<compile_context>
chip_gen: v5e
topology: v5e:2x2
jax: 0.10.0
libtpu: 0.0.40
codegen_flags: <defaults>
</compile_context>

<pallas_src>
import functools

import jax
import jax.numpy as jnp
from jax.experimental import pallas as pl
from jax.experimental.pallas import tpu as pltpu


# Encoder geometry for 16x16 inputs: (H, W, Cin_pad, Cout_pad) per block.
CIN_PAD = 8   # block-1 input channels zero-padded 3 -> 8 so K = W*Cin = 128
BLOCK_DIMS = (
    (16, 16, CIN_PAD, 32),   # K=128, merged N=512
    (8,  8,  32,      32),   # K=256, merged N=256
    (4,  4,  32,      64),   # K=128, merged N=256 (Cout zero-padded 32->64)
    (2,  2,  64,      128),  # K=128, merged N=256 (Cout zero-padded 32->128)
)
FEAT_DIM = 32     # real feature width; lanes 32..127 of the slab are zero
FEAT_PAD = 128
SUB = 8           # f32 sublane granularity for row-group alignment


def _round_up(n, m):
    return (n + m - 1) // m * m


# ---------------------------------------------------------------------------
# Fused encoder + matching-head kernel
# ---------------------------------------------------------------------------
def _matchnet_kernel(x_ref, k1, b1, k2, b2, k3, b3, k4, b4, o_ref,
                     pad2, pad3, pad4, *, lane_b, ns_pad, nq, inv_temp):
    """Whole MatchNet forward for one slab of lane_b images, VMEM resident."""
    B = lane_b

    def conv_block(src_ref, k_ref, b_ref, H, wh):
        # 3x3 'same' conv (BN scale folded in) as 3 row-tap matmuls on one
        # accumulator; the two output-column parities are merged along N so
        # the width 2x-maxpool is a max of the two 128-lane-aligned halves.
        rows = H * B
        acc = jnp.dot(src_ref[0:rows, :], k_ref[0],
                      preferred_element_type=jnp.float32)
        acc = acc + jnp.dot(src_ref[B:B + rows, :], k_ref[1],
                            preferred_element_type=jnp.float32)
        acc = acc + jnp.dot(src_ref[2 * B:2 * B + rows, :], k_ref[2],
                            preferred_element_type=jnp.float32)
        pooled_w = jnp.maximum(acc[:, :wh], acc[:, wh:])
        # bias (BN shift) + ReLU commute with the max-pools (per-channel bias).
        return jnp.maximum(pooled_w + b_ref[...], 0.0)

    def pool_h_store(y, H, dst_ref):
        # height 2x-maxpool: max of adjacent row blocks; the +B offset skips
        # the zero border row-block of the destination slab.
        for j in range(H // 2):
            r = jnp.maximum(y[(2 * j) * B:(2 * j + 1) * B, :],
                            y[(2 * j + 1) * B:(2 * j + 2) * B, :])
            dst_ref[(j + 1) * B:(j + 2) * B, :] = r

    # Zero the height-padding border rows of the intermediate scratch slabs
    # (single grid step, so this runs exactly once).
    for ref, (H, W, Cin, _) in ((pad2, BLOCK_DIMS[1]), (pad3, BLOCK_DIMS[2]),
                                (pad4, BLOCK_DIMS[3])):
        z = jnp.zeros((B, W * Cin), jnp.float32)
        ref[0:B, :] = z
        ref[(H + 1) * B:(H + 2) * B, :] = z

    # Blocks 1..3: conv + pool, activations stay resident in VMEM scratch.
    for src, dst, k, b, (H, W, _, Cout) in (
            (x_ref, pad2, k1, b1, BLOCK_DIMS[0]),
            (pad2, pad3, k2, b2, BLOCK_DIMS[1]),
            (pad3, pad4, k3, b3, BLOCK_DIMS[2])):
        wh = (W // 2) * Cout
        y = conv_block(src, k, b, H, wh)
        pool_h_store(y, H, dst)

    # Block 4 feeds straight into the matching head (no HBM round-trip).
    h4, w4, _, c4 = BLOCK_DIMS[3]
    wh4 = (w4 // 2) * c4                                   # == FEAT_PAD == 128
    y4 = conv_block(pad4, k4, b4, h4, wh4)                 # [2*B, 128]
    feats = jnp.maximum(y4[0:B, :], y4[B:2 * B, :])        # [B, 128] f32

    # Matching head:
    # logits[q, s] = (support[s] / max(||support[s]||, 1e-12)) . (query[q] / T)
    s = feats[0:ns_pad, :]
    inv_norm = jax.lax.rsqrt(jnp.maximum(
        jnp.sum(s * s, axis=1, keepdims=True), 1e-24))     # EUP rsqrt
    sn = s * inv_norm
    q = feats[ns_pad:ns_pad + nq, :] * inv_temp            # 1/T folded into query
    o_ref[...] = jax.lax.dot_general(
        q, sn, dimension_numbers=(((1,), (1,)), ((), ())),
        preferred_element_type=jnp.float32)                # [nq, ns_pad]


# ---------------------------------------------------------------------------
# Host-side weight / input preparation
# ---------------------------------------------------------------------------
def _build_block_weights(p, W, Cin_pad, Cout_pad):
    """Fold eval-BN into the conv and lay the 3x3 'same' conv out as three
    [W*Cin_pad, 2*(W//2)*Cout_pad] f32 matrices (one per row tap; even/odd
    output-column parities concatenated along N)."""
    scale = p["gamma"] / jnp.sqrt(p["var"] + 1e-5)                    # [cout]
    bias = p["beta"] - p["mean"] * scale                              # [cout]
    w = p["w"] * scale[None, None, None, :]                           # [3,3,cin,cout]
    cin, cout = w.shape[2], w.shape[3]
    w = jnp.pad(w, ((0, 0), (0, 0), (0, Cin_pad - cin), (0, Cout_pad - cout)))
    bias = jnp.pad(bias, (0, Cout_pad - cout))                        # zero pad bias
    Wo = W // 2
    w_in = jnp.arange(W)[:, None]                                     # [W, 1]
    wo = jnp.arange(Wo)[None, :]                                      # [1, Wo]
    taps = []
    for ky in range(3):
        halves = []
        for par in range(2):                                          # column parity
            kx = w_in - (2 * wo + par) + 1                            # tap per (w_in, wo)
            valid = (kx >= 0) & (kx <= 2)
            g = w[ky][jnp.clip(kx, 0, 2)]                             # [W, Wo, Cin, Cout]
            g = jnp.where(valid[:, :, None, None], g, 0.0)
            g = jnp.transpose(g, (0, 2, 1, 3))                        # [W, Cin, Wo, Cout]
            halves.append(g.reshape(W * Cin_pad, Wo * Cout_pad))
        taps.append(jnp.concatenate(halves, axis=1))                  # merged parities
    k = jnp.stack(taps, axis=0).astype(jnp.float32)                   # [3, K, 2*wh]
    b = jnp.tile(bias, Wo).reshape(1, Wo * Cout_pad).astype(jnp.float32)
    return k, b


def _prepare_images(support_images, query_images, ns_pad, B):
    """[N,C,H,W] f32 -> [(H+2)*B, W*CIN_PAD] f32 slab, rows = padded_h*B + image.
    Support occupies image rows [0, ns), query [ns_pad, ns_pad+nq); the rest is zero."""
    ns = support_images.shape[0]
    nq = query_images.shape[0]
    _, C, H, W = support_images.shape
    x = jnp.zeros((B, H, W, CIN_PAD), jnp.float32)
    x = x.at[0:ns, :, :, 0:C].set(jnp.transpose(support_images, (0, 2, 3, 1)))
    x = x.at[ns_pad:ns_pad + nq, :, :, 0:C].set(
        jnp.transpose(query_images, (0, 2, 3, 1)))
    x = x.reshape(B, H, W * CIN_PAD)
    x = jnp.transpose(x, (1, 0, 2))                                   # [H, B, W*Cp]
    x = jnp.pad(x, ((1, 1), (0, 0), (0, 0)))                          # zero height border
    return x.reshape((H + 2) * B, W * CIN_PAD)


# ---------------------------------------------------------------------------
# Forward
# ---------------------------------------------------------------------------
def matchnet_forward(params, support_images, query_images, *, shot, way, temperature):
    ns = support_images.shape[0]
    nq = query_images.shape[0]
    assert ns == shot * way
    ns_pad = _round_up(ns, SUB)                 # sublane-aligned support row group
    B = _round_up(ns_pad + nq, 16)              # images per (single) grid step

    x = _prepare_images(support_images, query_images, ns_pad, B)
    weight_args = []
    for p, (_, W, Cin, Cout) in zip(params["encoder"], BLOCK_DIMS):
        k, b = _build_block_weights(p, W, Cin, Cout)
        weight_args += [k, b]

    in_specs = [pl.BlockSpec(x.shape, lambda i: (0, 0))]
    for a in weight_args:
        in_specs.append(pl.BlockSpec(a.shape, lambda i, n=a.ndim: (0,) * n))

    scratch = [pltpu.VMEM(((H + 2) * B, W * Cin), jnp.float32)
               for (H, W, Cin, _) in BLOCK_DIMS[1:]]

    kernel = functools.partial(_matchnet_kernel, lane_b=B, ns_pad=ns_pad,
                               nq=nq, inv_temp=float(1.0 / temperature))

    logits = pl.pallas_call(
        kernel,
        out_shape=jax.ShapeDtypeStruct((nq, ns_pad), jnp.float32),
        grid=(1,),
        in_specs=in_specs,
        out_specs=pl.BlockSpec((nq, ns_pad), lambda i: (0, 0)),
        scratch_shapes=scratch,
        compiler_params=pltpu.CompilerParams(
            dimension_semantics=("arbitrary",),
            vmem_limit_bytes=32 * 1024 * 1024),
    )(x, *weight_args)

    # torch.bmm(refined_support [Nq,Ns,D], refined_query^T [Nq,D,1]) -> [Nq, Ns, 1]
    return logits[:, :ns, None]


# ---------------------------------------------------------------------------
# Deterministic parameter init (shapes implied by the ConvNet encoder)
# ---------------------------------------------------------------------------
def init_params(key, in_ch=3, hid=32, n_blocks=4):
    blocks = []
    cin = in_ch
    for _ in range(n_blocks):
        key, kw = jax.random.split(key)
        w = jax.random.normal(kw, (3, 3, cin, hid), jnp.float32) / jnp.sqrt(9.0 * cin)
        blocks.append(dict(
            w=w,
            gamma=jnp.ones((hid,), jnp.float32),
            beta=jnp.zeros((hid,), jnp.float32),
            mean=jnp.zeros((hid,), jnp.float32),
            var=jnp.ones((hid,), jnp.float32),
        ))
        cin = hid
    return {"encoder": blocks}


# ---------------------------------------------------------------------------
# Pure-JAX reference of the exact PyTorch forward (use_bilstm=False branch)
# ---------------------------------------------------------------------------
def _maxpool2(x_nhwc):
    N, H, W, C = x_nhwc.shape
    return x_nhwc.reshape(N, H // 2, 2, W // 2, 2, C).max(axis=(2, 4))


def reference_forward(params, support_images, query_images, *, shot, way, temperature):
    def ref_encoder(x_nchw):
        x = jnp.transpose(x_nchw, (0, 2, 3, 1))
        for p in params["encoder"]:
            scale = p["gamma"] / jnp.sqrt(p["var"] + 1e-5)
            bias = p["beta"] - p["mean"] * scale
            y = jax.lax.conv_general_dilated(
                x, p["w"], window_strides=(1, 1), padding="SAME",
                dimension_numbers=("NHWC", "HWIO", "NHWC"))
            x = _maxpool2(jnp.maximum(y * scale + bias, 0.0))
        return x.reshape(x.shape[0], -1)

    s = ref_encoder(support_images)
    q = ref_encoder(query_images)
    num_query = q.shape[0]
    support_extend = jnp.repeat(s[None, :, :], num_query, axis=0)
    query_extend = q[:, None, :]
    combined = jnp.concatenate([support_extend, query_extend], axis=1)
    refined_support = combined[:, :shot * way, :]
    refined_query = combined[:, shot * way:, :]
    rs_norm = refined_support / jnp.maximum(
        jnp.linalg.norm(refined_support, axis=2, keepdims=True), 1e-12)
    return jnp.einsum("bnd,bmd->bnm", rs_norm, refined_query) / temperature


# ---------------------------------------------------------------------------
if __name__ == "__main__":
    way, shot, query = 5, 1, 3
    num_support = way * shot      # 5
    num_query = way * query       # 15
    C, H, W = 3, 16, 16
    temperature = 16.0

    key = jax.random.PRNGKey(0)
    kp, ks, kq = jax.random.split(key, 3)
    params = init_params(kp, in_ch=C, hid=32, n_blocks=4)
    support_images = jax.random.normal(ks, (num_support, C, H, W), jnp.float32)
    query_images = jax.random.normal(kq, (num_query, C, H, W), jnp.float32)

    fwd = jax.jit(functools.partial(
        matchnet_forward, shot=shot, way=way, temperature=temperature))
    logits = fwd(params, support_images, query_images)
    jax.block_until_ready(logits)

    ref = reference_forward(params, support_images, query_images,
                            shot=shot, way=way, temperature=temperature)
    assert logits.shape == (num_query, shot * way, 1), logits.shape
    max_err = float(jnp.max(jnp.abs(logits - ref)))
    assert max_err < 5e-2, f"mismatch vs reference, max abs err = {max_err}"

    print("KERNEL_OK")
</pallas_src>

<mosaic_0001>
module attributes {stable_mosaic.version = 11 : i64} {
  func.func @_matchnet_kernel(%arg0: i32, %arg1: memref<576x128xf32, #tpu.memory_space<vmem>>, %arg2: memref<3x128x512xf32, #tpu.memory_space<vmem>>, %arg3: memref<1x256xf32, #tpu.memory_space<vmem>>, %arg4: memref<3x256x256xf32, #tpu.memory_space<vmem>>, %arg5: memref<1x128xf32, #tpu.memory_space<vmem>>, %arg6: memref<3x128x256xf32, #tpu.memory_space<vmem>>, %arg7: memref<1x128xf32, #tpu.memory_space<vmem>>, %arg8: memref<3x128x256xf32, #tpu.memory_space<vmem>>, %arg9: memref<1x128xf32, #tpu.memory_space<vmem>>, %arg10: memref<15x8xf32, #tpu.memory_space<vmem>>, %arg11: memref<320x256xf32, #tpu.memory_space<vmem>>, %arg12: memref<192x128xf32, #tpu.memory_space<vmem>>, %arg13: memref<128x128xf32, #tpu.memory_space<vmem>>) attributes {dimension_semantics = [#tpu.dimension_semantics<arbitrary>], iteration_bounds = array<i64: 1>, scalar_prefetch = 0 : i64, scratch_operands = 3 : i64, tpu.core_type = #tpu.core_type<tc>, window_params = [{pipeline_mode = #tpu.pipeline_mode<synchronous>, transform_indices = @transform_0, window_bounds = array<i64: 576, 128>}, {pipeline_mode = #tpu.pipeline_mode<synchronous>, transform_indices = @transform_1, window_bounds = array<i64: 3, 128, 512>}, {pipeline_mode = #tpu.pipeline_mode<synchronous>, transform_indices = @transform_2, window_bounds = array<i64: 1, 256>}, {pipeline_mode = #tpu.pipeline_mode<synchronous>, transform_indices = @transform_3, window_bounds = array<i64: 3, 256, 256>}, {pipeline_mode = #tpu.pipeline_mode<synchronous>, transform_indices = @transform_4, window_bounds = array<i64: 1, 128>}, {pipeline_mode = #tpu.pipeline_mode<synchronous>, transform_indices = @transform_5, window_bounds = array<i64: 3, 128, 256>}, {pipeline_mode = #tpu.pipeline_mode<synchronous>, transform_indices = @transform_6, window_bounds = array<i64: 1, 128>}, {pipeline_mode = #tpu.pipeline_mode<synchronous>, transform_indices = @transform_7, window_bounds = array<i64: 3, 128, 256>}, {pipeline_mode = #tpu.pipeline_mode<synchronous>, transform_indices = @transform_8, window_bounds = array<i64: 1, 128>}, {pipeline_mode = #tpu.pipeline_mode<synchronous>, transform_indices = @transform_9, window_bounds = array<i64: 15, 8>}]} {
    %cst = arith.constant 0.000000e+00 : f32
    %0 = vector.broadcast %cst : f32 to vector<32x256xf32>
    %c0 = arith.constant 0 : index
    %c0_0 = arith.constant 0 : index
    %1 = vector.load %arg11[%c0, %c0_0] : memref<320x256xf32, #tpu.memory_space<vmem>>, vector<32x256xf32>
    tpu.vector_store %arg11[%c0, %c0_0], %0 {strides = array<i32>} : memref<320x256xf32, #tpu.memory_space<vmem>>, vector<32x256xf32>,
    %c288 = arith.constant 288 : index
    %c0_1 = arith.constant 0 : index
    %2 = vector.load %arg11[%c288, %c0_1] : memref<320x256xf32, #tpu.memory_space<vmem>>, vector<32x256xf32>
    tpu.vector_store %arg11[%c288, %c0_1], %0 {strides = array<i32>} : memref<320x256xf32, #tpu.memory_space<vmem>>, vector<32x256xf32>,
    %cst_2 = arith.constant 0.000000e+00 : f32
    %3 = vector.broadcast %cst_2 : f32 to vector<32x128xf32>
    %c0_3 = arith.constant 0 : index
    %c0_4 = arith.constant 0 : index
    %4 = vector.load %arg12[%c0_3, %c0_4] : memref<192x128xf32, #tpu.memory_space<vmem>>, vector<32x128xf32>
    tpu.vector_store %arg12[%c0_3, %c0_4], %3 {strides = array<i32>} : memref<192x128xf32, #tpu.memory_space<vmem>>, vector<32x128xf32>,
    %c160 = arith.constant 160 : index
    %c0_5 = arith.constant 0 : index
    %5 = vector.load %arg12[%c160, %c0_5] : memref<192x128xf32, #tpu.memory_space<vmem>>, vector<32x128xf32>
    tpu.vector_store %arg12[%c160, %c0_5], %3 {strides = array<i32>} : memref<192x128xf32, #tpu.memory_space<vmem>>, vector<32x128xf32>,
    %cst_6 = arith.constant 0.000000e+00 : f32
    %6 = vector.broadcast %cst_6 : f32 to vector<32x128xf32>
    %c0_7 = arith.constant 0 : index
    %c0_8 = arith.constant 0 : index
    %7 = vector.load %arg13[%c0_7, %c0_8] : memref<128x128xf32, #tpu.memory_space<vmem>>, vector<32x128xf32>
    tpu.vector_store %arg13[%c0_7, %c0_8], %6 {strides = array<i32>} : memref<128x128xf32, #tpu.memory_space<vmem>>, vector<32x128xf32>,
    %c96 = arith.constant 96 : index
    %c0_9 = arith.constant 0 : index
    %8 = vector.load %arg13[%c96, %c0_9] : memref<128x128xf32, #tpu.memory_space<vmem>>, vector<32x128xf32>
    tpu.vector_store %arg13[%c96, %c0_9], %6 {strides = array<i32>} : memref<128x128xf32, #tpu.memory_space<vmem>>, vector<32x128xf32>,
    %c0_10 = arith.constant 0 : index
    %c0_11 = arith.constant 0 : index
    %9 = vector.load %arg1[%c0_10, %c0_11] : memref<576x128xf32, #tpu.memory_space<vmem>>, vector<512x128xf32>
    %c0_12 = arith.constant 0 : index
    %c0_13 = arith.constant 0 : index
    %c0_14 = arith.constant 0 : index
    %10 = vector.load %arg2[%c0_12, %c0_13, %c0_14] : memref<3x128x512xf32, #tpu.memory_space<vmem>>, vector<1x128x512xf32>
    %11 = vector.shape_cast %10 : vector<1x128x512xf32> to vector<128x512xf32>
    %cst_15 = arith.constant dense<0.000000e+00> : vector<512x512xf32>
    %12 = tpu.matmul %9, %11, %cst_15 {dimension_numbers = #tpu.dot_dimension_numbers<[1], [0], [0], [1], [0, 0, 1, 1], [], []>} : vector<512x128xf32>, vector<128x512xf32>, vector<512x512xf32> -> vector<512x512xf32>
    %c32 = arith.constant 32 : index
    %c0_16 = arith.constant 0 : index
    %13 = vector.load %arg1[%c32, %c0_16] : memref<576x128xf32, #tpu.memory_space<vmem>>, vector<512x128xf32>
    %c1 = arith.constant 1 : index
    %c0_17 = arith.constant 0 : index
    %c0_18 = arith.constant 0 : index
    %14 = vector.load %arg2[%c1, %c0_17, %c0_18] : memref<3x128x512xf32, #tpu.memory_space<vmem>>, vector<1x128x512xf32>
    %15 = vector.shape_cast %14 : vector<1x128x512xf32> to vector<128x512xf32>
    %cst_19 = arith.constant dense<0.000000e+00> : vector<512x512xf32>
    %16 = tpu.matmul %13, %15, %cst_19 {dimension_numbers = #tpu.dot_dimension_numbers<[1], [0], [0], [1], [0, 0, 1, 1], [], []>} : vector<512x128xf32>, vector<128x512xf32>, vector<512x512xf32> -> vector<512x512xf32>
    %17 = arith.addf %12, %16 : vector<512x512xf32>
    %c64 = arith.constant 64 : index
    %c0_20 = arith.constant 0 : index
    %18 = vector.load %arg1[%c64, %c0_20] : memref<576x128xf32, #tpu.memory_space<vmem>>, vector<512x128xf32>
    %c2 = arith.constant 2 : index
    %c0_21 = arith.constant 0 : index
    %c0_22 = arith.constant 0 : index
    %19 = vector.load %arg2[%c2, %c0_21, %c0_22] : memref<3x128x512xf32, #tpu.memory_space<vmem>>, vector<1x128x512xf32>
    %20 = vector.shape_cast %19 : vector<1x128x512xf32> to vector<128x512xf32>
    %cst_23 = arith.constant dense<0.000000e+00> : vector<512x512xf32>
    %21 = tpu.matmul %18, %20, %cst_23 {dimension_numbers = #tpu.dot_dimension_numbers<[1], [0], [0], [1], [0, 0, 1, 1], [], []>} : vector<512x128xf32>, vector<128x512xf32>, vector<512x512xf32> -> vector<512x512xf32>
    %22 = arith.addf %17, %21 : vector<512x512xf32>
    %23 = vector.extract_strided_slice %22 {offsets = [0, 0], sizes = [512, 256], strides = [1, 1]} : vector<512x512xf32> to vector<512x256xf32>
    %24 = vector.extract_strided_slice %22 {offsets = [0, 256], sizes = [512, 256], strides = [1, 1]} : vector<512x512xf32> to vector<512x256xf32>
    %25 = arith.maximumf %23, %24 : vector<512x256xf32>
    %c0_24 = arith.constant 0 : index
    %c0_25 = arith.constant 0 : index
    %26 = vector.load %arg3[%c0_24, %c0_25] : memref<1x256xf32, #tpu.memory_space<vmem>>, vector<1x256xf32>
    %27 = vector.broadcast %26 : vector<1x256xf32> to vector<512x256xf32>
    %28 = arith.addf %25, %27 : vector<512x256xf32>
    %cst_26 = arith.constant 0.000000e+00 : f32
    %29 = vector.broadcast %cst_26 : f32 to vector<512x256xf32>
    %30 = arith.maximumf %28, %29 : vector<512x256xf32>
    %31 = vector.extract_strided_slice %30 {offsets = [0, 0], sizes = [32, 256], strides = [1, 1]} : vector<512x256xf32> to vector<32x256xf32>
    %32 = vector.extract_strided_slice %30 {offsets = [32, 0], sizes = [32, 256], strides = [1, 1]} : vector<512x256xf32> to vector<32x256xf32>
    %33 = arith.maximumf %31, %32 : vector<32x256xf32>
    %c32_27 = arith.constant 32 : index
    %c0_28 = arith.constant 0 : index
    %34 = vector.load %arg11[%c32_27, %c0_28] : memref<320x256xf32, #tpu.memory_space<vmem>>, vector<32x256xf32>
    tpu.vector_store %arg11[%c32_27, %c0_28], %33 {strides = array<i32>} : memref<320x256xf32, #tpu.memory_space<vmem>>, vector<32x256xf32>,
    %35 = vector.extract_strided_slice %30 {offsets = [64, 0], sizes = [32, 256], strides = [1, 1]} : vector<512x256xf32> to vector<32x256xf32>
    %36 = vector.extract_strided_slice %30 {offsets = [96, 0], sizes = [32, 256], strides = [1, 1]} : vector<512x256xf32> to vector<32x256xf32>
    %37 = arith.maximumf %35, %36 : vector<32x256xf32>
    %c64_29 = arith.constant 64 : index
    %c0_30 = arith.constant 0 : index
    %38 = vector.load %arg11[%c64_29, %c0_30] : memref<320x256xf32, #tpu.memory_space<vmem>>, vector<32x256xf32>
    tpu.vector_store %arg11[%c64_29, %c0_30], %37 {strides = array<i32>} : memref<320x256xf32, #tpu.memory_space<vmem>>, vector<32x256xf32>,
    %39 = vector.extract_strided_slice %30 {offsets = [128, 0], sizes = [32, 256], strides = [1, 1]} : vector<512x256xf32> to vector<32x256xf32>
    %40 = vector.extract_strided_slice %30 {offsets = [160, 0], sizes = [32, 256], strides = [1, 1]} : vector<512x256xf32> to vector<32x256xf32>
    %41 = arith.maximumf %39, %40 : vector<32x256xf32>
    %c96_31 = arith.constant 96 : index
    %c0_32 = arith.constant 0 : index
    %42 = vector.load %arg11[%c96_31, %c0_32] : memref<320x256xf32, #tpu.memory_space<vmem>>, vector<32x256xf32>
    tpu.vector_store %arg11[%c96_31, %c0_32], %41 {strides = array<i32>} : memref<320x256xf32, #tpu.memory_space<vmem>>, vector<32x256xf32>,
    %43 = vector.extract_strided_slice %30 {offsets = [192, 0], sizes = [32, 256], strides = [1, 1]} : vector<512x256xf32> to vector<32x256xf32>
    %44 = vector.extract_strided_slice %30 {offsets = [224, 0], sizes = [32, 256], strides = [1, 1]} : vector<512x256xf32> to vector<32x256xf32>
    %45 = arith.maximumf %43, %44 : vector<32x256xf32>
    %c128 = arith.constant 128 : index
    %c0_33 = arith.constant 0 : index
    %46 = vector.load %arg11[%c128, %c0_33] : memref<320x256xf32, #tpu.memory_space<vmem>>, vector<32x256xf32>
    tpu.vector_store %arg11[%c128, %c0_33], %45 {strides = array<i32>} : memref<320x256xf32, #tpu.memory_space<vmem>>, vector<32x256xf32>,
    %47 = vector.extract_strided_slice %30 {offsets = [256, 0], sizes = [32, 256], strides = [1, 1]} : vector<512x256xf32> to vector<32x256xf32>
    %48 = vector.extract_strided_slice %30 {offsets = [288, 0], sizes = [32, 256], strides = [1, 1]} : vector<512x256xf32> to vector<32x256xf32>
    %49 = arith.maximumf %47, %48 : vector<32x256xf32>
    %c160_34 = arith.constant 160 : index
    %c0_35 = arith.constant 0 : index
    %50 = vector.load %arg11[%c160_34, %c0_35] : memref<320x256xf32, #tpu.memory_space<vmem>>, vector<32x256xf32>
    tpu.vector_store %arg11[%c160_34, %c0_35], %49 {strides = array<i32>} : memref<320x256xf32, #tpu.memory_space<vmem>>, vector<32x256xf32>,
    %51 = vector.extract_strided_slice %30 {offsets = [320, 0], sizes = [32, 256], strides = [1, 1]} : vector<512x256xf32> to vector<32x256xf32>
    %52 = vector.extract_strided_slice %30 {offsets = [352, 0], sizes = [32, 256], strides = [1, 1]} : vector<512x256xf32> to vector<32x256xf32>
    %53 = arith.maximumf %51, %52 : vector<32x256xf32>
    %c192 = arith.constant 192 : index
    %c0_36 = arith.constant 0 : index
    %54 = vector.load %arg11[%c192, %c0_36] : memref<320x256xf32, #tpu.memory_space<vmem>>, vector<32x256xf32>
    tpu.vector_store %arg11[%c192, %c0_36], %53 {strides = array<i32>} : memref<320x256xf32, #tpu.memory_space<vmem>>, vector<32x256xf32>,
    %55 = vector.extract_strided_slice %30 {offsets = [384, 0], sizes = [32, 256], strides = [1, 1]} : vector<512x256xf32> to vector<32x256xf32>
    %56 = vector.extract_strided_slice %30 {offsets = [416, 0], sizes = [32, 256], strides = [1, 1]} : vector<512x256xf32> to vector<32x256xf32>
    %57 = arith.maximumf %55, %56 : vector<32x256xf32>
    %c224 = arith.constant 224 : index
    %c0_37 = arith.constant 0 : index
    %58 = vector.load %arg11[%c224, %c0_37] : memref<320x256xf32, #tpu.memory_space<vmem>>, vector<32x256xf32>
    tpu.vector_store %arg11[%c224, %c0_37], %57 {strides = array<i32>} : memref<320x256xf32, #tpu.memory_space<vmem>>, vector<32x256xf32>,
    %59 = vector.extract_strided_slice %30 {offsets = [448, 0], sizes = [32, 256], strides = [1, 1]} : vector<512x256xf32> to vector<32x256xf32>
    %60 = vector.extract_strided_slice %30 {offsets = [480, 0], sizes = [32, 256], strides = [1, 1]} : vector<512x256xf32> to vector<32x256xf32>
    %61 = arith.maximumf %59, %60 : vector<32x256xf32>
    %c256 = arith.constant 256 : index
    %c0_38 = arith.constant 0 : index
    %62 = vector.load %arg11[%c256, %c0_38] : memref<320x256xf32, #tpu.memory_space<vmem>>, vector<32x256xf32>
    tpu.vector_store %arg11[%c256, %c0_38], %61 {strides = array<i32>} : memref<320x256xf32, #tpu.memory_space<vmem>>, vector<32x256xf32>,
    %c0_39 = arith.constant 0 : index
    %c0_40 = arith.constant 0 : index
    %63 = vector.load %arg11[%c0_39, %c0_40] : memref<320x256xf32, #tpu.memory_space<vmem>>, vector<256x256xf32>
    %c0_41 = arith.constant 0 : index
    %c0_42 = arith.constant 0 : index
    %c0_43 = arith.constant 0 : index
    %64 = vector.load %arg4[%c0_41, %c0_42, %c0_43] : memref<3x256x256xf32, #tpu.memory_space<vmem>>, vector<1x256x256xf32>
    %65 = vector.shape_cast %64 : vector<1x256x256xf32> to vector<256x256xf32>
    %cst_44 = arith.constant dense<0.000000e+00> : vector<256x256xf32>
    %66 = tpu.matmul %63, %65, %cst_44 {dimension_numbers = #tpu.dot_dimension_numbers<[1], [0], [0], [1], [0, 0, 1, 1], [], []>} : vector<256x256xf32>, vector<256x256xf32>, vector<256x256xf32> -> vector<256x256xf32>
    %c32_45 = arith.constant 32 : index
    %c0_46 = arith.constant 0 : index
    %67 = vector.load %arg11[%c32_45, %c0_46] : memref<320x256xf32, #tpu.memory_space<vmem>>, vector<256x256xf32>
    %c1_47 = arith.constant 1 : index
    %c0_48 = arith.constant 0 : index
    %c0_49 = arith.constant 0 : index
    %68 = vector.load %arg4[%c1_47, %c0_48, %c0_49] : memref<3x256x256xf32, #tpu.memory_space<vmem>>, vector<1x256x256xf32>
    %69 = vector.shape_cast %68 : vector<1x256x256xf32> to vector<256x256xf32>
    %cst_50 = arith.constant dense<0.000000e+00> : vector<256x256xf32>
    %70 = tpu.matmul %67, %69, %cst_50 {dimension_numbers = #tpu.dot_dimension_numbers<[1], [0], [0], [1], [0, 0, 1, 1], [], []>} : vector<256x256xf32>, vector<256x256xf32>, vector<256x256xf32> -> vector<256x256xf32>
    %71 = arith.addf %66, %70 : vector<256x256xf32>
    %c64_51 = arith.constant 64 : index
    %c0_52 = arith.constant 0 : index
    %72 = vector.load %arg11[%c64_51, %c0_52] : memref<320x256xf32, #tpu.memory_space<vmem>>, vector<256x256xf32>
    %c2_53 = arith.constant 2 : index
    %c0_54 = arith.constant 0 : index
    %c0_55 = arith.constant 0 : index
    %73 = vector.load %arg4[%c2_53, %c0_54, %c0_55] : memref<3x256x256xf32, #tpu.memory_space<vmem>>, vector<1x256x256xf32>
    %74 = vector.shape_cast %73 : vector<1x256x256xf32> to vector<256x256xf32>
    %cst_56 = arith.constant dense<0.000000e+00> : vector<256x256xf32>
    %75 = tpu.matmul %72, %74, %cst_56 {dimension_numbers = #tpu.dot_dimension_numbers<[1], [0], [0], [1], [0, 0, 1, 1], [], []>} : vector<256x256xf32>, vector<256x256xf32>, vector<256x256xf32> -> vector<256x256xf32>
    %76 = arith.addf %71, %75 : vector<256x256xf32>
    %77 = vector.extract_strided_slice %76 {offsets = [0, 0], sizes = [256, 128], strides = [1, 1]} : vector<256x256xf32> to vector<256x128xf32>
    %78 = vector.extract_strided_slice %76 {offsets = [0, 128], sizes = [256, 128], strides = [1, 1]} : vector<256x256xf32> to vector<256x128xf32>
    %79 = arith.maximumf %77, %78 : vector<256x128xf32>
    %c0_57 = arith.constant 0 : index
    %c0_58 = arith.constant 0 : index
    %80 = vector.load %arg5[%c0_57, %c0_58] : memref<1x128xf32, #tpu.memory_space<vmem>>, vector<1x128xf32>
    %81 = vector.broadcast %80 : vector<1x128xf32> to vector<256x128xf32>
    %82 = arith.addf %79, %81 : vector<256x128xf32>
    %cst_59 = arith.constant 0.000000e+00 : f32
    %83 = vector.broadcast %cst_59 : f32 to vector<256x128xf32>
    %84 = arith.maximumf %82, %83 : vector<256x128xf32>
    %85 = vector.extract_strided_slice %84 {offsets = [0, 0], sizes = [32, 128], strides = [1, 1]} : vector<256x128xf32> to vector<32x128xf32>
    %86 = vector.extract_strided_slice %84 {offsets = [32, 0], sizes = [32, 128], strides = [1, 1]} : vector<256x128xf32> to vector<32x128xf32>
    %87 = arith.maximumf %85, %86 : vector<32x128xf32>
    %c32_60 = arith.constant 32 : index
    %c0_61 = arith.constant 0 : index
    %88 = vector.load %arg12[%c32_60, %c0_61] : memref<192x128xf32, #tpu.memory_space<vmem>>, vector<32x128xf32>
    tpu.vector_store %arg12[%c32_60, %c0_61], %87 {strides = array<i32>} : memref<192x128xf32, #tpu.memory_space<vmem>>, vector<32x128xf32>,
    %89 = vector.extract_strided_slice %84 {offsets = [64, 0], sizes = [32, 128], strides = [1, 1]} : vector<256x128xf32> to vector<32x128xf32>
    %90 = vector.extract_strided_slice %84 {offsets = [96, 0], sizes = [32, 128], strides = [1, 1]} : vector<256x128xf32> to vector<32x128xf32>
    %91 = arith.maximumf %89, %90 : vector<32x128xf32>
    %c64_62 = arith.constant 64 : index
    %c0_63 = arith.constant 0 : index
    %92 = vector.load %arg12[%c64_62, %c0_63] : memref<192x128xf32, #tpu.memory_space<vmem>>, vector<32x128xf32>
    tpu.vector_store %arg12[%c64_62, %c0_63], %91 {strides = array<i32>} : memref<192x128xf32, #tpu.memory_space<vmem>>, vector<32x128xf32>,
    %93 = vector.extract_strided_slice %84 {offsets = [128, 0], sizes = [32, 128], strides = [1, 1]} : vector<256x128xf32> to vector<32x128xf32>
    %94 = vector.extract_strided_slice %84 {offsets = [160, 0], sizes = [32, 128], strides = [1, 1]} : vector<256x128xf32> to vector<32x128xf32>
    %95 = arith.maximumf %93, %94 : vector<32x128xf32>
    %c96_64 = arith.constant 96 : index
    %c0_65 = arith.constant 0 : index
    %96 = vector.load %arg12[%c96_64, %c0_65] : memref<192x128xf32, #tpu.memory_space<vmem>>, vector<32x128xf32>
    tpu.vector_store %arg12[%c96_64, %c0_65], %95 {strides = array<i32>} : memref<192x128xf32, #tpu.memory_space<vmem>>, vector<32x128xf32>,
    %97 = vector.extract_strided_slice %84 {offsets = [192, 0], sizes = [32, 128], strides = [1, 1]} : vector<256x128xf32> to vector<32x128xf32>
    %98 = vector.extract_strided_slice %84 {offsets = [224, 0], sizes = [32, 128], strides = [1, 1]} : vector<256x128xf32> to vector<32x128xf32>
    %99 = arith.maximumf %97, %98 : vector<32x128xf32>
    %c128_66 = arith.constant 128 : index
    %c0_67 = arith.constant 0 : index
    %100 = vector.load %arg12[%c128_66, %c0_67] : memref<192x128xf32, #tpu.memory_space<vmem>>, vector<32x128xf32>
    tpu.vector_store %arg12[%c128_66, %c0_67], %99 {strides = array<i32>} : memref<192x128xf32, #tpu.memory_space<vmem>>, vector<32x128xf32>,
    %c0_68 = arith.constant 0 : index
    %c0_69 = arith.constant 0 : index
    %101 = vector.load %arg12[%c0_68, %c0_69] : memref<192x128xf32, #tpu.memory_space<vmem>>, vector<128x128xf32>
    %c0_70 = arith.constant 0 : index
    %c0_71 = arith.constant 0 : index
    %c0_72 = arith.constant 0 : index
    %102 = vector.load %arg6[%c0_70, %c0_71, %c0_72] : memref<3x128x256xf32, #tpu.memory_space<vmem>>, vector<1x128x256xf32>
    %103 = vector.shape_cast %102 : vector<1x128x256xf32> to vector<128x256xf32>
    %cst_73 = arith.constant dense<0.000000e+00> : vector<128x256xf32>
    %104 = tpu.matmul %101, %103, %cst_73 {dimension_numbers = #tpu.dot_dimension_numbers<[1], [0], [0], [1], [0, 0, 1, 1], [], []>} : vector<128x128xf32>, vector<128x256xf32>, vector<128x256xf32> -> vector<128x256xf32>
    %c32_74 = arith.constant 32 : index
    %c0_75 = arith.constant 0 : index
    %105 = vector.load %arg12[%c32_74, %c0_75] : memref<192x128xf32, #tpu.memory_space<vmem>>, vector<128x128xf32>
    %c1_76 = arith.constant 1 : index
    %c0_77 = arith.constant 0 : index
    %c0_78 = arith.constant 0 : index
    %106 = vector.load %arg6[%c1_76, %c0_77, %c0_78] : memref<3x128x256xf32, #tpu.memory_space<vmem>>, vector<1x128x256xf32>
    %107 = vector.shape_cast %106 : vector<1x128x256xf32> to vector<128x256xf32>
    %cst_79 = arith.constant dense<0.000000e+00> : vector<128x256xf32>
    %108 = tpu.matmul %105, %107, %cst_79 {dimension_numbers = #tpu.dot_dimension_numbers<[1], [0], [0], [1], [0, 0, 1, 1], [], []>} : vector<128x128xf32>, vector<128x256xf32>, vector<128x256xf32> -> vector<128x256xf32>
    %109 = arith.addf %104, %108 : vector<128x256xf32>
    %c64_80 = arith.constant 64 : index
    %c0_81 = arith.constant 0 : index
    %110 = vector.load %arg12[%c64_80, %c0_81] : memref<192x128xf32, #tpu.memory_space<vmem>>, vector<128x128xf32>
    %c2_82 = arith.constant 2 : index
    %c0_83 = arith.constant 0 : index
    %c0_84 = arith.constant 0 : index
    %111 = vector.load %arg6[%c2_82, %c0_83, %c0_84] : memref<3x128x256xf32, #tpu.memory_space<vmem>>, vector<1x128x256xf32>
    %112 = vector.shape_cast %111 : vector<1x128x256xf32> to vector<128x256xf32>
    %cst_85 = arith.constant dense<0.000000e+00> : vector<128x256xf32>
    %113 = tpu.matmul %110, %112, %cst_85 {dimension_numbers = #tpu.dot_dimension_numbers<[1], [0], [0], [1], [0, 0, 1, 1], [], []>} : vector<128x128xf32>, vector<128x256xf32>, vector<128x256xf32> -> vector<128x256xf32>
    %114 = arith.addf %109, %113 : vector<128x256xf32>
    %115 = vector.extract_strided_slice %114 {offsets = [0, 0], sizes = [128, 128], strides = [1, 1]} : vector<128x256xf32> to vector<128x128xf32>
    %116 = vector.extract_strided_slice %114 {offsets = [0, 128], sizes = [128, 128], strides = [1, 1]} : vector<128x256xf32> to vector<128x128xf32>
    %117 = arith.maximumf %115, %116 : vector<128x128xf32>
    %c0_86 = arith.constant 0 : index
    %c0_87 = arith.constant 0 : index
    %118 = vector.load %arg7[%c0_86, %c0_87] : memref<1x128xf32, #tpu.memory_space<vmem>>, vector<1x128xf32>
    %119 = vector.broadcast %118 : vector<1x128xf32> to vector<128x128xf32>
    %120 = arith.addf %117, %119 : vector<128x128xf32>
    %cst_88 = arith.constant 0.000000e+00 : f32
    %121 = vector.broadcast %cst_88 : f32 to vector<128x128xf32>
    %122 = arith.maximumf %120, %121 : vector<128x128xf32>
    %123 = vector.extract_strided_slice %122 {offsets = [0, 0], sizes = [32, 128], strides = [1, 1]} : vector<128x128xf32> to vector<32x128xf32>
    %124 = vector.extract_strided_slice %122 {offsets = [32, 0], sizes = [32, 128], strides = [1, 1]} : vector<128x128xf32> to vector<32x128xf32>
    %125 = arith.maximumf %123, %124 : vector<32x128xf32>
    %c32_89 = arith.constant 32 : index
    %c0_90 = arith.constant 0 : index
    %126 = vector.load %arg13[%c32_89, %c0_90] : memref<128x128xf32, #tpu.memory_space<vmem>>, vector<32x128xf32>
    tpu.vector_store %arg13[%c32_89, %c0_90], %125 {strides = array<i32>} : memref<128x128xf32, #tpu.memory_space<vmem>>, vector<32x128xf32>,
    %127 = vector.extract_strided_slice %122 {offsets = [64, 0], sizes = [32, 128], strides = [1, 1]} : vector<128x128xf32> to vector<32x128xf32>
    %128 = vector.extract_strided_slice %122 {offsets = [96, 0], sizes = [32, 128], strides = [1, 1]} : vector<128x128xf32> to vector<32x128xf32>
    %129 = arith.maximumf %127, %128 : vector<32x128xf32>
    %c64_91 = arith.constant 64 : index
    %c0_92 = arith.constant 0 : index
    %130 = vector.load %arg13[%c64_91, %c0_92] : memref<128x128xf32, #tpu.memory_space<vmem>>, vector<32x128xf32>
    tpu.vector_store %arg13[%c64_91, %c0_92], %129 {strides = array<i32>} : memref<128x128xf32, #tpu.memory_space<vmem>>, vector<32x128xf32>,
    %c0_93 = arith.constant 0 : index
    %c0_94 = arith.constant 0 : index
    %131 = vector.load %arg13[%c0_93, %c0_94] : memref<128x128xf32, #tpu.memory_space<vmem>>, vector<64x128xf32>
    %c0_95 = arith.constant 0 : index
    %c0_96 = arith.constant 0 : index
    %c0_97 = arith.constant 0 : index
    %132 = vector.load %arg8[%c0_95, %c0_96, %c0_97] : memref<3x128x256xf32, #tpu.memory_space<vmem>>, vector<1x128x256xf32>
    %133 = vector.shape_cast %132 : vector<1x128x256xf32> to vector<128x256xf32>
    %cst_98 = arith.constant dense<0.000000e+00> : vector<64x256xf32>
    %134 = tpu.matmul %131, %133, %cst_98 {dimension_numbers = #tpu.dot_dimension_numbers<[1], [0], [0], [1], [0, 0, 1, 1], [], []>} : vector<64x128xf32>, vector<128x256xf32>, vector<64x256xf32> -> vector<64x256xf32>
    %c32_99 = arith.constant 32 : index
    %c0_100 = arith.constant 0 : index
    %135 = vector.load %arg13[%c32_99, %c0_100] : memref<128x128xf32, #tpu.memory_space<vmem>>, vector<64x128xf32>
    %c1_101 = arith.constant 1 : index
    %c0_102 = arith.constant 0 : index
    %c0_103 = arith.constant 0 : index
    %136 = vector.load %arg8[%c1_101, %c0_102, %c0_103] : memref<3x128x256xf32, #tpu.memory_space<vmem>>, vector<1x128x256xf32>
    %137 = vector.shape_cast %136 : vector<1x128x256xf32> to vector<128x256xf32>
    %cst_104 = arith.constant dense<0.000000e+00> : vector<64x256xf32>
    %138 = tpu.matmul %135, %137, %cst_104 {dimension_numbers = #tpu.dot_dimension_numbers<[1], [0], [0], [1], [0, 0, 1, 1], [], []>} : vector<64x128xf32>, vector<128x256xf32>, vector<64x256xf32> -> vector<64x256xf32>
    %139 = arith.addf %134, %138 : vector<64x256xf32>
    %c64_105 = arith.constant 64 : index
    %c0_106 = arith.constant 0 : index
    %140 = vector.load %arg13[%c64_105, %c0_106] : memref<128x128xf32, #tpu.memory_space<vmem>>, vector<64x128xf32>
    %c2_107 = arith.constant 2 : index
    %c0_108 = arith.constant 0 : index
    %c0_109 = arith.constant 0 : index
    %141 = vector.load %arg8[%c2_107, %c0_108, %c0_109] : memref<3x128x256xf32, #tpu.memory_space<vmem>>, vector<1x128x256xf32>
    %142 = vector.shape_cast %141 : vector<1x128x256xf32> to vector<128x256xf32>
    %cst_110 = arith.constant dense<0.000000e+00> : vector<64x256xf32>
    %143 = tpu.matmul %140, %142, %cst_110 {dimension_numbers = #tpu.dot_dimension_numbers<[1], [0], [0], [1], [0, 0, 1, 1], [], []>} : vector<64x128xf32>, vector<128x256xf32>, vector<64x256xf32> -> vector<64x256xf32>
    %144 = arith.addf %139, %143 : vector<64x256xf32>
    %145 = vector.extract_strided_slice %144 {offsets = [0, 0], sizes = [64, 128], strides = [1, 1]} : vector<64x256xf32> to vector<64x128xf32>
    %146 = vector.extract_strided_slice %144 {offsets = [0, 128], sizes = [64, 128], strides = [1, 1]} : vector<64x256xf32> to vector<64x128xf32>
    %147 = arith.maximumf %145, %146 : vector<64x128xf32>
    %c0_111 = arith.constant 0 : index
    %c0_112 = arith.constant 0 : index
    %148 = vector.load %arg9[%c0_111, %c0_112] : memref<1x128xf32, #tpu.memory_space<vmem>>, vector<1x128xf32>
    %149 = vector.broadcast %148 : vector<1x128xf32> to vector<64x128xf32>
    %150 = arith.addf %147, %149 : vector<64x128xf32>
    %cst_113 = arith.constant 0.000000e+00 : f32
    %151 = vector.broadcast %cst_113 : f32 to vector<64x128xf32>
    %152 = arith.maximumf %150, %151 : vector<64x128xf32>
    %153 = vector.extract_strided_slice %152 {offsets = [0, 0], sizes = [32, 128], strides = [1, 1]} : vector<64x128xf32> to vector<32x128xf32>
    %154 = vector.extract_strided_slice %152 {offsets = [32, 0], sizes = [32, 128], strides = [1, 1]} : vector<64x128xf32> to vector<32x128xf32>
    %155 = arith.maximumf %153, %154 : vector<32x128xf32>
    %156 = vector.extract_strided_slice %155 {offsets = [0, 0], sizes = [8, 128], strides = [1, 1]} : vector<32x128xf32> to vector<8x128xf32>
    %157 = arith.mulf %156, %156 : vector<8x128xf32>
    %cst_114 = arith.constant dense<0.000000e+00> : vector<8xf32>
    %158 = vector.multi_reduction <add>, %157, %cst_114 [1] : vector<8x128xf32> to vector<8xf32>
    %159 = vector.shape_cast %158 : vector<8xf32> to vector<8x1xf32>
    %cst_115 = arith.constant 1.000000e-24 : f32
    %160 = vector.broadcast %cst_115 : f32 to vector<8x1xf32>
    %161 = arith.maximumf %159, %160 : vector<8x1xf32>
    %162 = math.rsqrt %161 : vector<8x1xf32>
    %163 = vector.broadcast %162 : vector<8x1xf32> to vector<8x128xf32>
    %164 = arith.mulf %156, %163 : vector<8x128xf32>
    %165 = vector.extract_strided_slice %155 {offsets = [8, 0], sizes = [15, 128], strides = [1, 1]} : vector<32x128xf32> to vector<15x128xf32>
    %cst_116 = arith.constant 6.250000e-02 : f32
    %166 = vector.broadcast %cst_116 : f32 to vector<15x128xf32>
    %167 = arith.mulf %165, %166 : vector<15x128xf32>
    %cst_117 = arith.constant dense<0.000000e+00> : vector<15x8xf32>
    %168 = tpu.matmul %167, %164, %cst_117 {dimension_numbers = #tpu.dot_dimension_numbers<[1], [1], [0], [0], [0, 0, 1, 0], [], []>} : vector<15x128xf32>, vector<8x128xf32>, vector<15x8xf32> -> vector<15x8xf32>
    %c0_118 = arith.constant 0 : index
    %c0_119 = arith.constant 0 : index
    %169 = vector.load %arg10[%c0_118, %c0_119] : memref<15x8xf32, #tpu.memory_space<vmem>>, vector<15x8xf32>
    tpu.vector_store %arg10[%c0_118, %c0_119], %168 {strides = array<i32>} : memref<15x8xf32, #tpu.memory_space<vmem>>, vector<15x8xf32>,
    return
  }
  func.func @transform_0(%arg0: i32) -> (i32, i32) {
    %c0_i32 = arith.constant 0 : i32
    %c0_i32_0 = arith.constant 0 : i32
    %c0_i32_1 = arith.constant 0 : i32
    return %c0_i32, %c0_i32_0 : i32, i32
  }
  func.func @transform_1(%arg0: i32) -> (i32, i32, i32) {
    %c0_i32 = arith.constant 0 : i32
    %c0_i32_0 = arith.constant 0 : i32
    %c0_i32_1 = arith.constant 0 : i32
    %c0_i32_2 = arith.constant 0 : i32
    return %c0_i32, %c0_i32_0, %c0_i32_1 : i32, i32, i32
  }
  func.func @transform_2(%arg0: i32) -> (i32, i32) {
    %c0_i32 = arith.constant 0 : i32
    %c0_i32_0 = arith.constant 0 : i32
    %c0_i32_1 = arith.constant 0 : i32
    return %c0_i32, %c0_i32_0 : i32, i32
  }
  func.func @transform_3(%arg0: i32) -> (i32, i32, i32) {
    %c0_i32 = arith.constant 0 : i32
    %c0_i32_0 = arith.constant 0 : i32
    %c0_i32_1 = arith.constant 0 : i32
    %c0_i32_2 = arith.constant 0 : i32
    return %c0_i32, %c0_i32_0, %c0_i32_1 : i32, i32, i32
  }
  func.func @transform_4(%arg0: i32) -> (i32, i32) {
    %c0_i32 = arith.constant 0 : i32
    %c0_i32_0 = arith.constant 0 : i32
    %c0_i32_1 = arith.constant 0 : i32
    return %c0_i32, %c0_i32_0 : i32, i32
  }
  func.func @transform_5(%arg0: i32) -> (i32, i32, i32) {
    %c0_i32 = arith.constant 0 : i32
    %c0_i32_0 = arith.constant 0 : i32
    %c0_i32_1 = arith.constant 0 : i32
    %c0_i32_2 = arith.constant 0 : i32
    return %c0_i32, %c0_i32_0, %c0_i32_1 : i32, i32, i32
  }
  func.func @transform_6(%arg0: i32) -> (i32, i32) {
    %c0_i32 = arith.constant 0 : i32
    %c0_i32_0 = arith.constant 0 : i32
    %c0_i32_1 = arith.constant 0 : i32
    return %c0_i32, %c0_i32_0 : i32, i32
  }
  func.func @transform_7(%arg0: i32) -> (i32, i32, i32) {
    %c0_i32 = arith.constant 0 : i32
    %c0_i32_0 = arith.constant 0 : i32
    %c0_i32_1 = arith.constant 0 : i32
    %c0_i32_2 = arith.constant 0 : i32
    return %c0_i32, %c0_i32_0, %c0_i32_1 : i32, i32, i32
  }
  func.func @transform_8(%arg0: i32) -> (i32, i32) {
    %c0_i32 = arith.constant 0 : i32
    %c0_i32_0 = arith.constant 0 : i32
    %c0_i32_1 = arith.constant 0 : i32
    return %c0_i32, %c0_i32_0 : i32, i32
  }
  func.func @transform_9(%arg0: i32) -> (i32, i32) {
    %c0_i32 = arith.constant 0 : i32
    %c0_i32_0 = arith.constant 0 : i32
    %c0_i32_1 = arith.constant 0 : i32
    return %c0_i32, %c0_i32_0 : i32, i32
  }
}

</mosaic_0001>

<bundles_post_ra>
// kernel: tile.19
= control target key start
LH: loop header
LB: loop body
LE: loop exit
PB: predicated region body
PF: predicated region fallthrough
CT: control target
= control target key end

     0   :  { %s22_s0 = inlined_call_operand.vmem [shape: f32[32], index: 0, kind: input, shape index: {}]   ;;  %s23_s1 = inlined_call_operand.vmem [shape: f32[8,32], index: 1, kind: output, shape index: {}]  }
   0x1   :  { %v4_v0 = vld [vmem:[%s22_s0] ss:$0 sm:$0xff] }
   0x2   :  { %5 = vst [vmem:[%s23_s1] sm:$0xff] %v4_v0 }

// kernel: tile.20
= control target key start
LH: loop header
LB: loop body
LE: loop exit
PB: predicated region body
PF: predicated region fallthrough
CT: control target
= control target key end

     0   :  { %s7_s6 = smov 3  ;;  %s46_s9 = smov 96   ;;  %vm4_vm0 = vcmask 261120   ;;  %vm11_vm1 = vcmask 1048320   ;;  %vm18_vm2 = vcmask 785920   ;;  %vm25_vm3 = vcmask 523520   ;;  %s77_s0 = inlined_call_operand.vmem [shape: f32[8,32], index: 0, kind: input, shape index: {}]   ;;  %s78_s1 = inlined_call_operand.vmem [shape: f32[1,256], index: 1, kind: output, shape index: {}]  }
   0x1   :  { %v39_v0 = vld [vmem:[%s77_s0 + $0x3] ss:$4 sm:%s7_s6]   ;;  %s21_s10 = smov 3  ;;  %s14_s13 = smov 3 }
   0x2   :  { %9 = vrot.lane.b32.xlu0 %v39_v0, %s46_s9  ;;  %v41_v1 = vld [vmem:[%s77_s0 + $0x1] ss:$4 sm:%s21_s10]   ;;  %s47_s14 = smov 32   ;;  %s48_s17 = smov 64  }
   0x3   :  { %23 = vrot.lane.b32.xlu1 %v41_v1, %s47_s14  ;;  %v40_v2 = vld [vmem:[%s77_s0 + $0x2] ss:$4 sm:%s14_s13]   ;;  %s2_s18 = smov 3 }
   0x4   :  { %v3_v3 = vld [vmem:[%s77_s0] ss:$4 sm:%s2_s18]  }
   0x5   :  { %5 = vst.msk [vmem:[#allocation0] ss:$8 sm:$0x3] %vm4_vm0, %v3_v3  }
   0xa   :  { %16 = vrot.lane.b32.xlu0 %v40_v2, %s48_s17 }
  0x74   :  { %v10_v4 = vpop.permute.xlu0 %9  }
  0x75   :  { %12 = vst.msk [vmem:[#allocation0] ss:$8 sm:$0x3] %vm11_vm1, %v10_v4   ;;  %v24_v5 = vpop.permute.xlu1 %23  }
  0x7c   :  { %v17_v6 = vpop.permute.xlu0 %16  }
  0x7d   :  { %19 = vst.msk [vmem:[#allocation0] ss:$8 sm:$0x3] %vm18_vm2, %v17_v6  }
  0x7e   :  { %26 = vst.msk [vmem:[#allocation0] ss:$8 sm:$0x3] %vm25_vm3, %v24_v5  }
  0x85   :  { %v29_v7 = vld [vmem:[#allocation0] sm:$0x1]  ;;  %v34_v8 = vld [vmem:[#allocation0 + $0x8] sm:$0x1] }
  0x86   :  { %32 = vst [vmem:[%s78_s1] sm:$0x1] %v29_v7 }
  0x87   :  { %42 = vst [vmem:[%s78_s1 + $0x1] sm:$0x1] %v34_v8 }

// kernel: tile.24
= control target key start
LH: loop header
LB: loop body
LE: loop exit
PB: predicated region body
PF: predicated region fallthrough
CT: control target
= control target key end

     0   :  { %s22_s0 = inlined_call_operand.vmem [shape: f32[32], index: 0, kind: input, shape index: {}]   ;;  %s23_s1 = inlined_call_operand.vmem [shape: f32[4,32], index: 1, kind: output, shape index: {}]  }
   0x1   :  { %v4_v0 = vld [vmem:[%s22_s0] ss:$0 sm:$0xff] }
   0x2   :  { %5 = vst [vmem:[%s23_s1] sm:$0xf] %v4_v0 }

// kernel: tile.25
= control target key start
LH: loop header
LB: loop body
LE: loop exit
PB: predicated region body
PF: predicated region fallthrough
CT: control target
= control target key end

     0   :  { %s37_s8 = smov 32   ;;  %s38_s9 = smov 64   ;;  %vm7_vm0 = vcmask 261120   ;;  %vm13_vm1 = vcmask 1048320   ;;  %vm19_vm2 = vcmask 785920   ;;  %vm25_vm3 = vcmask 523520   ;;  %s55_s0 = inlined_call_operand.vmem [shape: f32[4,32], index: 0, kind: input, shape index: {}]   ;;  %s56_s1 = inlined_call_operand.vmem [shape: f32[1,128], index: 1, kind: output, shape index: {}]  }
   0x1   :  { %v4_v0 = vld [vmem:[%s55_s0] sm:$0xf]  ;;  %s36_s0 = smov 96  }
   0x2   :  { %5 = vst [vmem:[#allocation1] sm:$0xf] %v4_v0 }
   0x9   :  { %v10_v1 = vld [vmem:[#allocation1 + $0x3] sm:$0x1]   ;;  %v22_v2 = vld [vmem:[#allocation1 + $0x1] sm:$0x1]   ;;  %v16_v3 = vld [vmem:[#allocation1 + $0x2] sm:$0x1]  }
   0xa   :  { %11 = vrot.lane.b32.xlu0 %v10_v1, %s36_s0  ;;  %23 = vrot.lane.b32.xlu1 %v22_v2, %s37_s8  ;;  %v6_v4 = vld [vmem:[#allocation1] sm:$0x1]  }
   0xb   :  { %8 = vst.msk [vmem:[#allocation0] sm:$0x1] %vm7_vm0, %v6_v4  }
  0x12   :  { %17 = vrot.lane.b32.xlu0 %v16_v3, %s38_s9 }
  0x7c   :  { %v12_v5 = vpop.permute.xlu0 %11   ;;  %v24_v6 = vpop.permute.xlu1 %23  }
  0x7d   :  { %14 = vst.msk [vmem:[#allocation0] sm:$0x1] %vm13_vm1, %v12_v5  }
  0x84   :  { %v18_v7 = vpop.permute.xlu0 %17  }
  0x85   :  { %20 = vst.msk [vmem:[#allocation0] sm:$0x1] %vm19_vm2, %v18_v7  }
  0x86   :  { %26 = vst.msk [vmem:[#allocation0] sm:$0x1] %vm25_vm3, %v24_v6  }
  0x8d   :  { %v29_v8 = vld [vmem:[#allocation0] sm:$0x1] }
  0x8e   :  { %32 = vst [vmem:[%s56_s1] sm:$0x1] %v29_v8 }

// kernel: tile.29
= control target key start
LH: loop header
LB: loop body
LE: loop exit
PB: predicated region body
PF: predicated region fallthrough
CT: control target
= control target key end

     0   :  { %s22_s0 = inlined_call_operand.vmem [shape: f32[64], index: 0, kind: input, shape index: {}]   ;;  %s23_s1 = inlined_call_operand.vmem [shape: f32[2,64], index: 1, kind: output, shape index: {}]  }
   0x1   :  { %v4_v0 = vld [vmem:[%s22_s0] ss:$0 sm:$0xff] }
   0x2   :  { %5 = vst [vmem:[%s23_s1] sm:$0x3] %v4_v0 }

// kernel: tile.30
= control target key start
LH: loop header
LB: loop body
LE: loop exit
PB: predicated region body
PF: predicated region fallthrough
CT: control target
= control target key end

     0   :  { %vm7_vm0 = vcmask 523264   ;;  %vm13_vm1 = vcmask 1048064   ;;  %s39_s0 = inlined_call_operand.vmem [shape: f32[2,64], index: 0, kind: input, shape index: {}]   ;;  %s40_s1 = inlined_call_operand.vmem [shape: f32[1,128], index: 1, kind: output, shape index: {}]  }
   0x1   :  { %v4_v0 = vld [vmem:[%s39_s0] sm:$0x3]  ;;  %s22_s0 = smov 64  }
   0x2   :  { %5 = vst [vmem:[#allocation1] sm:$0x3] %v4_v0 }
   0x9   :  { %v10_v1 = vld [vmem:[#allocation1 + $0x1] sm:$0x1]   ;;  %v6_v2 = vld [vmem:[#allocation1] sm:$0x1]  }
   0xa   :  { %11 = vrot.lane.b32.xlu0 %v10_v1, %s22_s0  ;;  %8 = vst.msk [vmem:[#allocation0] sm:$0x1] %vm7_vm0, %v6_v2  }
  0x7c   :  { %v12_v3 = vpop.permute.xlu0 %11  }
  0x7d   :  { %14 = vst.msk [vmem:[#allocation0] sm:$0x1] %vm13_vm1, %v12_v3  }
  0x84   :  { %v17_v4 = vld [vmem:[#allocation0] sm:$0x1] }
  0x85   :  { %20 = vst [vmem:[%s40_s1] sm:$0x1] %v17_v4 }

// kernel: matchnet_forward.1
= control target key start
LH: loop header
LB: loop body
LE: loop exit
PB: predicated region body
PF: predicated region fallthrough
CT: control target
= control target key end

     0   :  { %vm6607_vm3 = vcmask 64512   ;;  %vm6609_vm4 = vcmask 63488   ;;  %s13282_s1 = inlined_call_operand.vmem [shape: f32[3,128,512], index: 1, kind: input, shape index: {}]   ;;  %s13283_s0 = inlined_call_operand.vmem [shape: f32[576,128], index: 0, kind: input, shape index: {}]   ;;  %s13284_s3 = inlined_call_operand.vmem [shape: f32[3,256,256], index: 3, kind: input, shape index: {}]   ;;  %s13285_s2 = inlined_call_operand.vmem [shape: f32[1,256], index: 2, kind: input, shape index: {}]   ;;  %s13286_s4 = inlined_call_operand.vmem [shape: f32[1,128], index: 4, kind: input, shape index: {}]   ;;  %s13287_s5 = inlined_call_operand.vmem [shape: f32[3,128,256], index: 5, kind: input, shape index: {}]   ;;  %s13288_s6 = inlined_call_operand.vmem [shape: f32[1,128], index: 6, kind: input, shape index: {}]   ;;  %s13289_s7 = inlined_call_operand.vmem [shape: f32[3,128,256], index: 7, kind: input, shape index: {}]   ;;  %s13290_s8 = inlined_call_operand.vmem [shape: f32[1,128], index: 8, kind: input, shape index: {}]   ;;  %s13291_s9 = inlined_call_operand.vmem [shape: f32[15,8], index: 9, kind: output, shape index: {}]  }
   0x1   :  { %v6675_v0 = vld [vmem:[%s13282_s1 + $0x3e0] sm:$0xff]  ;;  %v6676_v1 = vld [vmem:[%s13282_s1 + $0x3e8] sm:$0xff]  ;;  %v6677_v2 = vld [vmem:[%s13282_s1 + $0x3f0] sm:$0xff] }
   0x2   :  { %261 = vmatpush.msra.mxu0 %v6675_v0  ;;  %470 = vmatpush.msra.mxu1 %v6676_v1  ;;  %v6678_v3 = vld [vmem:[%s13282_s1 + $0x3f8] sm:$0xff]  ;;  %v6671_v4 = vld [vmem:[%s13282_s1 + $0x3c0] sm:$0xff]  ;;  %v6672_v5 = vld [vmem:[%s13282_s1 + $0x3c8] sm:$0xff] }
   0x3   :  { %679 = vmatpush.msra.mxu2 %v6677_v2  ;;  %888 = vmatpush.msra.mxu3 %v6678_v3  ;;  %v6673_v6 = vld [vmem:[%s13282_s1 + $0x3d0] sm:$0xff]  ;;  %v6674_v7 = vld [vmem:[%s13282_s1 + $0x3d8] sm:$0xff]  ;;  %v6667_v8 = vld [vmem:[%s13282_s1 + $0x3a0] sm:$0xff] }
   0x4   :  { %262 = vmatpush.msra.mxu0 %v6671_v4  ;;  %471 = vmatpush.msra.mxu1 %v6672_v5  ;;  %v6668_v9 = vld [vmem:[%s13282_s1 + $0x3a8] sm:$0xff]  ;;  %v6669_v10 = vld [vmem:[%s13282_s1 + $0x3b0] sm:$0xff]  ;;  %v6670_v11 = vld [vmem:[%s13282_s1 + $0x3b8] sm:$0xff] }
   0x5   :  { %680 = vmatpush.msra.mxu2 %v6673_v6  ;;  %889 = vmatpush.msra.mxu3 %v6674_v7  ;;  %v6663_v12 = vld [vmem:[%s13282_s1 + $0x380] sm:$0xff]  ;;  %v6664_v13 = vld [vmem:[%s13282_s1 + $0x388] sm:$0xff]  ;;  %v6665_v14 = vld [vmem:[%s13282_s1 + $0x390] sm:$0xff] }
   0x6   :  { %263 = vmatpush.msra.mxu0 %v6667_v8  ;;  %472 = vmatpush.msra.mxu1 %v6668_v9  ;;  %v6666_v15 = vld [vmem:[%s13282_s1 + $0x398] sm:$0xff]  ;;  %v6659_v16 = vld [vmem:[%s13282_s1 + $0x360] sm:$0xff]  ;;  %v6660_v17 = vld [vmem:[%s13282_s1 + $0x368] sm:$0xff] }
   0x7   :  { %681 = vmatpush.msra.mxu2 %v6669_v10  ;;  %890 = vmatpush.msra.mxu3 %v6670_v11  ;;  %v6661_v18 = vld [vmem:[%s13282_s1 + $0x370] sm:$0xff]  ;;  %v6662_v19 = vld [vmem:[%s13282_s1 + $0x378] sm:$0xff]  ;;  %v6655_v20 = vld [vmem:[%s13282_s1 + $0x340] sm:$0xff] }
   0x8   :  { %264 = vmatpush.msra.mxu0 %v6663_v12  ;;  %473 = vmatpush.msra.mxu1 %v6664_v13  ;;  %v6656_v21 = vld [vmem:[%s13282_s1 + $0x348] sm:$0xff]  ;;  %v6657_v22 = vld [vmem:[%s13282_s1 + $0x350] sm:$0xff]  ;;  %v6658_v23 = vld [vmem:[%s13282_s1 + $0x358] sm:$0xff] }
   0x9   :  { %682 = vmatpush.msra.mxu2 %v6665_v14  ;;  %891 = vmatpush.msra.mxu3 %v6666_v15  ;;  %v6651_v24 = vld [vmem:[%s13282_s1 + $0x320] sm:$0xff]  ;;  %v6652_v25 = vld [vmem:[%s13282_s1 + $0x328] sm:$0xff]  ;;  %v6653_v26 = vld [vmem:[%s13282_s1 + $0x330] sm:$0xff] }
   0xa   :  { %265 = vmatpush.msra.mxu0 %v6659_v16  ;;  %474 = vmatpush.msra.mxu1 %v6660_v17  ;;  %v6654_v27 = vld [vmem:[%s13282_s1 + $0x338] sm:$0xff]  ;;  %v6647_v28 = vld [vmem:[%s13282_s1 + $0x300] sm:$0xff]  ;;  %v6648_v29 = vld [vmem:[%s13282_s1 + $0x308] sm:$0xff] }
   0xb   :  { %683 = vmatpush.msra.mxu2 %v6661_v18  ;;  %892 = vmatpush.msra.mxu3 %v6662_v19  ;;  %v6649_v30 = vld [vmem:[%s13282_s1 + $0x310] sm:$0xff]  ;;  %v6650_v31 = vld [vmem:[%s13282_s1 + $0x318] sm:$0xff]  ;;  %v6643_v32 = vld [vmem:[%s13282_s1 + $0x2e0] sm:$0xff] }
   0xc   :  { %266 = vmatpush.msra.mxu0 %v6655_v20  ;;  %475 = vmatpush.msra.mxu1 %v6656_v21  ;;  %v6644_v33 = vld [vmem:[%s13282_s1 + $0x2e8] sm:$0xff]  ;;  %v6645_v34 = vld [vmem:[%s13282_s1 + $0x2f0] sm:$0xff]  ;;  %v6646_v35 = vld [vmem:[%s13282_s1 + $0x2f8] sm:$0xff] }
   0xd   :  { %684 = vmatpush.msra.mxu2 %v6657_v22  ;;  %893 = vmatpush.msra.mxu3 %v6658_v23  ;;  %v6639_v36 = vld [vmem:[%s13282_s1 + $0x2c0] sm:$0xff]  ;;  %v6640_v37 = vld [vmem:[%s13282_s1 + $0x2c8] sm:$0xff]  ;;  %v6641_v38 = vld [vmem:[%s13282_s1 + $0x2d0] sm:$0xff] }
   0xe   :  { %267 = vmatpush.msra.mxu0 %v6651_v24  ;;  %476 = vmatpush.msra.mxu1 %v6652_v25  ;;  %v6642_v39 = vld [vmem:[%s13282_s1 + $0x2d8] sm:$0xff]  ;;  %v6635_v40 = vld [vmem:[%s13282_s1 + $0x2a0] sm:$0xff]  ;;  %v6636_v41 = vld [vmem:[%s13282_s1 + $0x2a8] sm:$0xff] }
   0xf   :  { %685 = vmatpush.msra.mxu2 %v6653_v26  ;;  %894 = vmatpush.msra.mxu3 %v6654_v27  ;;  %v6637_v42 = vld [vmem:[%s13282_s1 + $0x2b0] sm:$0xff]  ;;  %v6638_v43 = vld [vmem:[%s13282_s1 + $0x2b8] sm:$0xff]  ;;  %v6631_v44 = vld [vmem:[%s13282_s1 + $0x280] sm:$0xff] }
  0x10   :  { %268 = vmatpush.msra.mxu0 %v6647_v28  ;;  %477 = vmatpush.msra.mxu1 %v6648_v29  ;;  %v6632_v45 = vld [vmem:[%s13282_s1 + $0x288] sm:$0xff]  ;;  %v6633_v46 = vld [vmem:[%s13282_s1 + $0x290] sm:$0xff]  ;;  %v6634_v47 = vld [vmem:[%s13282_s1 + $0x298] sm:$0xff] }
  0x11   :  { %686 = vmatpush.msra.mxu2 %v6649_v30  ;;  %895 = vmatpush.msra.mxu3 %v6650_v31  ;;  %v6627_v48 = vld [vmem:[%s13282_s1 + $0x260] sm:$0xff]  ;;  %v6628_v49 = vld [vmem:[%s13282_s1 + $0x268] sm:$0xff]  ;;  %v6629_v50 = vld [vmem:[%s13282_s1 + $0x270] sm:$0xff] }
  0x12   :  { %269 = vmatpush.msra.mxu0 %v6643_v32  ;;  %478 = vmatpush.msra.mxu1 %v6644_v33  ;;  %v6630_v51 = vld [vmem:[%s13282_s1 + $0x278] sm:$0xff]  ;;  %v6623_v52 = vld [vmem:[%s13282_s1 + $0x240] sm:$0xff]  ;;  %v6624_v53 = vld [vmem:[%s13282_s1 + $0x248] sm:$0xff] }
  0x13   :  { %687 = vmatpush.msra.mxu2 %v6645_v34  ;;  %896 = vmatpush.msra.mxu3 %v6646_v35  ;;  %v6625_v54 = vld [vmem:[%s13282_s1 + $0x250] sm:$0xff]  ;;  %v6626_v55 = vld [vmem:[%s13282_s1 + $0x258] sm:$0xff]  ;;  %v6619_v56 = vld [vmem:[%s13282_s1 + $0x220] sm:$0xff] }
  0x14   :  { %270 = vmatpush.msra.mxu0 %v6639_v36  ;;  %479 = vmatpush.msra.mxu1 %v6640_v37  ;;  %v6620_v57 = vld [vmem:[%s13282_s1 + $0x228] sm:$0xff]  ;;  %v6621_v58 = vld [vmem:[%s13282_s1 + $0x230] sm:$0xff]  ;;  %v6622_v59 = vld [vmem:[%s13282_s1 + $0x238] sm:$0xff] }
  0x15   :  { %688 = vmatpush.msra.mxu2 %v6641_v38  ;;  %897 = vmatpush.msra.mxu3 %v6642_v39  ;;  %v6615_v60 = vld [vmem:[%s13282_s1 + $0x200] sm:$0xff]  ;;  %v6616_v61 = vld [vmem:[%s13282_s1 + $0x208] sm:$0xff]  ;;  %v6617_v62 = vld [vmem:[%s13282_s1 + $0x210] sm:$0xff] }
  0x16   :  { %271 = vmatpush.msra.mxu0 %v6635_v40  ;;  %480 = vmatpush.msra.mxu1 %v6636_v41  ;;  %v6618_v63 = vld [vmem:[%s13282_s1 + $0x218] sm:$0xff]  ;;  %v68_v0 = vld [vmem:[%s13283_s0 + $0x20] sm:$0xff]  ;;  %v190_v1 = vld [vmem:[%s13282_s1 + $0x1f0] sm:$0xff] }
  0x17   :  { %689 = vmatpush.msra.mxu2 %v6637_v42  ;;  %898 = vmatpush.msra.mxu3 %v6638_v43  ;;  %v191_v2 = vld [vmem:[%s13282_s1 + $0x1f8] sm:$0xff]  ;;  %v188_v3 = vld [vmem:[%s13282_s1 + $0x1e0] sm:$0xff]  ;;  %v189_v4 = vld [vmem:[%s13282_s1 + $0x1e8] sm:$0xff] }
  0x18   :  { %272 = vmatpush.msra.mxu0 %v6631_v44  ;;  %481 = vmatpush.msra.mxu1 %v6632_v45  ;;  %v69_v5 = vld [vmem:[%s13283_s0 + $0x28] sm:$0xff]  ;;  %v70_v6 = vld [vmem:[%s13283_s0 + $0x30] sm:$0xff]  ;;  %v187_v8 = vld [vmem:[%s13282_s1 + $0x1d8] sm:$0xff] }
  0x19   :  { %690 = vmatpush.msra.mxu2 %v6633_v46  ;;  %899 = vmatpush.msra.mxu3 %v6634_v47  ;;  %v186_v7 = vld [vmem:[%s13282_s1 + $0x1d0] sm:$0xff]  ;;  %v71_v9 = vld [vmem:[%s13283_s0 + $0x38] sm:$0xff]  ;;  %v184_v10 = vld [vmem:[%s13282_s1 + $0x1c0] sm:$0xff] }
  0x1a   :  { %273 = vmatpush.msra.mxu0 %v6627_v48  ;;  %482 = vmatpush.msra.mxu1 %v6628_v49  ;;  %v185_v11 = vld [vmem:[%s13282_s1 + $0x1c8] sm:$0xff]  ;;  %v72_v12 = vld [vmem:[%s13283_s0 + $0x40] sm:$0xff]  ;;  %v74_v14 = vld [vmem:[%s13283_s0 + $0x50] sm:$0xff] }
  0x1b   :  { %691 = vmatpush.msra.mxu2 %v6629_v50  ;;  %900 = vmatpush.msra.mxu3 %v6630_v51  ;;  %v73_v13 = vld [vmem:[%s13283_s0 + $0x48] sm:$0xff]  ;;  %v182_v15 = vld [vmem:[%s13282_s1 + $0x1b0] sm:$0xff]  ;;  %v183_v16 = vld [vmem:[%s13282_s1 + $0x1b8] sm:$0xff] }
  0x1c   :  { %274 = vmatpush.msra.mxu0 %v6623_v52  ;;  %483 = vmatpush.msra.mxu1 %v6624_v53  ;;  %v75_v17 = vld [vmem:[%s13283_s0 + $0x58] sm:$0xff]  ;;  %v180_v18 = vld [vmem:[%s13282_s1 + $0x1a0] sm:$0xff]  ;;  %v181_v19 = vld [vmem:[%s13282_s1 + $0x1a8] sm:$0xff] }
  0x1d   :  { %692 = vmatpush.msra.mxu2 %v6625_v54  ;;  %901 = vmatpush.msra.mxu3 %v6626_v55  ;;  %v76_v20 = vld [vmem:[%s13283_s0 + $0x60] sm:$0xff]  ;;  %v77_v21 = vld [vmem:[%s13283_s0 + $0x68] sm:$0xff]  ;;  %v78_v22 = vld [vmem:[%s13283_s0 + $0x70] sm:$0xff] }
  0x1e   :  { %275 = vmatpush.msra.mxu0 %v6619_v56  ;;  %484 = vmatpush.msra.mxu1 %v6620_v57  ;;  %v178_v23 = vld [vmem:[%s13282_s1 + $0x190] sm:$0xff]  ;;  %v179_v24 = vld [vmem:[%s13282_s1 + $0x198] sm:$0xff]  ;;  %v176_v26 = vld [vmem:[%s13282_s1 + $0x180] sm:$0xff] }
  0x1f   :  { %693 = vmatpush.msra.mxu2 %v6621_v58  ;;  %902 = vmatpush.msra.mxu3 %v6622_v59  ;;  %v79_v25 = vld [vmem:[%s13283_s0 + $0x78] sm:$0xff]  ;;  %v177_v27 = vld [vmem:[%s13282_s1 + $0x188] sm:$0xff]  ;;  %v80_v28 = vld [vmem:[%s13283_s0 + $0x80] sm:$0xff] }
  0x20   :  { %276 = vmatpush.msra.mxu0 %v6615_v60  ;;  %485 = vmatpush.msra.mxu1 %v6616_v61  ;;  %v81_v29 = vld [vmem:[%s13283_s0 + $0x88] sm:$0xff]  ;;  %v82_v30 = vld [vmem:[%s13283_s0 + $0x90] sm:$0xff]  ;;  %v83_v31 = vld [vmem:[%s13283_s0 + $0x98] sm:$0xff] }
  0x21   :  { %694 = vmatpush.msra.mxu2 %v6617_v62  ;;  %903 = vmatpush.msra.mxu3 %v6618_v63  ;;  %v174_v32 = vld [vmem:[%s13282_s1 + $0x170] sm:$0xff]  ;;  %v175_v33 = vld [vmem:[%s13282_s1 + $0x178] sm:$0xff]  ;;  %v172_v34 = vld [vmem:[%s13282_s1 + $0x160] sm:$0xff] }
  0x22   :  { %277 = vmatmul.f32.vlgmr.msra.gmra.mxu0 %v68_v0  ;;  %486 = vmatmul.f32.vlgmr.msra.gmra.mxu1 %v68_v0  ;;  %v173_v35 = vld [vmem:[%s13282_s1 + $0x168] sm:$0xff]  ;;  %v84_v38 = vld [vmem:[%s13283_s0 + $0xa0] sm:$0xff]  ;;  %v86_v48 = vld [vmem:[%s13283_s0 + $0xb0] sm:$0xff] }
  0x23   :  { %695 = vmatmul.f32.vlgmr.msra.gmra.mxu2 %v68_v0  ;;  %904 = vmatmul.f32.vlgmr.msra.gmra.mxu3 %v68_v0  ;;  %v85_v43 = vld [vmem:[%s13283_s0 + $0xa8] sm:$0xff]  ;;  %v87_v53 = vld [vmem:[%s13283_s0 + $0xb8] sm:$0xff]  ;;  %v170_v54 = vld [vmem:[%s13282_s1 + $0x150] sm:$0xff] }
  0x24   :  { %1515 = vmatpush.msrb.mxu2 %v190_v1  ;;  %1724 = vmatpush.msrb.mxu3 %v191_v2  ;;  %v171_v55 = vld [vmem:[%s13282_s1 + $0x158] sm:$0xff]  ;;  %v168_v58 = vld [vmem:[%s13282_s1 + $0x140] sm:$0xff]  ;;  %v169_v59 = vld [vmem:[%s13282_s1 + $0x148] sm:$0xff] }
  0x25   :  { %1097 = vmatpush.msrb.mxu0 %v188_v3  ;;  %1306 = vmatpush.msrb.mxu1 %v189_v4  ;;  %v88_v62 = vld [vmem:[%s13283_s0 + $0xc0] sm:$0xff]  ;;  %v89_v3 = vld [vmem:[%s13283_s0 + $0xc8] sm:$0xff] }
  0x26   :  { %1516 = vmatpush.msrb.mxu2 %v186_v7  ;;  %1725 = vmatpush.msrb.mxu3 %v187_v8  ;;  %v90_v8 = vld [vmem:[%s13283_s0 + $0xd0] sm:$0xff] }
  0x27   :  { %1098 = vmatpush.msrb.mxu0 %v184_v10  ;;  %1307 = vmatpush.msrb.mxu1 %v185_v11 }
  0x28   :  { %1517 = vmatpush.msrb.mxu2 %v182_v15  ;;  %1726 = vmatpush.msrb.mxu3 %v183_v16  ;;  %v167_v15 = vld [vmem:[%s13282_s1 + $0x138] sm:$0xff] }
  0x29   :  { %1099 = vmatpush.msrb.mxu0 %v180_v18  ;;  %1308 = vmatpush.msrb.mxu1 %v181_v19  ;;  %v164_v18 = vld [vmem:[%s13282_s1 + $0x120] sm:$0xff]  ;;  %v165_v19 = vld [vmem:[%s13282_s1 + $0x128] sm:$0xff] }
  0x2a   :  { %280 = vmatmul.f32.gmra.mxu0 %v69_v5  ;;  %489 = vmatmul.f32.gmra.mxu1 %v69_v5 }
  0x2b   :  { %698 = vmatmul.f32.gmra.mxu2 %v69_v5  ;;  %907 = vmatmul.f32.gmra.mxu3 %v69_v5 }
  0x2c   :  { %1518 = vmatpush.msrb.mxu2 %v178_v23  ;;  %1727 = vmatpush.msrb.mxu3 %v179_v24 }
  0x2d   :  { %1100 = vmatpush.msrb.mxu0 %v176_v26  ;;  %1309 = vmatpush.msrb.mxu1 %v177_v27  ;;  %v93_v27 = vld [vmem:[%s13283_s0 + $0xe8] sm:$0xff] }
  0x2e   :  { %1519 = vmatpush.msrb.mxu2 %v174_v32  ;;  %1728 = vmatpush.msrb.mxu3 %v175_v33  ;;  %v94_v32 = vld [vmem:[%s13283_s0 + $0xf0] sm:$0xff] }
  0x2f   :  { %1101 = vmatpush.msrb.mxu0 %v172_v34  ;;  %1310 = vmatpush.msrb.mxu1 %v173_v35 }
  0x30   :  { %1520 = vmatpush.msrb.mxu2 %v170_v54  ;;  %1729 = vmatpush.msrb.mxu3 %v171_v55 }
  0x31   :  { %1102 = vmatpush.msrb.mxu0 %v168_v58  ;;  %1311 = vmatpush.msrb.mxu1 %v169_v59  ;;  %v160_v58 = vld [vmem:[%s13282_s1 + $0x100] sm:$0xff]  ;;  %v161_v59 = vld [vmem:[%s13282_s1 + $0x108] sm:$0xff] }
  0x32   :  { %283 = vmatmul.f32.gmra.mxu0 %v70_v6  ;;  %492 = vmatmul.f32.gmra.mxu1 %v70_v6 }
  0x33   :  { %701 = vmatmul.f32.gmra.mxu2 %v70_v6  ;;  %910 = vmatmul.f32.gmra.mxu3 %v70_v6 }
  0x34   :  { %1730 = vmatpush.msrb.mxu3 %v167_v15  ;;  %1103 = vmatpush.msrb.mxu0 %v164_v18 }
  0x35   :  { %1312 = vmatpush.msrb.mxu1 %v165_v19  ;;  %v97_v19 = vld [vmem:[%s13283_s0 + $0x108] sm:$0xff] }
  0x36   :  { %1104 = vmatpush.msrb.mxu0 %v160_v58 }
  0x37   :  { %1313 = vmatpush.msrb.mxu1 %v161_v59 }
  0x3a   :  { %286 = vmatmul.f32.gmra.mxu0 %v71_v9  ;;  %495 = vmatmul.f32.gmra.mxu1 %v71_v9 }
  0x3b   :  { %704 = vmatmul.f32.gmra.mxu2 %v71_v9  ;;  %913 = vmatmul.f32.gmra.mxu3 %v71_v9 }
  0x42   :  { %289 = vmatmul.f32.gmra.mxu0 %v72_v12  ;;  %498 = vmatmul.f32.gmra.mxu1 %v72_v12 }
  0x43   :  { %707 = vmatmul.f32.gmra.mxu2 %v72_v12  ;;  %916 = vmatmul.f32.gmra.mxu3 %v72_v12 }
  0x4a   :  { %292 = vmatmul.f32.gmra.mxu0 %v73_v13  ;;  %501 = vmatmul.f32.gmra.mxu1 %v73_v13 }
  0x4b   :  { %710 = vmatmul.f32.gmra.mxu2 %v73_v13  ;;  %919 = vmatmul.f32.gmra.mxu3 %v73_v13  ;;  %v91_v13 = vld [vmem:[%s13283_s0 + $0xd8] sm:$0xff] }
  0x52   :  { %295 = vmatmul.f32.gmra.mxu0 %v74_v14  ;;  %504 = vmatmul.f32.gmra.mxu1 %v74_v14 }
  0x53   :  { %713 = vmatmul.f32.gmra.mxu2 %v74_v14  ;;  %922 = vmatmul.f32.gmra.mxu3 %v74_v14  ;;  %v166_v14 = vld [vmem:[%s13282_s1 + $0x130] sm:$0xff] }
  0x54   :  { %1521 = vmatpush.msrb.mxu2 %v166_v14 }
  0x5a   :  { %298 = vmatmul.f32.gmra.mxu0 %v75_v17  ;;  %507 = vmatmul.f32.gmra.mxu1 %v75_v17 }
  0x5b   :  { %716 = vmatmul.f32.gmra.mxu2 %v75_v17  ;;  %925 = vmatmul.f32.gmra.mxu3 %v75_v17 }
  0x62   :  { %301 = vmatmul.f32.gmra.mxu0 %v76_v20  ;;  %510 = vmatmul.f32.gmra.mxu1 %v76_v20 }
  0x63   :  { %719 = vmatmul.f32.gmra.mxu2 %v76_v20  ;;  %928 = vmatmul.f32.gmra.mxu3 %v76_v20 }
  0x6a   :  { %304 = vmatmul.f32.gmra.mxu0 %v77_v21  ;;  %513 = vmatmul.f32.gmra.mxu1 %v77_v21 }
  0x6b   :  { %722 = vmatmul.f32.gmra.mxu2 %v77_v21  ;;  %931 = vmatmul.f32.gmra.mxu3 %v77_v21 }
  0x72   :  { %307 = vmatmul.f32.gmra.mxu0 %v78_v22  ;;  %516 = vmatmul.f32.gmra.mxu1 %v78_v22 }
  0x73   :  { %725 = vmatmul.f32.gmra.mxu2 %v78_v22  ;;  %934 = vmatmul.f32.gmra.mxu3 %v78_v22  ;;  %v92_v22 = vld [vmem:[%s13283_s0 + $0xe0] sm:$0xff] }
  0x7a   :  { %310 = vmatmul.f32.gmra.mxu0 %v79_v25  ;;  %519 = vmatmul.f32.gmra.mxu1 %v79_v25 }
  0x7b   :  { %728 = vmatmul.f32.gmra.mxu2 %v79_v25  ;;  %937 = vmatmul.f32.gmra.mxu3 %v79_v25 }
  0x82   :  { %313 = vmatmul.f32.gmra.mxu0 %v80_v28  ;;  %522 = vmatmul.f32.gmra.mxu1 %v80_v28 }
  0x83   :  { %731 = vmatmul.f32.gmra.mxu2 %v80_v28  ;;  %940 = vmatmul.f32.gmra.mxu3 %v80_v28 }
  0x8a   :  { %316 = vmatmul.f32.gmra.mxu0 %v81_v29  ;;  %525 = vmatmul.f32.gmra.mxu1 %v81_v29 }
  0x8b   :  { %734 = vmatmul.f32.gmra.mxu2 %v81_v29  ;;  %943 = vmatmul.f32.gmra.mxu3 %v81_v29 }
  0x92   :  { %319 = vmatmul.f32.gmra.mxu0 %v82_v30  ;;  %528 = vmatmul.f32.gmra.mxu1 %v82_v30 }
  0x93   :  { %737 = vmatmul.f32.gmra.mxu2 %v82_v30  ;;  %946 = vmatmul.f32.gmra.mxu3 %v82_v30 }
  0x9a   :  { %322 = vmatmul.f32.gmra.mxu0 %v83_v31  ;;  %531 = vmatmul.f32.gmra.mxu1 %v83_v31 }
  0x9b   :  { %740 = vmatmul.f32.gmra.mxu2 %v83_v31  ;;  %949 = vmatmul.f32.gmra.mxu3 %v83_v31 }
  0x9f   :  { %v7449_v36 = vpop.f32.mrf.mxu0  ;;  %v7451_v37 = vpop.f32.mrf.mxu1 }
  0xa2   :  { %325 = vmatmul.f32.gmra.mxu0 %v84_v38  ;;  %534 = vmatmul.f32.gmra.mxu1 %v84_v38 }
  0xa3   :  { %743 = vmatmul.f32.gmra.mxu2 %v84_v38  ;;  %952 = vmatmul.f32.gmra.mxu3 %v84_v38 }
  0xa6   :  { %v7456_v39 = vpop.f32.mrf.mxu2  ;;  %v7458_v40 = vpop.f32.mrf.mxu3 }
  0xa7   :  { %v7460_v41 = vpop.f32.mrf.mxu0  ;;  %v7462_v42 = vpop.f32.mrf.mxu1 }
  0xaa   :  { %328 = vmatmul.f32.gmra.mxu0 %v85_v43  ;;  %537 = vmatmul.f32.gmra.mxu1 %v85_v43 }
  0xab   :  { %746 = vmatmul.f32.gmra.mxu2 %v85_v43  ;;  %955 = vmatmul.f32.gmra.mxu3 %v85_v43  ;;  %v95_v43 = vld [vmem:[%s13283_s0 + $0xf8] sm:$0xff] }
  0xae   :  { %v7467_v44 = vpop.f32.mrf.mxu2  ;;  %v7469_v45 = vpop.f32.mrf.mxu3 }
  0xaf   :  { %v7471_v46 = vpop.f32.mrf.mxu0  ;;  %v7473_v47 = vpop.f32.mrf.mxu1 }
  0xb2   :  { %331 = vmatmul.f32.gmra.mxu0 %v86_v48  ;;  %540 = vmatmul.f32.gmra.mxu1 %v86_v48 }
  0xb3   :  { %749 = vmatmul.f32.gmra.mxu2 %v86_v48  ;;  %958 = vmatmul.f32.gmra.mxu3 %v86_v48  ;;  %v162_v48 = vld [vmem:[%s13282_s1 + $0x110] sm:$0xff] }
  0xb4   :  { %1522 = vmatpush.msrb.mxu2 %v162_v48  ;;  %v98_v48 = vld [vmem:[%s13283_s0 + $0x110] sm:$0xff] }
  0xb6   :  { %v7478_v49 = vpop.f32.mrf.mxu2  ;;  %v7480_v50 = vpop.f32.mrf.mxu3 }
  0xb7   :  { %v7482_v51 = vpop.f32.mrf.mxu0  ;;  %v7484_v52 = vpop.f32.mrf.mxu1 }
  0xb8   :  { %13394 = vst [vmem:[#allocation5_spill] sm:$0xff] %v7484_v52 }
  0xba   :  { %334 = vmatmul.f32.gmra.mxu0 %v87_v53  ;;  %543 = vmatmul.f32.gmra.mxu1 %v87_v53 }
  0xbb   :  { %752 = vmatmul.f32.gmra.mxu2 %v87_v53  ;;  %961 = vmatmul.f32.gmra.mxu3 %v87_v53  ;;  %v163_v53 = vld [vmem:[%s13282_s1 + $0x118] sm:$0xff] }
  0xbc   :  { %1731 = vmatpush.msrb.mxu3 %v163_v53 }
  0xbe   :  { %v7495_v56 = vpop.f32.mrf.mxu2  ;;  %v7497_v57 = vpop.f32.mrf.mxu3 }
  0xbf   :  { %v7505_v60 = vpop.f32.mrf.mxu0  ;;  %v7507_v61 = vpop.f32.mrf.mxu1 }
  0xc2   :  { %337 = vmatmul.f32.gmra.mxu0 %v88_v62  ;;  %546 = vmatmul.f32.gmra.mxu1 %v88_v62 }
  0xc3   :  { %755 = vmatmul.f32.gmra.mxu2 %v88_v62  ;;  %964 = vmatmul.f32.gmra.mxu3 %v88_v62 }
  0xc6   :  { %v7512_v63 = vpop.f32.mrf.mxu2  ;;  %v7514_v0 = vpop.f32.mrf.mxu3 }
  0xc7   :  { %v7516_v1 = vpop.f32.mrf.mxu0  ;;  %v7518_v2 = vpop.f32.mrf.mxu1 }
  0xca   :  { %340 = vmatmul.f32.gmra.mxu0 %v89_v3  ;;  %549 = vmatmul.f32.gmra.mxu1 %v89_v3 }
  0xcb   :  { %758 = vmatmul.f32.gmra.mxu2 %v89_v3  ;;  %967 = vmatmul.f32.gmra.mxu3 %v89_v3 }
  0xce   :  { %v7523_v4 = vpop.f32.mrf.mxu2  ;;  %v7525_v5 = vpop.f32.mrf.mxu3 }
  0xcf   :  { %v7527_v6 = vpop.f32.mrf.mxu0  ;;  %v7529_v7 = vpop.f32.mrf.mxu1 }
  0xd2   :  { %343 = vmatmul.f32.gmra.mxu0 %v90_v8  ;;  %552 = vmatmul.f32.gmra.mxu1 %v90_v8 }
  0xd3   :  { %761 = vmatmul.f32.gmra.mxu2 %v90_v8  ;;  %970 = vmatmul.f32.gmra.mxu3 %v90_v8  ;;  %v96_v8 = vld [vmem:[%s13283_s0 + $0x100] sm:$0xff] }
  0xd6   :  { %v7534_v9 = vpop.f32.mrf.mxu2  ;;  %v7536_v10 = vpop.f32.mrf.mxu3 }
  0xd7   :  { %v7538_v11 = vpop.f32.mrf.mxu0  ;;  %v7540_v12 = vpop.f32.mrf.mxu1 }
  0xd8   :  { %13395 = vst [vmem:[#allocation6_spill] sm:$0xff] %v7538_v11 }
  0xd9   :  { %13396 = vst [vmem:[#allocation7_spill] sm:$0xff] %v7540_v12 }
  0xda   :  { %346 = vmatmul.f32.gmra.mxu0 %v91_v13  ;;  %555 = vmatmul.f32.gmra.mxu1 %v91_v13 }
  0xdb   :  { %764 = vmatmul.f32.gmra.mxu2 %v91_v13  ;;  %973 = vmatmul.f32.gmra.mxu3 %v91_v13 }
  0xde   :  { %v7551_v16 = vpop.f32.mrf.mxu2  ;;  %v7553_v17 = vpop.f32.mrf.mxu3 }
  0xdf   :  { %13397 = vst [vmem:[#allocation8_spill] sm:$0xff] %v7551_v16  ;;  %v7561_v20 = vpop.f32.mrf.mxu0  ;;  %v7563_v21 = vpop.f32.mrf.mxu1 }
  0xe0   :  { %13398 = vst [vmem:[#allocation9_spill] sm:$0xff] %v7553_v17  ;;  %v6718_v17 = vld [vmem:[%s13282_s1 + $0x538] sm:$0xff] }
  0xe1   :  { %13399 = vst [vmem:[#allocation10_spill] sm:$0xff] %v7561_v20 }
  0xe2   :  { %13400 = vst [vmem:[#allocation11_spill] sm:$0xff] %v7563_v21  ;;  %349 = vmatmul.f32.gmra.mxu0 %v92_v22  ;;  %558 = vmatmul.f32.gmra.mxu1 %v92_v22 }
  0xe3   :  { %767 = vmatmul.f32.gmra.mxu2 %v92_v22  ;;  %976 = vmatmul.f32.gmra.mxu3 %v92_v22 }
  0xe6   :  { %v7568_v23 = vpop.f32.mrf.mxu2  ;;  %v7570_v24 = vpop.f32.mrf.mxu3 }
  0xe7   :  { %13401 = vst [vmem:[#allocation12_spill] sm:$0xff] %v7568_v23  ;;  %v7572_v25 = vpop.f32.mrf.mxu0  ;;  %v7574_v26 = vpop.f32.mrf.mxu1  ;;  %v6717_v23 = vld [vmem:[%s13282_s1 + $0x530] sm:$0xff] }
  0xe8   :  { %13402 = vst [vmem:[#allocation13_spill] sm:$0xff] %v7570_v24 }
  0xe9   :  { %13403 = vst [vmem:[#allocation14_spill] sm:$0xff] %v7572_v25 }
  0xea   :  { %13404 = vst [vmem:[#allocation15_spill] sm:$0xff] %v7574_v26  ;;  %352 = vmatmul.f32.gmra.mxu0 %v93_v27  ;;  %561 = vmatmul.f32.gmra.mxu1 %v93_v27  ;;  %v6722_v26 = vld [vmem:[%s13282_s1 + $0x558] sm:$0xff] }
  0xeb   :  { %770 = vmatmul.f32.gmra.mxu2 %v93_v27  ;;  %979 = vmatmul.f32.gmra.mxu3 %v93_v27 }
  0xee   :  { %v7579_v28 = vpop.f32.mrf.mxu2  ;;  %v7581_v29 = vpop.f32.mrf.mxu3 }
  0xef   :  { %13405 = vst [vmem:[#allocation16_spill] sm:$0xff] %v7579_v28  ;;  %v7583_v30 = vpop.f32.mrf.mxu0  ;;  %v7585_v31 = vpop.f32.mrf.mxu1 }
  0xf0   :  { %13406 = vst [vmem:[#allocation17_spill] sm:$0xff] %v7581_v29 }
  0xf1   :  { %13407 = vst [vmem:[#allocation18_spill] sm:$0xff] %v7583_v30  ;;  %v7051_v30 = vld [vmem:[%s13283_s0 + $0x90] sm:$0xff] }
  0xf2   :  { %13408 = vst [vmem:[#allocation19_spill] sm:$0xff] %v7585_v31  ;;  %355 = vmatmul.f32.gmra.mxu0 %v94_v32  ;;  %564 = vmatmul.f32.gmra.mxu1 %v94_v32 }
  0xf3   :  { %773 = vmatmul.f32.gmra.mxu2 %v94_v32  ;;  %982 = vmatmul.f32.gmra.mxu3 %v94_v32 }
  0xf6   :  { %v7590_v33 = vpop.f32.mrf.mxu2  ;;  %v7592_v34 = vpop.f32.mrf.mxu3 }
  0xf7   :  { %13409 = vst [vmem:[#allocation20_spill] sm:$0xff] %v7590_v33  ;;  %v7594_v35 = vpop.f32.mrf.mxu0  ;;  %v7596_v38 = vpop.f32.mrf.mxu1  ;;  %v7055_v33 = vld [vmem:[%s13283_s0 + $0xb0] sm:$0xff] }
  0xf8   :  { %13410 = vst [vmem:[#allocation21_spill] sm:$0xff] %v7592_v34 }
  0xf9   :  { %13411 = vst [vmem:[#allocation22_spill] sm:$0xff] %v7594_v35  ;;  %v156_v35 = vld [vmem:[%s13282_s1 + $0xe0] sm:$0xff] }
  0xfa   :  { %13412 = vst [vmem:[#allocation23_spill] sm:$0xff] %v7596_v38  ;;  %358 = vmatmul.f32.gmra.mxu0 %v95_v43  ;;  %567 = vmatmul.f32.gmra.mxu1 %v95_v43  ;;  %v158_v38 = vld [vmem:[%s13282_s1 + $0xf0] sm:$0xff] }
  0xfb   :  { %776 = vmatmul.f32.gmra.mxu2 %v95_v43  ;;  %985 = vmatmul.f32.gmra.mxu3 %v95_v43 }
  0xfc   :  { %1523 = vmatpush.msrb.mxu2 %v158_v38  ;;  %1105 = vmatpush.msrb.mxu0 %v156_v35 }
  0xfe   :  { %v7607_v54 = vpop.f32.mrf.mxu2  ;;  %v7609_v55 = vpop.f32.mrf.mxu3 }
  0xff   :  { %13413 = vst [vmem:[#allocation24_spill] sm:$0xff] %v7607_v54  ;;  %v7617_v62 = vpop.f32.mrf.mxu0  ;;  %v7619_v3 = vpop.f32.mrf.mxu1 }
 0x100   :  { %13414 = vst [vmem:[#allocation25_spill] sm:$0xff] %v7609_v55 }
 0x101   :  { %13415 = vst [vmem:[#allocation26_spill] sm:$0xff] %v7617_v62 }
 0x102   :  { %13416 = vst [vmem:[#allocation27_spill] sm:$0xff] %v7619_v3  ;;  %361 = vmatmul.f32.gmra.mxu0 %v96_v8  ;;  %570 = vmatmul.f32.gmra.mxu1 %v96_v8 }
 0x103   :  { %779 = vmatmul.f32.gmra.mxu2 %v96_v8  ;;  %988 = vmatmul.f32.gmra.mxu3 %v96_v8 }
 0x106   :  { %v7624_v13 = vpop.f32.mrf.mxu2  ;;  %v7626_v14 = vpop.f32.mrf.mxu3 }
 0x107   :  { %13417 = vst [vmem:[#allocation28_spill] sm:$0xff] %v7624_v13  ;;  %v7628_v15 = vpop.f32.mrf.mxu0  ;;  %v7630_v18 = vpop.f32.mrf.mxu1 }
 0x108   :  { %13418 = vst [vmem:[#allocation29_spill] sm:$0xff] %v7626_v14 }
 0x109   :  { %13419 = vst [vmem:[#allocation30_spill] sm:$0xff] %v7628_v15  ;;  %v6721_v15 = vld [vmem:[%s13282_s1 + $0x550] sm:$0xff] }
 0x10a   :  { %13420 = vst [vmem:[#allocation31_spill] sm:$0xff] %v7630_v18  ;;  %364 = vmatmul.f32.gmra.mxu0 %v97_v19  ;;  %573 = vmatmul.f32.gmra.mxu1 %v97_v19 }
 0x10b   :  { %782 = vmatmul.f32.gmra.mxu2 %v97_v19  ;;  %991 = vmatmul.f32.gmra.mxu3 %v97_v19  ;;  %v99_v19 = vld [vmem:[%s13283_s0 + $0x118] sm:$0xff] }
 0x10e   :  { %v7635_v22 = vpop.f32.mrf.mxu2  ;;  %v7637_v27 = vpop.f32.mrf.mxu3 }
 0x10f   :  { %13421 = vst [vmem:[#allocation32_spill] sm:$0xff] %v7635_v22  ;;  %v7639_v32 = vpop.f32.mrf.mxu0  ;;  %v7641_v43 = vpop.f32.mrf.mxu1 }
 0x110   :  { %13422 = vst [vmem:[#allocation33_spill] sm:$0xff] %v7637_v27 }
 0x111   :  { %13423 = vst [vmem:[#allocation34_spill] sm:$0xff] %v7639_v32 }
 0x112   :  { %13424 = vst [vmem:[#allocation35_spill] sm:$0xff] %v7641_v43  ;;  %367 = vmatmul.f32.gmra.mxu0 %v98_v48  ;;  %576 = vmatmul.f32.gmra.mxu1 %v98_v48 }
 0x113   :  { %785 = vmatmul.f32.gmra.mxu2 %v98_v48  ;;  %994 = vmatmul.f32.gmra.mxu3 %v98_v48  ;;  %v159_v48 = vld [vmem:[%s13282_s1 + $0xf8] sm:$0xff] }
 0x114   :  { %1732 = vmatpush.msrb.mxu3 %v159_v48 }
 0x116   :  { %v7646_v53 = vpop.f32.mrf.mxu2  ;;  %v7648_v58 = vpop.f32.mrf.mxu3 }
 0x117   :  { %13425 = vst [vmem:[#allocation36_spill] sm:$0xff] %v7646_v53  ;;  %v7650_v59 = vpop.f32.mrf.mxu0  ;;  %v7652_v8 = vpop.f32.mrf.mxu1 }
 0x118   :  { %13426 = vst [vmem:[#allocation37_spill] sm:$0xff] %v7648_v58  ;;  %v157_v58 = vld [vmem:[%s13282_s1 + $0xe8] sm:$0xff] }
 0x119   :  { %13427 = vst [vmem:[#allocation38_spill] sm:$0xff] %v7650_v59  ;;  %1314 = vmatpush.msrb.mxu1 %v157_v58 }
 0x11a   :  { %13428 = vst [vmem:[#allocation39_spill] sm:$0xff] %v7652_v8  ;;  %370 = vmatmul.f32.gmra.mxu0 %v99_v19  ;;  %579 = vmatmul.f32.gmra.mxu1 %v99_v19 }
 0x11b   :  { %788 = vmatmul.f32.gmra.mxu2 %v99_v19  ;;  %997 = vmatmul.f32.gmra.mxu3 %v99_v19  ;;  %v100_v19 = vld [vmem:[%s13283_s0 + $0x120] sm:$0xff] }
 0x11e   :  { %v7663_v59 = vpop.f32.mrf.mxu2  ;;  %v7665_v8 = vpop.f32.mrf.mxu3 }
 0x11f   :  { %13429 = vst [vmem:[#allocation40_spill] sm:$0xff] %v7663_v59  ;;  %v7673_v53 = vpop.f32.mrf.mxu0  ;;  %v7675_v38 = vpop.f32.mrf.mxu1 }
 0x120   :  { %13430 = vst [vmem:[#allocation41_spill] sm:$0xff] %v7665_v8 }
 0x121   :  { %13431 = vst [vmem:[#allocation42_spill] sm:$0xff] %v7673_v53 }
 0x122   :  { %13432 = vst [vmem:[#allocation43_spill] sm:$0xff] %v7675_v38  ;;  %373 = vmatmul.f32.gmra.mxu0 %v100_v19  ;;  %582 = vmatmul.f32.gmra.mxu1 %v100_v19  ;;  %v101_v38 = vld [vmem:[%s13283_s0 + $0x128] sm:$0xff] }
 0x123   :  { %791 = vmatmul.f32.gmra.mxu2 %v100_v19  ;;  %1000 = vmatmul.f32.gmra.mxu3 %v100_v19 }
 0x126   :  { %v7680_v48 = vpop.f32.mrf.mxu2  ;;  %v7682_v8 = vpop.f32.mrf.mxu3 }
 0x127   :  { %13433 = vst [vmem:[#allocation44_spill] sm:$0xff] %v7680_v48  ;;  %v7684_v59 = vpop.f32.mrf.mxu0  ;;  %v7686_v43 = vpop.f32.mrf.mxu1 }
 0x128   :  { %13434 = vst [vmem:[#allocation45_spill] sm:$0xff] %v7682_v8 }
 0x129   :  { %13435 = vst [vmem:[#allocation46_spill] sm:$0xff] %v7684_v59 }
 0x12a   :  { %13436 = vst [vmem:[#allocation47_spill] sm:$0xff] %v7686_v43  ;;  %376 = vmatmul.f32.gmra.mxu0 %v101_v38  ;;  %585 = vmatmul.f32.gmra.mxu1 %v101_v38  ;;  %v102_v43 = vld [vmem:[%s13283_s0 + $0x130] sm:$0xff] }
 0x12b   :  { %794 = vmatmul.f32.gmra.mxu2 %v101_v38  ;;  %1003 = vmatmul.f32.gmra.mxu3 %v101_v38 }
 0x12e   :  { %v7691_v35 = vpop.f32.mrf.mxu2  ;;  %v7693_v58 = vpop.f32.mrf.mxu3 }
 0x12f   :  { %13437 = vst [vmem:[#allocation48_spill] sm:$0xff] %v7691_v35  ;;  %v7695_v19 = vpop.f32.mrf.mxu0  ;;  %v7697_v53 = vpop.f32.mrf.mxu1 }
 0x130   :  { %13438 = vst [vmem:[#allocation49_spill] sm:$0xff] %v7693_v58 }
 0x131   :  { %13439 = vst [vmem:[#allocation50_spill] sm:$0xff] %v7695_v19  ;;  %v154_v19 = vld [vmem:[%s13282_s1 + $0xd0] sm:$0xff] }
 0x132   :  { %13440 = vst [vmem:[#allocation51_spill] sm:$0xff] %v7697_v53  ;;  %379 = vmatmul.f32.gmra.mxu0 %v102_v43  ;;  %588 = vmatmul.f32.gmra.mxu1 %v102_v43  ;;  %v103_v53 = vld [vmem:[%s13283_s0 + $0x138] sm:$0xff] }
 0x133   :  { %797 = vmatmul.f32.gmra.mxu2 %v102_v43  ;;  %1006 = vmatmul.f32.gmra.mxu3 %v102_v43  ;;  %v155_v43 = vld [vmem:[%s13282_s1 + $0xd8] sm:$0xff] }
 0x134   :  { %1524 = vmatpush.msrb.mxu2 %v154_v19  ;;  %1733 = vmatpush.msrb.mxu3 %v155_v43 }
 0x136   :  { %v7702_v59 = vpop.f32.mrf.mxu2  ;;  %v7704_v8 = vpop.f32.mrf.mxu3 }
 0x137   :  { %13441 = vst [vmem:[#allocation52_spill] sm:$0xff] %v7702_v59  ;;  %v7706_v38 = vpop.f32.mrf.mxu0  ;;  %v7708_v35 = vpop.f32.mrf.mxu1  ;;  %v153_v59 = vld [vmem:[%s13282_s1 + $0xc8] sm:$0xff] }
 0x138   :  { %13442 = vst [vmem:[#allocation53_spill] sm:$0xff] %v7704_v8  ;;  %v152_v8 = vld [vmem:[%s13282_s1 + $0xc0] sm:$0xff]  ;;  %1315 = vmatpush.msrb.mxu1 %v153_v59 }
 0x139   :  { %13443 = vst [vmem:[#allocation54_spill] sm:$0xff] %v7706_v38  ;;  %1106 = vmatpush.msrb.mxu0 %v152_v8 }
 0x13a   :  { %13444 = vst [vmem:[#allocation55_spill] sm:$0xff] %v7708_v35  ;;  %382 = vmatmul.f32.gmra.mxu0 %v103_v53  ;;  %591 = vmatmul.f32.gmra.mxu1 %v103_v53 }
 0x13b   :  { %800 = vmatmul.f32.gmra.mxu2 %v103_v53  ;;  %1009 = vmatmul.f32.gmra.mxu3 %v103_v53  ;;  %v104_v53 = vld [vmem:[%s13283_s0 + $0x140] sm:$0xff] }
 0x13e   :  { %v7719_v38 = vpop.f32.mrf.mxu2  ;;  %v7721_v35 = vpop.f32.mrf.mxu3 }
 0x13f   :  { %13445 = vst [vmem:[#allocation56_spill] sm:$0xff] %v7719_v38  ;;  %v7729_v58 = vpop.f32.mrf.mxu0  ;;  %v7731_v19 = vpop.f32.mrf.mxu1 }
 0x140   :  { %13446 = vst [vmem:[#allocation57_spill] sm:$0xff] %v7721_v35 }
 0x141   :  { %13447 = vst [vmem:[#allocation58_spill] sm:$0xff] %v7729_v58 }
 0x142   :  { %13448 = vst [vmem:[#allocation59_spill] sm:$0xff] %v7731_v19  ;;  %385 = vmatmul.f32.gmra.mxu0 %v104_v53  ;;  %594 = vmatmul.f32.gmra.mxu1 %v104_v53  ;;  %v105_v19 = vld [vmem:[%s13283_s0 + $0x148] sm:$0xff] }
 0x143   :  { %803 = vmatmul.f32.gmra.mxu2 %v104_v53  ;;  %1012 = vmatmul.f32.gmra.mxu3 %v104_v53 }
 0x146   :  { %v7736_v43 = vpop.f32.mrf.mxu2  ;;  %v7738_v35 = vpop.f32.mrf.mxu3 }
 0x147   :  { %13449 = vst [vmem:[#allocation60_spill] sm:$0xff] %v7736_v43  ;;  %v7740_v38 = vpop.f32.mrf.mxu0  ;;  %v7742_v48 = vpop.f32.mrf.mxu1 }
 0x148   :  { %13450 = vst [vmem:[#allocation61_spill] sm:$0xff] %v7738_v35 }
 0x149   :  { %13451 = vst [vmem:[#allocation62_spill] sm:$0xff] %v7740_v38 }
 0x14a   :  { %13452 = vst [vmem:[#allocation63_spill] sm:$0xff] %v7742_v48  ;;  %388 = vmatmul.f32.gmra.mxu0 %v105_v19  ;;  %597 = vmatmul.f32.gmra.mxu1 %v105_v19  ;;  %v106_v48 = vld [vmem:[%s13283_s0 + $0x150] sm:$0xff] }
 0x14b   :  { %806 = vmatmul.f32.gmra.mxu2 %v105_v19  ;;  %1015 = vmatmul.f32.gmra.mxu3 %v105_v19 }
 0x14e   :  { %v7747_v59 = vpop.f32.mrf.mxu2  ;;  %v7749_v8 = vpop.f32.mrf.mxu3 }
 0x14f   :  { %13453 = vst [vmem:[#allocation64_spill] sm:$0xff] %v7747_v59  ;;  %v7751_v53 = vpop.f32.mrf.mxu0  ;;  %v7753_v43 = vpop.f32.mrf.mxu1 }
 0x150   :  { %13454 = vst [vmem:[#allocation65_spill] sm:$0xff] %v7749_v8 }
 0x151   :  { %13455 = vst [vmem:[#allocation66_spill] sm:$0xff] %v7751_v53  ;;  %v150_v53 = vld [vmem:[%s13282_s1 + $0xb0] sm:$0xff] }
 0x152   :  { %13456 = vst [vmem:[#allocation67_spill] sm:$0xff] %v7753_v43  ;;  %391 = vmatmul.f32.gmra.mxu0 %v106_v48  ;;  %600 = vmatmul.f32.gmra.mxu1 %v106_v48  ;;  %v107_v43 = vld [vmem:[%s13283_s0 + $0x158] sm:$0xff] }
 0x153   :  { %809 = vmatmul.f32.gmra.mxu2 %v106_v48  ;;  %1018 = vmatmul.f32.gmra.mxu3 %v106_v48  ;;  %v151_v48 = vld [vmem:[%s13282_s1 + $0xb8] sm:$0xff] }
 0x154   :  { %1525 = vmatpush.msrb.mxu2 %v150_v53  ;;  %1734 = vmatpush.msrb.mxu3 %v151_v48 }
 0x156   :  { %v7758_v38 = vpop.f32.mrf.mxu2  ;;  %v7760_v35 = vpop.f32.mrf.mxu3 }
 0x157   :  { %13457 = vst [vmem:[#allocation68_spill] sm:$0xff] %v7758_v38  ;;  %v7762_v19 = vpop.f32.mrf.mxu0  ;;  %v7764_v59 = vpop.f32.mrf.mxu1  ;;  %v149_v38 = vld [vmem:[%s13282_s1 + $0xa8] sm:$0xff] }
 0x158   :  { %13458 = vst [vmem:[#allocation69_spill] sm:$0xff] %v7760_v35  ;;  %v148_v35 = vld [vmem:[%s13282_s1 + $0xa0] sm:$0xff]  ;;  %1316 = vmatpush.msrb.mxu1 %v149_v38 }
 0x159   :  { %13459 = vst [vmem:[#allocation70_spill] sm:$0xff] %v7762_v19  ;;  %1107 = vmatpush.msrb.mxu0 %v148_v35 }
 0x15a   :  { %13460 = vst [vmem:[#allocation71_spill] sm:$0xff] %v7764_v59  ;;  %394 = vmatmul.f32.gmra.mxu0 %v107_v43  ;;  %603 = vmatmul.f32.gmra.mxu1 %v107_v43 }
 0x15b   :  { %812 = vmatmul.f32.gmra.mxu2 %v107_v43  ;;  %1021 = vmatmul.f32.gmra.mxu3 %v107_v43  ;;  %v108_v43 = vld [vmem:[%s13283_s0 + $0x160] sm:$0xff] }
 0x15e   :  { %v7775_v19 = vpop.f32.mrf.mxu2  ;;  %v7777_v59 = vpop.f32.mrf.mxu3 }
 0x15f   :  { %13461 = vst [vmem:[#allocation72_spill] sm:$0xff] %v7775_v19  ;;  %v7785_v8 = vpop.f32.mrf.mxu0  ;;  %v7787_v53 = vpop.f32.mrf.mxu1 }
 0x160   :  { %13462 = vst [vmem:[#allocation73_spill] sm:$0xff] %v7777_v59 }
 0x161   :  { %13463 = vst [vmem:[#allocation74_spill] sm:$0xff] %v7785_v8 }
 0x162   :  { %13464 = vst [vmem:[#allocation75_spill] sm:$0xff] %v7787_v53  ;;  %397 = vmatmul.f32.gmra.mxu0 %v108_v43  ;;  %606 = vmatmul.f32.gmra.mxu1 %v108_v43  ;;  %v109_v53 = vld [vmem:[%s13283_s0 + $0x168] sm:$0xff] }
 0x163   :  { %815 = vmatmul.f32.gmra.mxu2 %v108_v43  ;;  %1024 = vmatmul.f32.gmra.mxu3 %v108_v43 }
 0x166   :  { %v7792_v48 = vpop.f32.mrf.mxu2  ;;  %v7794_v59 = vpop.f32.mrf.mxu3 }
 0x167   :  { %13465 = vst [vmem:[#allocation76_spill] sm:$0xff] %v7792_v48  ;;  %v7796_v19 = vpop.f32.mrf.mxu0  ;;  %v7798_v58 = vpop.f32.mrf.mxu1 }
 0x168   :  { %13466 = vst [vmem:[#allocation77_spill] sm:$0xff] %v7794_v59 }
 0x169   :  { %13467 = vst [vmem:[#allocation78_spill] sm:$0xff] %v7796_v19 }
 0x16a   :  { %13468 = vst [vmem:[#allocation79_spill] sm:$0xff] %v7798_v58  ;;  %400 = vmatmul.f32.gmra.mxu0 %v109_v53  ;;  %609 = vmatmul.f32.gmra.mxu1 %v109_v53  ;;  %v110_v58 = vld [vmem:[%s13283_s0 + $0x170] sm:$0xff] }
 0x16b   :  { %818 = vmatmul.f32.gmra.mxu2 %v109_v53  ;;  %1027 = vmatmul.f32.gmra.mxu3 %v109_v53 }
 0x16e   :  { %v7803_v35 = vpop.f32.mrf.mxu2  ;;  %v7805_v38 = vpop.f32.mrf.mxu3 }
 0x16f   :  { %13469 = vst [vmem:[#allocation80_spill] sm:$0xff] %v7803_v35  ;;  %v7807_v43 = vpop.f32.mrf.mxu0  ;;  %v7809_v8 = vpop.f32.mrf.mxu1 }
 0x170   :  { %13470 = vst [vmem:[#allocation81_spill] sm:$0xff] %v7805_v38 }
 0x171   :  { %13471 = vst [vmem:[#allocation82_spill] sm:$0xff] %v7807_v43  ;;  %v146_v43 = vld [vmem:[%s13282_s1 + $0x90] sm:$0xff] }
 0x172   :  { %13472 = vst [vmem:[#allocation83_spill] sm:$0xff] %v7809_v8  ;;  %403 = vmatmul.f32.gmra.mxu0 %v110_v58  ;;  %612 = vmatmul.f32.gmra.mxu1 %v110_v58  ;;  %v111_v8 = vld [vmem:[%s13283_s0 + $0x178] sm:$0xff] }
 0x173   :  { %821 = vmatmul.f32.gmra.mxu2 %v110_v58  ;;  %1030 = vmatmul.f32.gmra.mxu3 %v110_v58  ;;  %v147_v58 = vld [vmem:[%s13282_s1 + $0x98] sm:$0xff] }
 0x174   :  { %1526 = vmatpush.msrb.mxu2 %v146_v43  ;;  %1735 = vmatpush.msrb.mxu3 %v147_v58 }
 0x176   :  { %v7814_v19 = vpop.f32.mrf.mxu2  ;;  %v7816_v59 = vpop.f32.mrf.mxu3 }
 0x177   :  { %13473 = vst [vmem:[#allocation84_spill] sm:$0xff] %v7814_v19  ;;  %v7818_v53 = vpop.f32.mrf.mxu0  ;;  %v7820_v35 = vpop.f32.mrf.mxu1  ;;  %v145_v19 = vld [vmem:[%s13282_s1 + $0x88] sm:$0xff] }
 0x178   :  { %13474 = vst [vmem:[#allocation85_spill] sm:$0xff] %v7816_v59  ;;  %v144_v59 = vld [vmem:[%s13282_s1 + $0x80] sm:$0xff]  ;;  %1317 = vmatpush.msrb.mxu1 %v145_v19 }
 0x179   :  { %13475 = vst [vmem:[#allocation86_spill] sm:$0xff] %v7818_v53  ;;  %1108 = vmatpush.msrb.mxu0 %v144_v59 }
 0x17a   :  { %13476 = vst [vmem:[#allocation87_spill] sm:$0xff] %v7820_v35  ;;  %406 = vmatmul.f32.gmra.mxu0 %v111_v8  ;;  %615 = vmatmul.f32.gmra.mxu1 %v111_v8 }
 0x17b   :  { %824 = vmatmul.f32.gmra.mxu2 %v111_v8  ;;  %1033 = vmatmul.f32.gmra.mxu3 %v111_v8  ;;  %v112_v8 = vld [vmem:[%s13283_s0 + $0x180] sm:$0xff] }
 0x17e   :  { %v7831_v53 = vpop.f32.mrf.mxu2  ;;  %v7833_v35 = vpop.f32.mrf.mxu3 }
 0x17f   :  { %13477 = vst [vmem:[#allocation88_spill] sm:$0xff] %v7831_v53  ;;  %v7841_v38 = vpop.f32.mrf.mxu0  ;;  %v7843_v43 = vpop.f32.mrf.mxu1 }
 0x180   :  { %13478 = vst [vmem:[#allocation89_spill] sm:$0xff] %v7833_v35 }
 0x181   :  { %13479 = vst [vmem:[#allocation90_spill] sm:$0xff] %v7841_v38 }
 0x182   :  { %13480 = vst [vmem:[#allocation91_spill] sm:$0xff] %v7843_v43  ;;  %409 = vmatmul.f32.gmra.mxu0 %v112_v8  ;;  %618 = vmatmul.f32.gmra.mxu1 %v112_v8  ;;  %v113_v43 = vld [vmem:[%s13283_s0 + $0x188] sm:$0xff] }
 0x183   :  { %827 = vmatmul.f32.gmra.mxu2 %v112_v8  ;;  %1036 = vmatmul.f32.gmra.mxu3 %v112_v8 }
 0x186   :  { %v7848_v58 = vpop.f32.mrf.mxu2  ;;  %v7850_v35 = vpop.f32.mrf.mxu3 }
 0x187   :  { %13481 = vst [vmem:[#allocation92_spill] sm:$0xff] %v7848_v58  ;;  %v7852_v53 = vpop.f32.mrf.mxu0  ;;  %v7854_v48 = vpop.f32.mrf.mxu1 }
 0x188   :  { %13482 = vst [vmem:[#allocation93_spill] sm:$0xff] %v7850_v35 }
 0x189   :  { %13483 = vst [vmem:[#allocation94_spill] sm:$0xff] %v7852_v53 }
 0x18a   :  { %13484 = vst [vmem:[#allocation95_spill] sm:$0xff] %v7854_v48  ;;  %412 = vmatmul.f32.gmra.mxu0 %v113_v43  ;;  %621 = vmatmul.f32.gmra.mxu1 %v113_v43  ;;  %v114_v48 = vld [vmem:[%s13283_s0 + $0x190] sm:$0xff] }
 0x18b   :  { %830 = vmatmul.f32.gmra.mxu2 %v113_v43  ;;  %1039 = vmatmul.f32.gmra.mxu3 %v113_v43 }
 0x18e   :  { %v7859_v59 = vpop.f32.mrf.mxu2  ;;  %v7861_v19 = vpop.f32.mrf.mxu3 }
 0x18f   :  { %13485 = vst [vmem:[#allocation96_spill] sm:$0xff] %v7859_v59  ;;  %v7863_v8 = vpop.f32.mrf.mxu0  ;;  %v7865_v58 = vpop.f32.mrf.mxu1 }
 0x190   :  { %13486 = vst [vmem:[#allocation97_spill] sm:$0xff] %v7861_v19 }
 0x191   :  { %13487 = vst [vmem:[#allocation98_spill] sm:$0xff] %v7863_v8  ;;  %v142_v8 = vld [vmem:[%s13282_s1 + $0x70] sm:$0xff] }
 0x192   :  { %13488 = vst [vmem:[#allocation99_spill] sm:$0xff] %v7865_v58  ;;  %415 = vmatmul.f32.gmra.mxu0 %v114_v48  ;;  %624 = vmatmul.f32.gmra.mxu1 %v114_v48  ;;  %v115_v58 = vld [vmem:[%s13283_s0 + $0x198] sm:$0xff] }
 0x193   :  { %833 = vmatmul.f32.gmra.mxu2 %v114_v48  ;;  %1042 = vmatmul.f32.gmra.mxu3 %v114_v48  ;;  %v143_v48 = vld [vmem:[%s13282_s1 + $0x78] sm:$0xff] }
 0x194   :  { %1527 = vmatpush.msrb.mxu2 %v142_v8  ;;  %1736 = vmatpush.msrb.mxu3 %v143_v48 }
 0x196   :  { %v7870_v53 = vpop.f32.mrf.mxu2  ;;  %v7872_v35 = vpop.f32.mrf.mxu3 }
 0x197   :  { %13489 = vst [vmem:[#allocation100_spill] sm:$0xff] %v7870_v53  ;;  %v7874_v43 = vpop.f32.mrf.mxu0  ;;  %v7876_v59 = vpop.f32.mrf.mxu1  ;;  %v141_v53 = vld [vmem:[%s13282_s1 + $0x68] sm:$0xff] }
 0x198   :  { %13490 = vst [vmem:[#allocation101_spill] sm:$0xff] %v7872_v35  ;;  %v140_v35 = vld [vmem:[%s13282_s1 + $0x60] sm:$0xff]  ;;  %1318 = vmatpush.msrb.mxu1 %v141_v53 }
 0x199   :  { %13491 = vst [vmem:[#allocation102_spill] sm:$0xff] %v7874_v43  ;;  %1109 = vmatpush.msrb.mxu0 %v140_v35 }
 0x19a   :  { %13492 = vst [vmem:[#allocation103_spill] sm:$0xff] %v7876_v59  ;;  %418 = vmatmul.f32.gmra.mxu0 %v115_v58  ;;  %627 = vmatmul.f32.gmra.mxu1 %v115_v58 }
 0x19b   :  { %836 = vmatmul.f32.gmra.mxu2 %v115_v58  ;;  %1045 = vmatmul.f32.gmra.mxu3 %v115_v58  ;;  %v116_v58 = vld [vmem:[%s13283_s0 + $0x1a0] sm:$0xff] }
 0x19e   :  { %v7887_v43 = vpop.f32.mrf.mxu2  ;;  %v7889_v59 = vpop.f32.mrf.mxu3 }
 0x19f   :  { %13493 = vst [vmem:[#allocation104_spill] sm:$0xff] %v7887_v43  ;;  %v7897_v19 = vpop.f32.mrf.mxu0  ;;  %v7899_v8 = vpop.f32.mrf.mxu1 }
 0x1a0   :  { %13494 = vst [vmem:[#allocation105_spill] sm:$0xff] %v7889_v59 }
 0x1a1   :  { %13495 = vst [vmem:[#allocation106_spill] sm:$0xff] %v7897_v19 }
 0x1a2   :  { %13496 = vst [vmem:[#allocation107_spill] sm:$0xff] %v7899_v8  ;;  %421 = vmatmul.f32.gmra.mxu0 %v116_v58  ;;  %630 = vmatmul.f32.gmra.mxu1 %v116_v58  ;;  %v117_v8 = vld [vmem:[%s13283_s0 + $0x1a8] sm:$0xff] }
 0x1a3   :  { %839 = vmatmul.f32.gmra.mxu2 %v116_v58  ;;  %1048 = vmatmul.f32.gmra.mxu3 %v116_v58 }
 0x1a6   :  { %v7904_v48 = vpop.f32.mrf.mxu2  ;;  %v7906_v59 = vpop.f32.mrf.mxu3 }
 0x1a7   :  { %13497 = vst [vmem:[#allocation108_spill] sm:$0xff] %v7904_v48  ;;  %v7908_v43 = vpop.f32.mrf.mxu0  ;;  %v7910_v38 = vpop.f32.mrf.mxu1 }
 0x1a8   :  { %13498 = vst [vmem:[#allocation109_spill] sm:$0xff] %v7906_v59 }
 0x1a9   :  { %13499 = vst [vmem:[#allocation110_spill] sm:$0xff] %v7908_v43 }
 0x1aa   :  { %13500 = vst [vmem:[#allocation111_spill] sm:$0xff] %v7910_v38  ;;  %424 = vmatmul.f32.gmra.mxu0 %v117_v8  ;;  %633 = vmatmul.f32.gmra.mxu1 %v117_v8  ;;  %v118_v38 = vld [vmem:[%s13283_s0 + $0x1b0] sm:$0xff] }
 0x1ab   :  { %842 = vmatmul.f32.gmra.mxu2 %v117_v8  ;;  %1051 = vmatmul.f32.gmra.mxu3 %v117_v8 }
 0x1ae   :  { %v7915_v35 = vpop.f32.mrf.mxu2  ;;  %v7917_v53 = vpop.f32.mrf.mxu3 }
 0x1af   :  { %13501 = vst [vmem:[#allocation112_spill] sm:$0xff] %v7915_v35  ;;  %v7919_v58 = vpop.f32.mrf.mxu0  ;;  %v7921_v19 = vpop.f32.mrf.mxu1 }
 0x1b0   :  { %13502 = vst [vmem:[#allocation113_spill] sm:$0xff] %v7917_v53 }
 0x1b1   :  { %13503 = vst [vmem:[#allocation114_spill] sm:$0xff] %v7919_v58  ;;  %v138_v58 = vld [vmem:[%s13282_s1 + $0x50] sm:$0xff] }
 0x1b2   :  { %13504 = vst [vmem:[#allocation115_spill] sm:$0xff] %v7921_v19  ;;  %427 = vmatmul.f32.gmra.mxu0 %v118_v38  ;;  %636 = vmatmul.f32.gmra.mxu1 %v118_v38  ;;  %v119_v19 = vld [vmem:[%s13283_s0 + $0x1b8] sm:$0xff] }
 0x1b3   :  { %845 = vmatmul.f32.gmra.mxu2 %v118_v38  ;;  %1054 = vmatmul.f32.gmra.mxu3 %v118_v38  ;;  %v139_v38 = vld [vmem:[%s13282_s1 + $0x58] sm:$0xff] }
 0x1b4   :  { %1528 = vmatpush.msrb.mxu2 %v138_v58  ;;  %1737 = vmatpush.msrb.mxu3 %v139_v38 }
 0x1b6   :  { %v7926_v43 = vpop.f32.mrf.mxu2  ;;  %v7928_v59 = vpop.f32.mrf.mxu3 }
 0x1b7   :  { %13505 = vst [vmem:[#allocation116_spill] sm:$0xff] %v7926_v43  ;;  %v7930_v8 = vpop.f32.mrf.mxu0  ;;  %v7932_v35 = vpop.f32.mrf.mxu1  ;;  %v137_v43 = vld [vmem:[%s13282_s1 + $0x48] sm:$0xff] }
 0x1b8   :  { %13506 = vst [vmem:[#allocation117_spill] sm:$0xff] %v7928_v59  ;;  %v136_v59 = vld [vmem:[%s13282_s1 + $0x40] sm:$0xff]  ;;  %1319 = vmatpush.msrb.mxu1 %v137_v43 }
 0x1b9   :  { %13507 = vst [vmem:[#allocation118_spill] sm:$0xff] %v7930_v8  ;;  %1110 = vmatpush.msrb.mxu0 %v136_v59 }
 0x1ba   :  { %13508 = vst [vmem:[#allocation119_spill] sm:$0xff] %v7932_v35  ;;  %430 = vmatmul.f32.gmra.mxu0 %v119_v19  ;;  %639 = vmatmul.f32.gmra.mxu1 %v119_v19 }
 0x1bb   :  { %848 = vmatmul.f32.gmra.mxu2 %v119_v19  ;;  %1057 = vmatmul.f32.gmra.mxu3 %v119_v19  ;;  %v120_v19 = vld [vmem:[%s13283_s0 + $0x1c0] sm:$0xff] }
 0x1be   :  { %v7943_v8 = vpop.f32.mrf.mxu2  ;;  %v7945_v35 = vpop.f32.mrf.mxu3 }
 0x1bf   :  { %13509 = vst [vmem:[#allocation120_spill] sm:$0xff] %v7943_v8  ;;  %v7953_v53 = vpop.f32.mrf.mxu0  ;;  %v7955_v58 = vpop.f32.mrf.mxu1 }
 0x1c0   :  { %13510 = vst [vmem:[#allocation121_spill] sm:$0xff] %v7945_v35 }
 0x1c1   :  { %13511 = vst [vmem:[#allocation122_spill] sm:$0xff] %v7953_v53 }
 0x1c2   :  { %13512 = vst [vmem:[#allocation123_spill] sm:$0xff] %v7955_v58  ;;  %433 = vmatmul.f32.gmra.mxu0 %v120_v19  ;;  %642 = vmatmul.f32.gmra.mxu1 %v120_v19  ;;  %v121_v58 = vld [vmem:[%s13283_s0 + $0x1c8] sm:$0xff] }
 0x1c3   :  { %851 = vmatmul.f32.gmra.mxu2 %v120_v19  ;;  %1060 = vmatmul.f32.gmra.mxu3 %v120_v19 }
 0x1c6   :  { %v7960_v38 = vpop.f32.mrf.mxu2  ;;  %v7962_v35 = vpop.f32.mrf.mxu3 }
 0x1c7   :  { %13513 = vst [vmem:[#allocation124_spill] sm:$0xff] %v7960_v38  ;;  %v7964_v8 = vpop.f32.mrf.mxu0  ;;  %v7966_v48 = vpop.f32.mrf.mxu1 }
 0x1c8   :  { %13514 = vst [vmem:[#allocation125_spill] sm:$0xff] %v7962_v35 }
 0x1c9   :  { %13515 = vst [vmem:[#allocation126_spill] sm:$0xff] %v7964_v8 }
 0x1ca   :  { %13516 = vst [vmem:[#allocation127_spill] sm:$0xff] %v7966_v48  ;;  %436 = vmatmul.f32.gmra.mxu0 %v121_v58  ;;  %645 = vmatmul.f32.gmra.mxu1 %v121_v58  ;;  %v122_v48 = vld [vmem:[%s13283_s0 + $0x1d0] sm:$0xff] }
 0x1cb   :  { %854 = vmatmul.f32.gmra.mxu2 %v121_v58  ;;  %1063 = vmatmul.f32.gmra.mxu3 %v121_v58 }
 0x1ce   :  { %v7971_v59 = vpop.f32.mrf.mxu2  ;;  %v7973_v43 = vpop.f32.mrf.mxu3 }
 0x1cf   :  { %13517 = vst [vmem:[#allocation128_spill] sm:$0xff] %v7971_v59  ;;  %v7975_v19 = vpop.f32.mrf.mxu0  ;;  %v7977_v38 = vpop.f32.mrf.mxu1 }
 0x1d0   :  { %13518 = vst [vmem:[#allocation129_spill] sm:$0xff] %v7973_v43 }
 0x1d1   :  { %13519 = vst [vmem:[#allocation130_spill] sm:$0xff] %v7975_v19  ;;  %v134_v19 = vld [vmem:[%s13282_s1 + $0x30] sm:$0xff] }
 0x1d2   :  { %13520 = vst [vmem:[#allocation131_spill] sm:$0xff] %v7977_v38  ;;  %439 = vmatmul.f32.gmra.mxu0 %v122_v48  ;;  %648 = vmatmul.f32.gmra.mxu1 %v122_v48  ;;  %v123_v38 = vld [vmem:[%s13283_s0 + $0x1d8] sm:$0xff] }
 0x1d3   :  { %857 = vmatmul.f32.gmra.mxu2 %v122_v48  ;;  %1066 = vmatmul.f32.gmra.mxu3 %v122_v48  ;;  %v135_v48 = vld [vmem:[%s13282_s1 + $0x38] sm:$0xff] }
 0x1d4   :  { %1529 = vmatpush.msrb.mxu2 %v134_v19  ;;  %1738 = vmatpush.msrb.mxu3 %v135_v48 }
 0x1d6   :  { %v7982_v8 = vpop.f32.mrf.mxu2  ;;  %v7984_v35 = vpop.f32.mrf.mxu3 }
 0x1d7   :  { %13521 = vst [vmem:[#allocation132_spill] sm:$0xff] %v7982_v8  ;;  %v7986_v58 = vpop.f32.mrf.mxu0  ;;  %v7988_v59 = vpop.f32.mrf.mxu1  ;;  %v133_v8 = vld [vmem:[%s13282_s1 + $0x28] sm:$0xff] }
 0x1d8   :  { %13522 = vst [vmem:[#allocation133_spill] sm:$0xff] %v7984_v35  ;;  %v132_v35 = vld [vmem:[%s13282_s1 + $0x20] sm:$0xff]  ;;  %1320 = vmatpush.msrb.mxu1 %v133_v8 }
 0x1d9   :  { %13523 = vst [vmem:[#allocation134_spill] sm:$0xff] %v7986_v58  ;;  %1111 = vmatpush.msrb.mxu0 %v132_v35 }
 0x1da   :  { %13524 = vst [vmem:[#allocation135_spill] sm:$0xff] %v7988_v59  ;;  %442 = vmatmul.f32.gmra.mxu0 %v123_v38  ;;  %651 = vmatmul.f32.gmra.mxu1 %v123_v38 }
 0x1db   :  { %860 = vmatmul.f32.gmra.mxu2 %v123_v38  ;;  %1069 = vmatmul.f32.gmra.mxu3 %v123_v38  ;;  %v124_v38 = vld [vmem:[%s13283_s0 + $0x1e0] sm:$0xff] }
 0x1de   :  { %v7999_v58 = vpop.f32.mrf.mxu2  ;;  %v8001_v59 = vpop.f32.mrf.mxu3 }
 0x1df   :  { %13525 = vst [vmem:[#allocation136_spill] sm:$0xff] %v7999_v58  ;;  %v8009_v43 = vpop.f32.mrf.mxu0  ;;  %v8011_v19 = vpop.f32.mrf.mxu1 }
 0x1e0   :  { %13526 = vst [vmem:[#allocation137_spill] sm:$0xff] %v8001_v59 }
 0x1e1   :  { %13527 = vst [vmem:[#allocation138_spill] sm:$0xff] %v8009_v43 }
 0x1e2   :  { %13528 = vst [vmem:[#allocation139_spill] sm:$0xff] %v8011_v19  ;;  %445 = vmatmul.f32.gmra.mxu0 %v124_v38  ;;  %654 = vmatmul.f32.gmra.mxu1 %v124_v38  ;;  %v125_v19 = vld [vmem:[%s13283_s0 + $0x1e8] sm:$0xff] }
 0x1e3   :  { %863 = vmatmul.f32.gmra.mxu2 %v124_v38  ;;  %1072 = vmatmul.f32.gmra.mxu3 %v124_v38 }
 0x1e6   :  { %v8016_v48 = vpop.f32.mrf.mxu2  ;;  %v8018_v59 = vpop.f32.mrf.mxu3 }
 0x1e7   :  { %13529 = vst [vmem:[#allocation140_spill] sm:$0xff] %v8016_v48  ;;  %v8020_v58 = vpop.f32.mrf.mxu0  ;;  %v8022_v53 = vpop.f32.mrf.mxu1 }
 0x1e8   :  { %13530 = vst [vmem:[#allocation141_spill] sm:$0xff] %v8018_v59 }
 0x1e9   :  { %13531 = vst [vmem:[#allocation142_spill] sm:$0xff] %v8020_v58 }
 0x1ea   :  { %13532 = vst [vmem:[#allocation143_spill] sm:$0xff] %v8022_v53  ;;  %448 = vmatmul.f32.gmra.mxu0 %v125_v19  ;;  %657 = vmatmul.f32.gmra.mxu1 %v125_v19  ;;  %v126_v53 = vld [vmem:[%s13283_s0 + $0x1f0] sm:$0xff] }
 0x1eb   :  { %866 = vmatmul.f32.gmra.mxu2 %v125_v19  ;;  %1075 = vmatmul.f32.gmra.mxu3 %v125_v19 }
 0x1ee   :  { %v8027_v35 = vpop.f32.mrf.mxu2  ;;  %v8029_v8 = vpop.f32.mrf.mxu3 }
 0x1ef   :  { %13533 = vst [vmem:[#allocation144_spill] sm:$0xff] %v8027_v35  ;;  %v8031_v38 = vpop.f32.mrf.mxu0  ;;  %v8033_v43 = vpop.f32.mrf.mxu1 }
 0x1f0   :  { %13534 = vst [vmem:[#allocation145_spill] sm:$0xff] %v8029_v8 }
 0x1f1   :  { %13535 = vst [vmem:[#allocation146_spill] sm:$0xff] %v8031_v38  ;;  %v130_v38 = vld [vmem:[%s13282_s1 + $0x10] sm:$0xff] }
 0x1f2   :  { %13536 = vst [vmem:[#allocation147_spill] sm:$0xff] %v8033_v43  ;;  %451 = vmatmul.f32.gmra.mxu0 %v126_v53  ;;  %660 = vmatmul.f32.gmra.mxu1 %v126_v53  ;;  %v127_v43 = vld [vmem:[%s13283_s0 + $0x1f8] sm:$0xff] }
 0x1f3   :  { %869 = vmatmul.f32.gmra.mxu2 %v126_v53  ;;  %1078 = vmatmul.f32.gmra.mxu3 %v126_v53  ;;  %v131_v53 = vld [vmem:[%s13282_s1 + $0x18] sm:$0xff] }
 0x1f4   :  { %1530 = vmatpush.msrb.mxu2 %v130_v38  ;;  %1739 = vmatpush.msrb.mxu3 %v131_v53 }
 0x1f6   :  { %v8038_v58 = vpop.f32.mrf.mxu2  ;;  %v8040_v59 = vpop.f32.mrf.mxu3 }
 0x1f7   :  { %13537 = vst [vmem:[#allocation148_spill] sm:$0xff] %v8038_v58  ;;  %v8042_v19 = vpop.f32.mrf.mxu0  ;;  %v8044_v35 = vpop.f32.mrf.mxu1  ;;  %v129_v58 = vld [vmem:[%s13282_s1 + $0x8] sm:$0xff] }
 0x1f8   :  { %13538 = vst [vmem:[#allocation149_spill] sm:$0xff] %v8040_v59  ;;  %v128_v59 = vld [vmem:[%s13282_s1] sm:$0xff]  ;;  %1321 = vmatpush.msrb.mxu1 %v129_v58 }
 0x1f9   :  { %13539 = vst [vmem:[#allocation150_spill] sm:$0xff] %v8042_v19  ;;  %1112 = vmatpush.msrb.mxu0 %v128_v59 }
 0x1fa   :  { %13540 = vst [vmem:[#allocation151_spill] sm:$0xff] %v8044_v35  ;;  %454 = vmatmul.f32.gmra.mxu0 %v127_v43  ;;  %663 = vmatmul.f32.gmra.mxu1 %v127_v43 }
 0x1fb   :  { %872 = vmatmul.f32.gmra.mxu2 %v127_v43  ;;  %1081 = vmatmul.f32.gmra.mxu3 %v127_v43  ;;  %v192_v43 = vld [vmem:[%s13283_s0 + $0x200] sm:$0xff] }
 0x1fe   :  { %v8055_v19 = vpop.f32.mrf.mxu2  ;;  %v8057_v35 = vpop.f32.mrf.mxu3 }
 0x1ff   :  { %13541 = vst [vmem:[#allocation152_spill] sm:$0xff] %v8055_v19  ;;  %v8065_v8 = vpop.f32.mrf.mxu0  ;;  %v8067_v38 = vpop.f32.mrf.mxu1 }
 0x200   :  { %13542 = vst [vmem:[#allocation153_spill] sm:$0xff] %v8057_v35 }
 0x201   :  { %13543 = vst [vmem:[#allocation154_spill] sm:$0xff] %v8065_v8 }
 0x202   :  { %13544 = vst [vmem:[#allocation155_spill] sm:$0xff] %v8067_v38  ;;  %457 = vmatmul.f32.gmra.mxu0 %v192_v43  ;;  %666 = vmatmul.f32.gmra.mxu1 %v192_v43  ;;  %v193_v38 = vld [vmem:[%s13283_s0 + $0x208] sm:$0xff] }
 0x203   :  { %875 = vmatmul.f32.gmra.mxu2 %v192_v43  ;;  %1084 = vmatmul.f32.gmra.mxu3 %v192_v43 }
 0x206   :  { %v8072_v53 = vpop.f32.mrf.mxu2  ;;  %v8074_v35 = vpop.f32.mrf.mxu3 }
 0x207   :  { %13545 = vst [vmem:[#allocation156_spill] sm:$0xff] %v8072_v53  ;;  %v8076_v19 = vpop.f32.mrf.mxu0  ;;  %v8078_v48 = vpop.f32.mrf.mxu1 }
 0x208   :  { %13546 = vst [vmem:[#allocation157_spill] sm:$0xff] %v8074_v35 }
 0x209   :  { %13547 = vst [vmem:[#allocation158_spill] sm:$0xff] %v8076_v19 }
 0x20a   :  { %13548 = vst [vmem:[#allocation159_spill] sm:$0xff] %v8078_v48  ;;  %460 = vmatmul.f32.gmra.mxu0 %v193_v38  ;;  %669 = vmatmul.f32.gmra.mxu1 %v193_v38  ;;  %v194_v48 = vld [vmem:[%s13283_s0 + $0x210] sm:$0xff] }
 0x20b   :  { %878 = vmatmul.f32.gmra.mxu2 %v193_v38  ;;  %1087 = vmatmul.f32.gmra.mxu3 %v193_v38 }
 0x20e   :  { %v8083_v59 = vpop.f32.mrf.mxu2  ;;  %v8085_v58 = vpop.f32.mrf.mxu3 }
 0x20f   :  { %13549 = vst [vmem:[#allocation160_spill] sm:$0xff] %v8083_v59  ;;  %v8087_v43 = vpop.f32.mrf.mxu0  ;;  %v8089_v53 = vpop.f32.mrf.mxu1 }
 0x210   :  { %13550 = vst [vmem:[#allocation161_spill] sm:$0xff] %v8085_v58 }
 0x211   :  { %13551 = vst [vmem:[#allocation162_spill] sm:$0xff] %v8087_v43  ;;  %v6741_v43 = vld [vmem:[%s13282_s1 + $0x5f0] sm:$0xff] }
 0x212   :  { %13552 = vst [vmem:[#allocation163_spill] sm:$0xff] %v8089_v53  ;;  %463 = vmatmul.f32.gmra.mxu0 %v194_v48  ;;  %672 = vmatmul.f32.gmra.mxu1 %v194_v48  ;;  %v195_v53 = vld [vmem:[%s13283_s0 + $0x218] sm:$0xff] }
 0x213   :  { %881 = vmatmul.f32.gmra.mxu2 %v194_v48  ;;  %1090 = vmatmul.f32.gmra.mxu3 %v194_v48  ;;  %v6742_v48 = vld [vmem:[%s13282_s1 + $0x5f8] sm:$0xff] }
 0x214   :  { %2480 = vmatpush.msra.mxu2 %v6741_v43  ;;  %2689 = vmatpush.msra.mxu3 %v6742_v48 }
 0x216   :  { %v8094_v19 = vpop.f32.mrf.mxu2  ;;  %v8096_v35 = vpop.f32.mrf.mxu3 }
 0x217   :  { %13553 = vst [vmem:[#allocation164_spill] sm:$0xff] %v8094_v19  ;;  %v8098_v38 = vpop.f32.mrf.mxu0  ;;  %v8100_v59 = vpop.f32.mrf.mxu1  ;;  %v6740_v19 = vld [vmem:[%s13282_s1 + $0x5e8] sm:$0xff] }
 0x218   :  { %13554 = vst [vmem:[#allocation165_spill] sm:$0xff] %v8096_v35  ;;  %v6739_v35 = vld [vmem:[%s13282_s1 + $0x5e0] sm:$0xff]  ;;  %2271 = vmatpush.msra.mxu1 %v6740_v19 }
 0x219   :  { %13555 = vst [vmem:[#allocation166_spill] sm:$0xff] %v8098_v38  ;;  %2062 = vmatpush.msra.mxu0 %v6739_v35 }
 0x21a   :  { %13556 = vst [vmem:[#allocation167_spill] sm:$0xff] %v8100_v59  ;;  %466 = vmatmul.f32.gmra.mxu0 %v195_v53  ;;  %675 = vmatmul.f32.gmra.mxu1 %v195_v53 }
 0x21b   :  { %884 = vmatmul.f32.gmra.mxu2 %v195_v53  ;;  %1093 = vmatmul.f32.gmra.mxu3 %v195_v53  ;;  %v64_v53 = vld [vmem:[%s13283_s0] sm:$0xff] }
 0x21e   :  { %v8111_v38 = vpop.f32.mrf.mxu2  ;;  %v8113_v59 = vpop.f32.mrf.mxu3 }
 0x21f   :  { %13557 = vst [vmem:[#allocation168_spill] sm:$0xff] %v8111_v38  ;;  %v8121_v58 = vpop.f32.mrf.mxu0  ;;  %v8123_v43 = vpop.f32.mrf.mxu1 }
 0x220   :  { %13558 = vst [vmem:[#allocation169_spill] sm:$0xff] %v8113_v59 }
 0x221   :  { %13559 = vst [vmem:[#allocation170_spill] sm:$0xff] %v8121_v58 }
 0x222   :  { %13560 = vst [vmem:[#allocation171_spill] sm:$0xff] %v8123_v43  ;;  %1113 = vmatmul.f32.vlgmr.msrb.gmra.mxu0 %v64_v53  ;;  %1322 = vmatmul.f32.vlgmr.msrb.gmra.mxu1 %v64_v53  ;;  %v65_v43 = vld [vmem:[%s13283_s0 + $0x8] sm:$0xff] }
 0x223   :  { %1531 = vmatmul.f32.vlgmr.msrb.gmra.mxu2 %v64_v53  ;;  %1740 = vmatmul.f32.vlgmr.msrb.gmra.mxu3 %v64_v53 }
 0x226   :  { %v8128_v48 = vpop.f32.mrf.mxu2  ;;  %v8130_v59 = vpop.f32.mrf.mxu3 }
 0x227   :  { %13561 = vst [vmem:[#allocation172_spill] sm:$0xff] %v8128_v48  ;;  %v8132_v38 = vpop.f32.mrf.mxu0  ;;  %v8134_v8 = vpop.f32.mrf.mxu1 }
 0x228   :  { %13562 = vst [vmem:[#allocation173_spill] sm:$0xff] %v8130_v59 }
 0x229   :  { %13563 = vst [vmem:[#allocation174_spill] sm:$0xff] %v8132_v38 }
 0x22a   :  { %13564 = vst [vmem:[#allocation175_spill] sm:$0xff] %v8134_v8  ;;  %1116 = vmatmul.f32.gmra.mxu0 %v65_v43  ;;  %1325 = vmatmul.f32.gmra.mxu1 %v65_v43  ;;  %v66_v8 = vld [vmem:[%s13283_s0 + $0x10] sm:$0xff] }
 0x22b   :  { %1534 = vmatmul.f32.gmra.mxu2 %v65_v43  ;;  %1743 = vmatmul.f32.gmra.mxu3 %v65_v43 }
 0x22e   :  { %v8139_v35 = vpop.f32.mrf.mxu2  ;;  %v8141_v19 = vpop.f32.mrf.mxu3 }
 0x22f   :  { %13565 = vst [vmem:[#allocation176_spill] sm:$0xff] %v8139_v35  ;;  %v8143_v53 = vpop.f32.mrf.mxu0  ;;  %v8145_v58 = vpop.f32.mrf.mxu1 }
 0x230   :  { %13566 = vst [vmem:[#allocation177_spill] sm:$0xff] %v8141_v19 }
 0x231   :  { %13567 = vst [vmem:[#allocation178_spill] sm:$0xff] %v8143_v53  ;;  %v6737_v53 = vld [vmem:[%s13282_s1 + $0x5d0] sm:$0xff] }
 0x232   :  { %13568 = vst [vmem:[#allocation179_spill] sm:$0xff] %v8145_v58  ;;  %1119 = vmatmul.f32.gmra.mxu0 %v66_v8  ;;  %1328 = vmatmul.f32.gmra.mxu1 %v66_v8  ;;  %v67_v58 = vld [vmem:[%s13283_s0 + $0x18] sm:$0xff] }
 0x233   :  { %1537 = vmatmul.f32.gmra.mxu2 %v66_v8  ;;  %1746 = vmatmul.f32.gmra.mxu3 %v66_v8  ;;  %v6738_v8 = vld [vmem:[%s13282_s1 + $0x5d8] sm:$0xff] }
 0x234   :  { %2481 = vmatpush.msra.mxu2 %v6737_v53  ;;  %2690 = vmatpush.msra.mxu3 %v6738_v8 }
 0x236   :  { %v8150_v38 = vpop.f32.mrf.mxu2  ;;  %v8152_v59 = vpop.f32.mrf.mxu3 }
 0x237   :  { %13569 = vst [vmem:[#allocation180_spill] sm:$0xff] %v8150_v38  ;;  %v8154_v43 = vpop.f32.mrf.mxu0  ;;  %v8156_v35 = vpop.f32.mrf.mxu1  ;;  %v6736_v38 = vld [vmem:[%s13282_s1 + $0x5c8] sm:$0xff] }
 0x238   :  { %13570 = vst [vmem:[#allocation181_spill] sm:$0xff] %v8152_v59  ;;  %v6735_v59 = vld [vmem:[%s13282_s1 + $0x5c0] sm:$0xff]  ;;  %2272 = vmatpush.msra.mxu1 %v6736_v38 }
 0x239   :  { %13571 = vst [vmem:[#allocation182_spill] sm:$0xff] %v8154_v43  ;;  %2063 = vmatpush.msra.mxu0 %v6735_v59  ;;  %v7038_v59 = vld [vmem:[%s13283_s0 + $0x28] sm:$0xff] }
 0x23a   :  { %13572 = vst [vmem:[#allocation183_spill] sm:$0xff] %v8156_v35  ;;  %1122 = vmatmul.f32.gmra.mxu0 %v67_v58  ;;  %1331 = vmatmul.f32.gmra.mxu1 %v67_v58 }
 0x23b   :  { %1540 = vmatmul.f32.gmra.mxu2 %v67_v58  ;;  %1749 = vmatmul.f32.gmra.mxu3 %v67_v58  ;;  %v7037_v58 = vld [vmem:[%s13283_s0 + $0x20] sm:$0xff] }
 0x23e   :  { %v8167_v43 = vpop.f32.mrf.mxu2  ;;  %v8169_v35 = vpop.f32.mrf.mxu3 }
 0x23f   :  { %13573 = vst [vmem:[#allocation184_spill] sm:$0xff] %v8167_v43  ;;  %v8177_v19 = vpop.f32.mrf.mxu0  ;;  %v8179_v53 = vpop.f32.mrf.mxu1 }
 0x240   :  { %13574 = vst [vmem:[#allocation185_spill] sm:$0xff] %v8169_v35 }
 0x241   :  { %13575 = vst [vmem:[#allocation186_spill] sm:$0xff] %v8177_v19 }
 0x242   :  { %13576 = vst [vmem:[#allocation187_spill] sm:$0xff] %v8179_v53  ;;  %1125 = vmatmul.f32.gmra.mxu0 %v7037_v58  ;;  %1334 = vmatmul.f32.gmra.mxu1 %v7037_v58 }
 0x243   :  { %1543 = vmatmul.f32.gmra.mxu2 %v7037_v58  ;;  %1752 = vmatmul.f32.gmra.mxu3 %v7037_v58 }
 0x246   :  { %v8184_v8 = vpop.f32.mrf.mxu2  ;;  %v8186_v35 = vpop.f32.mrf.mxu3 }
 0x247   :  { %13577 = vst [vmem:[#allocation188_spill] sm:$0xff] %v8184_v8  ;;  %v8188_v43 = vpop.f32.mrf.mxu0  ;;  %v8190_v48 = vpop.f32.mrf.mxu1 }
 0x248   :  { %13578 = vst [vmem:[#allocation189_spill] sm:$0xff] %v8186_v35 }
 0x249   :  { %13579 = vst [vmem:[#allocation190_spill] sm:$0xff] %v8188_v43 }
 0x24a   :  { %13580 = vst [vmem:[#allocation191_spill] sm:$0xff] %v8190_v48  ;;  %1128 = vmatmul.f32.gmra.mxu0 %v7038_v59  ;;  %1337 = vmatmul.f32.gmra.mxu1 %v7038_v59  ;;  %v7039_v48 = vld [vmem:[%s13283_s0 + $0x30] sm:$0xff] }
 0x24b   :  { %1546 = vmatmul.f32.gmra.mxu2 %v7038_v59  ;;  %1755 = vmatmul.f32.gmra.mxu3 %v7038_v59 }
 0x24e   :  { %v8195_v38 = vpop.f32.mrf.mxu2  ;;  %v8197_v53 = vpop.f32.mrf.mxu3 }
 0x24f   :  { %13581 = vst [vmem:[#allocation192_spill] sm:$0xff] %v8195_v38  ;;  %v8199_v58 = vpop.f32.mrf.mxu0  ;;  %v8201_v8 = vpop.f32.mrf.mxu1 }
 0x250   :  { %13582 = vst [vmem:[#allocation193_spill] sm:$0xff] %v8197_v53 }
 0x251   :  { %13583 = vst [vmem:[#allocation194_spill] sm:$0xff] %v8199_v58  ;;  %v6734_v58 = vld [vmem:[%s13282_s1 + $0x5b8] sm:$0xff] }
 0x252   :  { %13584 = vst [vmem:[#allocation195_spill] sm:$0xff] %v8201_v8  ;;  %1131 = vmatmul.f32.gmra.mxu0 %v7039_v48  ;;  %1340 = vmatmul.f32.gmra.mxu1 %v7039_v48  ;;  %v6733_v8 = vld [vmem:[%s13282_s1 + $0x5b0] sm:$0xff] }
 0x253   :  { %1549 = vmatmul.f32.gmra.mxu2 %v7039_v48  ;;  %1758 = vmatmul.f32.gmra.mxu3 %v7039_v48  ;;  %v7040_v48 = vld [vmem:[%s13283_s0 + $0x38] sm:$0xff] }
 0x254   :  { %2482 = vmatpush.msra.mxu2 %v6733_v8  ;;  %2691 = vmatpush.msra.mxu3 %v6734_v58  ;;  %v6732_v8 = vld [vmem:[%s13282_s1 + $0x5a8] sm:$0xff] }
 0x255   :  { %2273 = vmatpush.msra.mxu1 %v6732_v8 }
 0x256   :  { %v8206_v43 = vpop.f32.mrf.mxu2  ;;  %v8208_v35 = vpop.f32.mrf.mxu3 }
 0x257   :  { %13585 = vst [vmem:[#allocation196_spill] sm:$0xff] %v8206_v43  ;;  %v8210_v59 = vpop.f32.mrf.mxu0  ;;  %v8212_v38 = vpop.f32.mrf.mxu1 }
 0x258   :  { %13586 = vst [vmem:[#allocation197_spill] sm:$0xff] %v8208_v35  ;;  %v6731_v35 = vld [vmem:[%s13282_s1 + $0x5a0] sm:$0xff] }
 0x259   :  { %13587 = vst [vmem:[#allocation198_spill] sm:$0xff] %v8210_v59  ;;  %2064 = vmatpush.msra.mxu0 %v6731_v35  ;;  %v7042_v35 = vld [vmem:[%s13283_s0 + $0x48] sm:$0xff] }
 0x25a   :  { %13588 = vst [vmem:[#allocation199_spill] sm:$0xff] %v8212_v38  ;;  %1134 = vmatmul.f32.gmra.mxu0 %v7040_v48  ;;  %1343 = vmatmul.f32.gmra.mxu1 %v7040_v48 }
 0x25b   :  { %1552 = vmatmul.f32.gmra.mxu2 %v7040_v48  ;;  %1761 = vmatmul.f32.gmra.mxu3 %v7040_v48  ;;  %v7041_v48 = vld [vmem:[%s13283_s0 + $0x40] sm:$0xff] }
 0x25e   :  { %v8223_v59 = vpop.f32.mrf.mxu2  ;;  %v8225_v38 = vpop.f32.mrf.mxu3 }
 0x25f   :  { %13589 = vst [vmem:[#allocation200_spill] sm:$0xff] %v8223_v59  ;;  %v8233_v58 = vpop.f32.mrf.mxu0  ;;  %v8235_v43 = vpop.f32.mrf.mxu1 }
 0x260   :  { %13590 = vst [vmem:[#allocation201_spill] sm:$0xff] %v8225_v38 }
 0x261   :  { %13591 = vst [vmem:[#allocation202_spill] sm:$0xff] %v8233_v58 }
 0x262   :  { %13592 = vst [vmem:[#allocation203_spill] sm:$0xff] %v8235_v43  ;;  %1137 = vmatmul.f32.gmra.mxu0 %v7041_v48  ;;  %1346 = vmatmul.f32.gmra.mxu1 %v7041_v48 }
 0x263   :  { %1555 = vmatmul.f32.gmra.mxu2 %v7041_v48  ;;  %1764 = vmatmul.f32.gmra.mxu3 %v7041_v48 }
 0x266   :  { %v8240_v38 = vpop.f32.mrf.mxu2  ;;  %v8242_v59 = vpop.f32.mrf.mxu3 }
 0x267   :  { %13593 = vst [vmem:[#allocation204_spill] sm:$0xff] %v8240_v38  ;;  %v8244_v53 = vpop.f32.mrf.mxu0  ;;  %v8246_v19 = vpop.f32.mrf.mxu1 }
 0x268   :  { %13594 = vst [vmem:[#allocation205_spill] sm:$0xff] %v8242_v59 }
 0x269   :  { %13595 = vst [vmem:[#allocation206_spill] sm:$0xff] %v8244_v53 }
 0x26a   :  { %13596 = vst [vmem:[#allocation207_spill] sm:$0xff] %v8246_v19  ;;  %1140 = vmatmul.f32.gmra.mxu0 %v7042_v35  ;;  %1349 = vmatmul.f32.gmra.mxu1 %v7042_v35  ;;  %v7043_v19 = vld [vmem:[%s13283_s0 + $0x50] sm:$0xff] }
 0x26b   :  { %1558 = vmatmul.f32.gmra.mxu2 %v7042_v35  ;;  %1767 = vmatmul.f32.gmra.mxu3 %v7042_v35 }
 0x26e   :  { %v8251_v8 = vpop.f32.mrf.mxu2  ;;  %v8253_v43 = vpop.f32.mrf.mxu3 }
 0x26f   :  { %13597 = vst [vmem:[#allocation208_spill] sm:$0xff] %v8251_v8  ;;  %v8255_v48 = vpop.f32.mrf.mxu0  ;;  %v8257_v58 = vpop.f32.mrf.mxu1 }
 0x270   :  { %13598 = vst [vmem:[#allocation209_spill] sm:$0xff] %v8253_v43 }
 0x271   :  { %13599 = vst [vmem:[#allocation210_spill] sm:$0xff] %v8255_v48  ;;  %v6730_v48 = vld [vmem:[%s13282_s1 + $0x598] sm:$0xff] }
 0x272   :  { %13600 = vst [vmem:[#allocation211_spill] sm:$0xff] %v8257_v58  ;;  %1143 = vmatmul.f32.gmra.mxu0 %v7043_v19  ;;  %1352 = vmatmul.f32.gmra.mxu1 %v7043_v19  ;;  %v6729_v58 = vld [vmem:[%s13282_s1 + $0x590] sm:$0xff] }
 0x273   :  { %1561 = vmatmul.f32.gmra.mxu2 %v7043_v19  ;;  %1770 = vmatmul.f32.gmra.mxu3 %v7043_v19  ;;  %v7044_v19 = vld [vmem:[%s13283_s0 + $0x58] sm:$0xff] }
 0x274   :  { %2483 = vmatpush.msra.mxu2 %v6729_v58  ;;  %2692 = vmatpush.msra.mxu3 %v6730_v48  ;;  %v6728_v58 = vld [vmem:[%s13282_s1 + $0x588] sm:$0xff] }
 0x275   :  { %2274 = vmatpush.msra.mxu1 %v6728_v58 }
 0x276   :  { %v8262_v53 = vpop.f32.mrf.mxu2  ;;  %v8264_v59 = vpop.f32.mrf.mxu3 }
 0x277   :  { %13601 = vst [vmem:[#allocation212_spill] sm:$0xff] %v8262_v53  ;;  %v8266_v35 = vpop.f32.mrf.mxu0  ;;  %v8268_v8 = vpop.f32.mrf.mxu1 }
 0x278   :  { %13602 = vst [vmem:[#allocation213_spill] sm:$0xff] %v8264_v59  ;;  %v6727_v59 = vld [vmem:[%s13282_s1 + $0x580] sm:$0xff] }
 0x279   :  { %13603 = vst [vmem:[#allocation214_spill] sm:$0xff] %v8266_v35  ;;  %2065 = vmatpush.msra.mxu0 %v6727_v59  ;;  %v7046_v59 = vld [vmem:[%s13283_s0 + $0x68] sm:$0xff] }
 0x27a   :  { %13604 = vst [vmem:[#allocation215_spill] sm:$0xff] %v8268_v8  ;;  %1146 = vmatmul.f32.gmra.mxu0 %v7044_v19  ;;  %1355 = vmatmul.f32.gmra.mxu1 %v7044_v19 }
 0x27b   :  { %1564 = vmatmul.f32.gmra.mxu2 %v7044_v19  ;;  %1773 = vmatmul.f32.gmra.mxu3 %v7044_v19  ;;  %v7045_v19 = vld [vmem:[%s13283_s0 + $0x60] sm:$0xff] }
 0x27e   :  { %v8279_v35 = vpop.f32.mrf.mxu2  ;;  %v8281_v8 = vpop.f32.mrf.mxu3 }
 0x27f   :  { %13605 = vst [vmem:[#allocation216_spill] sm:$0xff] %v8279_v35  ;;  %v8289_v48 = vpop.f32.mrf.mxu0  ;;  %v8291_v53 = vpop.f32.mrf.mxu1 }
 0x280   :  { %13606 = vst [vmem:[#allocation217_spill] sm:$0xff] %v8281_v8 }
 0x281   :  { %13607 = vst [vmem:[#allocation218_spill] sm:$0xff] %v8289_v48 }
 0x282   :  { %13608 = vst [vmem:[#allocation219_spill] sm:$0xff] %v8291_v53  ;;  %1149 = vmatmul.f32.gmra.mxu0 %v7045_v19  ;;  %1358 = vmatmul.f32.gmra.mxu1 %v7045_v19 }
 0x283   :  { %1567 = vmatmul.f32.gmra.mxu2 %v7045_v19  ;;  %1776 = vmatmul.f32.gmra.mxu3 %v7045_v19 }
 0x286   :  { %v8296_v8 = vpop.f32.mrf.mxu2  ;;  %v8298_v35 = vpop.f32.mrf.mxu3 }
 0x287   :  { %13609 = vst [vmem:[#allocation220_spill] sm:$0xff] %v8296_v8  ;;  %v8300_v43 = vpop.f32.mrf.mxu0  ;;  %v8302_v38 = vpop.f32.mrf.mxu1 }
 0x288   :  { %13610 = vst [vmem:[#allocation221_spill] sm:$0xff] %v8298_v35 }
 0x289   :  { %13611 = vst [vmem:[#allocation222_spill] sm:$0xff] %v8300_v43 }
 0x28a   :  { %13612 = vst [vmem:[#allocation223_spill] sm:$0xff] %v8302_v38  ;;  %1152 = vmatmul.f32.gmra.mxu0 %v7046_v59  ;;  %1361 = vmatmul.f32.gmra.mxu1 %v7046_v59  ;;  %v7047_v38 = vld [vmem:[%s13283_s0 + $0x70] sm:$0xff] }
 0x28b   :  { %1570 = vmatmul.f32.gmra.mxu2 %v7046_v59  ;;  %1779 = vmatmul.f32.gmra.mxu3 %v7046_v59 }
 0x28e   :  { %v8307_v58 = vpop.f32.mrf.mxu2  ;;  %v8309_v53 = vpop.f32.mrf.mxu3 }
 0x28f   :  { %13613 = vst [vmem:[#allocation224_spill] sm:$0xff] %v8307_v58  ;;  %v8311_v19 = vpop.f32.mrf.mxu0  ;;  %v8313_v8 = vpop.f32.mrf.mxu1 }
 0x290   :  { %13614 = vst [vmem:[#allocation225_spill] sm:$0xff] %v8309_v53 }
 0x291   :  { %13615 = vst [vmem:[#allocation226_spill] sm:$0xff] %v8311_v19  ;;  %v6726_v19 = vld [vmem:[%s13282_s1 + $0x578] sm:$0xff] }
 0x292   :  { %13616 = vst [vmem:[#allocation227_spill] sm:$0xff] %v8313_v8  ;;  %1155 = vmatmul.f32.gmra.mxu0 %v7047_v38  ;;  %1364 = vmatmul.f32.gmra.mxu1 %v7047_v38  ;;  %v6725_v8 = vld [vmem:[%s13282_s1 + $0x570] sm:$0xff] }
 0x293   :  { %1573 = vmatmul.f32.gmra.mxu2 %v7047_v38  ;;  %1782 = vmatmul.f32.gmra.mxu3 %v7047_v38  ;;  %v7048_v38 = vld [vmem:[%s13283_s0 + $0x78] sm:$0xff] }
 0x294   :  { %2484 = vmatpush.msra.mxu2 %v6725_v8  ;;  %2693 = vmatpush.msra.mxu3 %v6726_v19  ;;  %v6723_v8 = vld [vmem:[%s13282_s1 + $0x560] sm:$0xff]  ;;  %v6724_v19 = vld [vmem:[%s13282_s1 + $0x568] sm:$0xff] }
 0x295   :  { %2066 = vmatpush.msra.mxu0 %v6723_v8  ;;  %2275 = vmatpush.msra.mxu1 %v6724_v19  ;;  %v7050_v8 = vld [vmem:[%s13283_s0 + $0x88] sm:$0xff] }
 0x296   :  { %v8318_v43 = vpop.f32.mrf.mxu2  ;;  %v8320_v35 = vpop.f32.mrf.mxu3  ;;  %2485 = vmatpush.msra.mxu2 %v6721_v15  ;;  %2694 = vmatpush.msra.mxu3 %v6722_v26  ;;  %v6719_v26 = vld [vmem:[%s13282_s1 + $0x540] sm:$0xff]  ;;  %v6720_v15 = vld [vmem:[%s13282_s1 + $0x548] sm:$0xff] }
 0x297   :  { %13617 = vst [vmem:[#allocation228_spill] sm:$0xff] %v8318_v43  ;;  %v8322_v59 = vpop.f32.mrf.mxu0  ;;  %v8324_v58 = vpop.f32.mrf.mxu1  ;;  %2067 = vmatpush.msra.mxu0 %v6719_v26  ;;  %2276 = vmatpush.msra.mxu1 %v6720_v15  ;;  %v7054_v26 = vld [vmem:[%s13283_s0 + $0xa8] sm:$0xff] }
 0x298   :  { %13618 = vst [vmem:[#allocation229_spill] sm:$0xff] %v8320_v35  ;;  %2486 = vmatpush.msra.mxu2 %v6717_v23  ;;  %2695 = vmatpush.msra.mxu3 %v6718_v17  ;;  %v6715_v17 = vld [vmem:[%s13282_s1 + $0x520] sm:$0xff]  ;;  %v6716_v23 = vld [vmem:[%s13282_s1 + $0x528] sm:$0xff] }
 0x299   :  { %13619 = vst [vmem:[#allocation230_spill] sm:$0xff] %v8322_v59  ;;  %2068 = vmatpush.msra.mxu0 %v6715_v17  ;;  %2277 = vmatpush.msra.mxu1 %v6716_v23  ;;  %v7058_v17 = vld [vmem:[%s13283_s0 + $0xc8] sm:$0xff] }
 0x29a   :  { %13620 = vst [vmem:[#allocation231_spill] sm:$0xff] %v8324_v58  ;;  %1158 = vmatmul.f32.gmra.mxu0 %v7048_v38  ;;  %1367 = vmatmul.f32.gmra.mxu1 %v7048_v38 }
 0x29b   :  { %1576 = vmatmul.f32.gmra.mxu2 %v7048_v38  ;;  %1785 = vmatmul.f32.gmra.mxu3 %v7048_v38  ;;  %v7049_v38 = vld [vmem:[%s13283_s0 + $0x80] sm:$0xff] }
 0x29e   :  { %v8335_v59 = vpop.f32.mrf.mxu2  ;;  %v8337_v58 = vpop.f32.mrf.mxu3 }
 0x29f   :  { %13621 = vst [vmem:[#allocation232_spill] sm:$0xff] %v8335_v59  ;;  %v8339_v35 = vpop.f32.mrf.mxu0  ;;  %v8341_v43 = vpop.f32.mrf.mxu1 }
 0x2a0   :  { %13622 = vst [vmem:[#allocation233_spill] sm:$0xff] %v8337_v58 }
 0x2a2   :  { %1161 = vmatmul.f32.gmra.mxu0 %v7049_v38  ;;  %1370 = vmatmul.f32.gmra.mxu1 %v7049_v38 }
 0x2a3   :  { %1579 = vmatmul.f32.gmra.mxu2 %v7049_v38  ;;  %1788 = vmatmul.f32.gmra.mxu3 %v7049_v38 }
 0x2a6   :  { %v8352_v58 = vpop.f32.mrf.mxu2  ;;  %v8354_v59 = vpop.f32.mrf.mxu3 }
 0x2a7   :  { %v8356_v53 = vpop.f32.mrf.mxu0  ;;  %v8358_v48 = vpop.f32.mrf.mxu1 }
 0x2aa   :  { %1164 = vmatmul.f32.gmra.mxu0 %v7050_v8  ;;  %1373 = vmatmul.f32.gmra.mxu1 %v7050_v8 }
 0x2ab   :  { %1582 = vmatmul.f32.gmra.mxu2 %v7050_v8  ;;  %1791 = vmatmul.f32.gmra.mxu3 %v7050_v8 }
 0x2ae   :  { %v8363_v19 = vpop.f32.mrf.mxu2  ;;  %v8365_v32 = vpop.f32.mrf.mxu3 }
 0x2af   :  { %v8367_v38 = vpop.f32.mrf.mxu0  ;;  %v8369_v31 = vpop.f32.mrf.mxu1 }
 0x2b2   :  { %1167 = vmatmul.f32.gmra.mxu0 %v7051_v30  ;;  %1376 = vmatmul.f32.gmra.mxu1 %v7051_v30 }
 0x2b3   :  { %1585 = vmatmul.f32.gmra.mxu2 %v7051_v30  ;;  %1794 = vmatmul.f32.gmra.mxu3 %v7051_v30  ;;  %v7052_v30 = vld [vmem:[%s13283_s0 + $0x98] sm:$0xff] }
 0x2b6   :  { %v8374_v27 = vpop.f32.mrf.mxu2  ;;  %v8376_v22 = vpop.f32.mrf.mxu3 }
 0x2b7   :  { %v8378_v8 = vpop.f32.mrf.mxu0  ;;  %v8380_v18 = vpop.f32.mrf.mxu1 }
 0x2b8   :  { %13623 = vst [vmem:[#allocation234_spill] sm:$0xff] %v8378_v8 }
 0x2b9   :  { %13624 = vst [vmem:[#allocation235_spill] sm:$0xff] %v8380_v18 }
 0x2ba   :  { %1170 = vmatmul.f32.gmra.mxu0 %v7052_v30  ;;  %1379 = vmatmul.f32.gmra.mxu1 %v7052_v30 }
 0x2bb   :  { %1588 = vmatmul.f32.gmra.mxu2 %v7052_v30  ;;  %1797 = vmatmul.f32.gmra.mxu3 %v7052_v30  ;;  %v7053_v30 = vld [vmem:[%s13283_s0 + $0xa0] sm:$0xff] }
 0x2be   :  { %v8391_v25 = vpop.f32.mrf.mxu2  ;;  %v8393_v14 = vpop.f32.mrf.mxu3 }
 0x2bf   :  { %v8395_v13 = vpop.f32.mrf.mxu0  ;;  %v8397_v3 = vpop.f32.mrf.mxu1 }
 0x2c2   :  { %1173 = vmatmul.f32.gmra.mxu0 %v7053_v30  ;;  %1382 = vmatmul.f32.gmra.mxu1 %v7053_v30 }
 0x2c3   :  { %1591 = vmatmul.f32.gmra.mxu2 %v7053_v30  ;;  %1800 = vmatmul.f32.gmra.mxu3 %v7053_v30 }
 0x2c6   :  { %v8408_v62 = vpop.f32.mrf.mxu2  ;;  %v8410_v21 = vpop.f32.mrf.mxu3 }
 0x2c7   :  { %v8412_v20 = vpop.f32.mrf.mxu0  ;;  %v8414_v55 = vpop.f32.mrf.mxu1 }
 0x2ca   :  { %1176 = vmatmul.f32.gmra.mxu0 %v7054_v26  ;;  %1385 = vmatmul.f32.gmra.mxu1 %v7054_v26 }
 0x2cb   :  { %1594 = vmatmul.f32.gmra.mxu2 %v7054_v26  ;;  %1803 = vmatmul.f32.gmra.mxu3 %v7054_v26 }
 0x2ce   :  { %v8419_v15 = vpop.f32.mrf.mxu2  ;;  %v8421_v54 = vpop.f32.mrf.mxu3 }
 0x2cf   :  { %v8423_v30 = vpop.f32.mrf.mxu0  ;;  %v8425_v34 = vpop.f32.mrf.mxu1 }
 0x2d2   :  { %1179 = vmatmul.f32.gmra.mxu0 %v7055_v33  ;;  %1388 = vmatmul.f32.gmra.mxu1 %v7055_v33 }
 0x2d3   :  { %1597 = vmatmul.f32.gmra.mxu2 %v7055_v33  ;;  %1806 = vmatmul.f32.gmra.mxu3 %v7055_v33  ;;  %v7056_v33 = vld [vmem:[%s13283_s0 + $0xb8] sm:$0xff] }
 0x2d6   :  { %v8430_v29 = vpop.f32.mrf.mxu2  ;;  %v8432_v28 = vpop.f32.mrf.mxu3 }
 0x2d7   :  { %v8434_v26 = vpop.f32.mrf.mxu0  ;;  %v8436_v24 = vpop.f32.mrf.mxu1 }
 0x2d8   :  { %13625 = vst [vmem:[#allocation236_spill] sm:$0xff] %v8434_v26 }
 0x2d9   :  { %13626 = vst [vmem:[#allocation237_spill] sm:$0xff] %v8436_v24 }
 0x2da   :  { %1182 = vmatmul.f32.gmra.mxu0 %v7056_v33  ;;  %1391 = vmatmul.f32.gmra.mxu1 %v7056_v33 }
 0x2db   :  { %1600 = vmatmul.f32.gmra.mxu2 %v7056_v33  ;;  %1809 = vmatmul.f32.gmra.mxu3 %v7056_v33  ;;  %v7057_v33 = vld [vmem:[%s13283_s0 + $0xc0] sm:$0xff] }
 0x2de   :  { %v8447_v16 = vpop.f32.mrf.mxu2  ;;  %v8449_v24 = vpop.f32.mrf.mxu3 }
 0x2df   :  { %13627 = vst [vmem:[#allocation238_spill] sm:$0xff] %v8447_v16  ;;  %v8451_v12 = vpop.f32.mrf.mxu0  ;;  %v8453_v26 = vpop.f32.mrf.mxu1 }
 0x2e0   :  { %13628 = vst [vmem:[#allocation239_spill] sm:$0xff] %v8449_v24 }
 0x2e1   :  { %13629 = vst [vmem:[#allocation240_spill] sm:$0xff] %v8451_v12 }
 0x2e2   :  { %13630 = vst [vmem:[#allocation241_spill] sm:$0xff] %v8453_v26  ;;  %1185 = vmatmul.f32.gmra.mxu0 %v7057_v33  ;;  %1394 = vmatmul.f32.gmra.mxu1 %v7057_v33 }
 0x2e3   :  { %1603 = vmatmul.f32.gmra.mxu2 %v7057_v33  ;;  %1812 = vmatmul.f32.gmra.mxu3 %v7057_v33 }
 0x2e6   :  { %v8464_v12 = vpop.f32.mrf.mxu2  ;;  %v8466_v26 = vpop.f32.mrf.mxu3 }
 0x2e7   :  { %13631 = vst [vmem:[#allocation242_spill] sm:$0xff] %v8464_v12  ;;  %v8468_v24 = vpop.f32.mrf.mxu0  ;;  %v8470_v16 = vpop.f32.mrf.mxu1 }
 0x2e8   :  { %13632 = vst [vmem:[#allocation243_spill] sm:$0xff] %v8466_v26 }
 0x2e9   :  { %13633 = vst [vmem:[#allocation244_spill] sm:$0xff] %v8468_v24 }
 0x2ea   :  { %13634 = vst [vmem:[#allocation245_spill] sm:$0xff] %v8470_v16  ;;  %1188 = vmatmul.f32.gmra.mxu0 %v7058_v17  ;;  %1397 = vmatmul.f32.gmra.mxu1 %v7058_v17  ;;  %v7059_v16 = vld [vmem:[%s13283_s0 + $0xd0] sm:$0xff] }
 0x2eb   :  { %1606 = vmatmul.f32.gmra.mxu2 %v7058_v17  ;;  %1815 = vmatmul.f32.gmra.mxu3 %v7058_v17 }
 0x2ee   :  { %v8475_v23 = vpop.f32.mrf.mxu2  ;;  %v8477_v11 = vpop.f32.mrf.mxu3 }
 0x2ef   :  { %13635 = vst [vmem:[#allocation246_spill] sm:$0xff] %v8475_v23  ;;  %v8479_v33 = vpop.f32.mrf.mxu0  ;;  %v8481_v12 = vpop.f32.mrf.mxu1 }
 0x2f0   :  { %13636 = vst [vmem:[#allocation247_spill] sm:$0xff] %v8477_v11 }
 0x2f1   :  { %13637 = vst [vmem:[#allocation248_spill] sm:$0xff] %v8479_v33  ;;  %v6714_v33 = vld [vmem:[%s13282_s1 + $0x518] sm:$0xff] }
 0x2f2   :  { %13638 = vst [vmem:[#allocation249_spill] sm:$0xff] %v8481_v12  ;;  %1191 = vmatmul.f32.gmra.mxu0 %v7059_v16  ;;  %1400 = vmatmul.f32.gmra.mxu1 %v7059_v16  ;;  %v6713_v12 = vld [vmem:[%s13282_s1 + $0x510] sm:$0xff] }
 0x2f3   :  { %1609 = vmatmul.f32.gmra.mxu2 %v7059_v16  ;;  %1818 = vmatmul.f32.gmra.mxu3 %v7059_v16  ;;  %v7060_v16 = vld [vmem:[%s13283_s0 + $0xd8] sm:$0xff] }
 0x2f4   :  { %2487 = vmatpush.msra.mxu2 %v6713_v12  ;;  %2696 = vmatpush.msra.mxu3 %v6714_v33  ;;  %v6711_v12 = vld [vmem:[%s13282_s1 + $0x500] sm:$0xff]  ;;  %v6712_v33 = vld [vmem:[%s13282_s1 + $0x508] sm:$0xff] }
 0x2f5   :  { %2069 = vmatpush.msra.mxu0 %v6711_v12  ;;  %2278 = vmatpush.msra.mxu1 %v6712_v33  ;;  %v7062_v12 = vld [vmem:[%s13283_s0 + $0xe8] sm:$0xff] }
 0x2f6   :  { %v8486_v24 = vpop.f32.mrf.mxu2  ;;  %v8488_v26 = vpop.f32.mrf.mxu3 }
 0x2f7   :  { %13639 = vst [vmem:[#allocation250_spill] sm:$0xff] %v8486_v24  ;;  %v8490_v17 = vpop.f32.mrf.mxu0  ;;  %v8492_v23 = vpop.f32.mrf.mxu1 }
 0x2f8   :  { %13640 = vst [vmem:[#allocation251_spill] sm:$0xff] %v8488_v26 }
 0x2f9   :  { %13641 = vst [vmem:[#allocation252_spill] sm:$0xff] %v8490_v17 }
 0x2fa   :  { %13642 = vst [vmem:[#allocation253_spill] sm:$0xff] %v8492_v23  ;;  %1194 = vmatmul.f32.gmra.mxu0 %v7060_v16  ;;  %1403 = vmatmul.f32.gmra.mxu1 %v7060_v16 }
 0x2fb   :  { %1612 = vmatmul.f32.gmra.mxu2 %v7060_v16  ;;  %1821 = vmatmul.f32.gmra.mxu3 %v7060_v16  ;;  %v7061_v16 = vld [vmem:[%s13283_s0 + $0xe0] sm:$0xff] }
 0x2fe   :  { %v8503_v17 = vpop.f32.mrf.mxu2  ;;  %v8505_v23 = vpop.f32.mrf.mxu3 }
 0x2ff   :  { %13643 = vst [vmem:[#allocation254_spill] sm:$0xff] %v8503_v17  ;;  %v8507_v26 = vpop.f32.mrf.mxu0  ;;  %v8509_v24 = vpop.f32.mrf.mxu1 }
 0x300   :  { %13644 = vst [vmem:[#allocation255_spill] sm:$0xff] %v8505_v23 }
 0x301   :  { %13645 = vst [vmem:[#allocation256_spill] sm:$0xff] %v8507_v26 }
 0x302   :  { %13646 = vst [vmem:[#allocation257_spill] sm:$0xff] %v8509_v24  ;;  %1197 = vmatmul.f32.gmra.mxu0 %v7061_v16  ;;  %1406 = vmatmul.f32.gmra.mxu1 %v7061_v16 }
 0x303   :  { %1615 = vmatmul.f32.gmra.mxu2 %v7061_v16  ;;  %1824 = vmatmul.f32.gmra.mxu3 %v7061_v16 }
 0x306   :  { %v8520_v26 = vpop.f32.mrf.mxu2  ;;  %v8522_v24 = vpop.f32.mrf.mxu3 }
 0x307   :  { %13647 = vst [vmem:[#allocation258_spill] sm:$0xff] %v8520_v26  ;;  %v8524_v23 = vpop.f32.mrf.mxu0  ;;  %v8526_v17 = vpop.f32.mrf.mxu1 }
 0x308   :  { %13648 = vst [vmem:[#allocation259_spill] sm:$0xff] %v8522_v24 }
 0x309   :  { %13649 = vst [vmem:[#allocation260_spill] sm:$0xff] %v8524_v23 }
 0x30a   :  { %13650 = vst [vmem:[#allocation261_spill] sm:$0xff] %v8526_v17  ;;  %1200 = vmatmul.f32.gmra.mxu0 %v7062_v12  ;;  %1409 = vmatmul.f32.gmra.mxu1 %v7062_v12  ;;  %v7063_v17 = vld [vmem:[%s13283_s0 + $0xf0] sm:$0xff] }
 0x30b   :  { %1618 = vmatmul.f32.gmra.mxu2 %v7062_v12  ;;  %1827 = vmatmul.f32.gmra.mxu3 %v7062_v12 }
 0x30e   :  { %v8531_v33 = vpop.f32.mrf.mxu2  ;;  %v8533_v11 = vpop.f32.mrf.mxu3 }
 0x30f   :  { %13651 = vst [vmem:[#allocation262_spill] sm:$0xff] %v8531_v33  ;;  %v8535_v16 = vpop.f32.mrf.mxu0  ;;  %v8537_v26 = vpop.f32.mrf.mxu1 }
 0x310   :  { %13652 = vst [vmem:[#allocation263_spill] sm:$0xff] %v8533_v11 }
 0x311   :  { %13653 = vst [vmem:[#allocation264_spill] sm:$0xff] %v8535_v16  ;;  %v6710_v16 = vld [vmem:[%s13282_s1 + $0x4f8] sm:$0xff] }
 0x312   :  { %13654 = vst [vmem:[#allocation265_spill] sm:$0xff] %v8537_v26  ;;  %1203 = vmatmul.f32.gmra.mxu0 %v7063_v17  ;;  %1412 = vmatmul.f32.gmra.mxu1 %v7063_v17  ;;  %v6709_v26 = vld [vmem:[%s13282_s1 + $0x4f0] sm:$0xff] }
 0x313   :  { %1621 = vmatmul.f32.gmra.mxu2 %v7063_v17  ;;  %1830 = vmatmul.f32.gmra.mxu3 %v7063_v17  ;;  %v7064_v17 = vld [vmem:[%s13283_s0 + $0xf8] sm:$0xff] }
 0x314   :  { %2488 = vmatpush.msra.mxu2 %v6709_v26  ;;  %2697 = vmatpush.msra.mxu3 %v6710_v16  ;;  %v6707_v26 = vld [vmem:[%s13282_s1 + $0x4e0] sm:$0xff]  ;;  %v6708_v16 = vld [vmem:[%s13282_s1 + $0x4e8] sm:$0xff] }
 0x315   :  { %2070 = vmatpush.msra.mxu0 %v6707_v26  ;;  %2279 = vmatpush.msra.mxu1 %v6708_v16  ;;  %v7066_v26 = vld [vmem:[%s13283_s0 + $0x108] sm:$0xff] }
 0x316   :  { %v8542_v23 = vpop.f32.mrf.mxu2  ;;  %v8544_v24 = vpop.f32.mrf.mxu3 }
 0x317   :  { %13655 = vst [vmem:[#allocation266_spill] sm:$0xff] %v8542_v23  ;;  %v8546_v12 = vpop.f32.mrf.mxu0  ;;  %v8548_v33 = vpop.f32.mrf.mxu1 }
 0x318   :  { %13656 = vst [vmem:[#allocation267_spill] sm:$0xff] %v8544_v24 }
 0x319   :  { %13657 = vst [vmem:[#allocation268_spill] sm:$0xff] %v8546_v12 }
 0x31a   :  { %13658 = vst [vmem:[#allocation269_spill] sm:$0xff] %v8548_v33  ;;  %1206 = vmatmul.f32.gmra.mxu0 %v7064_v17  ;;  %1415 = vmatmul.f32.gmra.mxu1 %v7064_v17 }
 0x31b   :  { %1624 = vmatmul.f32.gmra.mxu2 %v7064_v17  ;;  %1833 = vmatmul.f32.gmra.mxu3 %v7064_v17  ;;  %v7065_v17 = vld [vmem:[%s13283_s0 + $0x100] sm:$0xff] }
 0x31e   :  { %v8559_v12 = vpop.f32.mrf.mxu2  ;;  %v8561_v33 = vpop.f32.mrf.mxu3 }
 0x31f   :  { %13659 = vst [vmem:[#allocation270_spill] sm:$0xff] %v8559_v12  ;;  %v8563_v24 = vpop.f32.mrf.mxu0  ;;  %v8565_v23 = vpop.f32.mrf.mxu1 }
 0x320   :  { %13660 = vst [vmem:[#allocation271_spill] sm:$0xff] %v8561_v33 }
 0x321   :  { %13661 = vst [vmem:[#allocation272_spill] sm:$0xff] %v8563_v24 }
 0x322   :  { %13662 = vst [vmem:[#allocation273_spill] sm:$0xff] %v8565_v23  ;;  %1209 = vmatmul.f32.gmra.mxu0 %v7065_v17  ;;  %1418 = vmatmul.f32.gmra.mxu1 %v7065_v17 }
 0x323   :  { %1627 = vmatmul.f32.gmra.mxu2 %v7065_v17  ;;  %1836 = vmatmul.f32.gmra.mxu3 %v7065_v17 }
 0x326   :  { %v8576_v24 = vpop.f32.mrf.mxu2  ;;  %v8578_v23 = vpop.f32.mrf.mxu3 }
 0x327   :  { %13663 = vst [vmem:[#allocation274_spill] sm:$0xff] %v8576_v24  ;;  %v8580_v33 = vpop.f32.mrf.mxu0  ;;  %v8582_v12 = vpop.f32.mrf.mxu1 }
 0x328   :  { %13664 = vst [vmem:[#allocation275_spill] sm:$0xff] %v8578_v23 }
 0x329   :  { %13665 = vst [vmem:[#allocation276_spill] sm:$0xff] %v8580_v33 }
 0x32a   :  { %13666 = vst [vmem:[#allocation277_spill] sm:$0xff] %v8582_v12  ;;  %1212 = vmatmul.f32.gmra.mxu0 %v7066_v26  ;;  %1421 = vmatmul.f32.gmra.mxu1 %v7066_v26  ;;  %v7067_v12 = vld [vmem:[%s13283_s0 + $0x110] sm:$0xff] }
 0x32b   :  { %1630 = vmatmul.f32.gmra.mxu2 %v7066_v26  ;;  %1839 = vmatmul.f32.gmra.mxu3 %v7066_v26 }
 0x32e   :  { %v8587_v16 = vpop.f32.mrf.mxu2  ;;  %v8589_v11 = vpop.f32.mrf.mxu3 }
 0x32f   :  { %13667 = vst [vmem:[#allocation278_spill] sm:$0xff] %v8587_v16  ;;  %v8591_v17 = vpop.f32.mrf.mxu0  ;;  %v8593_v24 = vpop.f32.mrf.mxu1 }
 0x330   :  { %13668 = vst [vmem:[#allocation279_spill] sm:$0xff] %v8589_v11 }
 0x331   :  { %13669 = vst [vmem:[#allocation280_spill] sm:$0xff] %v8591_v17  ;;  %v6706_v17 = vld [vmem:[%s13282_s1 + $0x4d8] sm:$0xff] }
 0x332   :  { %13670 = vst [vmem:[#allocation281_spill] sm:$0xff] %v8593_v24  ;;  %1215 = vmatmul.f32.gmra.mxu0 %v7067_v12  ;;  %1424 = vmatmul.f32.gmra.mxu1 %v7067_v12  ;;  %v6705_v24 = vld [vmem:[%s13282_s1 + $0x4d0] sm:$0xff] }
 0x333   :  { %1633 = vmatmul.f32.gmra.mxu2 %v7067_v12  ;;  %1842 = vmatmul.f32.gmra.mxu3 %v7067_v12  ;;  %v7068_v12 = vld [vmem:[%s13283_s0 + $0x118] sm:$0xff] }
 0x334   :  { %2489 = vmatpush.msra.mxu2 %v6705_v24  ;;  %2698 = vmatpush.msra.mxu3 %v6706_v17  ;;  %v6703_v24 = vld [vmem:[%s13282_s1 + $0x4c0] sm:$0xff]  ;;  %v6704_v17 = vld [vmem:[%s13282_s1 + $0x4c8] sm:$0xff] }
 0x335   :  { %2071 = vmatpush.msra.mxu0 %v6703_v24  ;;  %2280 = vmatpush.msra.mxu1 %v6704_v17  ;;  %v7070_v24 = vld [vmem:[%s13283_s0 + $0x128] sm:$0xff] }
 0x336   :  { %v8598_v33 = vpop.f32.mrf.mxu2  ;;  %v8600_v23 = vpop.f32.mrf.mxu3 }
 0x337   :  { %13671 = vst [vmem:[#allocation282_spill] sm:$0xff] %v8598_v33  ;;  %v8602_v26 = vpop.f32.mrf.mxu0  ;;  %v8604_v16 = vpop.f32.mrf.mxu1 }
 0x338   :  { %13672 = vst [vmem:[#allocation283_spill] sm:$0xff] %v8600_v23 }
 0x339   :  { %13673 = vst [vmem:[#allocation284_spill] sm:$0xff] %v8602_v26 }
 0x33a   :  { %13674 = vst [vmem:[#allocation285_spill] sm:$0xff] %v8604_v16  ;;  %1218 = vmatmul.f32.gmra.mxu0 %v7068_v12  ;;  %1427 = vmatmul.f32.gmra.mxu1 %v7068_v12 }
 0x33b   :  { %1636 = vmatmul.f32.gmra.mxu2 %v7068_v12  ;;  %1845 = vmatmul.f32.gmra.mxu3 %v7068_v12  ;;  %v7069_v12 = vld [vmem:[%s13283_s0 + $0x120] sm:$0xff] }
 0x33e   :  { %v8615_v26 = vpop.f32.mrf.mxu2  ;;  %v8617_v16 = vpop.f32.mrf.mxu3 }
 0x33f   :  { %13675 = vst [vmem:[#allocation286_spill] sm:$0xff] %v8615_v26  ;;  %v8619_v23 = vpop.f32.mrf.mxu0  ;;  %v8621_v33 = vpop.f32.mrf.mxu1 }
 0x340   :  { %13676 = vst [vmem:[#allocation287_spill] sm:$0xff] %v8617_v16 }
 0x341   :  { %13677 = vst [vmem:[#allocation288_spill] sm:$0xff] %v8619_v23 }
 0x342   :  { %13678 = vst [vmem:[#allocation289_spill] sm:$0xff] %v8621_v33  ;;  %1221 = vmatmul.f32.gmra.mxu0 %v7069_v12  ;;  %1430 = vmatmul.f32.gmra.mxu1 %v7069_v12 }
 0x343   :  { %1639 = vmatmul.f32.gmra.mxu2 %v7069_v12  ;;  %1848 = vmatmul.f32.gmra.mxu3 %v7069_v12 }
 0x346   :  { %v8632_v23 = vpop.f32.mrf.mxu2  ;;  %v8634_v33 = vpop.f32.mrf.mxu3 }
 0x347   :  { %13679 = vst [vmem:[#allocation290_spill] sm:$0xff] %v8632_v23  ;;  %v8636_v16 = vpop.f32.mrf.mxu0  ;;  %v8638_v26 = vpop.f32.mrf.mxu1 }
 0x348   :  { %13680 = vst [vmem:[#allocation291_spill] sm:$0xff] %v8634_v33 }
 0x349   :  { %13681 = vst [vmem:[#allocation292_spill] sm:$0xff] %v8636_v16 }
 0x34a   :  { %13682 = vst [vmem:[#allocation293_spill] sm:$0xff] %v8638_v26  ;;  %1224 = vmatmul.f32.gmra.mxu0 %v7070_v24  ;;  %1433 = vmatmul.f32.gmra.mxu1 %v7070_v24  ;;  %v7071_v26 = vld [vmem:[%s13283_s0 + $0x130] sm:$0xff] }
 0x34b   :  { %1642 = vmatmul.f32.gmra.mxu2 %v7070_v24  ;;  %1851 = vmatmul.f32.gmra.mxu3 %v7070_v24 }
 0x34e   :  { %v8643_v17 = vpop.f32.mrf.mxu2  ;;  %v8645_v11 = vpop.f32.mrf.mxu3 }
 0x34f   :  { %13683 = vst [vmem:[#allocation294_spill] sm:$0xff] %v8643_v17  ;;  %v8647_v12 = vpop.f32.mrf.mxu0  ;;  %v8649_v23 = vpop.f32.mrf.mxu1 }
 0x350   :  { %13684 = vst [vmem:[#allocation295_spill] sm:$0xff] %v8645_v11 }
 0x351   :  { %13685 = vst [vmem:[#allocation296_spill] sm:$0xff] %v8647_v12  ;;  %v6702_v12 = vld [vmem:[%s13282_s1 + $0x4b8] sm:$0xff] }
 0x352   :  { %13686 = vst [vmem:[#allocation297_spill] sm:$0xff] %v8649_v23  ;;  %1227 = vmatmul.f32.gmra.mxu0 %v7071_v26  ;;  %1436 = vmatmul.f32.gmra.mxu1 %v7071_v26  ;;  %v6701_v23 = vld [vmem:[%s13282_s1 + $0x4b0] sm:$0xff] }
 0x353   :  { %1645 = vmatmul.f32.gmra.mxu2 %v7071_v26  ;;  %1854 = vmatmul.f32.gmra.mxu3 %v7071_v26  ;;  %v7072_v26 = vld [vmem:[%s13283_s0 + $0x138] sm:$0xff] }
 0x354   :  { %2490 = vmatpush.msra.mxu2 %v6701_v23  ;;  %2699 = vmatpush.msra.mxu3 %v6702_v12  ;;  %v6699_v23 = vld [vmem:[%s13282_s1 + $0x4a0] sm:$0xff]  ;;  %v6700_v12 = vld [vmem:[%s13282_s1 + $0x4a8] sm:$0xff] }
 0x355   :  { %2072 = vmatpush.msra.mxu0 %v6699_v23  ;;  %2281 = vmatpush.msra.mxu1 %v6700_v12  ;;  %v7074_v23 = vld [vmem:[%s13283_s0 + $0x148] sm:$0xff] }
 0x356   :  { %v8654_v16 = vpop.f32.mrf.mxu2  ;;  %v8656_v33 = vpop.f32.mrf.mxu3 }
 0x357   :  { %13687 = vst [vmem:[#allocation298_spill] sm:$0xff] %v8654_v16  ;;  %v8658_v24 = vpop.f32.mrf.mxu0  ;;  %v8660_v17 = vpop.f32.mrf.mxu1 }
 0x358   :  { %13688 = vst [vmem:[#allocation299_spill] sm:$0xff] %v8656_v33 }
 0x359   :  { %13689 = vst [vmem:[#allocation300_spill] sm:$0xff] %v8658_v24 }
 0x35a   :  { %13690 = vst [vmem:[#allocation301_spill] sm:$0xff] %v8660_v17  ;;  %1230 = vmatmul.f32.gmra.mxu0 %v7072_v26  ;;  %1439 = vmatmul.f32.gmra.mxu1 %v7072_v26 }
 0x35b   :  { %1648 = vmatmul.f32.gmra.mxu2 %v7072_v26  ;;  %1857 = vmatmul.f32.gmra.mxu3 %v7072_v26  ;;  %v7073_v26 = vld [vmem:[%s13283_s0 + $0x140] sm:$0xff] }
 0x35e   :  { %v8671_v24 = vpop.f32.mrf.mxu2  ;;  %v8673_v17 = vpop.f32.mrf.mxu3 }
 0x35f   :  { %13691 = vst [vmem:[#allocation302_spill] sm:$0xff] %v8671_v24  ;;  %v8675_v33 = vpop.f32.mrf.mxu0  ;;  %v8677_v16 = vpop.f32.mrf.mxu1 }
 0x360   :  { %13692 = vst [vmem:[#allocation303_spill] sm:$0xff] %v8673_v17 }
 0x361   :  { %13693 = vst [vmem:[#allocation304_spill] sm:$0xff] %v8675_v33 }
 0x362   :  { %13694 = vst [vmem:[#allocation305_spill] sm:$0xff] %v8677_v16  ;;  %1233 = vmatmul.f32.gmra.mxu0 %v7073_v26  ;;  %1442 = vmatmul.f32.gmra.mxu1 %v7073_v26 }
 0x363   :  { %1651 = vmatmul.f32.gmra.mxu2 %v7073_v26  ;;  %1860 = vmatmul.f32.gmra.mxu3 %v7073_v26 }
 0x366   :  { %v8688_v33 = vpop.f32.mrf.mxu2  ;;  %v8690_v16 = vpop.f32.mrf.mxu3 }
 0x367   :  { %13695 = vst [vmem:[#allocation306_spill] sm:$0xff] %v8688_v33  ;;  %v8692_v17 = vpop.f32.mrf.mxu0  ;;  %v8694_v24 = vpop.f32.mrf.mxu1 }
 0x368   :  { %13696 = vst [vmem:[#allocation307_spill] sm:$0xff] %v8690_v16 }
 0x369   :  { %13697 = vst [vmem:[#allocation308_spill] sm:$0xff] %v8692_v17 }
 0x36a   :  { %13698 = vst [vmem:[#allocation309_spill] sm:$0xff] %v8694_v24  ;;  %1236 = vmatmul.f32.gmra.mxu0 %v7074_v23  ;;  %1445 = vmatmul.f32.gmra.mxu1 %v7074_v23  ;;  %v7075_v24 = vld [vmem:[%s13283_s0 + $0x150] sm:$0xff] }
 0x36b   :  { %1654 = vmatmul.f32.gmra.mxu2 %v7074_v23  ;;  %1863 = vmatmul.f32.gmra.mxu3 %v7074_v23 }
 0x36e   :  { %v8699_v12 = vpop.f32.mrf.mxu2  ;;  %v8701_v11 = vpop.f32.mrf.mxu3 }
 0x36f   :  { %13699 = vst [vmem:[#allocation310_spill] sm:$0xff] %v8699_v12  ;;  %v8703_v26 = vpop.f32.mrf.mxu0  ;;  %v8705_v33 = vpop.f32.mrf.mxu1 }
 0x370   :  { %13700 = vst [vmem:[#allocation311_spill] sm:$0xff] %v8701_v11 }
 0x371   :  { %13701 = vst [vmem:[#allocation312_spill] sm:$0xff] %v8703_v26  ;;  %v6698_v26 = vld [vmem:[%s13282_s1 + $0x498] sm:$0xff] }
 0x372   :  { %13702 = vst [vmem:[#allocation313_spill] sm:$0xff] %v8705_v33  ;;  %1239 = vmatmul.f32.gmra.mxu0 %v7075_v24  ;;  %1448 = vmatmul.f32.gmra.mxu1 %v7075_v24  ;;  %v6697_v33 = vld [vmem:[%s13282_s1 + $0x490] sm:$0xff] }
 0x373   :  { %1657 = vmatmul.f32.gmra.mxu2 %v7075_v24  ;;  %1866 = vmatmul.f32.gmra.mxu3 %v7075_v24  ;;  %v7076_v24 = vld [vmem:[%s13283_s0 + $0x158] sm:$0xff] }
 0x374   :  { %2491 = vmatpush.msra.mxu2 %v6697_v33  ;;  %2700 = vmatpush.msra.mxu3 %v6698_v26  ;;  %v6695_v33 = vld [vmem:[%s13282_s1 + $0x480] sm:$0xff]  ;;  %v6696_v26 = vld [vmem:[%s13282_s1 + $0x488] sm:$0xff] }
 0x375   :  { %2073 = vmatpush.msra.mxu0 %v6695_v33  ;;  %2282 = vmatpush.msra.mxu1 %v6696_v26  ;;  %v7078_v33 = vld [vmem:[%s13283_s0 + $0x168] sm:$0xff] }
 0x376   :  { %v8710_v17 = vpop.f32.mrf.mxu2  ;;  %v8712_v16 = vpop.f32.mrf.mxu3 }
 0x377   :  { %13703 = vst [vmem:[#allocation314_spill] sm:$0xff] %v8710_v17  ;;  %v8714_v23 = vpop.f32.mrf.mxu0  ;;  %v8716_v12 = vpop.f32.mrf.mxu1 }
 0x378   :  { %13704 = vst [vmem:[#allocation315_spill] sm:$0xff] %v8712_v16 }
 0x379   :  { %13705 = vst [vmem:[#allocation316_spill] sm:$0xff] %v8714_v23 }
 0x37a   :  { %13706 = vst [vmem:[#allocation317_spill] sm:$0xff] %v8716_v12  ;;  %1242 = vmatmul.f32.gmra.mxu0 %v7076_v24  ;;  %1451 = vmatmul.f32.gmra.mxu1 %v7076_v24 }
 0x37b   :  { %1660 = vmatmul.f32.gmra.mxu2 %v7076_v24  ;;  %1869 = vmatmul.f32.gmra.mxu3 %v7076_v24  ;;  %v7077_v24 = vld [vmem:[%s13283_s0 + $0x160] sm:$0xff] }
 0x37e   :  { %v8727_v23 = vpop.f32.mrf.mxu2  ;;  %v8729_v12 = vpop.f32.mrf.mxu3 }
 0x37f   :  { %13707 = vst [vmem:[#allocation318_spill] sm:$0xff] %v8727_v23  ;;  %v8731_v16 = vpop.f32.mrf.mxu0  ;;  %v8733_v17 = vpop.f32.mrf.mxu1 }
 0x380   :  { %13708 = vst [vmem:[#allocation319_spill] sm:$0xff] %v8729_v12 }
 0x381   :  { %13709 = vst [vmem:[#allocation320_spill] sm:$0xff] %v8731_v16 }
 0x382   :  { %13710 = vst [vmem:[#allocation321_spill] sm:$0xff] %v8733_v17  ;;  %1245 = vmatmul.f32.gmra.mxu0 %v7077_v24  ;;  %1454 = vmatmul.f32.gmra.mxu1 %v7077_v24 }
 0x383   :  { %1663 = vmatmul.f32.gmra.mxu2 %v7077_v24  ;;  %1872 = vmatmul.f32.gmra.mxu3 %v7077_v24 }
 0x386   :  { %v8744_v16 = vpop.f32.mrf.mxu2  ;;  %v8746_v17 = vpop.f32.mrf.mxu3 }
 0x387   :  { %13711 = vst [vmem:[#allocation322_spill] sm:$0xff] %v8744_v16  ;;  %v8748_v12 = vpop.f32.mrf.mxu0  ;;  %v8750_v23 = vpop.f32.mrf.mxu1 }
 0x388   :  { %13712 = vst [vmem:[#allocation323_spill] sm:$0xff] %v8746_v17 }
 0x389   :  { %13713 = vst [vmem:[#allocation324_spill] sm:$0xff] %v8748_v12 }
 0x38a   :  { %13714 = vst [vmem:[#allocation325_spill] sm:$0xff] %v8750_v23  ;;  %1248 = vmatmul.f32.gmra.mxu0 %v7078_v33  ;;  %1457 = vmatmul.f32.gmra.mxu1 %v7078_v33  ;;  %v7079_v23 = vld [vmem:[%s13283_s0 + $0x170] sm:$0xff] }
 0x38b   :  { %1666 = vmatmul.f32.gmra.mxu2 %v7078_v33  ;;  %1875 = vmatmul.f32.gmra.mxu3 %v7078_v33 }
 0x38e   :  { %v8755_v26 = vpop.f32.mrf.mxu2  ;;  %v8757_v11 = vpop.f32.mrf.mxu3 }
 0x38f   :  { %13715 = vst [vmem:[#allocation326_spill] sm:$0xff] %v8755_v26  ;;  %v8759_v24 = vpop.f32.mrf.mxu0  ;;  %v8761_v16 = vpop.f32.mrf.mxu1 }
 0x390   :  { %13716 = vst [vmem:[#allocation327_spill] sm:$0xff] %v8757_v11 }
 0x391   :  { %13717 = vst [vmem:[#allocation328_spill] sm:$0xff] %v8759_v24  ;;  %v6694_v24 = vld [vmem:[%s13282_s1 + $0x478] sm:$0xff] }
 0x392   :  { %13718 = vst [vmem:[#allocation329_spill] sm:$0xff] %v8761_v16  ;;  %1251 = vmatmul.f32.gmra.mxu0 %v7079_v23  ;;  %1460 = vmatmul.f32.gmra.mxu1 %v7079_v23  ;;  %v6693_v16 = vld [vmem:[%s13282_s1 + $0x470] sm:$0xff] }
 0x393   :  { %1669 = vmatmul.f32.gmra.mxu2 %v7079_v23  ;;  %1878 = vmatmul.f32.gmra.mxu3 %v7079_v23  ;;  %v7080_v23 = vld [vmem:[%s13283_s0 + $0x178] sm:$0xff] }
 0x394   :  { %2492 = vmatpush.msra.mxu2 %v6693_v16  ;;  %2701 = vmatpush.msra.mxu3 %v6694_v24  ;;  %v6691_v16 = vld [vmem:[%s13282_s1 + $0x460] sm:$0xff]  ;;  %v6692_v24 = vld [vmem:[%s13282_s1 + $0x468] sm:$0xff] }
 0x395   :  { %2074 = vmatpush.msra.mxu0 %v6691_v16  ;;  %2283 = vmatpush.msra.mxu1 %v6692_v24  ;;  %v7082_v16 = vld [vmem:[%s13283_s0 + $0x188] sm:$0xff] }
 0x396   :  { %v8766_v12 = vpop.f32.mrf.mxu2  ;;  %v8768_v17 = vpop.f32.mrf.mxu3 }
 0x397   :  { %13719 = vst [vmem:[#allocation330_spill] sm:$0xff] %v8766_v12  ;;  %v8770_v33 = vpop.f32.mrf.mxu0  ;;  %v8772_v26 = vpop.f32.mrf.mxu1 }
 0x398   :  { %13720 = vst [vmem:[#allocation331_spill] sm:$0xff] %v8768_v17 }
 0x399   :  { %13721 = vst [vmem:[#allocation332_spill] sm:$0xff] %v8770_v33 }
 0x39a   :  { %13722 = vst [vmem:[#allocation333_spill] sm:$0xff] %v8772_v26  ;;  %1254 = vmatmul.f32.gmra.mxu0 %v7080_v23  ;;  %1463 = vmatmul.f32.gmra.mxu1 %v7080_v23 }
 0x39b   :  { %1672 = vmatmul.f32.gmra.mxu2 %v7080_v23  ;;  %1881 = vmatmul.f32.gmra.mxu3 %v7080_v23  ;;  %v7081_v23 = vld [vmem:[%s13283_s0 + $0x180] sm:$0xff] }
 0x39e   :  { %v8783_v33 = vpop.f32.mrf.mxu2  ;;  %v8785_v26 = vpop.f32.mrf.mxu3 }
 0x39f   :  { %13723 = vst [vmem:[#allocation334_spill] sm:$0xff] %v8783_v33  ;;  %v8787_v17 = vpop.f32.mrf.mxu0  ;;  %v8789_v12 = vpop.f32.mrf.mxu1 }
 0x3a0   :  { %13724 = vst [vmem:[#allocation335_spill] sm:$0xff] %v8785_v26 }
 0x3a1   :  { %13725 = vst [vmem:[#allocation336_spill] sm:$0xff] %v8787_v17 }
 0x3a2   :  { %13726 = vst [vmem:[#allocation337_spill] sm:$0xff] %v8789_v12  ;;  %1257 = vmatmul.f32.gmra.mxu0 %v7081_v23  ;;  %1466 = vmatmul.f32.gmra.mxu1 %v7081_v23 }
 0x3a3   :  { %1675 = vmatmul.f32.gmra.mxu2 %v7081_v23  ;;  %1884 = vmatmul.f32.gmra.mxu3 %v7081_v23 }
 0x3a6   :  { %v8800_v17 = vpop.f32.mrf.mxu2  ;;  %v8802_v12 = vpop.f32.mrf.mxu3 }
 0x3a7   :  { %13727 = vst [vmem:[#allocation338_spill] sm:$0xff] %v8800_v17  ;;  %v8804_v26 = vpop.f32.mrf.mxu0  ;;  %v8806_v33 = vpop.f32.mrf.mxu1 }
 0x3a8   :  { %13728 = vst [vmem:[#allocation339_spill] sm:$0xff] %v8802_v12 }
 0x3a9   :  { %13729 = vst [vmem:[#allocation340_spill] sm:$0xff] %v8804_v26 }
 0x3aa   :  { %13730 = vst [vmem:[#allocation341_spill] sm:$0xff] %v8806_v33  ;;  %1260 = vmatmul.f32.gmra.mxu0 %v7082_v16  ;;  %1469 = vmatmul.f32.gmra.mxu1 %v7082_v16  ;;  %v7083_v33 = vld [vmem:[%s13283_s0 + $0x190] sm:$0xff] }
 0x3ab   :  { %1678 = vmatmul.f32.gmra.mxu2 %v7082_v16  ;;  %1887 = vmatmul.f32.gmra.mxu3 %v7082_v16 }
 0x3ae   :  { %v8811_v24 = vpop.f32.mrf.mxu2  ;;  %v8813_v11 = vpop.f32.mrf.mxu3 }
 0x3af   :  { %13731 = vst [vmem:[#allocation342_spill] sm:$0xff] %v8811_v24  ;;  %v8815_v23 = vpop.f32.mrf.mxu0  ;;  %v8817_v17 = vpop.f32.mrf.mxu1 }
 0x3b0   :  { %13732 = vst [vmem:[#allocation343_spill] sm:$0xff] %v8813_v11 }
 0x3b1   :  { %13733 = vst [vmem:[#allocation344_spill] sm:$0xff] %v8815_v23  ;;  %v6690_v23 = vld [vmem:[%s13282_s1 + $0x458] sm:$0xff] }
 0x3b2   :  { %13734 = vst [vmem:[#allocation345_spill] sm:$0xff] %v8817_v17  ;;  %1263 = vmatmul.f32.gmra.mxu0 %v7083_v33  ;;  %1472 = vmatmul.f32.gmra.mxu1 %v7083_v33  ;;  %v6689_v17 = vld [vmem:[%s13282_s1 + $0x450] sm:$0xff] }
 0x3b3   :  { %1681 = vmatmul.f32.gmra.mxu2 %v7083_v33  ;;  %1890 = vmatmul.f32.gmra.mxu3 %v7083_v33  ;;  %v7084_v33 = vld [vmem:[%s13283_s0 + $0x198] sm:$0xff] }
 0x3b4   :  { %2493 = vmatpush.msra.mxu2 %v6689_v17  ;;  %2702 = vmatpush.msra.mxu3 %v6690_v23  ;;  %v6687_v17 = vld [vmem:[%s13282_s1 + $0x440] sm:$0xff]  ;;  %v6688_v23 = vld [vmem:[%s13282_s1 + $0x448] sm:$0xff] }
 0x3b5   :  { %2075 = vmatpush.msra.mxu0 %v6687_v17  ;;  %2284 = vmatpush.msra.mxu1 %v6688_v23  ;;  %v7086_v17 = vld [vmem:[%s13283_s0 + $0x1a8] sm:$0xff] }
 0x3b6   :  { %v8822_v26 = vpop.f32.mrf.mxu2  ;;  %v8824_v12 = vpop.f32.mrf.mxu3 }
 0x3b7   :  { %13735 = vst [vmem:[#allocation346_spill] sm:$0xff] %v8822_v26  ;;  %v8826_v16 = vpop.f32.mrf.mxu0  ;;  %v8828_v24 = vpop.f32.mrf.mxu1 }
 0x3b8   :  { %13736 = vst [vmem:[#allocation347_spill] sm:$0xff] %v8824_v12 }
 0x3b9   :  { %13737 = vst [vmem:[#allocation348_spill] sm:$0xff] %v8826_v16 }
 0x3ba   :  { %13738 = vst [vmem:[#allocation349_spill] sm:$0xff] %v8828_v24  ;;  %1266 = vmatmul.f32.gmra.mxu0 %v7084_v33  ;;  %1475 = vmatmul.f32.gmra.mxu1 %v7084_v33 }
 0x3bb   :  { %1684 = vmatmul.f32.gmra.mxu2 %v7084_v33  ;;  %1893 = vmatmul.f32.gmra.mxu3 %v7084_v33  ;;  %v7085_v33 = vld [vmem:[%s13283_s0 + $0x1a0] sm:$0xff] }
 0x3be   :  { %v8839_v16 = vpop.f32.mrf.mxu2  ;;  %v8841_v24 = vpop.f32.mrf.mxu3 }
 0x3bf   :  { %13739 = vst [vmem:[#allocation350_spill] sm:$0xff] %v8839_v16  ;;  %v8843_v12 = vpop.f32.mrf.mxu0  ;;  %v8845_v26 = vpop.f32.mrf.mxu1 }
 0x3c0   :  { %13740 = vst [vmem:[#allocation351_spill] sm:$0xff] %v8841_v24 }
 0x3c1   :  { %13741 = vst [vmem:[#allocation352_spill] sm:$0xff] %v8843_v12 }
 0x3c2   :  { %13742 = vst [vmem:[#allocation353_spill] sm:$0xff] %v8845_v26  ;;  %1269 = vmatmul.f32.gmra.mxu0 %v7085_v33  ;;  %1478 = vmatmul.f32.gmra.mxu1 %v7085_v33 }
 0x3c3   :  { %1687 = vmatmul.f32.gmra.mxu2 %v7085_v33  ;;  %1896 = vmatmul.f32.gmra.mxu3 %v7085_v33 }
 0x3c6   :  { %v8856_v12 = vpop.f32.mrf.mxu2  ;;  %v8858_v26 = vpop.f32.mrf.mxu3 }
 0x3c7   :  { %13743 = vst [vmem:[#allocation354_spill] sm:$0xff] %v8856_v12  ;;  %v8860_v24 = vpop.f32.mrf.mxu0  ;;  %v8862_v16 = vpop.f32.mrf.mxu1 }
 0x3c8   :  { %13744 = vst [vmem:[#allocation355_spill] sm:$0xff] %v8858_v26 }
 0x3c9   :  { %13745 = vst [vmem:[#allocation356_spill] sm:$0xff] %v8860_v24 }
 0x3ca   :  { %13746 = vst [vmem:[#allocation357_spill] sm:$0xff] %v8862_v16  ;;  %1272 = vmatmul.f32.gmra.mxu0 %v7086_v17  ;;  %1481 = vmatmul.f32.gmra.mxu1 %v7086_v17  ;;  %v7087_v16 = vld [vmem:[%s13283_s0 + $0x1b0] sm:$0xff] }
 0x3cb   :  { %1690 = vmatmul.f32.gmra.mxu2 %v7086_v17  ;;  %1899 = vmatmul.f32.gmra.mxu3 %v7086_v17 }
 0x3ce   :  { %v8867_v23 = vpop.f32.mrf.mxu2  ;;  %v8869_v11 = vpop.f32.mrf.mxu3 }
 0x3cf   :  { %13747 = vst [vmem:[#allocation358_spill] sm:$0xff] %v8867_v23  ;;  %v8871_v33 = vpop.f32.mrf.mxu0  ;;  %v8873_v12 = vpop.f32.mrf.mxu1 }
 0x3d0   :  { %13748 = vst [vmem:[#allocation359_spill] sm:$0xff] %v8869_v11 }
 0x3d1   :  { %13749 = vst [vmem:[#allocation360_spill] sm:$0xff] %v8871_v33  ;;  %v6686_v33 = vld [vmem:[%s13282_s1 + $0x438] sm:$0xff] }
 0x3d2   :  { %13750 = vst [vmem:[#allocation361_spill] sm:$0xff] %v8873_v12  ;;  %1275 = vmatmul.f32.gmra.mxu0 %v7087_v16  ;;  %1484 = vmatmul.f32.gmra.mxu1 %v7087_v16  ;;  %v6685_v12 = vld [vmem:[%s13282_s1 + $0x430] sm:$0xff] }
 0x3d3   :  { %1693 = vmatmul.f32.gmra.mxu2 %v7087_v16  ;;  %1902 = vmatmul.f32.gmra.mxu3 %v7087_v16  ;;  %v7088_v16 = vld [vmem:[%s13283_s0 + $0x1b8] sm:$0xff] }
 0x3d4   :  { %2494 = vmatpush.msra.mxu2 %v6685_v12  ;;  %2703 = vmatpush.msra.mxu3 %v6686_v33  ;;  %v6683_v12 = vld [vmem:[%s13282_s1 + $0x420] sm:$0xff]  ;;  %v6684_v33 = vld [vmem:[%s13282_s1 + $0x428] sm:$0xff] }
 0x3d5   :  { %2076 = vmatpush.msra.mxu0 %v6683_v12  ;;  %2285 = vmatpush.msra.mxu1 %v6684_v33  ;;  %v7090_v12 = vld [vmem:[%s13283_s0 + $0x1c8] sm:$0xff] }
 0x3d6   :  { %v8878_v24 = vpop.f32.mrf.mxu2  ;;  %v8880_v26 = vpop.f32.mrf.mxu3 }
 0x3d7   :  { %13751 = vst [vmem:[#allocation362_spill] sm:$0xff] %v8878_v24  ;;  %v8882_v17 = vpop.f32.mrf.mxu0  ;;  %v8884_v23 = vpop.f32.mrf.mxu1 }
 0x3d8   :  { %13752 = vst [vmem:[#allocation363_spill] sm:$0xff] %v8880_v26 }
 0x3d9   :  { %13753 = vst [vmem:[#allocation364_spill] sm:$0xff] %v8882_v17 }
 0x3da   :  { %13754 = vst [vmem:[#allocation365_spill] sm:$0xff] %v8884_v23  ;;  %1278 = vmatmul.f32.gmra.mxu0 %v7088_v16  ;;  %1487 = vmatmul.f32.gmra.mxu1 %v7088_v16 }
 0x3db   :  { %1696 = vmatmul.f32.gmra.mxu2 %v7088_v16  ;;  %1905 = vmatmul.f32.gmra.mxu3 %v7088_v16  ;;  %v7089_v16 = vld [vmem:[%s13283_s0 + $0x1c0] sm:$0xff] }
 0x3de   :  { %v8895_v17 = vpop.f32.mrf.mxu2  ;;  %v8897_v23 = vpop.f32.mrf.mxu3 }
 0x3df   :  { %13755 = vst [vmem:[#allocation366_spill] sm:$0xff] %v8895_v17  ;;  %v8899_v26 = vpop.f32.mrf.mxu0  ;;  %v8901_v24 = vpop.f32.mrf.mxu1 }
 0x3e0   :  { %13756 = vst [vmem:[#allocation367_spill] sm:$0xff] %v8897_v23 }
 0x3e1   :  { %13757 = vst [vmem:[#allocation368_spill] sm:$0xff] %v8899_v26 }
 0x3e2   :  { %13758 = vst [vmem:[#allocation369_spill] sm:$0xff] %v8901_v24  ;;  %1281 = vmatmul.f32.gmra.mxu0 %v7089_v16  ;;  %1490 = vmatmul.f32.gmra.mxu1 %v7089_v16 }
 0x3e3   :  { %1699 = vmatmul.f32.gmra.mxu2 %v7089_v16  ;;  %1908 = vmatmul.f32.gmra.mxu3 %v7089_v16 }
 0x3e6   :  { %v8912_v26 = vpop.f32.mrf.mxu2  ;;  %v8914_v24 = vpop.f32.mrf.mxu3 }
 0x3e7   :  { %13759 = vst [vmem:[#allocation370_spill] sm:$0xff] %v8912_v26  ;;  %v8916_v23 = vpop.f32.mrf.mxu0  ;;  %v8918_v17 = vpop.f32.mrf.mxu1 }
 0x3e8   :  { %13760 = vst [vmem:[#allocation371_spill] sm:$0xff] %v8914_v24 }
 0x3e9   :  { %13761 = vst [vmem:[#allocation372_spill] sm:$0xff] %v8916_v23 }
 0x3ea   :  { %13762 = vst [vmem:[#allocation373_spill] sm:$0xff] %v8918_v17  ;;  %1284 = vmatmul.f32.gmra.mxu0 %v7090_v12  ;;  %1493 = vmatmul.f32.gmra.mxu1 %v7090_v12  ;;  %v7091_v17 = vld [vmem:[%s13283_s0 + $0x1d0] sm:$0xff] }
 0x3eb   :  { %1702 = vmatmul.f32.gmra.mxu2 %v7090_v12  ;;  %1911 = vmatmul.f32.gmra.mxu3 %v7090_v12 }
 0x3ee   :  { %v8923_v33 = vpop.f32.mrf.mxu2  ;;  %v8925_v11 = vpop.f32.mrf.mxu3 }
 0x3ef   :  { %13763 = vst [vmem:[#allocation374_spill] sm:$0xff] %v8923_v33  ;;  %v8927_v16 = vpop.f32.mrf.mxu0  ;;  %v8929_v26 = vpop.f32.mrf.mxu1 }
 0x3f0   :  { %13764 = vst [vmem:[#allocation375_spill] sm:$0xff] %v8925_v11 }
 0x3f1   :  { %13765 = vst [vmem:[#allocation376_spill] sm:$0xff] %v8927_v16  ;;  %v6682_v16 = vld [vmem:[%s13282_s1 + $0x418] sm:$0xff] }
 0x3f2   :  { %13766 = vst [vmem:[#allocation377_spill] sm:$0xff] %v8929_v26  ;;  %1287 = vmatmul.f32.gmra.mxu0 %v7091_v17  ;;  %1496 = vmatmul.f32.gmra.mxu1 %v7091_v17  ;;  %v6681_v26 = vld [vmem:[%s13282_s1 + $0x410] sm:$0xff] }
 0x3f3   :  { %1705 = vmatmul.f32.gmra.mxu2 %v7091_v17  ;;  %1914 = vmatmul.f32.gmra.mxu3 %v7091_v17  ;;  %v7092_v17 = vld [vmem:[%s13283_s0 + $0x1d8] sm:$0xff] }
 0x3f4   :  { %2495 = vmatpush.msra.mxu2 %v6681_v26  ;;  %2704 = vmatpush.msra.mxu3 %v6682_v16  ;;  %v6679_v26 = vld [vmem:[%s13282_s1 + $0x400] sm:$0xff]  ;;  %v6680_v16 = vld [vmem:[%s13282_s1 + $0x408] sm:$0xff] }
 0x3f5   :  { %2077 = vmatpush.msra.mxu0 %v6679_v26  ;;  %2286 = vmatpush.msra.mxu1 %v6680_v16  ;;  %v7094_v26 = vld [vmem:[%s13283_s0 + $0x1e8] sm:$0xff] }
 0x3f6   :  { %v8934_v23 = vpop.f32.mrf.mxu2  ;;  %v8936_v24 = vpop.f32.mrf.mxu3 }
 0x3f7   :  { %13767 = vst [vmem:[#allocation378_spill] sm:$0xff] %v8934_v23  ;;  %v8938_v12 = vpop.f32.mrf.mxu0  ;;  %v8940_v33 = vpop.f32.mrf.mxu1 }
 0x3f8   :  { %13768 = vst [vmem:[#allocation379_spill] sm:$0xff] %v8936_v24 }
 0x3f9   :  { %13769 = vst [vmem:[#allocation380_spill] sm:$0xff] %v8938_v12 }
 0x3fa   :  { %13770 = vst [vmem:[#allocation381_spill] sm:$0xff] %v8940_v33  ;;  %1290 = vmatmul.f32.gmra.mxu0 %v7092_v17  ;;  %1499 = vmatmul.f32.gmra.mxu1 %v7092_v17 }
 0x3fb   :  { %1708 = vmatmul.f32.gmra.mxu2 %v7092_v17  ;;  %1917 = vmatmul.f32.gmra.mxu3 %v7092_v17  ;;  %v7093_v17 = vld [vmem:[%s13283_s0 + $0x1e0] sm:$0xff] }
 0x3fe   :  { %v8951_v12 = vpop.f32.mrf.mxu2  ;;  %v8953_v33 = vpop.f32.mrf.mxu3 }
 0x3ff   :  { %13771 = vst [vmem:[#allocation382_spill] sm:$0xff] %v8951_v12  ;;  %v8955_v24 = vpop.f32.mrf.mxu0  ;;  %v8957_v23 = vpop.f32.mrf.mxu1 }
 0x400   :  { %13772 = vst [vmem:[#allocation383_spill] sm:$0xff] %v8953_v33 }
 0x401   :  { %13773 = vst [vmem:[#allocation384_spill] sm:$0xff] %v8955_v24 }
 0x402   :  { %13774 = vst [vmem:[#allocation385_spill] sm:$0xff] %v8957_v23  ;;  %1293 = vmatmul.f32.gmra.mxu0 %v7093_v17  ;;  %1502 = vmatmul.f32.gmra.mxu1 %v7093_v17 }
 0x403   :  { %1711 = vmatmul.f32.gmra.mxu2 %v7093_v17  ;;  %1920 = vmatmul.f32.gmra.mxu3 %v7093_v17 }
 0x406   :  { %v8968_v24 = vpop.f32.mrf.mxu2  ;;  %v8970_v23 = vpop.f32.mrf.mxu3 }
 0x407   :  { %13775 = vst [vmem:[#allocation386_spill] sm:$0xff] %v8968_v24  ;;  %v8972_v33 = vpop.f32.mrf.mxu0  ;;  %v8974_v12 = vpop.f32.mrf.mxu1 }
 0x408   :  { %13776 = vst [vmem:[#allocation387_spill] sm:$0xff] %v8970_v23 }
 0x409   :  { %13777 = vst [vmem:[#allocation388_spill] sm:$0xff] %v8972_v33 }
 0x40a   :  { %13778 = vst [vmem:[#allocation389_spill] sm:$0xff] %v8974_v12  ;;  %1296 = vmatmul.f32.gmra.mxu0 %v7094_v26  ;;  %1505 = vmatmul.f32.gmra.mxu1 %v7094_v26  ;;  %v7095_v12 = vld [vmem:[%s13283_s0 + $0x1f0] sm:$0xff] }
 0x40b   :  { %1714 = vmatmul.f32.gmra.mxu2 %v7094_v26  ;;  %1923 = vmatmul.f32.gmra.mxu3 %v7094_v26 }
 0x40e   :  { %v8979_v16 = vpop.f32.mrf.mxu2  ;;  %v8981_v11 = vpop.f32.mrf.mxu3 }
 0x40f   :  { %13779 = vst [vmem:[#allocation390_spill] sm:$0xff] %v8979_v16  ;;  %v8983_v17 = vpop.f32.mrf.mxu0  ;;  %v8985_v24 = vpop.f32.mrf.mxu1 }
 0x410   :  { %13780 = vst [vmem:[#allocation391_spill] sm:$0xff] %v8981_v11  ;;  %v1934_v11 = vld [vmem:[%s13283_s0 + $0x48] sm:$0xff] }
 0x411   :  { %13781 = vst [vmem:[#allocation392_spill] sm:$0xff] %v8983_v17  ;;  %v6806_v17 = vld [vmem:[%s13284_s3 + $0x3f8] sm:$0xff] }
 0x412   :  { %13782 = vst [vmem:[#allocation393_spill] sm:$0xff] %v8985_v24  ;;  %1299 = vmatmul.f32.gmra.mxu0 %v7095_v12  ;;  %1508 = vmatmul.f32.gmra.mxu1 %v7095_v12  ;;  %v6774_v24 = vld [vmem:[%s13284_s3 + $0x2f8] sm:$0xff] }
 0x413   :  { %1717 = vmatmul.f32.gmra.mxu2 %v7095_v12  ;;  %1926 = vmatmul.f32.gmra.mxu3 %v7095_v12  ;;  %v7096_v12 = vld [vmem:[%s13283_s0 + $0x1f8] sm:$0xff] }
 0x414   :  { %4099 = vmatpush.msrb.mxu2 %v6774_v24  ;;  %4212 = vmatpush.msrb.mxu3 %v6806_v17  ;;  %v1933_v24 = vld [vmem:[%s13283_s0 + $0x40] sm:$0xff]  ;;  %v6773_v17 = vld [vmem:[%s13284_s3 + $0x2f0] sm:$0xff] }
 0x415   :  { %3873 = vmatpush.msrb.mxu0 %v6773_v17 }
 0x416   :  { %v8990_v33 = vpop.f32.mrf.mxu2  ;;  %v8992_v23 = vpop.f32.mrf.mxu3 }
 0x417   :  { %13783 = vst [vmem:[#allocation394_spill] sm:$0xff] %v8990_v33  ;;  %v8994_v26 = vpop.f32.mrf.mxu0  ;;  %v8996_v16 = vpop.f32.mrf.mxu1 }
 0x418   :  { %13784 = vst [vmem:[#allocation395_spill] sm:$0xff] %v8992_v23 }
 0x419   :  { %13785 = vst [vmem:[#allocation396_spill] sm:$0xff] %v8994_v26 }
 0x41a   :  { %13786 = vst [vmem:[#allocation397_spill] sm:$0xff] %v8996_v16  ;;  %1302 = vmatmul.f32.gmra.mxu0 %v7096_v12  ;;  %1511 = vmatmul.f32.gmra.mxu1 %v7096_v12 }
 0x41b   :  { %1720 = vmatmul.f32.gmra.mxu2 %v7096_v12  ;;  %1929 = vmatmul.f32.gmra.mxu3 %v7096_v12  ;;  %v6805_v12 = vld [vmem:[%s13284_s3 + $0x3f0] sm:$0xff] }
 0x41c   :  { %3986 = vmatpush.msrb.mxu1 %v6805_v12 }
 0x41e   :  { %v9007_v26 = vpop.f32.mrf.mxu2  ;;  %v9009_v16 = vpop.f32.mrf.mxu3 }
 0x41f   :  { %13787 = vst [vmem:[#allocation398_spill] sm:$0xff] %v9007_v26  ;;  %v9011_v23 = vpop.f32.mrf.mxu0  ;;  %v9013_v33 = vpop.f32.mrf.mxu1 }
 0x420   :  { %13788 = vst [vmem:[#allocation399_spill] sm:$0xff] %v9009_v16 }
 0x421   :  { %13789 = vst [vmem:[#allocation400_spill] sm:$0xff] %v9011_v23 }
 0x422   :  { %13790 = vst [vmem:[#allocation401_spill] sm:$0xff] %v9013_v33  ;;  %2078 = vmatmul.f32.vlgmr.msra.gmra.mxu0 %v1933_v24  ;;  %2287 = vmatmul.f32.vlgmr.msra.gmra.mxu1 %v1933_v24 }
 0x423   :  { %2496 = vmatmul.f32.vlgmr.msra.gmra.mxu2 %v1933_v24  ;;  %2705 = vmatmul.f32.vlgmr.msra.gmra.mxu3 %v1933_v24 }
 0x426   :  { %v9024_v23 = vpop.f32.mrf.mxu2  ;;  %v9026_v33 = vpop.f32.mrf.mxu3 }
 0x427   :  { %13791 = vst [vmem:[#allocation402_spill] sm:$0xff] %v9024_v23  ;;  %v9028_v16 = vpop.f32.mrf.mxu0  ;;  %v9030_v26 = vpop.f32.mrf.mxu1 }
 0x428   :  { %13792 = vst [vmem:[#allocation403_spill] sm:$0xff] %v9026_v33 }
 0x429   :  { %13793 = vst [vmem:[#allocation404_spill] sm:$0xff] %v9028_v16 }
 0x42a   :  { %13794 = vst [vmem:[#allocation405_spill] sm:$0xff] %v9030_v26  ;;  %2081 = vmatmul.f32.gmra.mxu0 %v1934_v11  ;;  %2290 = vmatmul.f32.gmra.mxu1 %v1934_v11  ;;  %v1935_v26 = vld [vmem:[%s13283_s0 + $0x50] sm:$0xff] }
 0x42b   :  { %2499 = vmatmul.f32.gmra.mxu2 %v1934_v11  ;;  %2708 = vmatmul.f32.gmra.mxu3 %v1934_v11 }
 0x42e   :  { %v9035_v17 = vpop.f32.mrf.mxu2  ;;  %v9037_v12 = vpop.f32.mrf.mxu3 }
 0x42f   :  { %13795 = vst [vmem:[#allocation406_spill] sm:$0xff] %v9035_v17  ;;  %v9039_v24 = vpop.f32.mrf.mxu0  ;;  %v9041_v23 = vpop.f32.mrf.mxu1 }
 0x430   :  { %13796 = vst [vmem:[#allocation407_spill] sm:$0xff] %v9037_v12  ;;  %v1937_v12 = vld [vmem:[%s13283_s0 + $0x60] sm:$0xff] }
 0x431   :  { %13797 = vst [vmem:[#allocation408_spill] sm:$0xff] %v9039_v24  ;;  %v6772_v24 = vld [vmem:[%s13284_s3 + $0x2e8] sm:$0xff] }
 0x432   :  { %13798 = vst [vmem:[#allocation409_spill] sm:$0xff] %v9041_v23  ;;  %2084 = vmatmul.f32.gmra.mxu0 %v1935_v26  ;;  %2293 = vmatmul.f32.gmra.mxu1 %v1935_v26  ;;  %v1936_v23 = vld [vmem:[%s13283_s0 + $0x58] sm:$0xff] }
 0x433   :  { %2502 = vmatmul.f32.gmra.mxu2 %v1935_v26  ;;  %2711 = vmatmul.f32.gmra.mxu3 %v1935_v26  ;;  %v6804_v26 = vld [vmem:[%s13284_s3 + $0x3e8] sm:$0xff] }
 0x434   :  { %4100 = vmatpush.msrb.mxu2 %v6772_v24  ;;  %4213 = vmatpush.msrb.mxu3 %v6804_v26  ;;  %v6771_v24 = vld [vmem:[%s13284_s3 + $0x2e0] sm:$0xff] }
 0x435   :  { %3874 = vmatpush.msrb.mxu0 %v6771_v24 }
 0x436   :  { %v9046_v16 = vpop.f32.mrf.mxu2  ;;  %v9048_v33 = vpop.f32.mrf.mxu3 }
 0x437   :  { %13799 = vst [vmem:[#allocation410_spill] sm:$0xff] %v9046_v16  ;;  %v9050_v11 = vpop.f32.mrf.mxu0  ;;  %v9052_v17 = vpop.f32.mrf.mxu1 }
 0x438   :  { %13800 = vst [vmem:[#allocation411_spill] sm:$0xff] %v9048_v33 }
 0x439   :  { %13801 = vst [vmem:[#allocation412_spill] sm:$0xff] %v9050_v11 }
 0x43a   :  { %13802 = vst [vmem:[#allocation413_spill] sm:$0xff] %v9052_v17  ;;  %2087 = vmatmul.f32.gmra.mxu0 %v1936_v23  ;;  %2296 = vmatmul.f32.gmra.mxu1 %v1936_v23 }
 0x43b   :  { %2505 = vmatmul.f32.gmra.mxu2 %v1936_v23  ;;  %2714 = vmatmul.f32.gmra.mxu3 %v1936_v23  ;;  %v6803_v23 = vld [vmem:[%s13284_s3 + $0x3e0] sm:$0xff] }
 0x43c   :  { %3987 = vmatpush.msrb.mxu1 %v6803_v23 }
 0x43e   :  { %v9063_v11 = vpop.f32.mrf.mxu2  ;;  %v9065_v17 = vpop.f32.mrf.mxu3 }
 0x43f   :  { %13803 = vst [vmem:[#allocation414_spill] sm:$0xff] %v9063_v11  ;;  %v9067_v33 = vpop.f32.mrf.mxu0  ;;  %v9069_v16 = vpop.f32.mrf.mxu1  ;;  %v1938_v11 = vld [vmem:[%s13283_s0 + $0x68] sm:$0xff] }
 0x440   :  { %13804 = vst [vmem:[#allocation415_spill] sm:$0xff] %v9065_v17 }
 0x441   :  { %13805 = vst [vmem:[#allocation416_spill] sm:$0xff] %v9067_v33 }
 0x442   :  { %13806 = vst [vmem:[#allocation417_spill] sm:$0xff] %v9069_v16  ;;  %2090 = vmatmul.f32.gmra.mxu0 %v1937_v12  ;;  %2299 = vmatmul.f32.gmra.mxu1 %v1937_v12 }
 0x443   :  { %2508 = vmatmul.f32.gmra.mxu2 %v1937_v12  ;;  %2717 = vmatmul.f32.gmra.mxu3 %v1937_v12 }
 0x446   :  { %v9080_v26 = vpop.f32.mrf.mxu2  ;;  %v9082_v16 = vpop.f32.mrf.mxu3 }
 0x447   :  { %13807 = vst [vmem:[#allocation418_spill] sm:$0xff] %v9080_v26  ;;  %v9084_v33 = vpop.f32.mrf.mxu0  ;;  %v9086_v17 = vpop.f32.mrf.mxu1 }
 0x448   :  { %13808 = vst [vmem:[#allocation419_spill] sm:$0xff] %v9082_v16 }
 0x449   :  { %13809 = vst [vmem:[#allocation420_spill] sm:$0xff] %v9084_v33 }
 0x44a   :  { %13810 = vst [vmem:[#allocation421_spill] sm:$0xff] %v9086_v17  ;;  %2093 = vmatmul.f32.gmra.mxu0 %v1938_v11  ;;  %2302 = vmatmul.f32.gmra.mxu1 %v1938_v11  ;;  %v1939_v17 = vld [vmem:[%s13283_s0 + $0x70] sm:$0xff] }
 0x44b   :  { %2511 = vmatmul.f32.gmra.mxu2 %v1938_v11  ;;  %2720 = vmatmul.f32.gmra.mxu3 %v1938_v11 }
 0x44e   :  { %v9091_v24 = vpop.f32.mrf.mxu2  ;;  %v9093_v23 = vpop.f32.mrf.mxu3 }
 0x44f   :  { %13811 = vst [vmem:[#allocation422_spill] sm:$0xff] %v9091_v24  ;;  %v9095_v12 = vpop.f32.mrf.mxu0  ;;  %v9097_v26 = vpop.f32.mrf.mxu1 }
 0x450   :  { %13812 = vst [vmem:[#allocation423_spill] sm:$0xff] %v9093_v23  ;;  %v1941_v23 = vld [vmem:[%s13283_s0 + $0x80] sm:$0xff] }
 0x451   :  { %13813 = vst [vmem:[#allocation424_spill] sm:$0xff] %v9095_v12  ;;  %v6770_v12 = vld [vmem:[%s13284_s3 + $0x2d8] sm:$0xff] }
 0x452   :  { %13814 = vst [vmem:[#allocation425_spill] sm:$0xff] %v9097_v26  ;;  %2096 = vmatmul.f32.gmra.mxu0 %v1939_v17  ;;  %2305 = vmatmul.f32.gmra.mxu1 %v1939_v17  ;;  %v1940_v26 = vld [vmem:[%s13283_s0 + $0x78] sm:$0xff] }
 0x453   :  { %2514 = vmatmul.f32.gmra.mxu2 %v1939_v17  ;;  %2723 = vmatmul.f32.gmra.mxu3 %v1939_v17  ;;  %v6802_v17 = vld [vmem:[%s13284_s3 + $0x3d8] sm:$0xff] }
 0x454   :  { %4101 = vmatpush.msrb.mxu2 %v6770_v12  ;;  %4214 = vmatpush.msrb.mxu3 %v6802_v17  ;;  %v6769_v12 = vld [vmem:[%s13284_s3 + $0x2d0] sm:$0xff] }
 0x455   :  { %3875 = vmatpush.msrb.mxu0 %v6769_v12 }
 0x456   :  { %v9102_v33 = vpop.f32.mrf.mxu2  ;;  %v9104_v16 = vpop.f32.mrf.mxu3 }
 0x457   :  { %13815 = vst [vmem:[#allocation426_spill] sm:$0xff] %v9102_v33  ;;  %v9106_v11 = vpop.f32.mrf.mxu0  ;;  %v9108_v24 = vpop.f32.mrf.mxu1 }
 0x458   :  { %13816 = vst [vmem:[#allocation427_spill] sm:$0xff] %v9104_v16 }
 0x459   :  { %13817 = vst [vmem:[#allocation428_spill] sm:$0xff] %v9106_v11 }
 0x45a   :  { %13818 = vst [vmem:[#allocation429_spill] sm:$0xff] %v9108_v24  ;;  %2099 = vmatmul.f32.gmra.mxu0 %v1940_v26  ;;  %2308 = vmatmul.f32.gmra.mxu1 %v1940_v26 }
 0x45b   :  { %2517 = vmatmul.f32.gmra.mxu2 %v1940_v26  ;;  %2726 = vmatmul.f32.gmra.mxu3 %v1940_v26  ;;  %v6801_v26 = vld [vmem:[%s13284_s3 + $0x3d0] sm:$0xff] }
 0x45c   :  { %3988 = vmatpush.msrb.mxu1 %v6801_v26 }
 0x45e   :  { %v9119_v11 = vpop.f32.mrf.mxu2  ;;  %v9121_v24 = vpop.f32.mrf.mxu3 }
 0x45f   :  { %13819 = vst [vmem:[#allocation430_spill] sm:$0xff] %v9119_v11  ;;  %v9123_v16 = vpop.f32.mrf.mxu0  ;;  %v9125_v33 = vpop.f32.mrf.mxu1  ;;  %v1942_v11 = vld [vmem:[%s13283_s0 + $0x88] sm:$0xff] }
 0x460   :  { %13820 = vst [vmem:[#allocation431_spill] sm:$0xff] %v9121_v24 }
 0x461   :  { %13821 = vst [vmem:[#allocation432_spill] sm:$0xff] %v9123_v16 }
 0x462   :  { %13822 = vst [vmem:[#allocation433_spill] sm:$0xff] %v9125_v33  ;;  %2102 = vmatmul.f32.gmra.mxu0 %v1941_v23  ;;  %2311 = vmatmul.f32.gmra.mxu1 %v1941_v23 }
 0x463   :  { %2520 = vmatmul.f32.gmra.mxu2 %v1941_v23  ;;  %2729 = vmatmul.f32.gmra.mxu3 %v1941_v23 }
 0x466   :  { %v9136_v17 = vpop.f32.mrf.mxu2  ;;  %v9138_v33 = vpop.f32.mrf.mxu3 }
 0x467   :  { %13823 = vst [vmem:[#allocation434_spill] sm:$0xff] %v9136_v17  ;;  %v9140_v16 = vpop.f32.mrf.mxu0  ;;  %v9142_v24 = vpop.f32.mrf.mxu1 }
 0x468   :  { %13824 = vst [vmem:[#allocation435_spill] sm:$0xff] %v9138_v33 }
 0x469   :  { %13825 = vst [vmem:[#allocation436_spill] sm:$0xff] %v9140_v16 }
 0x46a   :  { %13826 = vst [vmem:[#allocation437_spill] sm:$0xff] %v9142_v24  ;;  %2105 = vmatmul.f32.gmra.mxu0 %v1942_v11  ;;  %2314 = vmatmul.f32.gmra.mxu1 %v1942_v11  ;;  %v1943_v24 = vld [vmem:[%s13283_s0 + $0x90] sm:$0xff] }
 0x46b   :  { %2523 = vmatmul.f32.gmra.mxu2 %v1942_v11  ;;  %2732 = vmatmul.f32.gmra.mxu3 %v1942_v11 }
 0x46e   :  { %v9147_v12 = vpop.f32.mrf.mxu2  ;;  %v9149_v26 = vpop.f32.mrf.mxu3 }
 0x46f   :  { %13827 = vst [vmem:[#allocation438_spill] sm:$0xff] %v9147_v12  ;;  %v9151_v23 = vpop.f32.mrf.mxu0  ;;  %v9153_v17 = vpop.f32.mrf.mxu1 }
 0x470   :  { %13828 = vst [vmem:[#allocation439_spill] sm:$0xff] %v9149_v26  ;;  %v1945_v26 = vld [vmem:[%s13283_s0 + $0xa0] sm:$0xff] }
 0x471   :  { %13829 = vst [vmem:[#allocation440_spill] sm:$0xff] %v9151_v23  ;;  %v6768_v23 = vld [vmem:[%s13284_s3 + $0x2c8] sm:$0xff] }
 0x472   :  { %13830 = vst [vmem:[#allocation441_spill] sm:$0xff] %v9153_v17  ;;  %2108 = vmatmul.f32.gmra.mxu0 %v1943_v24  ;;  %2317 = vmatmul.f32.gmra.mxu1 %v1943_v24  ;;  %v1944_v17 = vld [vmem:[%s13283_s0 + $0x98] sm:$0xff] }
 0x473   :  { %2526 = vmatmul.f32.gmra.mxu2 %v1943_v24  ;;  %2735 = vmatmul.f32.gmra.mxu3 %v1943_v24  ;;  %v6800_v24 = vld [vmem:[%s13284_s3 + $0x3c8] sm:$0xff] }
 0x474   :  { %4102 = vmatpush.msrb.mxu2 %v6768_v23  ;;  %4215 = vmatpush.msrb.mxu3 %v6800_v24  ;;  %v6767_v23 = vld [vmem:[%s13284_s3 + $0x2c0] sm:$0xff] }
 0x475   :  { %3876 = vmatpush.msrb.mxu0 %v6767_v23 }
 0x476   :  { %v9158_v16 = vpop.f32.mrf.mxu2  ;;  %v9160_v33 = vpop.f32.mrf.mxu3 }
 0x477   :  { %13831 = vst [vmem:[#allocation442_spill] sm:$0xff] %v9158_v16  ;;  %v9162_v11 = vpop.f32.mrf.mxu0  ;;  %v9164_v12 = vpop.f32.mrf.mxu1 }
 0x478   :  { %13832 = vst [vmem:[#allocation443_spill] sm:$0xff] %v9160_v33 }
 0x479   :  { %13833 = vst [vmem:[#allocation444_spill] sm:$0xff] %v9162_v11 }
 0x47a   :  { %13834 = vst [vmem:[#allocation445_spill] sm:$0xff] %v9164_v12  ;;  %2111 = vmatmul.f32.gmra.mxu0 %v1944_v17  ;;  %2320 = vmatmul.f32.gmra.mxu1 %v1944_v17 }
 0x47b   :  { %2529 = vmatmul.f32.gmra.mxu2 %v1944_v17  ;;  %2738 = vmatmul.f32.gmra.mxu3 %v1944_v17  ;;  %v6799_v17 = vld [vmem:[%s13284_s3 + $0x3c0] sm:$0xff] }
 0x47c   :  { %3989 = vmatpush.msrb.mxu1 %v6799_v17 }
 0x47e   :  { %v9175_v11 = vpop.f32.mrf.mxu2  ;;  %v9177_v12 = vpop.f32.mrf.mxu3 }
 0x47f   :  { %13835 = vst [vmem:[#allocation446_spill] sm:$0xff] %v9175_v11  ;;  %v9179_v33 = vpop.f32.mrf.mxu0  ;;  %v9181_v16 = vpop.f32.mrf.mxu1  ;;  %v1946_v11 = vld [vmem:[%s13283_s0 + $0xa8] sm:$0xff] }
 0x480   :  { %13836 = vst [vmem:[#allocation447_spill] sm:$0xff] %v9177_v12 }
 0x481   :  { %13837 = vst [vmem:[#allocation448_spill] sm:$0xff] %v9179_v33 }
 0x482   :  { %13838 = vst [vmem:[#allocation449_spill] sm:$0xff] %v9181_v16  ;;  %2114 = vmatmul.f32.gmra.mxu0 %v1945_v26  ;;  %2323 = vmatmul.f32.gmra.mxu1 %v1945_v26 }
 0x483   :  { %2532 = vmatmul.f32.gmra.mxu2 %v1945_v26  ;;  %2741 = vmatmul.f32.gmra.mxu3 %v1945_v26 }
 0x486   :  { %v9192_v24 = vpop.f32.mrf.mxu2  ;;  %v9194_v16 = vpop.f32.mrf.mxu3 }
 0x487   :  { %13839 = vst [vmem:[#allocation450_spill] sm:$0xff] %v9192_v24  ;;  %v9196_v33 = vpop.f32.mrf.mxu0  ;;  %v9198_v12 = vpop.f32.mrf.mxu1 }
 0x488   :  { %13840 = vst [vmem:[#allocation451_spill] sm:$0xff] %v9194_v16 }
 0x489   :  { %13841 = vst [vmem:[#allocation452_spill] sm:$0xff] %v9196_v33 }
 0x48a   :  { %13842 = vst [vmem:[#allocation453_spill] sm:$0xff] %v9198_v12  ;;  %2117 = vmatmul.f32.gmra.mxu0 %v1946_v11  ;;  %2326 = vmatmul.f32.gmra.mxu1 %v1946_v11  ;;  %v1947_v12 = vld [vmem:[%s13283_s0 + $0xb0] sm:$0xff] }
 0x48b   :  { %2535 = vmatmul.f32.gmra.mxu2 %v1946_v11  ;;  %2744 = vmatmul.f32.gmra.mxu3 %v1946_v11 }
 0x48e   :  { %v9203_v23 = vpop.f32.mrf.mxu2  ;;  %v9205_v17 = vpop.f32.mrf.mxu3 }
 0x48f   :  { %13843 = vst [vmem:[#allocation454_spill] sm:$0xff] %v9203_v23  ;;  %v9207_v26 = vpop.f32.mrf.mxu0  ;;  %v9209_v24 = vpop.f32.mrf.mxu1 }
 0x490   :  { %13844 = vst [vmem:[#allocation455_spill] sm:$0xff] %v9205_v17  ;;  %v1533_v17 = vadd.f32 %v8352_v58, %v7456_v39 }
 0x491   :  { %13845 = vst [vmem:[#allocation456_spill] sm:$0xff] %v9207_v26 }
 0x492   :  { %13846 = vst [vmem:[#allocation457_spill] sm:$0xff] %v9209_v24  ;;  %2120 = vmatmul.f32.gmra.mxu0 %v1947_v12  ;;  %2329 = vmatmul.f32.gmra.mxu1 %v1947_v12  ;;  %v1948_v24 = vld [vmem:[%s13283_s0 + $0xb8] sm:$0xff] }
 0x493   :  { %2538 = vmatmul.f32.gmra.mxu2 %v1947_v12  ;;  %2747 = vmatmul.f32.gmra.mxu3 %v1947_v12  ;;  %v6766_v12 = vld [vmem:[%s13284_s3 + $0x2b8] sm:$0xff] }
 0x494   :  { %4103 = vmatpush.msrb.mxu2 %v6766_v12  ;;  %v6797_v12 = vld [vmem:[%s13284_s3 + $0x3b0] sm:$0xff] }
 0x495   :  { %3990 = vmatpush.msrb.mxu1 %v6797_v12 }
 0x496   :  { %v9214_v33 = vpop.f32.mrf.mxu2  ;;  %v9216_v16 = vpop.f32.mrf.mxu3 }
 0x497   :  { %13847 = vst [vmem:[#allocation458_spill] sm:$0xff] %v9214_v33  ;;  %v9218_v11 = vpop.f32.mrf.mxu0  ;;  %v9220_v23 = vpop.f32.mrf.mxu1 }
 0x498   :  { %13848 = vst [vmem:[#allocation459_spill] sm:$0xff] %v9216_v16  ;;  %v6798_v16 = vld [vmem:[%s13284_s3 + $0x3b8] sm:$0xff] }
 0x499   :  { %13849 = vst [vmem:[#allocation460_spill] sm:$0xff] %v9218_v11  ;;  %4216 = vmatpush.msrb.mxu3 %v6798_v16  ;;  %v6765_v16 = vld [vmem:[%s13284_s3 + $0x2b0] sm:$0xff] }
 0x49a   :  { %13850 = vst [vmem:[#allocation461_spill] sm:$0xff] %v9220_v23  ;;  %2123 = vmatmul.f32.gmra.mxu0 %v1948_v24  ;;  %2332 = vmatmul.f32.gmra.mxu1 %v1948_v24 }
 0x49b   :  { %2541 = vmatmul.f32.gmra.mxu2 %v1948_v24  ;;  %2750 = vmatmul.f32.gmra.mxu3 %v1948_v24  ;;  %v1949_v24 = vld [vmem:[%s13283_s0 + $0xc0] sm:$0xff] }
 0x49c   :  { %3877 = vmatpush.msrb.mxu0 %v6765_v16 }
 0x49e   :  { %v9231_v33 = vpop.f32.mrf.mxu2  ;;  %v9233_v11 = vpop.f32.mrf.mxu3 }
 0x49f   :  { %13851 = vst [vmem:[#allocation462_spill] sm:$0xff] %v9231_v33  ;;  %v9235_v23 = vpop.f32.mrf.mxu0  ;;  %v9237_v26 = vpop.f32.mrf.mxu1 }
 0x4a0   :  { %13852 = vst [vmem:[#allocation463_spill] sm:$0xff] %v9233_v11  ;;  %v1742_v11 = vadd.f32 %v8354_v59, %v7458_v40  ;;  %v1950_v40 = vld [vmem:[%s13283_s0 + $0xc8] sm:$0xff]  ;;  %v1536_v59 = vadd.f32 %v8363_v19, %v7467_v44  ;;  %v1539_v44 = vadd.f32 %v8374_v27, %v7478_v49  ;;  %v1542_v49 = vadd.f32 %v8391_v25, %v7495_v56 }
 0x4a1   :  { %v6796_v27 = vld [vmem:[%s13284_s3 + $0x3a8] sm:$0xff] }
 0x4a2   :  { %2126 = vmatmul.f32.gmra.mxu0 %v1949_v24  ;;  %2335 = vmatmul.f32.gmra.mxu1 %v1949_v24 }
 0x4a3   :  { %2544 = vmatmul.f32.gmra.mxu2 %v1949_v24  ;;  %2753 = vmatmul.f32.gmra.mxu3 %v1949_v24 }
 0x4a4   :  { %4217 = vmatpush.msrb.mxu3 %v6796_v27 }
 0x4a6   :  { %v2497_v33 = vpop.f32.mrf.mxu2  ;;  %v2706_v18 = vpop.f32.mrf.mxu3 }
 0x4a7   :  { %v9252_v52 = vadd.f32 %v2497_v33, %v1533_v17  ;;  %v9254_v24 = vadd.f32 %v2706_v18, %v1742_v11  ;;  %v9256_v39 = vpop.f32.mrf.mxu0  ;;  %v9258_v58 = vpop.f32.mrf.mxu1  ;;  %v1745_v33 = vadd.f32 %v8365_v32, %v7469_v45  ;;  %v1748_v45 = vadd.f32 %v8376_v22, %v7480_v50  ;;  %v6764_v22 = vld [vmem:[%s13284_s3 + $0x2a8] sm:$0xff] }
 0x4a8   :  { %v1751_v50 = vadd.f32 %v8393_v14, %v7497_v57  ;;  %4104 = vmatpush.msrb.mxu2 %v6764_v22  ;;  %v1953_v57 = vld [vmem:[%s13283_s0 + $0xe0] sm:$0xff]  ;;  %v1115_v14 = vadd.f32 %v8339_v35, %v7449_v36 }
 0x4a9   :  { %v3282_v22 = vld [vmem:[%s13285_s2] sm:$0x3] }
 0x4aa   :  { %2129 = vmatmul.f32.gmra.mxu0 %v1950_v40  ;;  %2338 = vmatmul.f32.gmra.mxu1 %v1950_v40  ;;  %v9323_v35 = vperm.slane %v3282_v22, 1 }
 0x4ab   :  { %2547 = vmatmul.f32.gmra.mxu2 %v1950_v40  ;;  %2756 = vmatmul.f32.gmra.mxu3 %v1950_v40  ;;  %v1951_v40 = vld [vmem:[%s13283_s0 + $0xd0] sm:$0xff] }
 0x4ae   :  { %v2500_v18 = vpop.f32.mrf.mxu2  ;;  %v2709_v17 = vpop.f32.mrf.mxu3 }
 0x4af   :  { %v9267_v11 = vadd.f32 %v2500_v18, %v1536_v59  ;;  %v9269_v16 = vadd.f32 %v2709_v17, %v1745_v33  ;;  %v9271_v12 = vpop.f32.mrf.mxu0  ;;  %v9273_v8 = vpop.f32.mrf.mxu1 }
 0x4b2   :  { %2132 = vmatmul.f32.gmra.mxu0 %v1951_v40  ;;  %2341 = vmatmul.f32.gmra.mxu1 %v1951_v40 }
 0x4b3   :  { %2550 = vmatmul.f32.gmra.mxu2 %v1951_v40  ;;  %2759 = vmatmul.f32.gmra.mxu3 %v1951_v40  ;;  %v1952_v40 = vld [vmem:[%s13283_s0 + $0xd8] sm:$0xff] }
 0x4b6   :  { %v2503_v32 = vpop.f32.mrf.mxu2  ;;  %v2712_v19 = vpop.f32.mrf.mxu3 }
 0x4b7   :  { %v9282_v59 = vadd.f32 %v2503_v32, %v1539_v44  ;;  %v9284_v33 = vadd.f32 %v2712_v19, %v1748_v45  ;;  %v9286_v18 = vpop.f32.mrf.mxu0  ;;  %v9288_v17 = vpop.f32.mrf.mxu1 }
 0x4ba   :  { %2135 = vmatmul.f32.gmra.mxu0 %v1952_v40  ;;  %2344 = vmatmul.f32.gmra.mxu1 %v1952_v40 }
 0x4bb   :  { %2553 = vmatmul.f32.gmra.mxu2 %v1952_v40  ;;  %2762 = vmatmul.f32.gmra.mxu3 %v1952_v40  ;;  %v1324_v40 = vadd.f32 %v8341_v43, %v7451_v37  ;;  %v1127_v37 = vadd.f32 %v8395_v13, %v7505_v60  ;;  %v1336_v43 = vadd.f32 %v8397_v3, %v7507_v61 }
 0x4be   :  { %v2506_v44 = vpop.f32.mrf.mxu2  ;;  %v2715_v45 = vpop.f32.mrf.mxu3 }
 0x4bf   :  { %v9303_v32 = vadd.f32 %v2506_v44, %v1542_v49  ;;  %v9305_v19 = vadd.f32 %v2715_v45, %v1751_v50  ;;  %v2091_v56 = vpop.f32.mrf.mxu0  ;;  %v2300_v25 = vpop.f32.mrf.mxu1  ;;  %v2898_v49 = vadd.f32 %v9235_v23, %v1115_v14  ;;  %v2899_v50 = vadd.f32 %v9237_v26, %v1324_v40 }
 0x4c0   :  { %v9320_v44 = vperm.slane %v3282_v22, 0  ;;  %v1545_v23 = vadd.f32 %v8408_v62, %v7512_v63  ;;  %v1754_v26 = vadd.f32 %v8410_v21, %v7514_v0  ;;  %v2914_v60 = vadd.f32 %v2091_v56, %v1127_v37  ;;  %v1954_v0 = vld [vmem:[%s13283_s0 + $0xe8] sm:$0xff] }
 0x4c1   :  { %v3154_v27 = vmax.f32 %v2898_v49, %v9252_v52  ;;  %v3155_v36 = vmax.f32 %v2899_v50, %v9254_v24  ;;  %v6763_v52 = vld [vmem:[%s13284_s3 + $0x2a0] sm:$0xff]  ;;  %v2915_v61 = vadd.f32 %v2300_v25, %v1336_v43  ;;  %v1118_v21 = vadd.f32 %v8356_v53, %v7460_v41 }
 0x4c2   :  { %2138 = vmatmul.f32.gmra.mxu0 %v1953_v57  ;;  %2347 = vmatmul.f32.gmra.mxu1 %v1953_v57  ;;  %v6795_v24 = vld [vmem:[%s13284_s3 + $0x3a0] sm:$0xff]  ;;  %v1327_v22 = vadd.f32 %v8358_v48, %v7462_v42  ;;  %v1130_v49 = vadd.f32 %v8412_v20, %v7516_v1  ;;  %v1339_v50 = vadd.f32 %v8414_v55, %v7518_v2 }
 0x4c3   :  { %2556 = vmatmul.f32.gmra.mxu2 %v1953_v57  ;;  %2765 = vmatmul.f32.gmra.mxu3 %v1953_v57  ;;  %v3288_v14 = vadd.f32 %v9320_v44, %v3154_v27  ;;  %v3289_v40 = vadd.f32 %v9323_v35, %v3155_v36  ;;  %v2902_v37 = vadd.f32 %v9256_v39, %v1118_v21 }
 0x4c4   :  { %3878 = vmatpush.msrb.mxu0 %v6763_v52  ;;  %3991 = vmatpush.msrb.mxu1 %v6795_v24  ;;  %v2903_v41 = vadd.f32 %v9258_v58, %v1327_v22  ;;  %v1548_v42 = vadd.f32 %v8419_v15, %v7523_v4  ;;  %v1757_v1 = vadd.f32 %v8421_v54, %v7525_v5  ;;  %v1955_v54 = vld [vmem:[%s13283_s0 + $0xf0] sm:$0xff] }
 0x4c5   :  { %v3416_v20 = vmax.f32 %v3288_v14, 0.0  ;;  %v3417_v2 = vmax.f32 %v3289_v40, 0.0  ;;  %v3156_v55 = vmax.f32 %v2902_v37, %v9267_v11  ;;  %v1121_v11 = vadd.f32 %v8367_v38, %v7471_v46 }
 0x4c6   :  { %v2509_v45 = vpop.f32.mrf.mxu2  ;;  %v2718_v57 = vpop.f32.mrf.mxu3  ;;  %v3157_v48 = vmax.f32 %v2903_v41, %v9269_v16  ;;  %v1330_v16 = vadd.f32 %v8369_v31, %v7473_v47  ;;  %v1342_v46 = vadd.f32 %v8425_v34, %v7529_v7  ;;  %v1551_v38 = vadd.f32 %v8430_v29, %v7534_v9  ;;  %v1956_v9 = vld [vmem:[%s13283_s0 + $0xf8] sm:$0xff]  ;;  %v13855_v29 = vld [vmem:[#allocation234_spill] sm:$0xff]  ;;  %v13856_v41 = vld [vmem:[#allocation5_spill] sm:$0xff] }
 0x4c7   :  { %v2916_v3 = vadd.f32 %v2509_v45, %v1545_v23  ;;  %v2917_v13 = vadd.f32 %v2718_v57, %v1754_v26  ;;  %v2094_v63 = vpop.f32.mrf.mxu0  ;;  %v2303_v62 = vpop.f32.mrf.mxu1  ;;  %v3290_v57 = vadd.f32 %v9320_v44, %v3156_v55 }
 0x4c8   :  { %v2918_v36 = vadd.f32 %v2094_v63, %v1130_v49  ;;  %v2919_v43 = vadd.f32 %v2303_v62, %v1339_v50  ;;  %v2906_v63 = vadd.f32 %v9271_v12, %v1121_v11  ;;  %v2907_v62 = vadd.f32 %v9273_v8, %v1330_v16 }
 0x4c9   :  { %v3162_v56 = vmax.f32 %v2914_v60, %v2916_v3  ;;  %v3163_v25 = vmax.f32 %v2915_v61, %v2917_v13  ;;  %v3291_v60 = vadd.f32 %v9323_v35, %v3157_v48  ;;  %v1133_v13 = vadd.f32 %v8423_v30, %v7527_v6  ;;  %v13860_v48 = vld [vmem:[#allocation7_spill] sm:$0xff] }
 0x4ca   :  { %2141 = vmatmul.f32.gmra.mxu0 %v1954_v0  ;;  %2350 = vmatmul.f32.gmra.mxu1 %v1954_v0  ;;  %v1760_v6 = vadd.f32 %v8432_v28, %v7536_v10  ;;  %v3158_v30 = vmax.f32 %v2906_v63, %v9282_v59  ;;  %v3159_v8 = vmax.f32 %v2907_v62, %v9284_v33  ;;  %v3418_v12 = vmax.f32 %v3290_v57, 0.0 }
 0x4cb   :  { %v3296_v53 = vadd.f32 %v9320_v44, %v3162_v56  ;;  %v3297_v27 = vadd.f32 %v9323_v35, %v3163_v25  ;;  %2559 = vmatmul.f32.gmra.mxu2 %v1954_v0  ;;  %2768 = vmatmul.f32.gmra.mxu3 %v1954_v0  ;;  %v3419_v0 = vmax.f32 %v3291_v60, 0.0  ;;  %v1124_v59 = vadd.f32 %v13855_v29, %v7482_v51 }
 0x4cc   :  { %v3292_v33 = vadd.f32 %v9320_v44, %v3158_v30  ;;  %v3293_v37 = vadd.f32 %v9323_v35, %v3159_v8 }
 0x4cd   :  { %v3424_v39 = vmax.f32 %v3296_v53, 0.0  ;;  %v3425_v58 = vmax.f32 %v3297_v27, 0.0  ;;  %v13857_v53 = vld [vmem:[#allocation235_spill] sm:$0xff] }
 0x4ce   :  { %v2512_v23 = vpop.f32.mrf.mxu2  ;;  %v2721_v26 = vpop.f32.mrf.mxu3  ;;  %v1333_v27 = vadd.f32 %v13857_v53, %v13856_v41  ;;  %v3420_v11 = vmax.f32 %v3292_v33, 0.0  ;;  %v3421_v16 = vmax.f32 %v3293_v37, 0.0  ;;  %v6761_v33 = vld [vmem:[%s13284_s3 + $0x290] sm:$0xff] }
 0x4cf   :  { %v9362_v52 = vmax.f32 %v3416_v20, %v3424_v39  ;;  %v9364_v24 = vmax.f32 %v3417_v2, %v3425_v58  ;;  %v2920_v4 = vadd.f32 %v2512_v23, %v1548_v42  ;;  %v2921_v15 = vadd.f32 %v2721_v26, %v1757_v1  ;;  %v2097_v45 = vpop.f32.mrf.mxu0  ;;  %v2306_v5 = vpop.f32.mrf.mxu1  ;;  %v13858_v20 = vld [vmem:[#allocation6_spill] sm:$0xff]  ;;  %v13859_v2 = vld [vmem:[#allocation236_spill] sm:$0xff]  ;;  %v13861_v39 = vld [vmem:[#allocation237_spill] sm:$0xff]  ;;  %3879 = vmatpush.msrb.mxu0 %v6761_v33 }
 0x4d0   :  { %v2922_v34 = vadd.f32 %v2097_v45, %v1133_v13  ;;  %v2923_v14 = vadd.f32 %v2306_v5, %v1342_v46  ;;  %v1136_v55 = vadd.f32 %v13859_v2, %v13858_v20  ;;  %v1345_v58 = vadd.f32 %v13861_v39, %v13860_v48  ;;  %v13862_v26 = vld [vmem:[#allocation8_spill] sm:$0xff]  ;;  %v13864_v45 = vld [vmem:[#allocation9_spill] sm:$0xff]  ;;  %v13865_v5 = vld [vmem:[#allocation239_spill] sm:$0xff] }
 0x4d1   :  { %v3164_v61 = vmax.f32 %v2918_v36, %v2920_v4  ;;  %v3165_v3 = vmax.f32 %v2919_v43, %v2921_v15  ;;  %v2910_v36 = vadd.f32 %v9286_v18, %v1124_v59  ;;  %v2911_v51 = vadd.f32 %v9288_v17, %v1333_v27  ;;  %v13863_v4 = vld [vmem:[#allocation238_spill] sm:$0xff]  ;;  %v6793_v37 = vld [vmem:[%s13284_s3 + $0x390] sm:$0xff]  ;;  %v13874_v39 = vld [vmem:[#allocation16_spill] sm:$0xff] }
 0x4d2   :  { %2144 = vmatmul.f32.gmra.mxu0 %v1955_v54  ;;  %2353 = vmatmul.f32.gmra.mxu1 %v1955_v54  ;;  %v1554_v15 = vadd.f32 %v13863_v4, %v13862_v26  ;;  %v1958_v2 = vld [vmem:[%s13283_s0 + $0x108] sm:$0xff] }
 0x4d3   :  { %v3298_v47 = vadd.f32 %v9320_v44, %v3164_v61  ;;  %v3299_v31 = vadd.f32 %v9323_v35, %v3165_v3  ;;  %2562 = vmatmul.f32.gmra.mxu2 %v1955_v54  ;;  %2771 = vmatmul.f32.gmra.mxu3 %v1955_v54  ;;  %v1763_v54 = vadd.f32 %v13865_v5, %v13864_v45  ;;  %v6762_v61 = vld [vmem:[%s13284_s3 + $0x298] sm:$0xff] }
 0x4d4   :  { %v3160_v18 = vmax.f32 %v2910_v36, %v9303_v32  ;;  %v3161_v57 = vmax.f32 %v2911_v51, %v9305_v19  ;;  %v6794_v3 = vld [vmem:[%s13284_s3 + $0x398] sm:$0xff]  ;;  %4105 = vmatpush.msrb.mxu2 %v6762_v61  ;;  %3992 = vmatpush.msrb.mxu1 %v6793_v37  ;;  %v13876_v51 = vld [vmem:[#allocation17_spill] sm:$0xff]  ;;  %v13888_v37 = vld [vmem:[#allocation11_spill] sm:$0xff] }
 0x4d5   :  { %v3426_v21 = vmax.f32 %v3298_v47, 0.0  ;;  %v3427_v7 = vmax.f32 %v3299_v31, 0.0  ;;  %4218 = vmatpush.msrb.mxu3 %v6794_v3 }
 0x4d6   :  { %v2515_v40 = vpop.f32.mrf.mxu2  ;;  %v2724_v22 = vpop.f32.mrf.mxu3  ;;  %v3294_v8 = vadd.f32 %v9320_v44, %v3160_v18  ;;  %v13879_v18 = vld [vmem:[#allocation250_spill] sm:$0xff] }
 0x4d7   :  { %v2924_v56 = vadd.f32 %v2515_v40, %v1551_v38  ;;  %v2925_v25 = vadd.f32 %v2724_v22, %v1760_v6  ;;  %v2100_v49 = vpop.f32.mrf.mxu0  ;;  %v2309_v50 = vpop.f32.mrf.mxu1  ;;  %v9392_v10 = vmax.f32 %v3418_v12, %v3426_v21  ;;  %v9394_v28 = vmax.f32 %v3419_v0, %v3427_v7  ;;  %v1957_v38 = vld [vmem:[%s13283_s0 + $0x100] sm:$0xff]  ;;  %v13869_v40 = vld [vmem:[#allocation242_spill] sm:$0xff] }
 0x4d8   :  { %v2926_v13 = vadd.f32 %v2100_v49, %v1136_v55  ;;  %v2927_v63 = vadd.f32 %v2309_v50, %v1345_v58  ;;  %v3295_v12 = vadd.f32 %v9323_v35, %v3161_v57  ;;  %v3422_v50 = vmax.f32 %v3294_v8, 0.0  ;;  %v13875_v58 = vld [vmem:[#allocation246_spill] sm:$0xff] }
 0x4d9   :  { %13853 = vst [vmem:[#allocation464_spill] sm:$0xff] %v9392_v10  ;;  %v3166_v42 = vmax.f32 %v2922_v34, %v2924_v56  ;;  %v3167_v1 = vmax.f32 %v2923_v14, %v2925_v25  ;;  %v13868_v14 = vld [vmem:[#allocation12_spill] sm:$0xff]  ;;  %v13870_v56 = vld [vmem:[#allocation13_spill] sm:$0xff]  ;;  %v13871_v25 = vld [vmem:[#allocation243_spill] sm:$0xff]  ;;  %v1560_v36 = vadd.f32 %v13875_v58, %v13874_v39 }
 0x4da   :  { %13854 = vst [vmem:[#allocation465_spill] sm:$0xff] %v9394_v28  ;;  %2147 = vmatmul.f32.gmra.mxu0 %v1956_v9  ;;  %2356 = vmatmul.f32.gmra.mxu1 %v1956_v9  ;;  %v1557_v22 = vadd.f32 %v13869_v40, %v13868_v14  ;;  %v1766_v49 = vadd.f32 %v13871_v25, %v13870_v56  ;;  %v13883_v8 = vld [vmem:[#allocation254_spill] sm:$0xff] }
 0x4db   :  { %v3300_v43 = vadd.f32 %v9320_v44, %v3166_v42  ;;  %v3301_v23 = vadd.f32 %v9323_v35, %v3167_v1  ;;  %2565 = vmatmul.f32.gmra.mxu2 %v1956_v9  ;;  %2774 = vmatmul.f32.gmra.mxu3 %v1956_v9  ;;  %v3423_v9 = vmax.f32 %v3295_v12, 0.0 }
 0x4dd   :  { %v3428_v60 = vmax.f32 %v3300_v43, 0.0  ;;  %v3429_v17 = vmax.f32 %v3301_v23, 0.0  ;;  %v13877_v43 = vld [vmem:[#allocation247_spill] sm:$0xff] }
 0x4de   :  { %v2518_v62 = vpop.f32.mrf.mxu2  ;;  %v2727_v46 = vpop.f32.mrf.mxu3  ;;  %v1769_v23 = vadd.f32 %v13877_v43, %v13876_v51  ;;  %v13890_v51 = vld [vmem:[#allocation26_spill] sm:$0xff]  ;;  %v13891_v43 = vld [vmem:[#allocation256_spill] sm:$0xff] }
 0x4df   :  { %v2928_v47 = vadd.f32 %v2518_v62, %v1554_v15  ;;  %v2929_v32 = vadd.f32 %v2727_v46, %v1763_v54  ;;  %v9422_v31 = vpop.f32.mrf.mxu0  ;;  %v9424_v19 = vpop.f32.mrf.mxu1  ;;  %v9429_v6 = vmax.f32 %v3420_v11, %v3428_v60  ;;  %v9431_v30 = vmax.f32 %v3421_v16, %v3429_v17  ;;  %v1959_v11 = vld [vmem:[%s13283_s0 + $0x110] sm:$0xff]  ;;  %v13878_v16 = vld [vmem:[#allocation20_spill] sm:$0xff]  ;;  %v13880_v60 = vld [vmem:[#allocation21_spill] sm:$0xff] }
 0x4e0   :  { %v1563_v57 = vadd.f32 %v13879_v18, %v13878_v16  ;;  %v13881_v17 = vld [vmem:[#allocation251_spill] sm:$0xff]  ;;  %v13894_v16 = vld [vmem:[#allocation28_spill] sm:$0xff]  ;;  %v13895_v18 = vld [vmem:[#allocation258_spill] sm:$0xff] }
 0x4e1   :  { %13866 = vst [vmem:[#allocation234_spill] sm:$0xff] %v9429_v6  ;;  %v3168_v0 = vmax.f32 %v2926_v13, %v2928_v47  ;;  %v3169_v21 = vmax.f32 %v2927_v63, %v2929_v32  ;;  %v1772_v61 = vadd.f32 %v13881_v17, %v13880_v60  ;;  %v1960_v32 = vld [vmem:[%s13283_s0 + $0x118] sm:$0xff]  ;;  %v13897_v60 = vld [vmem:[#allocation259_spill] sm:$0xff] }
 0x4e2   :  { %13867 = vst [vmem:[#allocation5_spill] sm:$0xff] %v9431_v30  ;;  %2150 = vmatmul.f32.gmra.mxu0 %v1957_v38  ;;  %2359 = vmatmul.f32.gmra.mxu1 %v1957_v38 }
 0x4e3   :  { %v3302_v7 = vadd.f32 %v9320_v44, %v3168_v0  ;;  %v3303_v34 = vadd.f32 %v9323_v35, %v3169_v21  ;;  %2568 = vmatmul.f32.gmra.mxu2 %v1957_v38  ;;  %2777 = vmatmul.f32.gmra.mxu3 %v1957_v38  ;;  %v13882_v38 = vld [vmem:[#allocation24_spill] sm:$0xff]  ;;  %v13884_v0 = vld [vmem:[#allocation25_spill] sm:$0xff]  ;;  %v13885_v21 = vld [vmem:[#allocation255_spill] sm:$0xff] }
 0x4e4   :  { %v1566_v12 = vadd.f32 %v13883_v8, %v13882_v38  ;;  %v1962_v8 = vld [vmem:[%s13283_s0 + $0x128] sm:$0xff] }
 0x4e5   :  { %v3430_v29 = vmax.f32 %v3302_v7, 0.0  ;;  %v3431_v59 = vmax.f32 %v3303_v34, 0.0  ;;  %v1775_v7 = vadd.f32 %v13885_v21, %v13884_v0  ;;  %v6791_v0 = vld [vmem:[%s13284_s3 + $0x380] sm:$0xff]  ;;  %v13898_v21 = vld [vmem:[#allocation14_spill] sm:$0xff] }
 0x4e6   :  { %v2521_v41 = vpop.f32.mrf.mxu2  ;;  %v2730_v53 = vpop.f32.mrf.mxu3  ;;  %3993 = vmatpush.msrb.mxu1 %v6791_v0 }
 0x4e7   :  { %v9447_v27 = vadd.f32 %v2521_v41, %v1557_v22  ;;  %v9449_v42 = vadd.f32 %v2730_v53, %v1766_v49  ;;  %v9451_v1 = vpop.f32.mrf.mxu0  ;;  %v9453_v20 = vpop.f32.mrf.mxu1  ;;  %v9458_v55 = vmax.f32 %v3422_v50, %v3430_v29  ;;  %v9460_v48 = vmax.f32 %v3423_v9, %v3431_v59  ;;  %v1961_v49 = vld [vmem:[%s13283_s0 + $0x120] sm:$0xff]  ;;  %v6760_v50 = vld [vmem:[%s13284_s3 + $0x288] sm:$0xff]  ;;  %v13887_v59 = vld [vmem:[#allocation240_spill] sm:$0xff] }
 0x4e8   :  { %v6792_v9 = vld [vmem:[%s13284_s3 + $0x388] sm:$0xff]  ;;  %v13889_v41 = vld [vmem:[#allocation241_spill] sm:$0xff]  ;;  %4106 = vmatpush.msrb.mxu2 %v6760_v50 }
 0x4e9   :  { %13872 = vst [vmem:[#allocation235_spill] sm:$0xff] %v9458_v55  ;;  %v13886_v29 = vld [vmem:[#allocation10_spill] sm:$0xff]  ;;  %v1348_v53 = vadd.f32 %v13889_v41, %v13888_v37  ;;  %4219 = vmatpush.msrb.mxu3 %v6792_v9  ;;  %v13904_v41 = vld [vmem:[#allocation31_spill] sm:$0xff] }
 0x4ea   :  { %13873 = vst [vmem:[#allocation6_spill] sm:$0xff] %v9460_v48  ;;  %2153 = vmatmul.f32.gmra.mxu0 %v1958_v2  ;;  %2362 = vmatmul.f32.gmra.mxu1 %v1958_v2  ;;  %v1139_v33 = vadd.f32 %v13887_v59, %v13886_v29  ;;  %v13902_v59 = vld [vmem:[#allocation30_spill] sm:$0xff] }
 0x4eb   :  { %2571 = vmatmul.f32.gmra.mxu2 %v1958_v2  ;;  %2780 = vmatmul.f32.gmra.mxu3 %v1958_v2  ;;  %v2931_v39 = vadd.f32 %v9424_v19, %v1348_v53  ;;  %v13905_v53 = vld [vmem:[#allocation261_spill] sm:$0xff] }
 0x4ec   :  { %v2930_v2 = vadd.f32 %v9422_v31, %v1139_v33  ;;  %v13896_v31 = vld [vmem:[#allocation29_spill] sm:$0xff]  ;;  %v13903_v33 = vld [vmem:[#allocation260_spill] sm:$0xff] }
 0x4ed   :  { %v1778_v19 = vadd.f32 %v13897_v60, %v13896_v31  ;;  %v1154_v37 = vadd.f32 %v13903_v33, %v13902_v59 }
 0x4ee   :  { %v2524_v26 = vpop.f32.mrf.mxu2  ;;  %v2733_v4 = vpop.f32.mrf.mxu3  ;;  %v3170_v58 = vmax.f32 %v2930_v2, %v9447_v27  ;;  %v1363_v2 = vadd.f32 %v13905_v53, %v13904_v41  ;;  %v13919_v41 = vld [vmem:[#allocation265_spill] sm:$0xff] }
 0x4ef   :  { %v9466_v15 = vadd.f32 %v2524_v26, %v1560_v36  ;;  %v9468_v45 = vadd.f32 %v2733_v4, %v1769_v23  ;;  %v9470_v5 = vpop.f32.mrf.mxu0  ;;  %v9472_v54 = vpop.f32.mrf.mxu1  ;;  %v3171_v36 = vmax.f32 %v2931_v39, %v9449_v42  ;;  %v1151_v23 = vadd.f32 %v13891_v43, %v13890_v51  ;;  %v13892_v26 = vld [vmem:[#allocation27_spill] sm:$0xff]  ;;  %v13893_v4 = vld [vmem:[#allocation257_spill] sm:$0xff]  ;;  %v13906_v43 = vld [vmem:[#allocation32_spill] sm:$0xff] }
 0x4f2   :  { %2156 = vmatmul.f32.gmra.mxu0 %v1959_v11  ;;  %2365 = vmatmul.f32.gmra.mxu1 %v1959_v11 }
 0x4f3   :  { %2574 = vmatmul.f32.gmra.mxu2 %v1959_v11  ;;  %2783 = vmatmul.f32.gmra.mxu3 %v1959_v11  ;;  %v1360_v11 = vadd.f32 %v13893_v4, %v13892_v26  ;;  %v13908_v4 = vld [vmem:[#allocation33_spill] sm:$0xff] }
 0x4f6   :  { %v2527_v3 = vpop.f32.mrf.mxu2  ;;  %v2736_v13 = vpop.f32.mrf.mxu3 }
 0x4f7   :  { %v9481_v63 = vadd.f32 %v2527_v3, %v1563_v57  ;;  %v9483_v62 = vadd.f32 %v2736_v13, %v1772_v61  ;;  %v9485_v46 = vpop.f32.mrf.mxu0  ;;  %v9487_v47 = vpop.f32.mrf.mxu1  ;;  %v1569_v57 = vadd.f32 %v13895_v18, %v13894_v16 }
 0x4fa   :  { %2159 = vmatmul.f32.gmra.mxu0 %v1960_v32  ;;  %2368 = vmatmul.f32.gmra.mxu1 %v1960_v32 }
 0x4fb   :  { %2577 = vmatmul.f32.gmra.mxu2 %v1960_v32  ;;  %2786 = vmatmul.f32.gmra.mxu3 %v1960_v32 }
 0x4fe   :  { %v2530_v34 = vpop.f32.mrf.mxu2  ;;  %v2739_v14 = vpop.f32.mrf.mxu3 }
 0x4ff   :  { %v9496_v40 = vadd.f32 %v2530_v34, %v1566_v12  ;;  %v9498_v22 = vadd.f32 %v2739_v14, %v1775_v7  ;;  %v2115_v56 = vpop.f32.mrf.mxu0  ;;  %v2324_v25 = vpop.f32.mrf.mxu1  ;;  %v6759_v12 = vld [vmem:[%s13284_s3 + $0x280] sm:$0xff]  ;;  %v13899_v7 = vld [vmem:[#allocation244_spill] sm:$0xff]  ;;  %v3304_v14 = vadd.f32 %v9320_v44, %v3170_v58 }
 0x500   :  { %v2946_v3 = vadd.f32 %v2115_v56, %v1151_v23  ;;  %v2947_v13 = vadd.f32 %v2324_v25, %v1360_v11  ;;  %v1142_v34 = vadd.f32 %v13899_v7, %v13898_v21  ;;  %v3305_v56 = vadd.f32 %v9323_v35, %v3171_v36  ;;  %3880 = vmatpush.msrb.mxu0 %v6759_v12  ;;  %v13900_v25 = vld [vmem:[#allocation15_spill] sm:$0xff]  ;;  %v13907_v23 = vld [vmem:[#allocation262_spill] sm:$0xff] }
 0x501   :  { %v1572_v26 = vadd.f32 %v13907_v23, %v13906_v43  ;;  %v13909_v11 = vld [vmem:[#allocation263_spill] sm:$0xff]  ;;  %v3432_v18 = vmax.f32 %v3304_v14, 0.0  ;;  %v13912_v21 = vld [vmem:[#allocation18_spill] sm:$0xff]  ;;  %v13922_v43 = vld [vmem:[#allocation37_spill] sm:$0xff] }
 0x502   :  { %2162 = vmatmul.f32.gmra.mxu0 %v1961_v49  ;;  %2371 = vmatmul.f32.gmra.mxu1 %v1961_v49  ;;  %v2934_v39 = vadd.f32 %v9451_v1, %v1142_v34  ;;  %v1781_v16 = vadd.f32 %v13909_v11, %v13908_v4  ;;  %v13914_v34 = vld [vmem:[#allocation19_spill] sm:$0xff] }
 0x503   :  { %2580 = vmatmul.f32.gmra.mxu2 %v1961_v49  ;;  %2789 = vmatmul.f32.gmra.mxu3 %v1961_v49  ;;  %v13901_v49 = vld [vmem:[#allocation245_spill] sm:$0xff]  ;;  %v13923_v23 = vld [vmem:[#allocation267_spill] sm:$0xff] }
 0x504   :  { %v1351_v50 = vadd.f32 %v13901_v49, %v13900_v25  ;;  %v3172_v1 = vmax.f32 %v2934_v39, %v9466_v15  ;;  %v1963_v15 = vld [vmem:[%s13283_s0 + $0x130] sm:$0xff] }
 0x506   :  { %v2533_v17 = vpop.f32.mrf.mxu2  ;;  %v2742_v61 = vpop.f32.mrf.mxu3  ;;  %v2935_v58 = vadd.f32 %v9453_v20, %v1351_v50  ;;  %v3306_v14 = vadd.f32 %v9320_v44, %v3172_v1  ;;  %v13916_v50 = vld [vmem:[#allocation34_spill] sm:$0xff] }
 0x507   :  { %v2948_v32 = vadd.f32 %v2533_v17, %v1569_v57  ;;  %v2949_v27 = vadd.f32 %v2742_v61, %v1778_v19  ;;  %v2118_v38 = vpop.f32.mrf.mxu0  ;;  %v2327_v42 = vpop.f32.mrf.mxu1  ;;  %v3433_v57 = vmax.f32 %v3305_v56, 0.0 }
 0x508   :  { %v3173_v31 = vmax.f32 %v2935_v58, %v9468_v45  ;;  %v2950_v19 = vadd.f32 %v2118_v38, %v1154_v37  ;;  %v2951_v17 = vadd.f32 %v2327_v42, %v1363_v2  ;;  %v13913_v45 = vld [vmem:[#allocation248_spill] sm:$0xff]  ;;  %v13915_v38 = vld [vmem:[#allocation249_spill] sm:$0xff]  ;;  %v13918_v37 = vld [vmem:[#allocation35_spill] sm:$0xff]  ;;  %v3434_v4 = vmax.f32 %v3306_v14, 0.0 }
 0x509   :  { %v3178_v9 = vmax.f32 %v2946_v3, %v2948_v32  ;;  %v3179_v29 = vmax.f32 %v2947_v13, %v2949_v27  ;;  %v1145_v7 = vadd.f32 %v13913_v45, %v13912_v21  ;;  %v1354_v42 = vadd.f32 %v13915_v38, %v13914_v34  ;;  %v13920_v58 = vld [vmem:[#allocation36_spill] sm:$0xff]  ;;  %v13926_v21 = vld [vmem:[#allocation23_spill] sm:$0xff]  ;;  %v13927_v45 = vld [vmem:[#allocation253_spill] sm:$0xff] }
 0x50a   :  { %2165 = vmatmul.f32.gmra.mxu0 %v1962_v8  ;;  %2374 = vmatmul.f32.gmra.mxu1 %v1962_v8  ;;  %v3307_v56 = vadd.f32 %v9323_v35, %v3173_v31  ;;  %v1366_v53 = vadd.f32 %v13919_v41, %v13918_v37  ;;  %v13929_v14 = vld [vmem:[#allocation268_spill] sm:$0xff]  ;;  %v13933_v41 = vld [vmem:[#allocation270_spill] sm:$0xff] }
 0x50b   :  { %v3312_v36 = vadd.f32 %v9320_v44, %v3178_v9  ;;  %v3313_v51 = vadd.f32 %v9323_v35, %v3179_v29  ;;  %2583 = vmatmul.f32.gmra.mxu2 %v1962_v8  ;;  %2792 = vmatmul.f32.gmra.mxu3 %v1962_v8  ;;  %v13917_v9 = vld [vmem:[#allocation264_spill] sm:$0xff]  ;;  %v2938_v59 = vadd.f32 %v9470_v5, %v1145_v7 }
 0x50c   :  { %v1157_v29 = vadd.f32 %v13917_v9, %v13916_v50  ;;  %v2939_v33 = vadd.f32 %v9472_v54, %v1354_v42  ;;  %v3435_v11 = vmax.f32 %v3307_v56, 0.0  ;;  %v1357_v7 = vadd.f32 %v13927_v45, %v13926_v21  ;;  %v13928_v42 = vld [vmem:[#allocation38_spill] sm:$0xff]  ;;  %v13932_v37 = vld [vmem:[#allocation40_spill] sm:$0xff]  ;;  %v13940_v21 = vld [vmem:[#allocation275_spill] sm:$0xff] }
 0x50d   :  { %v3440_v60 = vmax.f32 %v3312_v36, 0.0  ;;  %v3441_v20 = vmax.f32 %v3313_v51, 0.0  ;;  %v13921_v36 = vld [vmem:[#allocation266_spill] sm:$0xff]  ;;  %v3174_v5 = vmax.f32 %v2938_v59, %v9481_v63  ;;  %v1964_v63 = vld [vmem:[%s13283_s0 + $0x138] sm:$0xff]  ;;  %v1160_v56 = vadd.f32 %v13929_v14, %v13928_v42  ;;  %v6757_v14 = vld [vmem:[%s13284_s3 + $0x270] sm:$0xff] }
 0x50e   :  { %v2536_v61 = vpop.f32.mrf.mxu2  ;;  %v2745_v3 = vpop.f32.mrf.mxu3  ;;  %v1575_v51 = vadd.f32 %v13921_v36, %v13920_v58  ;;  %v3175_v54 = vmax.f32 %v2939_v33, %v9483_v62  ;;  %v13924_v62 = vld [vmem:[#allocation22_spill] sm:$0xff]  ;;  %3881 = vmatpush.msrb.mxu0 %v6757_v14 }
 0x50f   :  { %v9554_v13 = vmax.f32 %v3432_v18, %v3440_v60  ;;  %v9556_v32 = vmax.f32 %v3433_v57, %v3441_v20  ;;  %v2952_v27 = vadd.f32 %v2536_v61, %v1572_v26  ;;  %v2953_v8 = vadd.f32 %v2745_v3, %v1781_v16  ;;  %v2121_v12 = vpop.f32.mrf.mxu0  ;;  %v2330_v0 = vpop.f32.mrf.mxu1 }
 0x510   :  { %v1784_v26 = vadd.f32 %v13923_v23, %v13922_v43  ;;  %v2954_v57 = vadd.f32 %v2121_v12, %v1157_v29  ;;  %v2955_v1 = vadd.f32 %v2330_v0, %v1366_v53  ;;  %v3308_v12 = vadd.f32 %v9320_v44, %v3174_v5  ;;  %v6790_v5 = vld [vmem:[%s13284_s3 + $0x378] sm:$0xff] }
 0x511   :  { %13910 = vst [vmem:[#allocation236_spill] sm:$0xff] %v9554_v13  ;;  %v3180_v25 = vmax.f32 %v2950_v19, %v2952_v27  ;;  %v3181_v49 = vmax.f32 %v2951_v17, %v2953_v8  ;;  %v13925_v8 = vld [vmem:[#allocation252_spill] sm:$0xff]  ;;  %v3309_v0 = vadd.f32 %v9323_v35, %v3175_v54  ;;  %v2943_v29 = vadd.f32 %v9487_v47, %v1357_v7 }
 0x512   :  { %13911 = vst [vmem:[#allocation7_spill] sm:$0xff] %v9556_v32  ;;  %2168 = vmatmul.f32.gmra.mxu0 %v1963_v15  ;;  %2377 = vmatmul.f32.gmra.mxu1 %v1963_v15  ;;  %v1578_v53 = vadd.f32 %v13933_v41, %v13932_v37  ;;  %v3436_v36 = vmax.f32 %v3308_v12, 0.0  ;;  %v1966_v41 = vld [vmem:[%s13283_s0 + $0x148] sm:$0xff] }
 0x513   :  { %v3314_v2 = vadd.f32 %v9320_v44, %v3180_v25  ;;  %v3315_v39 = vadd.f32 %v9323_v35, %v3181_v49  ;;  %2586 = vmatmul.f32.gmra.mxu2 %v1963_v15  ;;  %2795 = vmatmul.f32.gmra.mxu3 %v1963_v15  ;;  %v1148_v15 = vadd.f32 %v13925_v8, %v13924_v62  ;;  %v13930_v25 = vld [vmem:[#allocation39_spill] sm:$0xff]  ;;  %v13931_v49 = vld [vmem:[#allocation269_spill] sm:$0xff]  ;;  %v13937_v8 = vld [vmem:[#allocation44_spill] sm:$0xff] }
 0x514   :  { %v1369_v50 = vadd.f32 %v13931_v49, %v13930_v25  ;;  %v3177_v43 = vmax.f32 %v2943_v29, %v9498_v22  ;;  %4220 = vmatpush.msrb.mxu3 %v6790_v5 }
 0x515   :  { %v3442_v16 = vmax.f32 %v3314_v2, 0.0  ;;  %v3443_v18 = vmax.f32 %v3315_v39, 0.0  ;;  %v2942_v9 = vadd.f32 %v9485_v46, %v1148_v15  ;;  %v13934_v2 = vld [vmem:[#allocation41_spill] sm:$0xff]  ;;  %v13935_v39 = vld [vmem:[#allocation271_spill] sm:$0xff]  ;;  %v13938_v15 = vld [vmem:[#allocation274_spill] sm:$0xff] }
 0x516   :  { %v2539_v31 = vpop.f32.mrf.mxu2  ;;  %v2748_v60 = vpop.f32.mrf.mxu3  ;;  %v1787_v58 = vadd.f32 %v13935_v39, %v13934_v2  ;;  %v1581_v12 = vadd.f32 %v13938_v15, %v13937_v8  ;;  %v13944_v2 = vld [vmem:[#allocation278_spill] sm:$0xff]  ;;  %v1968_v8 = vld [vmem:[%s13283_s0 + $0x158] sm:$0xff] }
 0x517   :  { %v9581_v20 = vmax.f32 %v3434_v4, %v3442_v16  ;;  %v9583_v19 = vmax.f32 %v3435_v11, %v3443_v18  ;;  %v2956_v17 = vadd.f32 %v2539_v31, %v1575_v51  ;;  %v2957_v61 = vadd.f32 %v2748_v60, %v1784_v26  ;;  %v2124_v3 = vpop.f32.mrf.mxu0  ;;  %v2333_v27 = vpop.f32.mrf.mxu1  ;;  %v6758_v26 = vld [vmem:[%s13284_s3 + $0x278] sm:$0xff]  ;;  %v1965_v60 = vld [vmem:[%s13283_s0 + $0x140] sm:$0xff] }
 0x518   :  { %v3437_v51 = vmax.f32 %v3309_v0, 0.0  ;;  %v3176_v46 = vmax.f32 %v2942_v9, %v9496_v40  ;;  %v2958_v54 = vadd.f32 %v2124_v3, %v1160_v56  ;;  %v2959_v4 = vadd.f32 %v2333_v27, %v1369_v50  ;;  %4107 = vmatpush.msrb.mxu2 %v6758_v26  ;;  %v13939_v0 = vld [vmem:[#allocation45_spill] sm:$0xff]  ;;  %v6789_v56 = vld [vmem:[%s13284_s3 + $0x370] sm:$0xff]  ;;  %v13951_v15 = vld [vmem:[#allocation56_spill] sm:$0xff] }
 0x519   :  { %v3182_v34 = vmax.f32 %v2954_v57, %v2956_v17  ;;  %v3183_v38 = vmax.f32 %v2955_v1, %v2957_v61  ;;  %v3311_v61 = vadd.f32 %v9323_v35, %v3177_v43  ;;  %v1790_v45 = vadd.f32 %v13940_v21, %v13939_v0  ;;  %3994 = vmatpush.msrb.mxu1 %v6789_v56  ;;  %v13953_v21 = vld [vmem:[#allocation57_spill] sm:$0xff] }
 0x51a   :  { %2171 = vmatmul.f32.gmra.mxu0 %v1964_v63  ;;  %2380 = vmatmul.f32.gmra.mxu1 %v1964_v63  ;;  %v3310_v17 = vadd.f32 %v9320_v44, %v3176_v46 }
 0x51b   :  { %v3316_v59 = vadd.f32 %v9320_v44, %v3182_v34  ;;  %v3317_v33 = vadd.f32 %v9323_v35, %v3183_v38  ;;  %2589 = vmatmul.f32.gmra.mxu2 %v1964_v63  ;;  %2798 = vmatmul.f32.gmra.mxu3 %v1964_v63  ;;  %v3439_v34 = vmax.f32 %v3311_v61, 0.0 }
 0x51c   :  { %v3438_v7 = vmax.f32 %v3310_v17, 0.0 }
 0x51d   :  { %v3444_v23 = vmax.f32 %v3316_v59, 0.0  ;;  %v3445_v47 = vmax.f32 %v3317_v33, 0.0 }
 0x51e   :  { %v2542_v11 = vpop.f32.mrf.mxu2  ;;  %v2751_v16 = vpop.f32.mrf.mxu3 }
 0x51f   :  { %v9614_v18 = vmax.f32 %v3436_v36, %v3444_v23  ;;  %v9616_v40 = vmax.f32 %v3437_v51, %v3445_v47  ;;  %v2960_v22 = vadd.f32 %v2542_v11, %v1578_v53  ;;  %v2961_v57 = vadd.f32 %v2751_v16, %v1787_v58  ;;  %v9618_v1 = vpop.f32.mrf.mxu0  ;;  %v9620_v31 = vpop.f32.mrf.mxu1  ;;  %v13943_v53 = vld [vmem:[#allocation48_spill] sm:$0xff]  ;;  %v13945_v58 = vld [vmem:[#allocation49_spill] sm:$0xff]  ;;  %v13946_v36 = vld [vmem:[#allocation279_spill] sm:$0xff] }
 0x520   :  { %v1584_v39 = vadd.f32 %v13944_v2, %v13943_v53  ;;  %v1793_v51 = vadd.f32 %v13946_v36, %v13945_v58  ;;  %v13948_v11 = vld [vmem:[#allocation282_spill] sm:$0xff]  ;;  %v13957_v36 = vld [vmem:[#allocation43_spill] sm:$0xff] }
 0x521   :  { %13936 = vst [vmem:[#allocation237_spill] sm:$0xff] %v9616_v40  ;;  %v3184_v3 = vmax.f32 %v2958_v54, %v2960_v22  ;;  %v3185_v27 = vmax.f32 %v2959_v4, %v2961_v57  ;;  %v1967_v54 = vld [vmem:[%s13283_s0 + $0x150] sm:$0xff]  ;;  %v13947_v4 = vld [vmem:[#allocation52_spill] sm:$0xff]  ;;  %v13949_v22 = vld [vmem:[#allocation53_spill] sm:$0xff] }
 0x522   :  { %2174 = vmatmul.f32.gmra.mxu0 %v1965_v60  ;;  %2383 = vmatmul.f32.gmra.mxu1 %v1965_v60  ;;  %v1587_v16 = vadd.f32 %v13948_v11, %v13947_v4  ;;  %v13950_v57 = vld [vmem:[#allocation283_spill] sm:$0xff]  ;;  %v6788_v53 = vld [vmem:[%s13284_s3 + $0x368] sm:$0xff] }
 0x523   :  { %v3318_v63 = vadd.f32 %v9320_v44, %v3184_v3  ;;  %v3319_v62 = vadd.f32 %v9323_v35, %v3185_v27  ;;  %2592 = vmatmul.f32.gmra.mxu2 %v1965_v60  ;;  %2801 = vmatmul.f32.gmra.mxu3 %v1965_v60  ;;  %v1796_v60 = vadd.f32 %v13950_v57, %v13949_v22  ;;  %v13955_v2 = vld [vmem:[#allocation42_spill] sm:$0xff]  ;;  %v13960_v22 = vld [vmem:[#allocation288_spill] sm:$0xff] }
 0x524   :  { %4221 = vmatpush.msrb.mxu3 %v6788_v53  ;;  %v6755_v53 = vld [vmem:[%s13284_s3 + $0x260] sm:$0xff] }
 0x525   :  { %v3446_v38 = vmax.f32 %v3318_v63, 0.0  ;;  %v3447_v42 = vmax.f32 %v3319_v62, 0.0  ;;  %3882 = vmatpush.msrb.mxu0 %v6755_v53 }
 0x526   :  { %v2545_v25 = vpop.f32.mrf.mxu2  ;;  %v2754_v49 = vpop.f32.mrf.mxu3 }
 0x527   :  { %v9639_v50 = vmax.f32 %v3438_v7, %v3446_v38  ;;  %v9641_v9 = vmax.f32 %v3439_v34, %v3447_v42  ;;  %v9643_v29 = vadd.f32 %v2545_v25, %v1581_v12  ;;  %v9645_v59 = vadd.f32 %v2754_v49, %v1790_v45  ;;  %v9647_v33 = vpop.f32.mrf.mxu0  ;;  %v9649_v37 = vpop.f32.mrf.mxu1  ;;  %v13952_v12 = vld [vmem:[#allocation286_spill] sm:$0xff]  ;;  %v13954_v45 = vld [vmem:[#allocation287_spill] sm:$0xff]  ;;  %v1969_v49 = vld [vmem:[%s13283_s0 + $0x160] sm:$0xff] }
 0x528   :  { %v1590_v0 = vadd.f32 %v13952_v12, %v13951_v15  ;;  %v1799_v7 = vadd.f32 %v13954_v45, %v13953_v21  ;;  %v13964_v15 = vld [vmem:[#allocation290_spill] sm:$0xff] }
 0x529   :  { %13941 = vst [vmem:[#allocation8_spill] sm:$0xff] %v9639_v50 }
 0x52a   :  { %13942 = vst [vmem:[#allocation238_spill] sm:$0xff] %v9641_v9  ;;  %2177 = vmatmul.f32.gmra.mxu0 %v1966_v41  ;;  %2386 = vmatmul.f32.gmra.mxu1 %v1966_v41 }
 0x52b   :  { %2595 = vmatmul.f32.gmra.mxu2 %v1966_v41  ;;  %2804 = vmatmul.f32.gmra.mxu3 %v1966_v41  ;;  %v6756_v41 = vld [vmem:[%s13284_s3 + $0x268] sm:$0xff] }
 0x52c   :  { %4108 = vmatpush.msrb.mxu2 %v6756_v41  ;;  %v1970_v41 = vld [vmem:[%s13283_s0 + $0x168] sm:$0xff] }
 0x52e   :  { %v2548_v46 = vpop.f32.mrf.mxu2  ;;  %v2757_v43 = vpop.f32.mrf.mxu3 }
 0x52f   :  { %v9658_v23 = vadd.f32 %v2548_v46, %v1584_v39  ;;  %v9660_v47 = vadd.f32 %v2757_v43, %v1793_v51  ;;  %v9662_v26 = vpop.f32.mrf.mxu0  ;;  %v9664_v5 = vpop.f32.mrf.mxu1  ;;  %v13956_v39 = vld [vmem:[#allocation272_spill] sm:$0xff]  ;;  %v13958_v51 = vld [vmem:[#allocation273_spill] sm:$0xff] }
 0x530   :  { %v1163_v58 = vadd.f32 %v13956_v39, %v13955_v2  ;;  %v1372_v46 = vadd.f32 %v13958_v51, %v13957_v36  ;;  %v6787_v2 = vld [vmem:[%s13284_s3 + $0x360] sm:$0xff]  ;;  %v13967_v39 = vld [vmem:[#allocation46_spill] sm:$0xff]  ;;  %v13969_v51 = vld [vmem:[#allocation47_spill] sm:$0xff] }
 0x531   :  { %3995 = vmatpush.msrb.mxu1 %v6787_v2 }
 0x532   :  { %2180 = vmatmul.f32.gmra.mxu0 %v1967_v54  ;;  %2389 = vmatmul.f32.gmra.mxu1 %v1967_v54  ;;  %v2962_v43 = vadd.f32 %v9618_v1, %v1163_v58  ;;  %v13965_v1 = vld [vmem:[#allocation61_spill] sm:$0xff]  ;;  %v13968_v58 = vld [vmem:[#allocation276_spill] sm:$0xff] }
 0x533   :  { %2598 = vmatmul.f32.gmra.mxu2 %v1967_v54  ;;  %2807 = vmatmul.f32.gmra.mxu3 %v1967_v54  ;;  %v2963_v54 = vadd.f32 %v9620_v31, %v1372_v46  ;;  %v13970_v46 = vld [vmem:[#allocation277_spill] sm:$0xff] }
 0x534   :  { %v3186_v4 = vmax.f32 %v2962_v43, %v9643_v29  ;;  %v1375_v43 = vadd.f32 %v13970_v46, %v13969_v51 }
 0x535   :  { %v3187_v11 = vmax.f32 %v2963_v54, %v9645_v59 }
 0x536   :  { %v2551_v17 = vpop.f32.mrf.mxu2  ;;  %v2760_v61 = vpop.f32.mrf.mxu3 }
 0x537   :  { %v9673_v3 = vadd.f32 %v2551_v17, %v1587_v16  ;;  %v9675_v27 = vadd.f32 %v2760_v61, %v1796_v60  ;;  %v9677_v63 = vpop.f32.mrf.mxu0  ;;  %v9679_v62 = vpop.f32.mrf.mxu1  ;;  %v13959_v16 = vld [vmem:[#allocation58_spill] sm:$0xff]  ;;  %v13961_v60 = vld [vmem:[#allocation59_spill] sm:$0xff]  ;;  %v13962_v17 = vld [vmem:[#allocation289_spill] sm:$0xff]  ;;  %v3321_v36 = vadd.f32 %v9323_v35, %v3187_v11 }
 0x538   :  { %v1175_v57 = vadd.f32 %v13960_v22, %v13959_v16  ;;  %v1384_v61 = vadd.f32 %v13962_v17, %v13961_v60  ;;  %v13971_v22 = vld [vmem:[#allocation62_spill] sm:$0xff]  ;;  %v13973_v17 = vld [vmem:[#allocation63_spill] sm:$0xff] }
 0x53a   :  { %2183 = vmatmul.f32.gmra.mxu0 %v1968_v8  ;;  %2392 = vmatmul.f32.gmra.mxu1 %v1968_v8 }
 0x53b   :  { %2601 = vmatmul.f32.gmra.mxu2 %v1968_v8  ;;  %2810 = vmatmul.f32.gmra.mxu3 %v1968_v8  ;;  %v13963_v8 = vld [vmem:[#allocation60_spill] sm:$0xff] }
 0x53c   :  { %v1593_v12 = vadd.f32 %v13964_v15, %v13963_v8 }
 0x53e   :  { %v2554_v34 = vpop.f32.mrf.mxu2  ;;  %v2763_v38 = vpop.f32.mrf.mxu3 }
 0x53f   :  { %v9688_v42 = vadd.f32 %v2554_v34, %v1590_v0  ;;  %v9690_v14 = vadd.f32 %v2763_v38, %v1799_v7  ;;  %v2139_v56 = vpop.f32.mrf.mxu0  ;;  %v2348_v25 = vpop.f32.mrf.mxu1  ;;  %v13966_v0 = vld [vmem:[#allocation291_spill] sm:$0xff] }
 0x540   :  { %v1802_v31 = vadd.f32 %v13966_v0, %v13965_v1  ;;  %v2978_v7 = vadd.f32 %v2139_v56, %v1175_v57  ;;  %v2979_v34 = vadd.f32 %v2348_v25, %v1384_v61  ;;  %v1166_v56 = vadd.f32 %v13968_v58, %v13967_v39  ;;  %v13972_v57 = vld [vmem:[#allocation292_spill] sm:$0xff]  ;;  %v13974_v61 = vld [vmem:[#allocation293_spill] sm:$0xff]  ;;  %v13976_v0 = vld [vmem:[#allocation294_spill] sm:$0xff] }
 0x541   :  { %v3320_v25 = vadd.f32 %v9320_v44, %v3186_v4  ;;  %v1178_v60 = vadd.f32 %v13972_v57, %v13971_v22  ;;  %v1387_v8 = vadd.f32 %v13974_v61, %v13973_v17  ;;  %v2967_v4 = vadd.f32 %v9649_v37, %v1375_v43  ;;  %v13975_v1 = vld [vmem:[#allocation64_spill] sm:$0xff]  ;;  %v13983_v22 = vld [vmem:[#allocation51_spill] sm:$0xff] }
 0x542   :  { %2186 = vmatmul.f32.gmra.mxu0 %v1969_v49  ;;  %2395 = vmatmul.f32.gmra.mxu1 %v1969_v49  ;;  %v2966_v15 = vadd.f32 %v9647_v33, %v1166_v56 }
 0x543   :  { %2604 = vmatmul.f32.gmra.mxu2 %v1969_v49  ;;  %2813 = vmatmul.f32.gmra.mxu3 %v1969_v49 }
 0x544   :  { %v3188_v33 = vmax.f32 %v2966_v15, %v9658_v23  ;;  %v1971_v23 = vld [vmem:[%s13283_s0 + $0x170] sm:$0xff]  ;;  %v13986_v15 = vld [vmem:[#allocation296_spill] sm:$0xff] }
 0x546   :  { %v2557_v21 = vpop.f32.mrf.mxu2  ;;  %v2766_v45 = vpop.f32.mrf.mxu3  ;;  %v3322_v57 = vadd.f32 %v9320_v44, %v3188_v33  ;;  %v13991_v33 = vld [vmem:[#allocation69_spill] sm:$0xff] }
 0x547   :  { %v2980_v38 = vadd.f32 %v2557_v21, %v1593_v12  ;;  %v2981_v29 = vadd.f32 %v2766_v45, %v1802_v31  ;;  %v2142_v49 = vpop.f32.mrf.mxu0  ;;  %v2351_v59 = vpop.f32.mrf.mxu1  ;;  %v1596_v31 = vadd.f32 %v13976_v0, %v13975_v1  ;;  %v13977_v21 = vld [vmem:[#allocation65_spill] sm:$0xff]  ;;  %v13978_v45 = vld [vmem:[#allocation295_spill] sm:$0xff] }
 0x548   :  { %v2982_v2 = vadd.f32 %v2142_v49, %v1178_v60  ;;  %v2983_v39 = vadd.f32 %v2351_v59, %v1387_v8  ;;  %v13984_v49 = vld [vmem:[#allocation281_spill] sm:$0xff]  ;;  %v13985_v8 = vld [vmem:[#allocation66_spill] sm:$0xff]  ;;  %v13987_v1 = vld [vmem:[#allocation67_spill] sm:$0xff] }
 0x549   :  { %v3194_v54 = vmax.f32 %v2978_v7, %v2980_v38  ;;  %v3195_v16 = vmax.f32 %v2979_v34, %v2981_v29  ;;  %v1805_v7 = vadd.f32 %v13978_v45, %v13977_v21  ;;  %v3448_v34 = vmax.f32 %v3320_v25, 0.0  ;;  %v13981_v25 = vld [vmem:[#allocation50_spill] sm:$0xff]  ;;  %v13988_v0 = vld [vmem:[#allocation297_spill] sm:$0xff] }
 0x54a   :  { %2189 = vmatmul.f32.gmra.mxu0 %v1970_v41  ;;  %2398 = vmatmul.f32.gmra.mxu1 %v1970_v41  ;;  %v3449_v38 = vmax.f32 %v3321_v36, 0.0  ;;  %v3189_v29 = vmax.f32 %v2967_v4, %v9660_v47  ;;  %v13982_v47 = vld [vmem:[#allocation280_spill] sm:$0xff]  ;;  %v1378_v59 = vadd.f32 %v13984_v49, %v13983_v22  ;;  %v1181_v4 = vadd.f32 %v13986_v15, %v13985_v8 }
 0x54b   :  { %v3328_v11 = vadd.f32 %v9320_v44, %v3194_v54  ;;  %v3329_v12 = vadd.f32 %v9323_v35, %v3195_v16  ;;  %2607 = vmatmul.f32.gmra.mxu2 %v1970_v41  ;;  %2816 = vmatmul.f32.gmra.mxu3 %v1970_v41  ;;  %v1169_v36 = vadd.f32 %v13982_v47, %v13981_v25 }
 0x54c   :  { %v3323_v60 = vadd.f32 %v9323_v35, %v3189_v29  ;;  %v13992_v29 = vld [vmem:[#allocation299_spill] sm:$0xff] }
 0x54d   :  { %v3456_v53 = vmax.f32 %v3328_v11, 0.0  ;;  %v3457_v37 = vmax.f32 %v3329_v12, 0.0  ;;  %v2970_v11 = vadd.f32 %v9662_v26, %v1169_v36  ;;  %v2971_v12 = vadd.f32 %v9664_v5, %v1378_v59 }
 0x54e   :  { %v2560_v58 = vpop.f32.mrf.mxu2  ;;  %v2769_v56 = vpop.f32.mrf.mxu3 }
 0x54f   :  { %v9746_v51 = vmax.f32 %v3448_v34, %v3456_v53  ;;  %v9748_v41 = vmax.f32 %v3449_v38, %v3457_v37  ;;  %v2984_v46 = vadd.f32 %v2560_v58, %v1596_v31  ;;  %v2985_v43 = vadd.f32 %v2769_v56, %v1805_v7  ;;  %v2145_v54 = vpop.f32.mrf.mxu0  ;;  %v2354_v16 = vpop.f32.mrf.mxu1  ;;  %v13989_v7 = vld [vmem:[#allocation68_spill] sm:$0xff]  ;;  %v13990_v34 = vld [vmem:[#allocation298_spill] sm:$0xff] }
 0x550   :  { %v1390_v31 = vadd.f32 %v13988_v0, %v13987_v1  ;;  %v1599_v38 = vadd.f32 %v13990_v34, %v13989_v7  ;;  %v1808_v53 = vadd.f32 %v13992_v29, %v13991_v33  ;;  %v3190_v26 = vmax.f32 %v2970_v11, %v9673_v3  ;;  %v1972_v3 = vld [vmem:[%s13283_s0 + $0x178] sm:$0xff]  ;;  %v13999_v11 = vld [vmem:[#allocation70_spill] sm:$0xff]  ;;  %v14001_v0 = vld [vmem:[#allocation71_spill] sm:$0xff] }
 0x551   :  { %13979 = vst [vmem:[#allocation9_spill] sm:$0xff] %v9746_v51  ;;  %v3196_v17 = vmax.f32 %v2982_v2, %v2984_v46  ;;  %v3197_v61 = vmax.f32 %v2983_v39, %v2985_v43  ;;  %v3191_v5 = vmax.f32 %v2971_v12, %v9675_v27  ;;  %v3450_v37 = vmax.f32 %v3322_v57, 0.0  ;;  %v13995_v27 = vld [vmem:[#allocation54_spill] sm:$0xff]  ;;  %v13996_v57 = vld [vmem:[#allocation284_spill] sm:$0xff] }
 0x552   :  { %13980 = vst [vmem:[#allocation239_spill] sm:$0xff] %v9748_v41  ;;  %2192 = vmatmul.f32.gmra.mxu0 %v1971_v23  ;;  %2401 = vmatmul.f32.gmra.mxu1 %v1971_v23  ;;  %v3451_v2 = vmax.f32 %v3323_v60, 0.0  ;;  %v2986_v56 = vadd.f32 %v2145_v54, %v1181_v4  ;;  %v2987_v46 = vadd.f32 %v2354_v16, %v1390_v31  ;;  %v14000_v12 = vld [vmem:[#allocation300_spill] sm:$0xff]  ;;  %v14002_v31 = vld [vmem:[#allocation301_spill] sm:$0xff]  ;;  %v14004_v29 = vld [vmem:[#allocation302_spill] sm:$0xff] }
 0x553   :  { %v3330_v21 = vadd.f32 %v9320_v44, %v3196_v17  ;;  %v3331_v45 = vadd.f32 %v9323_v35, %v3197_v61  ;;  %2610 = vmatmul.f32.gmra.mxu2 %v1971_v23  ;;  %2819 = vmatmul.f32.gmra.mxu3 %v1971_v23  ;;  %v1172_v60 = vadd.f32 %v13996_v57, %v13995_v27  ;;  %v13997_v17 = vld [vmem:[#allocation55_spill] sm:$0xff]  ;;  %v13998_v61 = vld [vmem:[#allocation285_spill] sm:$0xff]  ;;  %v14003_v33 = vld [vmem:[#allocation72_spill] sm:$0xff] }
 0x554   :  { %v3324_v54 = vadd.f32 %v9320_v44, %v3190_v26  ;;  %v3325_v16 = vadd.f32 %v9323_v35, %v3191_v5  ;;  %v1381_v8 = vadd.f32 %v13998_v61, %v13997_v17  ;;  %v1184_v1 = vadd.f32 %v14000_v12, %v13999_v11  ;;  %v14005_v26 = vld [vmem:[#allocation73_spill] sm:$0xff]  ;;  %v14006_v5 = vld [vmem:[#allocation303_spill] sm:$0xff]  ;;  %v14010_v11 = vld [vmem:[#allocation306_spill] sm:$0xff] }
 0x555   :  { %v3458_v39 = vmax.f32 %v3330_v21, 0.0  ;;  %v3459_v58 = vmax.f32 %v3331_v45, 0.0  ;;  %v1393_v21 = vadd.f32 %v14002_v31, %v14001_v0  ;;  %v2974_v45 = vadd.f32 %v9677_v63, %v1172_v60  ;;  %v14012_v0 = vld [vmem:[#allocation307_spill] sm:$0xff] }
 0x556   :  { %v2563_v43 = vpop.f32.mrf.mxu2  ;;  %v2772_v25 = vpop.f32.mrf.mxu3  ;;  %v2975_v7 = vadd.f32 %v9679_v62, %v1381_v8 }
 0x557   :  { %v9773_v47 = vmax.f32 %v3450_v37, %v3458_v39  ;;  %v9775_v23 = vmax.f32 %v3451_v2, %v3459_v58  ;;  %v2988_v36 = vadd.f32 %v2563_v43, %v1599_v38  ;;  %v2989_v22 = vadd.f32 %v2772_v25, %v1808_v53  ;;  %v2148_v49 = vpop.f32.mrf.mxu0  ;;  %v2357_v59 = vpop.f32.mrf.mxu1  ;;  %v6786_v43 = vld [vmem:[%s13284_s3 + $0x358] sm:$0xff] }
 0x558   :  { %v1602_v53 = vadd.f32 %v14004_v29, %v14003_v33  ;;  %v1811_v37 = vadd.f32 %v14006_v5, %v14005_v26  ;;  %v3452_v2 = vmax.f32 %v3324_v54, 0.0  ;;  %v3453_v39 = vmax.f32 %v3325_v16, 0.0  ;;  %4222 = vmatpush.msrb.mxu3 %v6786_v43  ;;  %v1973_v16 = vld [vmem:[%s13283_s0 + $0x180] sm:$0xff]  ;;  %v6785_v33 = vld [vmem:[%s13284_s3 + $0x350] sm:$0xff] }
 0x559   :  { %13993 = vst [vmem:[#allocation12_spill] sm:$0xff] %v9773_v47  ;;  %v3198_v15 = vmax.f32 %v2986_v56, %v2988_v36  ;;  %v3199_v4 = vmax.f32 %v2987_v46, %v2989_v22  ;;  %v3192_v63 = vmax.f32 %v2974_v45, %v9688_v42  ;;  %v3193_v58 = vmax.f32 %v2975_v7, %v9690_v14  ;;  %v6754_v46 = vld [vmem:[%s13284_s3 + $0x258] sm:$0xff]  ;;  %v14017_v43 = vld [vmem:[#allocation81_spill] sm:$0xff] }
 0x55a   :  { %13994 = vst [vmem:[#allocation242_spill] sm:$0xff] %v9775_v23  ;;  %2195 = vmatmul.f32.gmra.mxu0 %v1972_v3  ;;  %2404 = vmatmul.f32.gmra.mxu1 %v1972_v3  ;;  %v2990_v25 = vadd.f32 %v2148_v49, %v1184_v1  ;;  %v2991_v36 = vadd.f32 %v2357_v59, %v1393_v21  ;;  %v14011_v1 = vld [vmem:[#allocation77_spill] sm:$0xff] }
 0x55b   :  { %v3332_v34 = vadd.f32 %v9320_v44, %v3198_v15  ;;  %v3333_v38 = vadd.f32 %v9323_v35, %v3199_v4  ;;  %2613 = vmatmul.f32.gmra.mxu2 %v1972_v3  ;;  %2822 = vmatmul.f32.gmra.mxu3 %v1972_v3  ;;  %v3326_v49 = vadd.f32 %v9320_v44, %v3192_v63  ;;  %v14009_v4 = vld [vmem:[#allocation76_spill] sm:$0xff] }
 0x55c   :  { %4109 = vmatpush.msrb.mxu2 %v6754_v46  ;;  %v3327_v59 = vadd.f32 %v9323_v35, %v3193_v58  ;;  %v1605_v12 = vadd.f32 %v14010_v11, %v14009_v4  ;;  %v1814_v31 = vadd.f32 %v14012_v0, %v14011_v1  ;;  %3996 = vmatpush.msrb.mxu1 %v6785_v33  ;;  %v1974_v58 = vld [vmem:[%s13283_s0 + $0x188] sm:$0xff]  ;;  %v14022_v4 = vld [vmem:[#allocation315_spill] sm:$0xff] }
 0x55d   :  { %v3460_v56 = vmax.f32 %v3332_v34, 0.0  ;;  %v3461_v62 = vmax.f32 %v3333_v38, 0.0  ;;  %v3454_v21 = vmax.f32 %v3326_v49, 0.0  ;;  %v6753_v38 = vld [vmem:[%s13284_s3 + $0x250] sm:$0xff] }
 0x55e   :  { %v2566_v22 = vpop.f32.mrf.mxu2  ;;  %v2775_v3 = vpop.f32.mrf.mxu3  ;;  %v3455_v45 = vmax.f32 %v3327_v59, 0.0  ;;  %3883 = vmatpush.msrb.mxu0 %v6753_v38  ;;  %v1975_v59 = vld [vmem:[%s13283_s0 + $0x190] sm:$0xff]  ;;  %v14024_v38 = vld [vmem:[#allocation318_spill] sm:$0xff] }
 0x55f   :  { %v9806_v27 = vmax.f32 %v3452_v2, %v3460_v56  ;;  %v9808_v42 = vmax.f32 %v3453_v39, %v3461_v62  ;;  %v2992_v14 = vadd.f32 %v2566_v22, %v1602_v53  ;;  %v2993_v57 = vadd.f32 %v2775_v3, %v1811_v37  ;;  %v9810_v60 = vpop.f32.mrf.mxu0  ;;  %v9812_v54 = vpop.f32.mrf.mxu1  ;;  %v14015_v56 = vld [vmem:[#allocation80_spill] sm:$0xff]  ;;  %v14016_v62 = vld [vmem:[#allocation310_spill] sm:$0xff] }
 0x560   :  { %v1608_v46 = vadd.f32 %v14016_v62, %v14015_v56 }
 0x561   :  { %14007 = vst [vmem:[#allocation13_spill] sm:$0xff] %v9806_v27  ;;  %v3200_v17 = vmax.f32 %v2990_v25, %v2992_v14  ;;  %v3201_v61 = vmax.f32 %v2991_v36, %v2993_v57  ;;  %v14018_v25 = vld [vmem:[#allocation311_spill] sm:$0xff] }
 0x562   :  { %14008 = vst [vmem:[#allocation243_spill] sm:$0xff] %v9808_v42  ;;  %2198 = vmatmul.f32.gmra.mxu0 %v1973_v16  ;;  %2407 = vmatmul.f32.gmra.mxu1 %v1973_v16  ;;  %v1817_v36 = vadd.f32 %v14018_v25, %v14017_v43 }
 0x563   :  { %v3334_v8 = vadd.f32 %v9320_v44, %v3200_v17  ;;  %v3335_v15 = vadd.f32 %v9323_v35, %v3201_v61  ;;  %2616 = vmatmul.f32.gmra.mxu2 %v1973_v16  ;;  %2825 = vmatmul.f32.gmra.mxu3 %v1973_v16  ;;  %v14019_v17 = vld [vmem:[#allocation84_spill] sm:$0xff]  ;;  %v14020_v61 = vld [vmem:[#allocation314_spill] sm:$0xff] }
 0x565   :  { %v3462_v7 = vmax.f32 %v3334_v8, 0.0  ;;  %v3463_v34 = vmax.f32 %v3335_v15, 0.0  ;;  %v1611_v8 = vadd.f32 %v14020_v61, %v14019_v17  ;;  %v14021_v15 = vld [vmem:[#allocation85_spill] sm:$0xff]  ;;  %v14027_v17 = vld [vmem:[#allocation74_spill] sm:$0xff]  ;;  %v14028_v61 = vld [vmem:[#allocation304_spill] sm:$0xff] }
 0x566   :  { %v2569_v29 = vpop.f32.mrf.mxu2  ;;  %v2778_v53 = vpop.f32.mrf.mxu3  ;;  %v1820_v11 = vadd.f32 %v14022_v4, %v14021_v15  ;;  %v14029_v15 = vld [vmem:[#allocation75_spill] sm:$0xff]  ;;  %v14030_v4 = vld [vmem:[#allocation305_spill] sm:$0xff] }
 0x567   :  { %v9831_v26 = vmax.f32 %v3454_v21, %v3462_v7  ;;  %v9833_v5 = vmax.f32 %v3455_v45, %v3463_v34  ;;  %v9835_v37 = vadd.f32 %v2569_v29, %v1605_v12  ;;  %v9837_v2 = vadd.f32 %v2778_v53, %v1814_v31  ;;  %v9839_v39 = vpop.f32.mrf.mxu0  ;;  %v9841_v63 = vpop.f32.mrf.mxu1  ;;  %v1976_v7 = vld [vmem:[%s13283_s0 + $0x198] sm:$0xff]  ;;  %v14025_v29 = vld [vmem:[#allocation89_spill] sm:$0xff]  ;;  %v14026_v53 = vld [vmem:[#allocation319_spill] sm:$0xff] }
 0x568   :  { %v14023_v34 = vld [vmem:[#allocation88_spill] sm:$0xff] }
 0x569   :  { %14013 = vst [vmem:[#allocation16_spill] sm:$0xff] %v9831_v26  ;;  %v1614_v33 = vadd.f32 %v14024_v38, %v14023_v34  ;;  %v14031_v38 = vld [vmem:[#allocation90_spill] sm:$0xff] }
 0x56a   :  { %14014 = vst [vmem:[#allocation246_spill] sm:$0xff] %v9833_v5  ;;  %2201 = vmatmul.f32.gmra.mxu0 %v1974_v58  ;;  %2410 = vmatmul.f32.gmra.mxu1 %v1974_v58 }
 0x56b   :  { %2619 = vmatmul.f32.gmra.mxu2 %v1974_v58  ;;  %2828 = vmatmul.f32.gmra.mxu3 %v1974_v58  ;;  %v1823_v58 = vadd.f32 %v14026_v53, %v14025_v29  ;;  %v14033_v53 = vld [vmem:[#allocation91_spill] sm:$0xff] }
 0x56e   :  { %v2572_v22 = vpop.f32.mrf.mxu2  ;;  %v2781_v3 = vpop.f32.mrf.mxu3 }
 0x56f   :  { %v9850_v14 = vadd.f32 %v2572_v22, %v1608_v46  ;;  %v9852_v57 = vadd.f32 %v2781_v3, %v1817_v36  ;;  %v9854_v16 = vpop.f32.mrf.mxu0  ;;  %v9856_v49 = vpop.f32.mrf.mxu1  ;;  %v1977_v22 = vld [vmem:[%s13283_s0 + $0x1a0] sm:$0xff]  ;;  %v6752_v3 = vld [vmem:[%s13284_s3 + $0x248] sm:$0xff] }
 0x570   :  { %4110 = vmatpush.msrb.mxu2 %v6752_v3  ;;  %v14036_v3 = vld [vmem:[#allocation322_spill] sm:$0xff] }
 0x572   :  { %2204 = vmatmul.f32.gmra.mxu0 %v1975_v59  ;;  %2413 = vmatmul.f32.gmra.mxu1 %v1975_v59 }
 0x573   :  { %2622 = vmatmul.f32.gmra.mxu2 %v1975_v59  ;;  %2831 = vmatmul.f32.gmra.mxu3 %v1975_v59  ;;  %v6784_v59 = vld [vmem:[%s13284_s3 + $0x348] sm:$0xff] }
 0x574   :  { %4223 = vmatpush.msrb.mxu3 %v6784_v59 }
 0x576   :  { %v2575_v12 = vpop.f32.mrf.mxu2  ;;  %v2784_v1 = vpop.f32.mrf.mxu3 }
 0x577   :  { %v9865_v0 = vadd.f32 %v2575_v12, %v1611_v8  ;;  %v9867_v31 = vadd.f32 %v2784_v1, %v1820_v11  ;;  %v9869_v21 = vpop.f32.mrf.mxu0  ;;  %v9871_v45 = vpop.f32.mrf.mxu1  ;;  %v1187_v8 = vadd.f32 %v14028_v61, %v14027_v17  ;;  %v1396_v11 = vadd.f32 %v14030_v4, %v14029_v15  ;;  %v14038_v17 = vld [vmem:[#allocation323_spill] sm:$0xff] }
 0x579   :  { %v2994_v12 = vadd.f32 %v9810_v60, %v1187_v8  ;;  %v2995_v1 = vadd.f32 %v9812_v54, %v1396_v11  ;;  %v14037_v60 = vld [vmem:[#allocation93_spill] sm:$0xff] }
 0x57a   :  { %2207 = vmatmul.f32.gmra.mxu0 %v1976_v7  ;;  %2416 = vmatmul.f32.gmra.mxu1 %v1976_v7  ;;  %v1826_v54 = vadd.f32 %v14038_v17, %v14037_v60  ;;  %v14043_v60 = vld [vmem:[#allocation94_spill] sm:$0xff]  ;;  %v14044_v17 = vld [vmem:[#allocation324_spill] sm:$0xff] }
 0x57b   :  { %2625 = vmatmul.f32.gmra.mxu2 %v1976_v7  ;;  %2834 = vmatmul.f32.gmra.mxu3 %v1976_v7  ;;  %v3202_v7 = vmax.f32 %v2994_v12, %v9835_v37  ;;  %v3203_v34 = vmax.f32 %v2995_v1, %v9837_v2  ;;  %v1978_v12 = vld [vmem:[%s13283_s0 + $0x1a8] sm:$0xff]  ;;  %v6751_v1 = vld [vmem:[%s13284_s3 + $0x240] sm:$0xff] }
 0x57c   :  { %3884 = vmatpush.msrb.mxu0 %v6751_v1 }
 0x57e   :  { %v2578_v56 = vpop.f32.mrf.mxu2  ;;  %v2787_v62 = vpop.f32.mrf.mxu3 }
 0x57f   :  { %v9880_v46 = vadd.f32 %v2578_v56, %v1614_v33  ;;  %v9882_v43 = vadd.f32 %v2787_v62, %v1823_v58  ;;  %v2163_v25 = vpop.f32.mrf.mxu0  ;;  %v2372_v36 = vpop.f32.mrf.mxu1  ;;  %v14032_v33 = vld [vmem:[#allocation320_spill] sm:$0xff]  ;;  %v14034_v58 = vld [vmem:[#allocation321_spill] sm:$0xff] }
 0x580   :  { %v1199_v29 = vadd.f32 %v14032_v33, %v14031_v38  ;;  %v1408_v56 = vadd.f32 %v14034_v58, %v14033_v53  ;;  %v14035_v62 = vld [vmem:[#allocation92_spill] sm:$0xff]  ;;  %v6783_v38 = vld [vmem:[%s13284_s3 + $0x340] sm:$0xff]  ;;  %v14039_v33 = vld [vmem:[#allocation78_spill] sm:$0xff] }
 0x581   :  { %v1617_v59 = vadd.f32 %v14036_v3, %v14035_v62  ;;  %v14040_v53 = vld [vmem:[#allocation308_spill] sm:$0xff]  ;;  %3997 = vmatpush.msrb.mxu1 %v6783_v38  ;;  %v14041_v58 = vld [vmem:[#allocation79_spill] sm:$0xff] }
 0x582   :  { %2210 = vmatmul.f32.gmra.mxu0 %v1977_v22  ;;  %2419 = vmatmul.f32.gmra.mxu1 %v1977_v22  ;;  %v3010_v15 = vadd.f32 %v2163_v25, %v1199_v29  ;;  %v1190_v25 = vadd.f32 %v14040_v53, %v14039_v33  ;;  %v3337_v29 = vadd.f32 %v9323_v35, %v3203_v34  ;;  %v14050_v38 = vld [vmem:[#allocation327_spill] sm:$0xff] }
 0x583   :  { %2628 = vmatmul.f32.gmra.mxu2 %v1977_v22  ;;  %2837 = vmatmul.f32.gmra.mxu3 %v1977_v22  ;;  %v3011_v22 = vadd.f32 %v2372_v36, %v1408_v56  ;;  %v3336_v36 = vadd.f32 %v9320_v44, %v3202_v7  ;;  %v14042_v56 = vld [vmem:[#allocation309_spill] sm:$0xff] }
 0x584   :  { %v1399_v62 = vadd.f32 %v14042_v56, %v14041_v58  ;;  %v2998_v26 = vadd.f32 %v9839_v39, %v1190_v25  ;;  %v3465_v58 = vmax.f32 %v3337_v29, 0.0  ;;  %v14055_v29 = vld [vmem:[#allocation83_spill] sm:$0xff] }
 0x585   :  { %v3464_v53 = vmax.f32 %v3336_v36, 0.0 }
 0x586   :  { %v2581_v61 = vpop.f32.mrf.mxu2  ;;  %v2790_v8 = vpop.f32.mrf.mxu3  ;;  %v2999_v7 = vadd.f32 %v9841_v63, %v1399_v62  ;;  %v3204_v39 = vmax.f32 %v2998_v26, %v9850_v14  ;;  %v1979_v26 = vld [vmem:[%s13283_s0 + $0x1b0] sm:$0xff]  ;;  %v14053_v14 = vld [vmem:[#allocation82_spill] sm:$0xff] }
 0x587   :  { %v3012_v4 = vadd.f32 %v2581_v61, %v1617_v59  ;;  %v3013_v37 = vadd.f32 %v2790_v8, %v1826_v54  ;;  %v2166_v11 = vpop.f32.mrf.mxu0  ;;  %v2375_v2 = vpop.f32.mrf.mxu1  ;;  %v1202_v54 = vadd.f32 %v14044_v17, %v14043_v60  ;;  %v14045_v61 = vld [vmem:[#allocation95_spill] sm:$0xff]  ;;  %v14046_v8 = vld [vmem:[#allocation325_spill] sm:$0xff] }
 0x588   :  { %v1411_v5 = vadd.f32 %v14046_v8, %v14045_v61  ;;  %v3205_v25 = vmax.f32 %v2999_v7, %v9852_v57  ;;  %v14054_v57 = vld [vmem:[#allocation312_spill] sm:$0xff] }
 0x589   :  { %v3210_v3 = vmax.f32 %v3010_v15, %v3012_v4  ;;  %v3211_v59 = vmax.f32 %v3011_v22, %v3013_v37  ;;  %v14047_v15 = vld [vmem:[#allocation96_spill] sm:$0xff]  ;;  %v14048_v22 = vld [vmem:[#allocation326_spill] sm:$0xff]  ;;  %v14049_v37 = vld [vmem:[#allocation97_spill] sm:$0xff]  ;;  %v3014_v62 = vadd.f32 %v2166_v11, %v1202_v54  ;;  %v1193_v36 = vadd.f32 %v14054_v57, %v14053_v14 }
 0x58a   :  { %2213 = vmatmul.f32.gmra.mxu0 %v1978_v12  ;;  %2422 = vmatmul.f32.gmra.mxu1 %v1978_v12  ;;  %v1620_v4 = vadd.f32 %v14048_v22, %v14047_v15  ;;  %v1829_v33 = vadd.f32 %v14050_v38, %v14049_v37  ;;  %v14056_v11 = vld [vmem:[#allocation313_spill] sm:$0xff]  ;;  %v3339_v54 = vadd.f32 %v9323_v35, %v3205_v25  ;;  %v14061_v25 = vld [vmem:[#allocation100_spill] sm:$0xff] }
 0x58b   :  { %v3344_v34 = vadd.f32 %v9320_v44, %v3210_v3  ;;  %v3345_v1 = vadd.f32 %v9323_v35, %v3211_v59  ;;  %2631 = vmatmul.f32.gmra.mxu2 %v1978_v12  ;;  %2840 = vmatmul.f32.gmra.mxu3 %v1978_v12  ;;  %v3015_v3 = vadd.f32 %v2375_v2, %v1411_v5 }
 0x58c   :  { %v1402_v5 = vadd.f32 %v14056_v11, %v14055_v29  ;;  %v3338_v2 = vadd.f32 %v9320_v44, %v3204_v39  ;;  %v3002_v38 = vadd.f32 %v9854_v16, %v1193_v36  ;;  %v3467_v14 = vmax.f32 %v3339_v54, 0.0 }
 0x58d   :  { %v3472_v56 = vmax.f32 %v3344_v34, 0.0  ;;  %v3473_v63 = vmax.f32 %v3345_v1, 0.0  ;;  %v14057_v1 = vld [vmem:[#allocation98_spill] sm:$0xff] }
 0x58e   :  { %v2584_v60 = vpop.f32.mrf.mxu2  ;;  %v2793_v59 = vpop.f32.mrf.mxu3  ;;  %v3206_v16 = vmax.f32 %v3002_v38, %v9865_v0  ;;  %v1980_v0 = vld [vmem:[%s13283_s0 + $0x1b8] sm:$0xff]  ;;  %v14070_v38 = vld [vmem:[#allocation317_spill] sm:$0xff] }
 0x58f   :  { %v9938_v17 = vmax.f32 %v3464_v53, %v3472_v56  ;;  %v9940_v12 = vmax.f32 %v3465_v58, %v3473_v63  ;;  %v3016_v61 = vadd.f32 %v2584_v60, %v1620_v4  ;;  %v3017_v8 = vadd.f32 %v2793_v59, %v1829_v33  ;;  %v2169_v15 = vpop.f32.mrf.mxu0  ;;  %v2378_v22 = vpop.f32.mrf.mxu1  ;;  %v14058_v4 = vld [vmem:[#allocation328_spill] sm:$0xff]  ;;  %v14059_v53 = vld [vmem:[#allocation99_spill] sm:$0xff]  ;;  %v14060_v58 = vld [vmem:[#allocation329_spill] sm:$0xff] }
 0x590   :  { %v1205_v37 = vadd.f32 %v14058_v4, %v14057_v1  ;;  %v3003_v33 = vadd.f32 %v9856_v49, %v1402_v5  ;;  %v1414_v56 = vadd.f32 %v14060_v58, %v14059_v53  ;;  %v14063_v60 = vld [vmem:[#allocation101_spill] sm:$0xff]  ;;  %v14064_v59 = vld [vmem:[#allocation331_spill] sm:$0xff] }
 0x591   :  { %14051 = vst [vmem:[#allocation17_spill] sm:$0xff] %v9938_v17  ;;  %v3212_v7 = vmax.f32 %v3014_v62, %v3016_v61  ;;  %v3213_v34 = vmax.f32 %v3015_v3, %v3017_v8  ;;  %v14062_v62 = vld [vmem:[#allocation330_spill] sm:$0xff]  ;;  %v1832_v61 = vadd.f32 %v14064_v59, %v14063_v60  ;;  %v3466_v8 = vmax.f32 %v3338_v2, 0.0  ;;  %v14068_v2 = vld [vmem:[#allocation316_spill] sm:$0xff]  ;;  %v14074_v60 = vld [vmem:[#allocation333_spill] sm:$0xff] }
 0x592   :  { %14052 = vst [vmem:[#allocation247_spill] sm:$0xff] %v9940_v12  ;;  %2216 = vmatmul.f32.gmra.mxu0 %v1979_v26  ;;  %2425 = vmatmul.f32.gmra.mxu1 %v1979_v26  ;;  %v1623_v3 = vadd.f32 %v14062_v62, %v14061_v25  ;;  %v3207_v49 = vmax.f32 %v3003_v33, %v9867_v31  ;;  %v14067_v31 = vld [vmem:[#allocation86_spill] sm:$0xff]  ;;  %v14072_v25 = vld [vmem:[#allocation332_spill] sm:$0xff] }
 0x593   :  { %v3346_v63 = vadd.f32 %v9320_v44, %v3212_v7  ;;  %v3347_v39 = vadd.f32 %v9323_v35, %v3213_v34  ;;  %2634 = vmatmul.f32.gmra.mxu2 %v1979_v26  ;;  %2843 = vmatmul.f32.gmra.mxu3 %v1979_v26  ;;  %v3018_v29 = vadd.f32 %v2169_v15, %v1205_v37  ;;  %v14069_v37 = vld [vmem:[#allocation87_spill] sm:$0xff] }
 0x594   :  { %v3019_v11 = vadd.f32 %v2378_v22, %v1414_v56  ;;  %v1196_v54 = vadd.f32 %v14068_v2, %v14067_v31  ;;  %v3340_v15 = vadd.f32 %v9320_v44, %v3206_v16  ;;  %v3341_v22 = vadd.f32 %v9323_v35, %v3207_v49  ;;  %v6750_v2 = vld [vmem:[%s13284_s3 + $0x238] sm:$0xff] }
 0x595   :  { %v3474_v57 = vmax.f32 %v3346_v63, 0.0  ;;  %v3475_v36 = vmax.f32 %v3347_v39, 0.0  ;;  %v1405_v33 = vadd.f32 %v14070_v38, %v14069_v37  ;;  %v14071_v39 = vld [vmem:[#allocation102_spill] sm:$0xff]  ;;  %4111 = vmatpush.msrb.mxu2 %v6750_v2 }
 0x596   :  { %v2587_v5 = vpop.f32.mrf.mxu2  ;;  %v2796_v7 = vpop.f32.mrf.mxu3  ;;  %v1208_v62 = vadd.f32 %v14072_v25, %v14071_v39  ;;  %v1981_v39 = vld [vmem:[%s13283_s0 + $0x1c0] sm:$0xff] }
 0x597   :  { %v9965_v34 = vmax.f32 %v3466_v8, %v3474_v57  ;;  %v9967_v26 = vmax.f32 %v3467_v14, %v3475_v36  ;;  %v3020_v1 = vadd.f32 %v2587_v5, %v1623_v3  ;;  %v3021_v4 = vadd.f32 %v2796_v7, %v1832_v61  ;;  %v2172_v53 = vpop.f32.mrf.mxu0  ;;  %v2381_v58 = vpop.f32.mrf.mxu1  ;;  %v14073_v3 = vld [vmem:[#allocation103_spill] sm:$0xff]  ;;  %v14075_v14 = vld [vmem:[#allocation104_spill] sm:$0xff]  ;;  %v14076_v57 = vld [vmem:[#allocation334_spill] sm:$0xff] }
 0x598   :  { %v1417_v59 = vadd.f32 %v14074_v60, %v14073_v3  ;;  %v3006_v61 = vadd.f32 %v9869_v21, %v1196_v54  ;;  %v3007_v8 = vadd.f32 %v9871_v45, %v1405_v33  ;;  %v1626_v36 = vadd.f32 %v14076_v57, %v14075_v14 }
 0x599   :  { %14065 = vst [vmem:[#allocation20_spill] sm:$0xff] %v9965_v34  ;;  %v3214_v56 = vmax.f32 %v3018_v29, %v3020_v1  ;;  %v3215_v63 = vmax.f32 %v3019_v11, %v3021_v4  ;;  %v14077_v29 = vld [vmem:[#allocation105_spill] sm:$0xff]  ;;  %v14078_v11 = vld [vmem:[#allocation335_spill] sm:$0xff]  ;;  %v3468_v7 = vmax.f32 %v3340_v15, 0.0  ;;  %v3469_v1 = vmax.f32 %v3341_v22, 0.0 }
 0x59a   :  { %14066 = vst [vmem:[#allocation250_spill] sm:$0xff] %v9967_v26  ;;  %2219 = vmatmul.f32.gmra.mxu0 %v1980_v0  ;;  %2428 = vmatmul.f32.gmra.mxu1 %v1980_v0  ;;  %v1835_v5 = vadd.f32 %v14078_v11, %v14077_v29  ;;  %v3208_v21 = vmax.f32 %v3006_v61, %v9880_v46  ;;  %v14082_v61 = vld [vmem:[#allocation338_spill] sm:$0xff]  ;;  %v14118_v34 = vld [vmem:[#allocation357_spill] sm:$0xff] }
 0x59b   :  { %v3348_v16 = vadd.f32 %v9320_v44, %v3214_v56  ;;  %v3349_v49 = vadd.f32 %v9323_v35, %v3215_v63  ;;  %2637 = vmatmul.f32.gmra.mxu2 %v1980_v0  ;;  %2846 = vmatmul.f32.gmra.mxu3 %v1980_v0  ;;  %v3209_v4 = vmax.f32 %v3007_v8, %v9882_v43  ;;  %v6782_v0 = vld [vmem:[%s13284_s3 + $0x338] sm:$0xff] }
 0x59c   :  { %v3022_v54 = vadd.f32 %v2172_v53, %v1208_v62  ;;  %v3023_v37 = vadd.f32 %v2381_v58, %v1417_v59  ;;  %4224 = vmatpush.msrb.mxu3 %v6782_v0  ;;  %v3342_v53 = vadd.f32 %v9320_v44, %v3208_v21  ;;  %v14081_v59 = vld [vmem:[#allocation108_spill] sm:$0xff] }
 0x59d   :  { %v3476_v31 = vmax.f32 %v3348_v16, 0.0  ;;  %v3477_v45 = vmax.f32 %v3349_v49, 0.0  ;;  %v3343_v58 = vadd.f32 %v9323_v35, %v3209_v4  ;;  %v1629_v8 = vadd.f32 %v14082_v61, %v14081_v59  ;;  %v14083_v16 = vld [vmem:[#allocation109_spill] sm:$0xff]  ;;  %v14084_v49 = vld [vmem:[#allocation339_spill] sm:$0xff] }
 0x59e   :  { %v2590_v38 = vpop.f32.mrf.mxu2  ;;  %v2799_v33 = vpop.f32.mrf.mxu3  ;;  %v1838_v14 = vadd.f32 %v14084_v49, %v14083_v16  ;;  %v3470_v57 = vmax.f32 %v3342_v53, 0.0  ;;  %v1983_v61 = vld [vmem:[%s13283_s0 + $0x1d0] sm:$0xff]  ;;  %v14092_v16 = vld [vmem:[#allocation346_spill] sm:$0xff] }
 0x59f   :  { %v9998_v15 = vmax.f32 %v3468_v7, %v3476_v31  ;;  %v10000_v46 = vmax.f32 %v3469_v1, %v3477_v45  ;;  %v3024_v43 = vadd.f32 %v2590_v38, %v1626_v36  ;;  %v3025_v22 = vadd.f32 %v2799_v33, %v1835_v5  ;;  %v10002_v56 = vpop.f32.mrf.mxu0  ;;  %v10004_v63 = vpop.f32.mrf.mxu1  ;;  %v6749_v5 = vld [vmem:[%s13284_s3 + $0x230] sm:$0xff]  ;;  %v14087_v38 = vld [vmem:[#allocation112_spill] sm:$0xff]  ;;  %v14088_v33 = vld [vmem:[#allocation342_spill] sm:$0xff] }
 0x5a0   :  { %v3471_v36 = vmax.f32 %v3343_v58, 0.0  ;;  %v6781_v7 = vld [vmem:[%s13284_s3 + $0x330] sm:$0xff]  ;;  %3885 = vmatpush.msrb.mxu0 %v6749_v5 }
 0x5a1   :  { %14079 = vst [vmem:[#allocation21_spill] sm:$0xff] %v9998_v15  ;;  %v3216_v25 = vmax.f32 %v3022_v54, %v3024_v43  ;;  %v3217_v62 = vmax.f32 %v3023_v37, %v3025_v22  ;;  %3998 = vmatpush.msrb.mxu1 %v6781_v7  ;;  %v1982_v37 = vld [vmem:[%s13283_s0 + $0x1c8] sm:$0xff]  ;;  %v1632_v43 = vadd.f32 %v14088_v33, %v14087_v38  ;;  %v14089_v22 = vld [vmem:[#allocation113_spill] sm:$0xff]  ;;  %v14095_v38 = vld [vmem:[#allocation120_spill] sm:$0xff] }
 0x5a2   :  { %14080 = vst [vmem:[#allocation251_spill] sm:$0xff] %v10000_v46  ;;  %2222 = vmatmul.f32.gmra.mxu0 %v1981_v39  ;;  %2431 = vmatmul.f32.gmra.mxu1 %v1981_v39  ;;  %v14096_v33 = vld [vmem:[#allocation350_spill] sm:$0xff] }
 0x5a3   :  { %v3350_v3 = vadd.f32 %v9320_v44, %v3216_v25  ;;  %v3351_v60 = vadd.f32 %v9323_v35, %v3217_v62  ;;  %2640 = vmatmul.f32.gmra.mxu2 %v1981_v39  ;;  %2849 = vmatmul.f32.gmra.mxu3 %v1981_v39  ;;  %v14090_v39 = vld [vmem:[#allocation343_spill] sm:$0xff] }
 0x5a4   :  { %v1841_v53 = vadd.f32 %v14090_v39, %v14089_v22  ;;  %v14097_v22 = vld [vmem:[#allocation121_spill] sm:$0xff]  ;;  %v14098_v39 = vld [vmem:[#allocation351_spill] sm:$0xff] }
 0x5a5   :  { %v3478_v29 = vmax.f32 %v3350_v3, 0.0  ;;  %v3479_v11 = vmax.f32 %v3351_v60, 0.0 }
 0x5a6   :  { %v2593_v1 = vpop.f32.mrf.mxu2  ;;  %v2802_v21 = vpop.f32.mrf.mxu3 }
 0x5a7   :  { %v10023_v4 = vmax.f32 %v3470_v57, %v3478_v29  ;;  %v10025_v31 = vmax.f32 %v3471_v36, %v3479_v11  ;;  %v10027_v45 = vadd.f32 %v2593_v1, %v1629_v8  ;;  %v10029_v2 = vadd.f32 %v2802_v21, %v1838_v14  ;;  %v10031_v0 = vpop.f32.mrf.mxu0  ;;  %v10033_v54 = vpop.f32.mrf.mxu1  ;;  %v14091_v8 = vld [vmem:[#allocation116_spill] sm:$0xff]  ;;  %v14093_v14 = vld [vmem:[#allocation117_spill] sm:$0xff]  ;;  %v14094_v57 = vld [vmem:[#allocation347_spill] sm:$0xff] }
 0x5a8   :  { %v1635_v49 = vadd.f32 %v14092_v16, %v14091_v8  ;;  %v1844_v36 = vadd.f32 %v14094_v57, %v14093_v14  ;;  %v1985_v14 = vld [vmem:[%s13283_s0 + $0x1e0] sm:$0xff]  ;;  %v6748_v57 = vld [vmem:[%s13284_s3 + $0x228] sm:$0xff] }
 0x5a9   :  { %14085 = vst [vmem:[#allocation24_spill] sm:$0xff] %v10023_v4  ;;  %4112 = vmatpush.msrb.mxu2 %v6748_v57  ;;  %v14106_v4 = vld [vmem:[#allocation353_spill] sm:$0xff]  ;;  %v14107_v57 = vld [vmem:[#allocation124_spill] sm:$0xff] }
 0x5aa   :  { %14086 = vst [vmem:[#allocation254_spill] sm:$0xff] %v10025_v31  ;;  %2225 = vmatmul.f32.gmra.mxu0 %v1982_v37  ;;  %2434 = vmatmul.f32.gmra.mxu1 %v1982_v37  ;;  %v14104_v31 = vld [vmem:[#allocation352_spill] sm:$0xff] }
 0x5ab   :  { %2643 = vmatmul.f32.gmra.mxu2 %v1982_v37  ;;  %2852 = vmatmul.f32.gmra.mxu3 %v1982_v37  ;;  %v1984_v37 = vld [vmem:[%s13283_s0 + $0x1d8] sm:$0xff] }
 0x5ae   :  { %v2596_v58 = vpop.f32.mrf.mxu2  ;;  %v2805_v25 = vpop.f32.mrf.mxu3 }
 0x5af   :  { %v10042_v62 = vadd.f32 %v2596_v58, %v1632_v43  ;;  %v10044_v3 = vadd.f32 %v2805_v25, %v1841_v53  ;;  %v10046_v60 = vpop.f32.mrf.mxu0  ;;  %v10048_v59 = vpop.f32.mrf.mxu1  ;;  %v1638_v43 = vadd.f32 %v14096_v33, %v14095_v38  ;;  %v1847_v53 = vadd.f32 %v14098_v39, %v14097_v22  ;;  %v14101_v38 = vld [vmem:[#allocation107_spill] sm:$0xff]  ;;  %v14102_v33 = vld [vmem:[#allocation337_spill] sm:$0xff] }
 0x5b2   :  { %2228 = vmatmul.f32.gmra.mxu0 %v1983_v61  ;;  %2437 = vmatmul.f32.gmra.mxu1 %v1983_v61 }
 0x5b3   :  { %2646 = vmatmul.f32.gmra.mxu2 %v1983_v61  ;;  %2855 = vmatmul.f32.gmra.mxu3 %v1983_v61 }
 0x5b6   :  { %v2599_v29 = vpop.f32.mrf.mxu2  ;;  %v2808_v11 = vpop.f32.mrf.mxu3 }
 0x5b7   :  { %v10057_v5 = vadd.f32 %v2599_v29, %v1635_v49  ;;  %v10059_v7 = vadd.f32 %v2808_v11, %v1844_v36  ;;  %v10061_v1 = vpop.f32.mrf.mxu0  ;;  %v10063_v21 = vpop.f32.mrf.mxu1  ;;  %v6780_v36 = vld [vmem:[%s13284_s3 + $0x328] sm:$0xff]  ;;  %v14100_v11 = vld [vmem:[#allocation336_spill] sm:$0xff] }
 0x5b8   :  { %v14099_v29 = vld [vmem:[#allocation106_spill] sm:$0xff]  ;;  %4225 = vmatpush.msrb.mxu3 %v6780_v36 }
 0x5b9   :  { %v14108_v36 = vld [vmem:[#allocation354_spill] sm:$0xff] }
 0x5ba   :  { %2231 = vmatmul.f32.gmra.mxu0 %v1984_v37  ;;  %2440 = vmatmul.f32.gmra.mxu1 %v1984_v37 }
 0x5bb   :  { %2649 = vmatmul.f32.gmra.mxu2 %v1984_v37  ;;  %2858 = vmatmul.f32.gmra.mxu3 %v1984_v37  ;;  %v1211_v37 = vadd.f32 %v14100_v11, %v14099_v29  ;;  %v14105_v11 = vld [vmem:[#allocation123_spill] sm:$0xff] }
 0x5bd   :  { %v3026_v22 = vadd.f32 %v10002_v56, %v1211_v37  ;;  %v14109_v56 = vld [vmem:[#allocation125_spill] sm:$0xff]  ;;  %v14110_v37 = vld [vmem:[#allocation355_spill] sm:$0xff] }
 0x5be   :  { %v2602_v58 = vpop.f32.mrf.mxu2  ;;  %v2811_v25 = vpop.f32.mrf.mxu3 }
 0x5bf   :  { %v10072_v61 = vadd.f32 %v2602_v58, %v1638_v43  ;;  %v10074_v8 = vadd.f32 %v2811_v25, %v1847_v53  ;;  %v2187_v16 = vpop.f32.mrf.mxu0  ;;  %v2396_v49 = vpop.f32.mrf.mxu1  ;;  %v1420_v43 = vadd.f32 %v14102_v33, %v14101_v38  ;;  %v3218_v53 = vmax.f32 %v3026_v22, %v10027_v45  ;;  %v14103_v25 = vld [vmem:[#allocation122_spill] sm:$0xff] }
 0x5c0   :  { %v1223_v29 = vadd.f32 %v14104_v31, %v14103_v25  ;;  %v1432_v38 = vadd.f32 %v14106_v4, %v14105_v11  ;;  %v1641_v33 = vadd.f32 %v14108_v36, %v14107_v57  ;;  %v1986_v31 = vld [vmem:[%s13283_s0 + $0x1e8] sm:$0xff]  ;;  %v6747_v4 = vld [vmem:[%s13284_s3 + $0x220] sm:$0xff]  ;;  %v14112_v11 = vld [vmem:[#allocation340_spill] sm:$0xff] }
 0x5c1   :  { %v3027_v39 = vadd.f32 %v10004_v63, %v1420_v43  ;;  %v1850_v63 = vadd.f32 %v14110_v37, %v14109_v56  ;;  %v14111_v25 = vld [vmem:[#allocation110_spill] sm:$0xff]  ;;  %3886 = vmatpush.msrb.mxu0 %v6747_v4  ;;  %v14116_v37 = vld [vmem:[#allocation356_spill] sm:$0xff] }
 0x5c2   :  { %2234 = vmatmul.f32.gmra.mxu0 %v1985_v14  ;;  %2443 = vmatmul.f32.gmra.mxu1 %v1985_v14  ;;  %v3042_v15 = vadd.f32 %v2187_v16, %v1223_v29  ;;  %v1214_v16 = vadd.f32 %v14112_v11, %v14111_v25  ;;  %v14113_v29 = vld [vmem:[#allocation111_spill] sm:$0xff]  ;;  %v14115_v56 = vld [vmem:[#allocation126_spill] sm:$0xff] }
 0x5c3   :  { %2652 = vmatmul.f32.gmra.mxu2 %v1985_v14  ;;  %2861 = vmatmul.f32.gmra.mxu3 %v1985_v14  ;;  %v3219_v58 = vmax.f32 %v3027_v39, %v10029_v2  ;;  %v3043_v14 = vadd.f32 %v2396_v49, %v1432_v38  ;;  %v6779_v39 = vld [vmem:[%s13284_s3 + $0x320] sm:$0xff]  ;;  %v3352_v49 = vadd.f32 %v9320_v44, %v3218_v53 }
 0x5c4   :  { %3999 = vmatpush.msrb.mxu1 %v6779_v39  ;;  %v14114_v38 = vld [vmem:[#allocation341_spill] sm:$0xff]  ;;  %v3030_v17 = vadd.f32 %v10031_v0, %v1214_v16  ;;  %v14122_v39 = vld [vmem:[#allocation359_spill] sm:$0xff] }
 0x5c5   :  { %v1423_v57 = vadd.f32 %v14114_v38, %v14113_v29  ;;  %v3480_v11 = vmax.f32 %v3352_v49, 0.0 }
 0x5c6   :  { %v2605_v43 = vpop.f32.mrf.mxu2  ;;  %v2814_v46 = vpop.f32.mrf.mxu3  ;;  %v3220_v0 = vmax.f32 %v3030_v17, %v10042_v62  ;;  %v1987_v17 = vld [vmem:[%s13283_s0 + $0x1f0] sm:$0xff]  ;;  %v14124_v62 = vld [vmem:[#allocation114_spill] sm:$0xff] }
 0x5c7   :  { %v3044_v26 = vadd.f32 %v2605_v43, %v1641_v33  ;;  %v3045_v45 = vadd.f32 %v2814_v46, %v1850_v63  ;;  %v2190_v22 = vpop.f32.mrf.mxu0  ;;  %v2399_v2 = vpop.f32.mrf.mxu1  ;;  %v3353_v46 = vadd.f32 %v9323_v35, %v3219_v58  ;;  %v1226_v63 = vadd.f32 %v14116_v37, %v14115_v56  ;;  %v14117_v43 = vld [vmem:[#allocation127_spill] sm:$0xff] }
 0x5c8   :  { %v1435_v12 = vadd.f32 %v14118_v34, %v14117_v43  ;;  %v3031_v53 = vadd.f32 %v10033_v54, %v1423_v57 }
 0x5c9   :  { %v3226_v36 = vmax.f32 %v3042_v15, %v3044_v26  ;;  %v3227_v33 = vmax.f32 %v3043_v14, %v3045_v45  ;;  %v14119_v26 = vld [vmem:[#allocation128_spill] sm:$0xff]  ;;  %v14120_v15 = vld [vmem:[#allocation358_spill] sm:$0xff]  ;;  %v14121_v45 = vld [vmem:[#allocation129_spill] sm:$0xff]  ;;  %v3481_v34 = vmax.f32 %v3353_v46, 0.0  ;;  %v3046_v38 = vadd.f32 %v2190_v22, %v1226_v63 }
 0x5ca   :  { %2237 = vmatmul.f32.gmra.mxu0 %v1986_v31  ;;  %2446 = vmatmul.f32.gmra.mxu1 %v1986_v31  ;;  %v1644_v14 = vadd.f32 %v14120_v15, %v14119_v26  ;;  %v1853_v25 = vadd.f32 %v14122_v39, %v14121_v45  ;;  %v3221_v16 = vmax.f32 %v3031_v53, %v10044_v3  ;;  %v14125_v3 = vld [vmem:[#allocation344_spill] sm:$0xff]  ;;  %v14126_v46 = vld [vmem:[#allocation115_spill] sm:$0xff]  ;;  %v14127_v22 = vld [vmem:[#allocation345_spill] sm:$0xff] }
 0x5cb   :  { %v3360_v58 = vadd.f32 %v9320_v44, %v3226_v36  ;;  %v3361_v4 = vadd.f32 %v9323_v35, %v3227_v33  ;;  %2655 = vmatmul.f32.gmra.mxu2 %v1986_v31  ;;  %2864 = vmatmul.f32.gmra.mxu3 %v1986_v31  ;;  %v3047_v57 = vadd.f32 %v2399_v2, %v1435_v12 }
 0x5cc   :  { %v1217_v49 = vadd.f32 %v14125_v3, %v14124_v62  ;;  %v1426_v12 = vadd.f32 %v14127_v22, %v14126_v46  ;;  %v3354_v2 = vadd.f32 %v9320_v44, %v3220_v0  ;;  %v3355_v63 = vadd.f32 %v9323_v35, %v3221_v16  ;;  %v14132_v16 = vld [vmem:[#allocation132_spill] sm:$0xff] }
 0x5cd   :  { %v3488_v29 = vmax.f32 %v3360_v58, 0.0  ;;  %v3489_v54 = vmax.f32 %v3361_v4, 0.0  ;;  %v14128_v4 = vld [vmem:[#allocation130_spill] sm:$0xff] }
 0x5ce   :  { %v2608_v36 = vpop.f32.mrf.mxu2  ;;  %v2817_v33 = vpop.f32.mrf.mxu3  ;;  %v3034_v39 = vadd.f32 %v10046_v60, %v1217_v49  ;;  %v3483_v62 = vmax.f32 %v3355_v63, 0.0 }
 0x5cf   :  { %v10130_v56 = vmax.f32 %v3480_v11, %v3488_v29  ;;  %v10132_v31 = vmax.f32 %v3481_v34, %v3489_v54  ;;  %v3048_v37 = vadd.f32 %v2608_v36, %v1644_v14  ;;  %v3049_v43 = vadd.f32 %v2817_v33, %v1853_v25  ;;  %v2193_v26 = vpop.f32.mrf.mxu0  ;;  %v2402_v15 = vpop.f32.mrf.mxu1  ;;  %v14129_v14 = vld [vmem:[#allocation360_spill] sm:$0xff]  ;;  %v14130_v11 = vld [vmem:[#allocation131_spill] sm:$0xff]  ;;  %v14131_v34 = vld [vmem:[#allocation361_spill] sm:$0xff] }
 0x5d0   :  { %v1229_v45 = vadd.f32 %v14129_v14, %v14128_v4  ;;  %v3035_v25 = vadd.f32 %v10048_v59, %v1426_v12  ;;  %v1438_v29 = vadd.f32 %v14131_v34, %v14130_v11  ;;  %v14134_v36 = vld [vmem:[#allocation133_spill] sm:$0xff]  ;;  %v14135_v33 = vld [vmem:[#allocation363_spill] sm:$0xff]  ;;  %v3222_v60 = vmax.f32 %v3034_v39, %v10057_v5  ;;  %v1988_v5 = vld [vmem:[%s13283_s0 + $0x1f8] sm:$0xff] }
 0x5d1   :  { %14123 = vst [vmem:[#allocation25_spill] sm:$0xff] %v10132_v31  ;;  %v3228_v53 = vmax.f32 %v3046_v38, %v3048_v37  ;;  %v3229_v58 = vmax.f32 %v3047_v57, %v3049_v43  ;;  %v14133_v38 = vld [vmem:[#allocation362_spill] sm:$0xff]  ;;  %v1856_v37 = vadd.f32 %v14135_v33, %v14134_v36  ;;  %v3482_v43 = vmax.f32 %v3354_v2, 0.0  ;;  %v14139_v2 = vld [vmem:[#allocation348_spill] sm:$0xff]  ;;  %v14141_v39 = vld [vmem:[#allocation349_spill] sm:$0xff] }
 0x5d2   :  { %2240 = vmatmul.f32.gmra.mxu0 %v1987_v17  ;;  %2449 = vmatmul.f32.gmra.mxu1 %v1987_v17  ;;  %v1647_v57 = vadd.f32 %v14133_v38, %v14132_v16  ;;  %v3223_v59 = vmax.f32 %v3035_v25, %v10059_v7  ;;  %v3050_v46 = vadd.f32 %v2193_v26, %v1229_v45  ;;  %v14138_v7 = vld [vmem:[#allocation118_spill] sm:$0xff]  ;;  %v14140_v45 = vld [vmem:[#allocation119_spill] sm:$0xff]  ;;  %v14143_v16 = vld [vmem:[#allocation364_spill] sm:$0xff] }
 0x5d3   :  { %v3362_v54 = vadd.f32 %v9320_v44, %v3228_v53  ;;  %v3363_v0 = vadd.f32 %v9323_v35, %v3229_v58  ;;  %2658 = vmatmul.f32.gmra.mxu2 %v1987_v17  ;;  %2867 = vmatmul.f32.gmra.mxu3 %v1987_v17  ;;  %v3051_v22 = vadd.f32 %v2402_v15, %v1438_v29  ;;  %v14145_v36 = vld [vmem:[#allocation365_spill] sm:$0xff] }
 0x5d4   :  { %v1220_v63 = vadd.f32 %v14139_v2, %v14138_v7  ;;  %v3356_v26 = vadd.f32 %v9320_v44, %v3222_v60  ;;  %v3357_v15 = vadd.f32 %v9323_v35, %v3223_v59  ;;  %v1429_v25 = vadd.f32 %v14141_v39, %v14140_v45  ;;  %v6746_v2 = vld [vmem:[%s13284_s3 + $0x218] sm:$0xff] }
 0x5d5   :  { %v3490_v3 = vmax.f32 %v3362_v54, 0.0  ;;  %v3491_v49 = vmax.f32 %v3363_v0, 0.0  ;;  %v14142_v0 = vld [vmem:[#allocation134_spill] sm:$0xff]  ;;  %4113 = vmatpush.msrb.mxu2 %v6746_v2 }
 0x5d6   :  { %v2611_v12 = vpop.f32.mrf.mxu2  ;;  %v2820_v53 = vpop.f32.mrf.mxu3  ;;  %v1232_v38 = vadd.f32 %v14143_v16, %v14142_v0  ;;  %v1989_v0 = vld [vmem:[%s13283_s0 + $0x200] sm:$0xff] }
 0x5d7   :  { %v10157_v58 = vmax.f32 %v3482_v43, %v3490_v3  ;;  %v10159_v17 = vmax.f32 %v3483_v62, %v3491_v49  ;;  %v3052_v4 = vadd.f32 %v2611_v12, %v1647_v57  ;;  %v3053_v14 = vadd.f32 %v2820_v53, %v1856_v37  ;;  %v2196_v11 = vpop.f32.mrf.mxu0  ;;  %v2405_v34 = vpop.f32.mrf.mxu1  ;;  %v14144_v57 = vld [vmem:[#allocation135_spill] sm:$0xff]  ;;  %v14146_v62 = vld [vmem:[#allocation136_spill] sm:$0xff]  ;;  %v14147_v3 = vld [vmem:[#allocation366_spill] sm:$0xff] }
 0x5d8   :  { %v1441_v33 = vadd.f32 %v14145_v36, %v14144_v57  ;;  %v3038_v37 = vadd.f32 %v10061_v1, %v1220_v63  ;;  %v3039_v43 = vadd.f32 %v10063_v21, %v1429_v25  ;;  %v1650_v49 = vadd.f32 %v14147_v3, %v14146_v62 }
 0x5d9   :  { %14136 = vst [vmem:[#allocation255_spill] sm:$0xff] %v10157_v58  ;;  %v3230_v29 = vmax.f32 %v3050_v46, %v3052_v4  ;;  %v3231_v54 = vmax.f32 %v3051_v22, %v3053_v14  ;;  %v14148_v46 = vld [vmem:[#allocation137_spill] sm:$0xff]  ;;  %v14149_v22 = vld [vmem:[#allocation367_spill] sm:$0xff]  ;;  %v3484_v53 = vmax.f32 %v3356_v26, 0.0  ;;  %v3485_v4 = vmax.f32 %v3357_v15, 0.0 }
 0x5da   :  { %14137 = vst [vmem:[#allocation10_spill] sm:$0xff] %v10159_v17  ;;  %2243 = vmatmul.f32.gmra.mxu0 %v1988_v5  ;;  %2452 = vmatmul.f32.gmra.mxu1 %v1988_v5  ;;  %v1859_v12 = vadd.f32 %v14149_v22, %v14148_v46  ;;  %v3224_v1 = vmax.f32 %v3038_v37, %v10072_v61  ;;  %v14153_v37 = vld [vmem:[#allocation370_spill] sm:$0xff] }
 0x5db   :  { %v3364_v60 = vadd.f32 %v9320_v44, %v3230_v29  ;;  %v3365_v59 = vadd.f32 %v9323_v35, %v3231_v54  ;;  %2661 = vmatmul.f32.gmra.mxu2 %v1988_v5  ;;  %2870 = vmatmul.f32.gmra.mxu3 %v1988_v5  ;;  %v3225_v14 = vmax.f32 %v3039_v43, %v10074_v8  ;;  %v6778_v5 = vld [vmem:[%s13284_s3 + $0x318] sm:$0xff] }
 0x5dc   :  { %v3054_v63 = vadd.f32 %v2196_v11, %v1232_v38  ;;  %v3055_v45 = vadd.f32 %v2405_v34, %v1441_v33  ;;  %4226 = vmatpush.msrb.mxu3 %v6778_v5  ;;  %v3358_v11 = vadd.f32 %v9320_v44, %v3224_v1  ;;  %v14152_v33 = vld [vmem:[#allocation140_spill] sm:$0xff] }
 0x5dd   :  { %v3492_v7 = vmax.f32 %v3364_v60, 0.0  ;;  %v3493_v21 = vmax.f32 %v3365_v59, 0.0  ;;  %v3359_v34 = vadd.f32 %v9323_v35, %v3225_v14  ;;  %v1653_v43 = vadd.f32 %v14153_v37, %v14152_v33  ;;  %v14154_v60 = vld [vmem:[#allocation141_spill] sm:$0xff]  ;;  %v14155_v59 = vld [vmem:[#allocation371_spill] sm:$0xff] }
 0x5de   :  { %v2614_v39 = vpop.f32.mrf.mxu2  ;;  %v2823_v25 = vpop.f32.mrf.mxu3  ;;  %v1862_v62 = vadd.f32 %v14155_v59, %v14154_v60  ;;  %v3486_v3 = vmax.f32 %v3358_v11, 0.0  ;;  %v1991_v37 = vld [vmem:[%s13283_s0 + $0x210] sm:$0xff]  ;;  %v14163_v60 = vld [vmem:[#allocation378_spill] sm:$0xff] }
 0x5df   :  { %v10190_v26 = vmax.f32 %v3484_v53, %v3492_v7  ;;  %v10192_v61 = vmax.f32 %v3485_v4, %v3493_v21  ;;  %v3056_v8 = vadd.f32 %v2614_v39, %v1650_v49  ;;  %v3057_v15 = vadd.f32 %v2823_v25, %v1859_v12  ;;  %v10194_v29 = vpop.f32.mrf.mxu0  ;;  %v10196_v54 = vpop.f32.mrf.mxu1  ;;  %v6745_v12 = vld [vmem:[%s13284_s3 + $0x210] sm:$0xff]  ;;  %v14158_v39 = vld [vmem:[#allocation144_spill] sm:$0xff]  ;;  %v14159_v25 = vld [vmem:[#allocation374_spill] sm:$0xff] }
 0x5e0   :  { %v3487_v49 = vmax.f32 %v3359_v34, 0.0  ;;  %v6777_v53 = vld [vmem:[%s13284_s3 + $0x310] sm:$0xff]  ;;  %3887 = vmatpush.msrb.mxu0 %v6745_v12 }
 0x5e1   :  { %14150 = vst [vmem:[#allocation240_spill] sm:$0xff] %v10190_v26  ;;  %v3232_v16 = vmax.f32 %v3054_v63, %v3056_v8  ;;  %v3233_v38 = vmax.f32 %v3055_v45, %v3057_v15  ;;  %4000 = vmatpush.msrb.mxu1 %v6777_v53  ;;  %v1990_v45 = vld [vmem:[%s13283_s0 + $0x208] sm:$0xff]  ;;  %v1656_v8 = vadd.f32 %v14159_v25, %v14158_v39  ;;  %v14160_v15 = vld [vmem:[#allocation145_spill] sm:$0xff]  ;;  %v14166_v39 = vld [vmem:[#allocation152_spill] sm:$0xff] }
 0x5e2   :  { %14151 = vst [vmem:[#allocation11_spill] sm:$0xff] %v10192_v61  ;;  %2246 = vmatmul.f32.gmra.mxu0 %v1989_v0  ;;  %2455 = vmatmul.f32.gmra.mxu1 %v1989_v0  ;;  %v14167_v25 = vld [vmem:[#allocation382_spill] sm:$0xff] }
 0x5e3   :  { %v3366_v57 = vadd.f32 %v9320_v44, %v3232_v16  ;;  %v3367_v36 = vadd.f32 %v9323_v35, %v3233_v38  ;;  %2664 = vmatmul.f32.gmra.mxu2 %v1989_v0  ;;  %2873 = vmatmul.f32.gmra.mxu3 %v1989_v0  ;;  %v14161_v0 = vld [vmem:[#allocation375_spill] sm:$0xff] }
 0x5e4   :  { %v1865_v11 = vadd.f32 %v14161_v0, %v14160_v15  ;;  %v14168_v15 = vld [vmem:[#allocation153_spill] sm:$0xff]  ;;  %v14169_v0 = vld [vmem:[#allocation383_spill] sm:$0xff] }
 0x5e5   :  { %v3494_v46 = vmax.f32 %v3366_v57, 0.0  ;;  %v3495_v22 = vmax.f32 %v3367_v36, 0.0 }
 0x5e6   :  { %v2617_v4 = vpop.f32.mrf.mxu2  ;;  %v2826_v1 = vpop.f32.mrf.mxu3 }
 0x5e7   :  { %v10215_v14 = vmax.f32 %v3486_v3, %v3494_v46  ;;  %v10217_v7 = vmax.f32 %v3487_v49, %v3495_v22  ;;  %v10219_v21 = vadd.f32 %v2617_v4, %v1653_v43  ;;  %v10221_v2 = vadd.f32 %v2826_v1, %v1862_v62  ;;  %v10223_v5 = vpop.f32.mrf.mxu0  ;;  %v10225_v63 = vpop.f32.mrf.mxu1  ;;  %v14162_v43 = vld [vmem:[#allocation148_spill] sm:$0xff]  ;;  %v14164_v62 = vld [vmem:[#allocation149_spill] sm:$0xff]  ;;  %v14165_v3 = vld [vmem:[#allocation379_spill] sm:$0xff] }
 0x5e8   :  { %v1659_v59 = vadd.f32 %v14163_v60, %v14162_v43  ;;  %v1868_v49 = vadd.f32 %v14165_v3, %v14164_v62  ;;  %v1993_v62 = vld [vmem:[%s13283_s0 + $0x220] sm:$0xff]  ;;  %v6744_v3 = vld [vmem:[%s13284_s3 + $0x208] sm:$0xff] }
 0x5e9   :  { %14156 = vst [vmem:[#allocation241_spill] sm:$0xff] %v10215_v14  ;;  %4114 = vmatpush.msrb.mxu2 %v6744_v3  ;;  %v14178_v14 = vld [vmem:[#allocation156_spill] sm:$0xff] }
 0x5ea   :  { %14157 = vst [vmem:[#allocation26_spill] sm:$0xff] %v10217_v7  ;;  %2249 = vmatmul.f32.gmra.mxu0 %v1990_v45  ;;  %2458 = vmatmul.f32.gmra.mxu1 %v1990_v45 }
 0x5eb   :  { %2667 = vmatmul.f32.gmra.mxu2 %v1990_v45  ;;  %2876 = vmatmul.f32.gmra.mxu3 %v1990_v45  ;;  %v1992_v45 = vld [vmem:[%s13283_s0 + $0x218] sm:$0xff] }
 0x5ee   :  { %v2620_v34 = vpop.f32.mrf.mxu2  ;;  %v2829_v16 = vpop.f32.mrf.mxu3 }
 0x5ef   :  { %v10234_v38 = vadd.f32 %v2620_v34, %v1656_v8  ;;  %v10236_v57 = vadd.f32 %v2829_v16, %v1865_v11  ;;  %v10238_v36 = vpop.f32.mrf.mxu0  ;;  %v10240_v33 = vpop.f32.mrf.mxu1  ;;  %v1662_v8 = vadd.f32 %v14167_v25, %v14166_v39  ;;  %v1871_v11 = vadd.f32 %v14169_v0, %v14168_v15  ;;  %v14172_v39 = vld [vmem:[#allocation139_spill] sm:$0xff]  ;;  %v14173_v25 = vld [vmem:[#allocation369_spill] sm:$0xff] }
 0x5f0   :  { %v6743_v15 = vld [vmem:[%s13284_s3 + $0x200] sm:$0xff] }
 0x5f1   :  { %v6775_v0 = vld [vmem:[%s13284_s3 + $0x300] sm:$0xff]  ;;  %3888 = vmatpush.msrb.mxu0 %v6743_v15 }
 0x5f2   :  { %2252 = vmatmul.f32.gmra.mxu0 %v1991_v37  ;;  %2461 = vmatmul.f32.gmra.mxu1 %v1991_v37 }
 0x5f3   :  { %2670 = vmatmul.f32.gmra.mxu2 %v1991_v37  ;;  %2879 = vmatmul.f32.gmra.mxu3 %v1991_v37 }
 0x5f4   :  { %4001 = vmatpush.msrb.mxu1 %v6775_v0 }
 0x5f6   :  { %v2623_v46 = vpop.f32.mrf.mxu2  ;;  %v2832_v22 = vpop.f32.mrf.mxu3 }
 0x5f7   :  { %v10249_v12 = vadd.f32 %v2623_v46, %v1659_v59  ;;  %v10251_v53 = vadd.f32 %v2832_v22, %v1868_v49  ;;  %v10253_v4 = vpop.f32.mrf.mxu0  ;;  %v10255_v1 = vpop.f32.mrf.mxu1  ;;  %v6776_v49 = vld [vmem:[%s13284_s3 + $0x308] sm:$0xff]  ;;  %v14171_v22 = vld [vmem:[#allocation368_spill] sm:$0xff] }
 0x5f8   :  { %v14170_v46 = vld [vmem:[#allocation138_spill] sm:$0xff]  ;;  %4227 = vmatpush.msrb.mxu3 %v6776_v49 }
 0x5f9   :  { %v14174_v49 = vld [vmem:[#allocation154_spill] sm:$0xff] }
 0x5fa   :  { %2255 = vmatmul.f32.gmra.mxu0 %v1992_v45  ;;  %2464 = vmatmul.f32.gmra.mxu1 %v1992_v45 }
 0x5fb   :  { %2673 = vmatmul.f32.gmra.mxu2 %v1992_v45  ;;  %2882 = vmatmul.f32.gmra.mxu3 %v1992_v45  ;;  %v1235_v45 = vadd.f32 %v14171_v22, %v14170_v46  ;;  %v14175_v46 = vld [vmem:[#allocation384_spill] sm:$0xff] }
 0x5fc   :  { %v1247_v22 = vadd.f32 %v14175_v46, %v14174_v49  ;;  %v14182_v49 = vld [vmem:[#allocation142_spill] sm:$0xff]  ;;  %v14183_v46 = vld [vmem:[#allocation372_spill] sm:$0xff] }
 0x5fe   :  { %v2626_v34 = vpop.f32.mrf.mxu2  ;;  %v2835_v16 = vpop.f32.mrf.mxu3 }
 0x5ff   :  { %v10264_v37 = vadd.f32 %v2626_v34, %v1662_v8  ;;  %v10266_v43 = vadd.f32 %v2835_v16, %v1871_v11  ;;  %v2211_v60 = vpop.f32.mrf.mxu0  ;;  %v2420_v59 = vpop.f32.mrf.mxu1  ;;  %v1444_v8 = vadd.f32 %v14173_v25, %v14172_v39  ;;  %v3058_v11 = vadd.f32 %v10194_v29, %v1235_v45  ;;  %v14176_v39 = vld [vmem:[#allocation155_spill] sm:$0xff]  ;;  %v14177_v25 = vld [vmem:[#allocation385_spill] sm:$0xff]  ;;  %v14179_v29 = vld [vmem:[#allocation386_spill] sm:$0xff] }
 0x600   :  { %v1456_v7 = vadd.f32 %v14177_v25, %v14176_v39  ;;  %v1665_v45 = vadd.f32 %v14179_v29, %v14178_v14  ;;  %v3074_v17 = vadd.f32 %v2211_v60, %v1247_v22  ;;  %v1238_v39 = vadd.f32 %v14183_v46, %v14182_v49  ;;  %v14184_v29 = vld [vmem:[#allocation143_spill] sm:$0xff] }
 0x601   :  { %v3059_v34 = vadd.f32 %v10196_v54, %v1444_v8  ;;  %v3234_v16 = vmax.f32 %v3058_v11, %v10219_v21  ;;  %v14180_v54 = vld [vmem:[#allocation157_spill] sm:$0xff]  ;;  %v14181_v8 = vld [vmem:[#allocation387_spill] sm:$0xff] }
 0x602   :  { %2258 = vmatmul.f32.gmra.mxu0 %v1993_v62  ;;  %2467 = vmatmul.f32.gmra.mxu1 %v1993_v62  ;;  %v1874_v61 = vadd.f32 %v14181_v8, %v14180_v54  ;;  %v3075_v21 = vadd.f32 %v2420_v59, %v1456_v7  ;;  %v14185_v54 = vld [vmem:[#allocation373_spill] sm:$0xff]  ;;  %v14188_v22 = vld [vmem:[#allocation159_spill] sm:$0xff]  ;;  %v3062_v58 = vadd.f32 %v10223_v5, %v1238_v39 }
 0x603   :  { %2676 = vmatmul.f32.gmra.mxu2 %v1993_v62  ;;  %2885 = vmatmul.f32.gmra.mxu3 %v1993_v62  ;;  %v3235_v3 = vmax.f32 %v3059_v34, %v10221_v2  ;;  %v1994_v34 = vld [vmem:[%s13283_s0 + $0x228] sm:$0xff]  ;;  %v3368_v14 = vadd.f32 %v9320_v44, %v3234_v16  ;;  %v1447_v8 = vadd.f32 %v14185_v54, %v14184_v29  ;;  %v14193_v46 = vld [vmem:[#allocation391_spill] sm:$0xff] }
 0x604   :  { %v3236_v5 = vmax.f32 %v3062_v58, %v10234_v38  ;;  %v1995_v58 = vld [vmem:[%s13283_s0 + $0x230] sm:$0xff]  ;;  %v14194_v38 = vld [vmem:[#allocation146_spill] sm:$0xff] }
 0x605   :  { %v3369_v25 = vadd.f32 %v9323_v35, %v3235_v3  ;;  %v3063_v49 = vadd.f32 %v10225_v63, %v1447_v8  ;;  %v3496_v54 = vmax.f32 %v3368_v14, 0.0 }
 0x606   :  { %v2629_v26 = vpop.f32.mrf.mxu2  ;;  %v2838_v62 = vpop.f32.mrf.mxu3 }
 0x607   :  { %v3076_v11 = vadd.f32 %v2629_v26, %v1665_v45  ;;  %v3077_v2 = vadd.f32 %v2838_v62, %v1874_v61  ;;  %v2214_v15 = vpop.f32.mrf.mxu0  ;;  %v2423_v0 = vpop.f32.mrf.mxu1  ;;  %v14186_v26 = vld [vmem:[#allocation158_spill] sm:$0xff]  ;;  %v14187_v61 = vld [vmem:[#allocation388_spill] sm:$0xff]  ;;  %v14189_v45 = vld [vmem:[#allocation389_spill] sm:$0xff]  ;;  %v3237_v39 = vmax.f32 %v3063_v49, %v10236_v57 }
 0x608   :  { %v1250_v59 = vadd.f32 %v14187_v61, %v14186_v26  ;;  %v1459_v62 = vadd.f32 %v14189_v45, %v14188_v22  ;;  %v3497_v26 = vmax.f32 %v3369_v25, 0.0  ;;  %v14195_v57 = vld [vmem:[#allocation376_spill] sm:$0xff]  ;;  %v14196_v25 = vld [vmem:[#allocation147_spill] sm:$0xff] }
 0x609   :  { %v3242_v60 = vmax.f32 %v3074_v17, %v3076_v11  ;;  %v3243_v7 = vmax.f32 %v3075_v21, %v3077_v2  ;;  %v14190_v17 = vld [vmem:[#allocation160_spill] sm:$0xff]  ;;  %v14191_v21 = vld [vmem:[#allocation390_spill] sm:$0xff]  ;;  %v14192_v2 = vld [vmem:[#allocation161_spill] sm:$0xff]  ;;  %v1241_v14 = vadd.f32 %v14195_v57, %v14194_v38 }
 0x60a   :  { %2261 = vmatmul.f32.gmra.mxu0 %v1994_v34  ;;  %2470 = vmatmul.f32.gmra.mxu1 %v1994_v34  ;;  %v1668_v11 = vadd.f32 %v14191_v21, %v14190_v17  ;;  %v1877_v29 = vadd.f32 %v14193_v46, %v14192_v2  ;;  %v3078_v8 = vadd.f32 %v2214_v15, %v1250_v59  ;;  %v14197_v15 = vld [vmem:[#allocation377_spill] sm:$0xff] }
 0x60b   :  { %v3376_v16 = vadd.f32 %v9320_v44, %v3242_v60  ;;  %v3377_v3 = vadd.f32 %v9323_v35, %v3243_v7  ;;  %2679 = vmatmul.f32.gmra.mxu2 %v1994_v34  ;;  %2888 = vmatmul.f32.gmra.mxu3 %v1994_v34  ;;  %v3079_v60 = vadd.f32 %v2423_v0, %v1459_v62 }
 0x60c   :  { %v1450_v0 = vadd.f32 %v14197_v15, %v14196_v25  ;;  %v3370_v59 = vadd.f32 %v9320_v44, %v3236_v5  ;;  %v3371_v62 = vadd.f32 %v9323_v35, %v3237_v39  ;;  %v14202_v39 = vld [vmem:[#allocation164_spill] sm:$0xff] }
 0x60d   :  { %v3504_v61 = vmax.f32 %v3376_v16, 0.0  ;;  %v3505_v63 = vmax.f32 %v3377_v3, 0.0  ;;  %v14198_v3 = vld [vmem:[#allocation162_spill] sm:$0xff] }
 0x60e   :  { %v2632_v22 = vpop.f32.mrf.mxu2  ;;  %v2841_v7 = vpop.f32.mrf.mxu3  ;;  %v3498_v38 = vmax.f32 %v3370_v59, 0.0  ;;  %v3499_v57 = vmax.f32 %v3371_v62, 0.0  ;;  %v14207_v59 = vld [vmem:[#allocation380_spill] sm:$0xff] }
 0x60f   :  { %v10322_v45 = vmax.f32 %v3496_v54, %v3504_v61  ;;  %v10324_v34 = vmax.f32 %v3497_v26, %v3505_v63  ;;  %v3080_v17 = vadd.f32 %v2632_v22, %v1668_v11  ;;  %v3081_v21 = vadd.f32 %v2841_v7, %v1877_v29  ;;  %v2217_v31 = vpop.f32.mrf.mxu0  ;;  %v2426_v2 = vpop.f32.mrf.mxu1  ;;  %v14199_v11 = vld [vmem:[#allocation392_spill] sm:$0xff]  ;;  %v14200_v26 = vld [vmem:[#allocation163_spill] sm:$0xff]  ;;  %v14201_v61 = vld [vmem:[#allocation393_spill] sm:$0xff] }
 0x610   :  { %v1253_v46 = vadd.f32 %v14199_v11, %v14198_v3  ;;  %v3066_v29 = vadd.f32 %v10238_v36, %v1241_v14  ;;  %v3067_v54 = vadd.f32 %v10240_v33, %v1450_v0  ;;  %v1462_v63 = vadd.f32 %v14201_v61, %v14200_v26  ;;  %v14204_v7 = vld [vmem:[#allocation165_spill] sm:$0xff] }
 0x611   :  { %v3244_v49 = vmax.f32 %v3078_v8, %v3080_v17  ;;  %v3245_v16 = vmax.f32 %v3079_v60, %v3081_v21  ;;  %v14203_v8 = vld [vmem:[#allocation394_spill] sm:$0xff]  ;;  %v14205_v17 = vld [vmem:[#allocation395_spill] sm:$0xff] }
 0x612   :  { %2264 = vmatmul.f32.gmra.mxu0 %v1995_v58  ;;  %2473 = vmatmul.f32.gmra.mxu1 %v1995_v58  ;;  %v1671_v60 = vadd.f32 %v14203_v8, %v14202_v39  ;;  %v1880_v21 = vadd.f32 %v14205_v17, %v14204_v7  ;;  %v3238_v36 = vmax.f32 %v3066_v29, %v10249_v12  ;;  %v1996_v12 = vld [vmem:[%s13283_s0 + $0x238] sm:$0xff]  ;;  %v14209_v29 = vld [vmem:[#allocation381_spill] sm:$0xff]  ;;  %v14212_v7 = vld [vmem:[#allocation167_spill] sm:$0xff] }
 0x613   :  { %v3378_v22 = vadd.f32 %v9320_v44, %v3244_v49  ;;  %v3379_v5 = vadd.f32 %v9323_v35, %v3245_v16  ;;  %2682 = vmatmul.f32.gmra.mxu2 %v1995_v58  ;;  %2891 = vmatmul.f32.gmra.mxu3 %v1995_v58  ;;  %v3239_v33 = vmax.f32 %v3067_v54, %v10251_v53  ;;  %v14206_v53 = vld [vmem:[#allocation150_spill] sm:$0xff]  ;;  %v14211_v8 = vld [vmem:[#allocation396_spill] sm:$0xff]  ;;  %v14213_v17 = vld [vmem:[#allocation397_spill] sm:$0xff] }
 0x614   :  { %v3082_v15 = vadd.f32 %v2217_v31, %v1253_v46  ;;  %v3083_v0 = vadd.f32 %v2426_v2, %v1462_v63  ;;  %v1244_v62 = vadd.f32 %v14207_v59, %v14206_v53  ;;  %v3372_v31 = vadd.f32 %v9320_v44, %v3238_v36  ;;  %v14208_v46 = vld [vmem:[#allocation151_spill] sm:$0xff] }
 0x615   :  { %v3506_v14 = vmax.f32 %v3378_v22, 0.0  ;;  %v3507_v25 = vmax.f32 %v3379_v5, 0.0  ;;  %v3373_v2 = vadd.f32 %v9323_v35, %v3239_v33  ;;  %v1453_v54 = vadd.f32 %v14209_v29, %v14208_v46  ;;  %v14210_v5 = vld [vmem:[#allocation166_spill] sm:$0xff] }
 0x616   :  { %v2635_v49 = vpop.f32.mrf.mxu2  ;;  %v2844_v16 = vpop.f32.mrf.mxu3 }
 0x617   :  { %v10349_v3 = vmax.f32 %v3498_v38, %v3506_v14  ;;  %v10351_v58 = vmax.f32 %v3499_v57, %v3507_v25  ;;  %v3084_v11 = vadd.f32 %v2635_v49, %v1671_v60  ;;  %v3085_v26 = vadd.f32 %v2844_v16, %v1880_v21  ;;  %v2220_v61 = vpop.f32.mrf.mxu0  ;;  %v2429_v39 = vpop.f32.mrf.mxu1  ;;  %v14214_v14 = vld [vmem:[#allocation168_spill] sm:$0xff]  ;;  %v14215_v25 = vld [vmem:[#allocation398_spill] sm:$0xff]  ;;  %v14217_v49 = vld [vmem:[#allocation399_spill] sm:$0xff] }
 0x618   :  { %v1256_v60 = vadd.f32 %v14211_v8, %v14210_v5  ;;  %v1465_v21 = vadd.f32 %v14213_v17, %v14212_v7  ;;  %v3070_v38 = vadd.f32 %v10253_v4, %v1244_v62  ;;  %v3071_v57 = vadd.f32 %v10255_v1, %v1453_v54  ;;  %v3767_v62 = vld [vmem:[%s13284_s3 + $0xf8] sm:$0xff] }
 0x619   :  { %v3246_v63 = vmax.f32 %v3082_v15, %v3084_v11  ;;  %v3247_v22 = vmax.f32 %v3083_v0, %v3085_v26  ;;  %v1674_v15 = vadd.f32 %v14215_v25, %v14214_v14  ;;  %v14216_v0 = vld [vmem:[#allocation169_spill] sm:$0xff]  ;;  %v3500_v11 = vmax.f32 %v3372_v31, 0.0  ;;  %4551 = vmatpush.msra.mxu2 %v3767_v62 }
 0x61a   :  { %2267 = vmatmul.f32.gmra.mxu0 %v1996_v12  ;;  %2476 = vmatmul.f32.gmra.mxu1 %v1996_v12  ;;  %v1883_v16 = vadd.f32 %v14217_v49, %v14216_v0  ;;  %v3501_v26 = vmax.f32 %v3373_v2, 0.0  ;;  %v3240_v4 = vmax.f32 %v3070_v38, %v10264_v37  ;;  %v3241_v53 = vmax.f32 %v3071_v57, %v10266_v43  ;;  %v14219_v38 = vld [vmem:[#allocation402_spill] sm:$0xff] }
 0x61b   :  { %v3380_v36 = vadd.f32 %v9320_v44, %v3246_v63  ;;  %v3381_v33 = vadd.f32 %v9323_v35, %v3247_v22  ;;  %2685 = vmatmul.f32.gmra.mxu2 %v1996_v12  ;;  %2894 = vmatmul.f32.gmra.mxu3 %v1996_v12  ;;  %v3799_v12 = vld [vmem:[%s13284_s3 + $0x1f8] sm:$0xff]  ;;  %v3086_v46 = vadd.f32 %v2220_v61, %v1256_v60 }
 0x61c   :  { %v3087_v29 = vadd.f32 %v2429_v39, %v1465_v21  ;;  %4664 = vmatpush.msra.mxu3 %v3799_v12  ;;  %v3374_v8 = vadd.f32 %v9320_v44, %v3240_v4  ;;  %v3375_v7 = vadd.f32 %v9323_v35, %v3241_v53  ;;  %v14218_v21 = vld [vmem:[#allocation172_spill] sm:$0xff] }
 0x61d   :  { %v3508_v59 = vmax.f32 %v3380_v36, 0.0  ;;  %v3509_v1 = vmax.f32 %v3381_v33, 0.0  ;;  %v1677_v57 = vadd.f32 %v14219_v38, %v14218_v21  ;;  %v14220_v36 = vld [vmem:[#allocation173_spill] sm:$0xff]  ;;  %v14221_v33 = vld [vmem:[#allocation403_spill] sm:$0xff]  ;;  %v3765_v38 = vld [vmem:[%s13284_s3 + $0xe8] sm:$0xff] }
 0x61e   :  { %v2638_v54 = vpop.f32.mrf.mxu2  ;;  %v2847_v63 = vpop.f32.mrf.mxu3  ;;  %v1886_v14 = vadd.f32 %v14221_v33, %v14220_v36  ;;  %v3502_v25 = vmax.f32 %v3374_v8, 0.0  ;;  %4552 = vmatpush.msra.mxu2 %v3765_v38  ;;  %v14226_v36 = vld [vmem:[#allocation180_spill] sm:$0xff]  ;;  %v14227_v33 = vld [vmem:[#allocation410_spill] sm:$0xff] }
 0x61f   :  { %v10382_v31 = vmax.f32 %v3500_v11, %v3508_v59  ;;  %v10384_v37 = vmax.f32 %v3501_v26, %v3509_v1  ;;  %v3088_v43 = vadd.f32 %v2638_v54, %v1674_v15  ;;  %v3089_v2 = vadd.f32 %v2847_v63, %v1883_v16  ;;  %v10386_v22 = vpop.f32.mrf.mxu0  ;;  %v10388_v5 = vpop.f32.mrf.mxu1  ;;  %v3766_v16 = vld [vmem:[%s13284_s3 + $0xf0] sm:$0xff]  ;;  %v14223_v54 = vld [vmem:[#allocation406_spill] sm:$0xff] }
 0x620   :  { %v3503_v15 = vmax.f32 %v3375_v7, 0.0  ;;  %v3798_v11 = vld [vmem:[%s13284_s3 + $0x1f0] sm:$0xff]  ;;  %4325 = vmatpush.msra.mxu0 %v3766_v16 }
 0x621   :  { %v3248_v61 = vmax.f32 %v3086_v46, %v3088_v43  ;;  %v3249_v39 = vmax.f32 %v3087_v29, %v3089_v2  ;;  %4438 = vmatpush.msra.mxu1 %v3798_v11  ;;  %v14222_v29 = vld [vmem:[#allocation176_spill] sm:$0xff]  ;;  %v14224_v43 = vld [vmem:[#allocation177_spill] sm:$0xff]  ;;  %v14225_v2 = vld [vmem:[#allocation407_spill] sm:$0xff] }
 0x622   :  { %3889 = vmatmul.f32.vlgmr.msrb.gmra.mxu0 %v9362_v52  ;;  %4002 = vmatmul.f32.vlgmr.msrb.gmra.mxu1 %v9364_v24  ;;  %v1680_v63 = vadd.f32 %v14223_v54, %v14222_v29  ;;  %v1889_v8 = vadd.f32 %v14225_v2, %v14224_v43  ;;  %v3764_v54 = vld [vmem:[%s13284_s3 + $0xe0] sm:$0xff]  ;;  %v14230_v43 = vld [vmem:[#allocation184_spill] sm:$0xff]  ;;  %v14231_v2 = vld [vmem:[#allocation414_spill] sm:$0xff] }
 0x623   :  { %v3382_v60 = vadd.f32 %v9320_v44, %v3248_v61  ;;  %v3383_v17 = vadd.f32 %v9323_v35, %v3249_v39  ;;  %4115 = vmatmul.f32.vlgmr.msrb.gmra.mxu2 %v9362_v52  ;;  %4228 = vmatmul.f32.vlgmr.msrb.gmra.mxu3 %v9364_v24 }
 0x624   :  { %4326 = vmatpush.msra.mxu0 %v3764_v54  ;;  %v14235_v54 = vld [vmem:[#allocation400_spill] sm:$0xff] }
 0x625   :  { %v3510_v0 = vmax.f32 %v3382_v60, 0.0  ;;  %v3511_v49 = vmax.f32 %v3383_v17, 0.0 }
 0x626   :  { %v2641_v26 = vpop.f32.mrf.mxu2  ;;  %v2850_v4 = vpop.f32.mrf.mxu3 }
 0x627   :  { %v10408_v53 = vmax.f32 %v3502_v25, %v3510_v0  ;;  %v10410_v59 = vmax.f32 %v3503_v15, %v3511_v49  ;;  %v10412_v1 = vadd.f32 %v2641_v26, %v1677_v57  ;;  %v10414_v62 = vadd.f32 %v2850_v4, %v1886_v14  ;;  %v10416_v12 = vpop.f32.mrf.mxu0  ;;  %v10418_v46 = vpop.f32.mrf.mxu1  ;;  %v3797_v57 = vld [vmem:[%s13284_s3 + $0x1e8] sm:$0xff]  ;;  %v14228_v25 = vld [vmem:[#allocation181_spill] sm:$0xff]  ;;  %v14229_v15 = vld [vmem:[#allocation411_spill] sm:$0xff] }
 0x628   :  { %4665 = vmatpush.msra.mxu3 %v3797_v57  ;;  %v1683_v14 = vadd.f32 %v14227_v33, %v14226_v36  ;;  %v1892_v0 = vadd.f32 %v14229_v15, %v14228_v25 }
 0x62a   :  { %3892 = vmatmul.f32.gmra.mxu0 %v9392_v10  ;;  %4005 = vmatmul.f32.gmra.mxu1 %v9394_v28 }
 0x62b   :  { %4118 = vmatmul.f32.gmra.mxu2 %v9392_v10  ;;  %4231 = vmatmul.f32.gmra.mxu3 %v9394_v28 }
 0x62e   :  { %v2644_v7 = vpop.f32.mrf.mxu2  ;;  %v2853_v61 = vpop.f32.mrf.mxu3 }
 0x62f   :  { %v10428_v39 = vadd.f32 %v2644_v7, %v1680_v63  ;;  %v10430_v60 = vadd.f32 %v2853_v61, %v1889_v8  ;;  %v10432_v17 = vpop.f32.mrf.mxu0  ;;  %v10434_v21 = vpop.f32.mrf.mxu1  ;;  %v3796_v63 = vld [vmem:[%s13284_s3 + $0x1e0] sm:$0xff]  ;;  %v1686_v8 = vadd.f32 %v14231_v2, %v14230_v43  ;;  %v14233_v61 = vld [vmem:[#allocation415_spill] sm:$0xff] }
 0x630   :  { %4439 = vmatpush.msra.mxu1 %v3796_v63  ;;  %v14232_v7 = vld [vmem:[#allocation185_spill] sm:$0xff]  ;;  %v14236_v43 = vld [vmem:[#allocation171_spill] sm:$0xff] }
 0x631   :  { %v1895_v38 = vadd.f32 %v14233_v61, %v14232_v7  ;;  %v14237_v2 = vld [vmem:[#allocation401_spill] sm:$0xff] }
 0x632   :  { %3895 = vmatmul.f32.gmra.mxu0 %v9429_v6  ;;  %4008 = vmatmul.f32.gmra.mxu1 %v9431_v30  ;;  %v1468_v7 = vadd.f32 %v14237_v2, %v14236_v43  ;;  %v14244_v2 = vld [vmem:[#allocation189_spill] sm:$0xff] }
 0x633   :  { %4121 = vmatmul.f32.gmra.mxu2 %v9429_v6  ;;  %4234 = vmatmul.f32.gmra.mxu3 %v9431_v30 }
 0x634   :  { %v3091_v61 = vadd.f32 %v10388_v5, %v1468_v7  ;;  %v14243_v5 = vld [vmem:[#allocation418_spill] sm:$0xff]  ;;  %v14245_v7 = vld [vmem:[#allocation419_spill] sm:$0xff] }
 0x636   :  { %v2647_v49 = vpop.f32.mrf.mxu2  ;;  %v2856_v16 = vpop.f32.mrf.mxu3 }
 0x637   :  { %v10450_v11 = vadd.f32 %v2647_v49, %v1683_v14  ;;  %v10452_v26 = vadd.f32 %v2856_v16, %v1892_v0  ;;  %v10454_v4 = vpop.f32.mrf.mxu0  ;;  %v10456_v29 = vpop.f32.mrf.mxu1  ;;  %v3763_v0 = vld [vmem:[%s13284_s3 + $0xd8] sm:$0xff]  ;;  %v14234_v16 = vld [vmem:[#allocation170_spill] sm:$0xff] }
 0x638   :  { %v3795_v49 = vld [vmem:[%s13284_s3 + $0x1d8] sm:$0xff]  ;;  %v1259_v63 = vadd.f32 %v14235_v54, %v14234_v16  ;;  %4553 = vmatpush.msra.mxu2 %v3763_v0  ;;  %v14241_v54 = vld [vmem:[#allocation417_spill] sm:$0xff] }
 0x639   :  { %4666 = vmatpush.msra.mxu3 %v3795_v49  ;;  %v14239_v16 = vld [vmem:[#allocation416_spill] sm:$0xff]  ;;  %v14240_v49 = vld [vmem:[#allocation187_spill] sm:$0xff] }
 0x63a   :  { %3898 = vmatmul.f32.gmra.mxu0 %v9458_v55  ;;  %4011 = vmatmul.f32.gmra.mxu1 %v9460_v48 }
 0x63b   :  { %4124 = vmatmul.f32.gmra.mxu2 %v9458_v55  ;;  %4237 = vmatmul.f32.gmra.mxu3 %v9460_v48  ;;  %v1898_v48 = vadd.f32 %v14245_v7, %v14244_v2  ;;  %v14252_v2 = vld [vmem:[#allocation191_spill] sm:$0xff]  ;;  %v14253_v7 = vld [vmem:[#allocation421_spill] sm:$0xff] }
 0x63c   :  { %v1483_v28 = vadd.f32 %v14253_v7, %v14252_v2 }
 0x63e   :  { %v2650_v57 = vpop.f32.mrf.mxu2  ;;  %v2859_v36 = vpop.f32.mrf.mxu3 }
 0x63f   :  { %v10472_v33 = vadd.f32 %v2650_v57, %v1686_v8  ;;  %v10474_v14 = vadd.f32 %v2859_v36, %v1895_v38  ;;  %v2235_v25 = vpop.f32.mrf.mxu0  ;;  %v2444_v15 = vpop.f32.mrf.mxu1  ;;  %v3090_v8 = vadd.f32 %v10386_v22, %v1259_v63  ;;  %v3251_v57 = vmax.f32 %v3091_v61, %v10414_v62  ;;  %v14238_v36 = vld [vmem:[#allocation186_spill] sm:$0xff]  ;;  %v14242_v63 = vld [vmem:[#allocation188_spill] sm:$0xff]  ;;  %v3762_v61 = vld [vmem:[%s13284_s3 + $0xd0] sm:$0xff] }
 0x640   :  { %v1271_v0 = vadd.f32 %v14239_v16, %v14238_v36  ;;  %v1480_v22 = vadd.f32 %v14241_v54, %v14240_v49  ;;  %v1689_v43 = vadd.f32 %v14243_v5, %v14242_v63  ;;  %v3794_v36 = vld [vmem:[%s13284_s3 + $0x1d0] sm:$0xff]  ;;  %v14246_v16 = vld [vmem:[#allocation174_spill] sm:$0xff]  ;;  %v14247_v49 = vld [vmem:[#allocation404_spill] sm:$0xff]  ;;  %4327 = vmatpush.msra.mxu0 %v3762_v61 }
 0x641   :  { %v3250_v38 = vmax.f32 %v3090_v8, %v10412_v1  ;;  %v1262_v54 = vadd.f32 %v14247_v49, %v14246_v16  ;;  %4440 = vmatpush.msra.mxu1 %v3794_v36  ;;  %v14251_v5 = vld [vmem:[#allocation420_spill] sm:$0xff]  ;;  %v14257_v36 = vld [vmem:[#allocation423_spill] sm:$0xff] }
 0x642   :  { %3901 = vmatmul.f32.gmra.mxu0 %v9554_v13  ;;  %4014 = vmatmul.f32.gmra.mxu1 %v9556_v32  ;;  %v3106_v30 = vadd.f32 %v2235_v25, %v1271_v0  ;;  %v3385_v25 = vadd.f32 %v9323_v35, %v3251_v57 }
 0x643   :  { %4127 = vmatmul.f32.gmra.mxu2 %v9554_v13  ;;  %4240 = vmatmul.f32.gmra.mxu3 %v9556_v32  ;;  %v3107_v32 = vadd.f32 %v2444_v15, %v1480_v22  ;;  %v3384_v63 = vadd.f32 %v9320_v44, %v3250_v38  ;;  %v14250_v22 = vld [vmem:[#allocation190_spill] sm:$0xff]  ;;  %v3094_v10 = vadd.f32 %v10416_v12, %v1262_v54 }
 0x644   :  { %v3513_v49 = vmax.f32 %v3385_v25, 0.0 }
 0x645   :  { %v3512_v16 = vmax.f32 %v3384_v63, 0.0  ;;  %v3252_v54 = vmax.f32 %v3094_v10, %v10428_v39 }
 0x646   :  { %v2653_v55 = vpop.f32.mrf.mxu2  ;;  %v2862_v13 = vpop.f32.mrf.mxu3 }
 0x647   :  { %v3108_v6 = vadd.f32 %v2653_v55, %v1689_v43  ;;  %v3109_v1 = vadd.f32 %v2862_v13, %v1898_v48  ;;  %v2238_v8 = vpop.f32.mrf.mxu0  ;;  %v2447_v62 = vpop.f32.mrf.mxu1  ;;  %v14248_v55 = vld [vmem:[#allocation175_spill] sm:$0xff]  ;;  %v14249_v48 = vld [vmem:[#allocation405_spill] sm:$0xff]  ;;  %v1274_v43 = vadd.f32 %v14251_v5, %v14250_v22 }
 0x648   :  { %v1471_v13 = vadd.f32 %v14249_v48, %v14248_v55  ;;  %v3111_v22 = vadd.f32 %v2447_v62, %v1483_v28  ;;  %v3386_v28 = vadd.f32 %v9320_v44, %v3252_v54 }
 0x649   :  { %v3258_v15 = vmax.f32 %v3106_v30, %v3108_v6  ;;  %v3259_v0 = vmax.f32 %v3107_v32, %v3109_v1  ;;  %v14254_v6 = vld [vmem:[#allocation192_spill] sm:$0xff]  ;;  %v14255_v30 = vld [vmem:[#allocation422_spill] sm:$0xff]  ;;  %v14256_v1 = vld [vmem:[#allocation193_spill] sm:$0xff] }
 0x64a   :  { %3904 = vmatmul.f32.gmra.mxu0 %v9581_v20  ;;  %4017 = vmatmul.f32.gmra.mxu1 %v9583_v19  ;;  %v3095_v38 = vadd.f32 %v10418_v46, %v1471_v13  ;;  %v1692_v32 = vadd.f32 %v14255_v30, %v14254_v6  ;;  %v1901_v12 = vadd.f32 %v14257_v36, %v14256_v1  ;;  %v3761_v13 = vld [vmem:[%s13284_s3 + $0xc8] sm:$0xff]  ;;  %v14260_v6 = vld [vmem:[#allocation179_spill] sm:$0xff]  ;;  %v14261_v30 = vld [vmem:[#allocation409_spill] sm:$0xff] }
 0x64b   :  { %v3392_v57 = vadd.f32 %v9320_v44, %v3258_v15  ;;  %v3393_v61 = vadd.f32 %v9323_v35, %v3259_v0  ;;  %4130 = vmatmul.f32.gmra.mxu2 %v9581_v20  ;;  %4243 = vmatmul.f32.gmra.mxu3 %v9583_v19  ;;  %v3793_v15 = vld [vmem:[%s13284_s3 + $0x1c8] sm:$0xff]  ;;  %v3110_v0 = vadd.f32 %v2238_v8, %v1274_v43 }
 0x64c   :  { %v3253_v46 = vmax.f32 %v3095_v38, %v10430_v60  ;;  %4554 = vmatpush.msra.mxu2 %v3761_v13  ;;  %4667 = vmatpush.msra.mxu3 %v3793_v15  ;;  %v14258_v38 = vld [vmem:[#allocation178_spill] sm:$0xff]  ;;  %v1474_v1 = vadd.f32 %v14261_v30, %v14260_v6  ;;  %v14266_v15 = vld [vmem:[#allocation196_spill] sm:$0xff]  ;;  %v3760_v6 = vld [vmem:[%s13284_s3 + $0xc0] sm:$0xff] }
 0x64d   :  { %v3520_v55 = vmax.f32 %v3392_v57, 0.0  ;;  %v3521_v48 = vmax.f32 %v3393_v61, 0.0  ;;  %v14259_v57 = vld [vmem:[#allocation408_spill] sm:$0xff]  ;;  %v14262_v36 = vld [vmem:[#allocation194_spill] sm:$0xff]  ;;  %v3792_v30 = vld [vmem:[%s13284_s3 + $0x1c0] sm:$0xff]  ;;  %4328 = vmatpush.msra.mxu0 %v3760_v6 }
 0x64e   :  { %v2656_v5 = vpop.f32.mrf.mxu2  ;;  %v2865_v2 = vpop.f32.mrf.mxu3  ;;  %v1265_v61 = vadd.f32 %v14259_v57, %v14258_v38  ;;  %v3387_v8 = vadd.f32 %v9323_v35, %v3253_v46  ;;  %4441 = vmatpush.msra.mxu1 %v3792_v30  ;;  %v14279_v6 = vld [vmem:[#allocation430_spill] sm:$0xff] }
 0x64f   :  { %v10538_v63 = vmax.f32 %v3512_v16, %v3520_v55  ;;  %v10540_v10 = vmax.f32 %v3513_v49, %v3521_v48  ;;  %v3112_v39 = vadd.f32 %v2656_v5, %v1692_v32  ;;  %v3113_v60 = vadd.f32 %v2865_v2, %v1901_v12  ;;  %v2241_v25 = vpop.f32.mrf.mxu0  ;;  %v2450_v7 = vpop.f32.mrf.mxu1  ;;  %v14263_v16 = vld [vmem:[#allocation424_spill] sm:$0xff]  ;;  %v14264_v55 = vld [vmem:[#allocation195_spill] sm:$0xff]  ;;  %v14265_v48 = vld [vmem:[#allocation425_spill] sm:$0xff] }
 0x650   :  { %v1277_v49 = vadd.f32 %v14263_v16, %v14262_v36  ;;  %v3098_v32 = vadd.f32 %v10432_v17, %v1265_v61  ;;  %v3099_v12 = vadd.f32 %v10434_v21, %v1474_v1  ;;  %v1486_v13 = vadd.f32 %v14265_v48, %v14264_v55  ;;  %v14269_v21 = vld [vmem:[#allocation427_spill] sm:$0xff]  ;;  %v14271_v55 = vld [vmem:[#allocation412_spill] sm:$0xff] }
 0x651   :  { %v3260_v62 = vmax.f32 %v3110_v0, %v3112_v39  ;;  %v3261_v43 = vmax.f32 %v3111_v22, %v3113_v60  ;;  %v14267_v0 = vld [vmem:[#allocation426_spill] sm:$0xff]  ;;  %v14268_v22 = vld [vmem:[#allocation197_spill] sm:$0xff]  ;;  %v3514_v60 = vmax.f32 %v3386_v28, 0.0  ;;  %v3515_v38 = vmax.f32 %v3387_v8, 0.0 }
 0x652   :  { %3907 = vmatmul.f32.gmra.mxu0 %v9614_v18  ;;  %4020 = vmatmul.f32.gmra.mxu1 %v9616_v40  ;;  %v1695_v17 = vadd.f32 %v14267_v0, %v14266_v15  ;;  %v1904_v5 = vadd.f32 %v14269_v21, %v14268_v22  ;;  %v3254_v2 = vmax.f32 %v3098_v32, %v10450_v11  ;;  %v14274_v0 = vld [vmem:[#allocation198_spill] sm:$0xff]  ;;  %v14275_v22 = vld [vmem:[#allocation428_spill] sm:$0xff] }
 0x653   :  { %v3394_v54 = vadd.f32 %v9320_v44, %v3260_v62  ;;  %v3395_v46 = vadd.f32 %v9323_v35, %v3261_v43  ;;  %4133 = vmatmul.f32.gmra.mxu2 %v9614_v18  ;;  %4246 = vmatmul.f32.gmra.mxu3 %v9616_v40  ;;  %v3255_v39 = vmax.f32 %v3099_v12, %v10452_v26  ;;  %v14270_v12 = vld [vmem:[#allocation182_spill] sm:$0xff] }
 0x654   :  { %v3114_v1 = vadd.f32 %v2241_v25, %v1277_v49  ;;  %v3115_v62 = vadd.f32 %v2450_v7, %v1486_v13  ;;  %v1268_v48 = vadd.f32 %v14271_v55, %v14270_v12  ;;  %v14272_v7 = vld [vmem:[#allocation183_spill] sm:$0xff]  ;;  %v14273_v49 = vld [vmem:[#allocation413_spill] sm:$0xff]  ;;  %v1280_v21 = vadd.f32 %v14275_v22, %v14274_v0  ;;  %v3759_v55 = vld [vmem:[%s13284_s3 + $0xb8] sm:$0xff] }
 0x655   :  { %v3522_v57 = vmax.f32 %v3394_v54, 0.0  ;;  %v3523_v61 = vmax.f32 %v3395_v46, 0.0  ;;  %v3388_v54 = vadd.f32 %v9320_v44, %v3254_v2  ;;  %v3389_v25 = vadd.f32 %v9323_v35, %v3255_v39  ;;  %4555 = vmatpush.msra.mxu2 %v3759_v55 }
 0x656   :  { %v2659_v43 = vpop.f32.mrf.mxu2  ;;  %v2868_v36 = vpop.f32.mrf.mxu3  ;;  %v1477_v13 = vadd.f32 %v14273_v49, %v14272_v7 }
 0x657   :  { %v10572_v11 = vmax.f32 %v3514_v60, %v3522_v57  ;;  %v10574_v26 = vmax.f32 %v3515_v38, %v3523_v61  ;;  %v3116_v28 = vadd.f32 %v2659_v43, %v1695_v17  ;;  %v3117_v8 = vadd.f32 %v2868_v36, %v1904_v5  ;;  %v2244_v16 = vpop.f32.mrf.mxu0  ;;  %v2453_v32 = vpop.f32.mrf.mxu1  ;;  %v14276_v60 = vld [vmem:[#allocation199_spill] sm:$0xff]  ;;  %v14277_v17 = vld [vmem:[#allocation429_spill] sm:$0xff]  ;;  %v14278_v61 = vld [vmem:[#allocation200_spill] sm:$0xff] }
 0x658   :  { %v1489_v5 = vadd.f32 %v14277_v17, %v14276_v60  ;;  %v3102_v38 = vadd.f32 %v10454_v4, %v1268_v48  ;;  %v3103_v2 = vadd.f32 %v10456_v29, %v1477_v13  ;;  %v1698_v30 = vadd.f32 %v14279_v6, %v14278_v61  ;;  %v3791_v48 = vld [vmem:[%s13284_s3 + $0x1b8] sm:$0xff] }
 0x659   :  { %v3262_v46 = vmax.f32 %v3114_v1, %v3116_v28  ;;  %v3263_v15 = vmax.f32 %v3115_v62, %v3117_v8  ;;  %v14280_v1 = vld [vmem:[#allocation201_spill] sm:$0xff]  ;;  %v14281_v62 = vld [vmem:[#allocation431_spill] sm:$0xff]  ;;  %v3516_v43 = vmax.f32 %v3388_v54, 0.0  ;;  %v3517_v36 = vmax.f32 %v3389_v25, 0.0  ;;  %4668 = vmatpush.msra.mxu3 %v3791_v48 }
 0x65a   :  { %3910 = vmatmul.f32.gmra.mxu0 %v9639_v50  ;;  %4023 = vmatmul.f32.gmra.mxu1 %v9641_v9  ;;  %v1907_v4 = vadd.f32 %v14281_v62, %v14280_v1  ;;  %v3256_v28 = vmax.f32 %v3102_v38, %v10472_v33  ;;  %v3257_v29 = vmax.f32 %v3103_v2, %v10474_v14  ;;  %v14283_v38 = vld [vmem:[#allocation434_spill] sm:$0xff] }
 0x65b   :  { %v3396_v39 = vadd.f32 %v9320_v44, %v3262_v46  ;;  %v3397_v57 = vadd.f32 %v9323_v35, %v3263_v15  ;;  %4136 = vmatmul.f32.gmra.mxu2 %v9639_v50  ;;  %4249 = vmatmul.f32.gmra.mxu3 %v9641_v9  ;;  %v3118_v7 = vadd.f32 %v2244_v16, %v1280_v21 }
 0x65c   :  { %v3119_v49 = vadd.f32 %v2453_v32, %v1489_v5  ;;  %v3390_v22 = vadd.f32 %v9320_v44, %v3256_v28  ;;  %v3391_v60 = vadd.f32 %v9323_v35, %v3257_v29  ;;  %v14282_v5 = vld [vmem:[#allocation204_spill] sm:$0xff] }
 0x65d   :  { %v3524_v8 = vmax.f32 %v3396_v39, 0.0  ;;  %v3525_v12 = vmax.f32 %v3397_v57, 0.0  ;;  %v1701_v2 = vadd.f32 %v14283_v38, %v14282_v5  ;;  %v14284_v39 = vld [vmem:[#allocation205_spill] sm:$0xff]  ;;  %v14285_v57 = vld [vmem:[#allocation435_spill] sm:$0xff] }
 0x65e   :  { %v2662_v13 = vpop.f32.mrf.mxu2  ;;  %v2871_v46 = vpop.f32.mrf.mxu3  ;;  %v1910_v61 = vadd.f32 %v14285_v57, %v14284_v39  ;;  %v3518_v6 = vmax.f32 %v3390_v22, 0.0  ;;  %v14290_v39 = vld [vmem:[#allocation212_spill] sm:$0xff]  ;;  %v14291_v57 = vld [vmem:[#allocation442_spill] sm:$0xff] }
 0x65f   :  { %v10606_v54 = vmax.f32 %v3516_v43, %v3524_v8  ;;  %v10608_v33 = vmax.f32 %v3517_v36, %v3525_v12  ;;  %v3120_v14 = vadd.f32 %v2662_v13, %v1698_v30  ;;  %v3121_v25 = vadd.f32 %v2871_v46, %v1907_v4  ;;  %v10610_v15 = vpop.f32.mrf.mxu0  ;;  %v10612_v0 = vpop.f32.mrf.mxu1  ;;  %v3758_v4 = vld [vmem:[%s13284_s3 + $0xb0] sm:$0xff]  ;;  %v14287_v13 = vld [vmem:[#allocation438_spill] sm:$0xff] }
 0x660   :  { %v3519_v30 = vmax.f32 %v3391_v60, 0.0  ;;  %v3790_v43 = vld [vmem:[%s13284_s3 + $0x1b0] sm:$0xff]  ;;  %4329 = vmatpush.msra.mxu0 %v3758_v4  ;;  %v3757_v60 = vld [vmem:[%s13284_s3 + $0xa8] sm:$0xff]  ;;  %v3788_v4 = vld [vmem:[%s13284_s3 + $0x1a0] sm:$0xff] }
 0x661   :  { %v3264_v16 = vmax.f32 %v3118_v7, %v3120_v14  ;;  %v3265_v32 = vmax.f32 %v3119_v49, %v3121_v25  ;;  %4442 = vmatpush.msra.mxu1 %v3790_v43  ;;  %v14286_v49 = vld [vmem:[#allocation208_spill] sm:$0xff]  ;;  %v14288_v14 = vld [vmem:[#allocation209_spill] sm:$0xff]  ;;  %v14289_v25 = vld [vmem:[#allocation439_spill] sm:$0xff]  ;;  %4556 = vmatpush.msra.mxu2 %v3757_v60 }
 0x662   :  { %3913 = vmatmul.f32.gmra.mxu0 %v9746_v51  ;;  %4026 = vmatmul.f32.gmra.mxu1 %v9748_v41  ;;  %v1704_v46 = vadd.f32 %v14287_v13, %v14286_v49  ;;  %v1913_v22 = vadd.f32 %v14289_v25, %v14288_v14  ;;  %v14294_v14 = vld [vmem:[#allocation16_spill] sm:$0xff]  ;;  %v14295_v25 = vld [vmem:[#allocation246_spill] sm:$0xff] }
 0x663   :  { %v3398_v21 = vadd.f32 %v9320_v44, %v3264_v16  ;;  %v3399_v17 = vadd.f32 %v9323_v35, %v3265_v32  ;;  %4139 = vmatmul.f32.gmra.mxu2 %v9746_v51  ;;  %4252 = vmatmul.f32.gmra.mxu3 %v9748_v41  ;;  %v3789_v16 = vld [vmem:[%s13284_s3 + $0x1a8] sm:$0xff] }
 0x664   :  { %4669 = vmatpush.msra.mxu3 %v3789_v16  ;;  %4443 = vmatpush.msra.mxu1 %v3788_v4  ;;  %v14297_v60 = vld [vmem:[#allocation446_spill] sm:$0xff] }
 0x665   :  { %v3526_v1 = vmax.f32 %v3398_v21, 0.0  ;;  %v3527_v62 = vmax.f32 %v3399_v17, 0.0  ;;  %v3753_v41 = vld [vmem:[%s13284_s3 + $0x88] sm:$0xff] }
 0x666   :  { %v2665_v36 = vpop.f32.mrf.mxu2  ;;  %v2874_v28 = vpop.f32.mrf.mxu3  ;;  %v14323_v51 = vld [vmem:[#allocation250_spill] sm:$0xff] }
 0x667   :  { %v10632_v29 = vmax.f32 %v3518_v6, %v3526_v1  ;;  %v10634_v8 = vmax.f32 %v3519_v30, %v3527_v62  ;;  %v10636_v12 = vadd.f32 %v2665_v36, %v1701_v2  ;;  %v10638_v55 = vadd.f32 %v2874_v28, %v1910_v61  ;;  %v10640_v48 = vpop.f32.mrf.mxu0  ;;  %v10642_v7 = vpop.f32.mrf.mxu1  ;;  %v14292_v6 = vld [vmem:[#allocation213_spill] sm:$0xff]  ;;  %v14293_v30 = vld [vmem:[#allocation443_spill] sm:$0xff] }
 0x668   :  { %v1707_v61 = vadd.f32 %v14291_v57, %v14290_v39  ;;  %v1916_v1 = vadd.f32 %v14293_v30, %v14292_v6  ;;  %v3756_v62 = vld [vmem:[%s13284_s3 + $0xa0] sm:$0xff]  ;;  %v3755_v57 = vld [vmem:[%s13284_s3 + $0x98] sm:$0xff] }
 0x669   :  { %4330 = vmatpush.msra.mxu0 %v3756_v62  ;;  %4557 = vmatpush.msra.mxu2 %v3755_v57  ;;  %v14305_v57 = vld [vmem:[#allocation247_spill] sm:$0xff] }
 0x66a   :  { %3916 = vmatmul.f32.gmra.mxu0 %v9773_v47  ;;  %4029 = vmatmul.f32.gmra.mxu1 %v9775_v23 }
 0x66b   :  { %4142 = vmatmul.f32.gmra.mxu2 %v9773_v47  ;;  %4255 = vmatmul.f32.gmra.mxu3 %v9775_v23 }
 0x66c   :  { %4558 = vmatpush.msra.mxu2 %v3753_v41  ;;  %v14324_v41 = vld [vmem:[#allocation224_spill] sm:$0xff] }
 0x66e   :  { %v2668_v32 = vpop.f32.mrf.mxu2  ;;  %v2877_v21 = vpop.f32.mrf.mxu3 }
 0x66f   :  { %v10658_v17 = vadd.f32 %v2668_v32, %v1704_v46  ;;  %v10660_v5 = vadd.f32 %v2877_v21, %v1913_v22  ;;  %v10662_v38 = vpop.f32.mrf.mxu0  ;;  %v10664_v2 = vpop.f32.mrf.mxu1  ;;  %v14296_v22 = vld [vmem:[#allocation216_spill] sm:$0xff]  ;;  %v14298_v32 = vld [vmem:[#allocation217_spill] sm:$0xff]  ;;  %v14299_v21 = vld [vmem:[#allocation447_spill] sm:$0xff] }
 0x670   :  { %v1710_v16 = vadd.f32 %v14297_v60, %v14296_v22  ;;  %v1919_v39 = vadd.f32 %v14299_v21, %v14298_v32  ;;  %v14301_v22 = vld [vmem:[#allocation432_spill] sm:$0xff]  ;;  %v14302_v32 = vld [vmem:[#allocation203_spill] sm:$0xff]  ;;  %v14303_v21 = vld [vmem:[#allocation433_spill] sm:$0xff] }
 0x672   :  { %3919 = vmatmul.f32.gmra.mxu0 %v9806_v27  ;;  %4032 = vmatmul.f32.gmra.mxu1 %v9808_v42 }
 0x673   :  { %4145 = vmatmul.f32.gmra.mxu2 %v9806_v27  ;;  %4258 = vmatmul.f32.gmra.mxu3 %v9808_v42  ;;  %v14304_v27 = vld [vmem:[#allocation17_spill] sm:$0xff] }
 0x676   :  { %v2671_v43 = vpop.f32.mrf.mxu2  ;;  %v2880_v36 = vpop.f32.mrf.mxu3 }
 0x677   :  { %v10680_v28 = vadd.f32 %v2671_v43, %v1707_v61  ;;  %v10682_v49 = vadd.f32 %v2880_v36, %v1916_v1  ;;  %v10684_v13 = vpop.f32.mrf.mxu0  ;;  %v10686_v46 = vpop.f32.mrf.mxu1  ;;  %v3787_v61 = vld [vmem:[%s13284_s3 + $0x198] sm:$0xff]  ;;  %v14300_v36 = vld [vmem:[#allocation202_spill] sm:$0xff] }
 0x678   :  { %4670 = vmatpush.msra.mxu3 %v3787_v61  ;;  %v1283_v60 = vadd.f32 %v14301_v22, %v14300_v36  ;;  %v14306_v61 = vld [vmem:[#allocation218_spill] sm:$0xff]  ;;  %v14308_v36 = vld [vmem:[#allocation219_spill] sm:$0xff]  ;;  %v14309_v22 = vld [vmem:[#allocation449_spill] sm:$0xff] }
 0x67a   :  { %3922 = vmatmul.f32.gmra.mxu0 %v14294_v14  ;;  %4035 = vmatmul.f32.gmra.mxu1 %v14295_v25 }
 0x67b   :  { %4148 = vmatmul.f32.gmra.mxu2 %v14294_v14  ;;  %4261 = vmatmul.f32.gmra.mxu3 %v14295_v25  ;;  %v1492_v25 = vadd.f32 %v14303_v21, %v14302_v32  ;;  %v3122_v14 = vadd.f32 %v10610_v15, %v1283_v60  ;;  %v1504_v15 = vadd.f32 %v14309_v22, %v14308_v36  ;;  %v14310_v60 = vld [vmem:[#allocation220_spill] sm:$0xff]  ;;  %v14312_v32 = vld [vmem:[#allocation221_spill] sm:$0xff]  ;;  %v14313_v21 = vld [vmem:[#allocation451_spill] sm:$0xff] }
 0x67c   :  { %v1922_v23 = vadd.f32 %v14313_v21, %v14312_v32  ;;  %v14315_v32 = vld [vmem:[#allocation436_spill] sm:$0xff] }
 0x67d   :  { %v3123_v42 = vadd.f32 %v10612_v0, %v1492_v25  ;;  %v14311_v0 = vld [vmem:[#allocation450_spill] sm:$0xff] }
 0x67e   :  { %v2674_v6 = vpop.f32.mrf.mxu2  ;;  %v2883_v30 = vpop.f32.mrf.mxu3  ;;  %v1713_v25 = vadd.f32 %v14311_v0, %v14310_v60  ;;  %v14314_v0 = vld [vmem:[#allocation206_spill] sm:$0xff] }
 0x67f   :  { %v10702_v1 = vadd.f32 %v2674_v6, %v1710_v16  ;;  %v10704_v62 = vadd.f32 %v2883_v30, %v1919_v39  ;;  %v2259_v4 = vpop.f32.mrf.mxu0  ;;  %v2468_v43 = vpop.f32.mrf.mxu1  ;;  %v3266_v16 = vmax.f32 %v3122_v14, %v10636_v12  ;;  %v3267_v39 = vmax.f32 %v3123_v42, %v10638_v55  ;;  %v14307_v6 = vld [vmem:[#allocation448_spill] sm:$0xff]  ;;  %v3786_v42 = vld [vmem:[%s13284_s3 + $0x190] sm:$0xff] }
 0x680   :  { %v1295_v30 = vadd.f32 %v14307_v6, %v14306_v61  ;;  %4444 = vmatpush.msra.mxu1 %v3786_v42  ;;  %v3139_v61 = vadd.f32 %v2468_v43, %v1504_v15  ;;  %v1286_v21 = vadd.f32 %v14315_v32, %v14314_v0  ;;  %v14316_v43 = vld [vmem:[#allocation207_spill] sm:$0xff]  ;;  %v14319_v42 = vld [vmem:[#allocation452_spill] sm:$0xff] }
 0x681   :  { %v3401_v47 = vadd.f32 %v9323_v35, %v3267_v39  ;;  %v14321_v39 = vld [vmem:[#allocation453_spill] sm:$0xff]  ;;  %v14322_v32 = vld [vmem:[#allocation20_spill] sm:$0xff] }
 0x682   :  { %3925 = vmatmul.f32.gmra.mxu0 %v14304_v27  ;;  %4038 = vmatmul.f32.gmra.mxu1 %v14305_v57  ;;  %v3138_v14 = vadd.f32 %v2259_v4, %v1295_v30  ;;  %v3785_v4 = vld [vmem:[%s13284_s3 + $0x188] sm:$0xff]  ;;  %v3126_v0 = vadd.f32 %v10640_v48, %v1286_v21 }
 0x683   :  { %4151 = vmatmul.f32.gmra.mxu2 %v14304_v27  ;;  %4264 = vmatmul.f32.gmra.mxu3 %v14305_v57  ;;  %v3754_v57 = vld [vmem:[%s13284_s3 + $0x90] sm:$0xff]  ;;  %v3400_v27 = vadd.f32 %v9320_v44, %v3266_v16 }
 0x684   :  { %4331 = vmatpush.msra.mxu0 %v3754_v57  ;;  %v14317_v57 = vld [vmem:[#allocation437_spill] sm:$0xff]  ;;  %4671 = vmatpush.msra.mxu3 %v3785_v4  ;;  %v14327_v4 = vld [vmem:[#allocation455_spill] sm:$0xff] }
 0x685   :  { %v3528_v21 = vmax.f32 %v3400_v27, 0.0 }
 0x686   :  { %v2677_v12 = vpop.f32.mrf.mxu2  ;;  %v2886_v55 = vpop.f32.mrf.mxu3 }
 0x687   :  { %v3140_v6 = vadd.f32 %v2677_v12, %v1713_v25  ;;  %v3141_v36 = vadd.f32 %v2886_v55, %v1922_v23  ;;  %v2262_v22 = vpop.f32.mrf.mxu0  ;;  %v2471_v60 = vpop.f32.mrf.mxu1  ;;  %v1495_v23 = vadd.f32 %v14317_v57, %v14316_v43  ;;  %v14318_v25 = vld [vmem:[#allocation222_spill] sm:$0xff]  ;;  %v14320_v12 = vld [vmem:[#allocation223_spill] sm:$0xff]  ;;  %v3529_v57 = vmax.f32 %v3401_v47, 0.0  ;;  %v3784_v47 = vld [vmem:[%s13284_s3 + $0x180] sm:$0xff] }
 0x688   :  { %v1298_v16 = vadd.f32 %v14319_v42, %v14318_v25  ;;  %v1507_v55 = vadd.f32 %v14321_v39, %v14320_v12  ;;  %v3268_v25 = vmax.f32 %v3126_v0, %v10658_v17  ;;  %v14330_v17 = vld [vmem:[#allocation210_spill] sm:$0xff]  ;;  %4445 = vmatpush.msra.mxu1 %v3784_v47 }
 0x689   :  { %v3274_v30 = vmax.f32 %v3138_v14, %v3140_v6  ;;  %v3275_v15 = vmax.f32 %v3139_v61, %v3141_v36  ;;  %v3127_v9 = vadd.f32 %v10642_v7, %v1495_v23  ;;  %v14325_v61 = vld [vmem:[#allocation454_spill] sm:$0xff]  ;;  %v14326_v36 = vld [vmem:[#allocation225_spill] sm:$0xff] }
 0x68a   :  { %3928 = vmatmul.f32.gmra.mxu0 %v14322_v32  ;;  %4041 = vmatmul.f32.gmra.mxu1 %v14323_v51  ;;  %v1716_v6 = vadd.f32 %v14325_v61, %v14324_v41  ;;  %v1925_v48 = vadd.f32 %v14327_v4, %v14326_v36  ;;  %v3142_v42 = vadd.f32 %v2262_v22, %v1298_v16  ;;  %v3752_v41 = vld [vmem:[%s13284_s3 + $0x80] sm:$0xff]  ;;  %v14335_v36 = vld [vmem:[#allocation456_spill] sm:$0xff] }
 0x68b   :  { %v3408_v43 = vadd.f32 %v9320_v44, %v3274_v30  ;;  %v3409_v14 = vadd.f32 %v9323_v35, %v3275_v15  ;;  %4154 = vmatmul.f32.gmra.mxu2 %v14322_v32  ;;  %4267 = vmatmul.f32.gmra.mxu3 %v14323_v51  ;;  %v3269_v7 = vmax.f32 %v3127_v9, %v10660_v5  ;;  %v14331_v5 = vld [vmem:[#allocation440_spill] sm:$0xff]  ;;  %v14333_v16 = vld [vmem:[#allocation441_spill] sm:$0xff] }
 0x68c   :  { %v3143_v15 = vadd.f32 %v2471_v60, %v1507_v55  ;;  %v1289_v22 = vadd.f32 %v14331_v5, %v14330_v17  ;;  %v14332_v60 = vld [vmem:[#allocation211_spill] sm:$0xff]  ;;  %4332 = vmatpush.msra.mxu0 %v3752_v41  ;;  %v3402_v0 = vadd.f32 %v9320_v44, %v3268_v25 }
 0x68d   :  { %v3536_v23 = vmax.f32 %v3408_v43, 0.0  ;;  %v3537_v30 = vmax.f32 %v3409_v14, 0.0  ;;  %v1498_v55 = vadd.f32 %v14333_v16, %v14332_v60  ;;  %v3403_v43 = vadd.f32 %v9323_v35, %v3269_v7 }
 0x68e   :  { %v2680_v12 = vpop.f32.mrf.mxu2  ;;  %v2889_v39 = vpop.f32.mrf.mxu3  ;;  %v3530_v17 = vmax.f32 %v3402_v0, 0.0 }
 0x68f   :  { %v3144_v32 = vadd.f32 %v2680_v12, %v1716_v6  ;;  %v3145_v51 = vadd.f32 %v2889_v39, %v1925_v48  ;;  %v2265_v50 = vpop.f32.mrf.mxu0  ;;  %v2474_v40 = vpop.f32.mrf.mxu1  ;;  %v10768_v27 = vmax.f32 %v3528_v21, %v3536_v23  ;;  %v10770_v9 = vmax.f32 %v3529_v57, %v3537_v30  ;;  %v14334_v6 = vld [vmem:[#allocation226_spill] sm:$0xff]  ;;  %v14336_v57 = vld [vmem:[#allocation21_spill] sm:$0xff]  ;;  %v14337_v23 = vld [vmem:[#allocation251_spill] sm:$0xff] }
 0x690   :  { %v1301_v4 = vadd.f32 %v14335_v36, %v14334_v6  ;;  %v3130_v48 = vadd.f32 %v10662_v38, %v1289_v22  ;;  %v3131_v21 = vadd.f32 %v10664_v2, %v1498_v55  ;;  %v14338_v30 = vld [vmem:[#allocation227_spill] sm:$0xff]  ;;  %v14339_v12 = vld [vmem:[#allocation457_spill] sm:$0xff]  ;;  %v3531_v5 = vmax.f32 %v3403_v43, 0.0 }
 0x691   :  { %14328 = vst [vmem:[#allocation256_spill] sm:$0xff] %v10768_v27  ;;  %v3276_v14 = vmax.f32 %v3142_v42, %v3144_v32  ;;  %v3277_v61 = vmax.f32 %v3143_v15, %v3145_v51  ;;  %v1510_v39 = vadd.f32 %v14339_v12, %v14338_v30  ;;  %v14340_v51 = vld [vmem:[#allocation228_spill] sm:$0xff]  ;;  %v14341_v32 = vld [vmem:[#allocation458_spill] sm:$0xff]  ;;  %v14342_v42 = vld [vmem:[#allocation229_spill] sm:$0xff] }
 0x692   :  { %14329 = vst [vmem:[#allocation27_spill] sm:$0xff] %v10770_v9  ;;  %3931 = vmatmul.f32.gmra.mxu0 %v14336_v57  ;;  %4044 = vmatmul.f32.gmra.mxu1 %v14337_v23  ;;  %v1719_v38 = vadd.f32 %v14341_v32, %v14340_v51  ;;  %v14343_v2 = vld [vmem:[#allocation459_spill] sm:$0xff]  ;;  %v3270_v41 = vmax.f32 %v3130_v48, %v10680_v28  ;;  %v14347_v28 = vld [vmem:[#allocation444_spill] sm:$0xff] }
 0x693   :  { %v3410_v25 = vadd.f32 %v9320_v44, %v3276_v14  ;;  %v3411_v7 = vadd.f32 %v9323_v35, %v3277_v61  ;;  %4157 = vmatmul.f32.gmra.mxu2 %v14336_v57  ;;  %4270 = vmatmul.f32.gmra.mxu3 %v14337_v23  ;;  %v1928_v15 = vadd.f32 %v14343_v2, %v14342_v42  ;;  %v14346_v42 = vld [vmem:[#allocation214_spill] sm:$0xff]  ;;  %v14348_v43 = vld [vmem:[#allocation215_spill] sm:$0xff] }
 0x694   :  { %v3271_v47 = vmax.f32 %v3131_v21, %v10682_v49  ;;  %v3146_v16 = vadd.f32 %v2265_v50, %v1301_v4  ;;  %v3147_v55 = vadd.f32 %v2474_v40, %v1510_v39  ;;  %v1292_v48 = vadd.f32 %v14347_v28, %v14346_v42  ;;  %v3751_v40 = vld [vmem:[%s13284_s3 + $0x78] sm:$0xff]  ;;  %v14349_v4 = vld [vmem:[#allocation445_spill] sm:$0xff]  ;;  %v14359_v42 = vld [vmem:[#allocation463_spill] sm:$0xff] }
 0x695   :  { %v3538_v22 = vmax.f32 %v3410_v25, 0.0  ;;  %v3539_v60 = vmax.f32 %v3411_v7, 0.0  ;;  %v3404_v49 = vadd.f32 %v9320_v44, %v3270_v41  ;;  %v3783_v50 = vld [vmem:[%s13284_s3 + $0x178] sm:$0xff]  ;;  %v1501_v21 = vadd.f32 %v14349_v4, %v14348_v43  ;;  %4559 = vmatpush.msra.mxu2 %v3751_v40  ;;  %v14350_v7 = vld [vmem:[#allocation230_spill] sm:$0xff]  ;;  %v14353_v41 = vld [vmem:[#allocation461_spill] sm:$0xff] }
 0x696   :  { %v2683_v14 = vpop.f32.mrf.mxu2  ;;  %v2892_v61 = vpop.f32.mrf.mxu3  ;;  %v3405_v0 = vadd.f32 %v9323_v35, %v3271_v47  ;;  %4672 = vmatpush.msra.mxu3 %v3783_v50 }
 0x697   :  { %v3148_v6 = vadd.f32 %v2683_v14, %v1719_v38  ;;  %v3149_v36 = vadd.f32 %v2892_v61, %v1928_v15  ;;  %v2268_v30 = vpop.f32.mrf.mxu0  ;;  %v2477_v12 = vpop.f32.mrf.mxu1  ;;  %v10796_v51 = vmax.f32 %v3530_v17, %v3538_v22  ;;  %v10798_v32 = vmax.f32 %v3531_v5, %v3539_v60  ;;  %v14351_v38 = vld [vmem:[#allocation460_spill] sm:$0xff]  ;;  %v14352_v15 = vld [vmem:[#allocation231_spill] sm:$0xff]  ;;  %v14355_v22 = vld [vmem:[#allocation254_spill] sm:$0xff] }
 0x698   :  { %v1304_v2 = vadd.f32 %v14351_v38, %v14350_v7  ;;  %v1513_v47 = vadd.f32 %v14353_v41, %v14352_v15  ;;  %v3134_v17 = vadd.f32 %v10684_v13, %v1292_v48  ;;  %v14354_v5 = vld [vmem:[#allocation24_spill] sm:$0xff]  ;;  %v3135_v60 = vadd.f32 %v10686_v46, %v1501_v21  ;;  %v14357_v61 = vld [vmem:[#allocation462_spill] sm:$0xff] }
 0x699   :  { %14344 = vst [vmem:[#allocation257_spill] sm:$0xff] %v10796_v51  ;;  %v3278_v39 = vmax.f32 %v3146_v16, %v3148_v6  ;;  %v3279_v25 = vmax.f32 %v3147_v55, %v3149_v36  ;;  %v14356_v55 = vld [vmem:[#allocation232_spill] sm:$0xff]  ;;  %v14358_v36 = vld [vmem:[#allocation233_spill] sm:$0xff]  ;;  %v3532_v28 = vmax.f32 %v3404_v49, 0.0  ;;  %v3533_v48 = vmax.f32 %v3405_v0, 0.0  ;;  %v3750_v49 = vld [vmem:[%s13284_s3 + $0x70] sm:$0xff] }
 0x69a   :  { %14345 = vst [vmem:[#allocation28_spill] sm:$0xff] %v10798_v32  ;;  %3934 = vmatmul.f32.gmra.mxu0 %v14354_v5  ;;  %4047 = vmatmul.f32.gmra.mxu1 %v14355_v22  ;;  %v1722_v6 = vadd.f32 %v14357_v61, %v14356_v55  ;;  %v1931_v13 = vadd.f32 %v14359_v42, %v14358_v36 }
 0x69b   :  { %v3412_v14 = vadd.f32 %v9320_v44, %v3278_v39  ;;  %v3413_v16 = vadd.f32 %v9323_v35, %v3279_v25  ;;  %4160 = vmatmul.f32.gmra.mxu2 %v14354_v5  ;;  %4273 = vmatmul.f32.gmra.mxu3 %v14355_v22  ;;  %v3272_v40 = vmax.f32 %v3134_v17, %v10702_v1  ;;  %v3782_v1 = vld [vmem:[%s13284_s3 + $0x170] sm:$0xff]  ;;  %v14364_v17 = vld [vmem:[#allocation25_spill] sm:$0xff] }
 0x69c   :  { %v3273_v46 = vmax.f32 %v3135_v60, %v10704_v62  ;;  %v3150_v4 = vadd.f32 %v2268_v30, %v1304_v2  ;;  %v3151_v21 = vadd.f32 %v2477_v12, %v1513_v47  ;;  %4333 = vmatpush.msra.mxu0 %v3750_v49  ;;  %4446 = vmatpush.msra.mxu1 %v3782_v1  ;;  %v3780_v49 = vld [vmem:[%s13284_s3 + $0x160] sm:$0xff]  ;;  %v14373_v1 = vld [vmem:[#allocation240_spill] sm:$0xff] }
 0x69d   :  { %v3540_v50 = vmax.f32 %v3412_v14, 0.0  ;;  %v3541_v43 = vmax.f32 %v3413_v16, 0.0  ;;  %v3406_v12 = vadd.f32 %v9320_v44, %v3272_v40 }
 0x69e   :  { %v2686_v39 = vpop.f32.mrf.mxu2  ;;  %v2895_v25 = vpop.f32.mrf.mxu3  ;;  %v3407_v0 = vadd.f32 %v9323_v35, %v3273_v46  ;;  %v3781_v46 = vld [vmem:[%s13284_s3 + $0x168] sm:$0xff]  ;;  %4447 = vmatpush.msra.mxu1 %v3780_v49 }
 0x69f   :  { %v3152_v7 = vadd.f32 %v2686_v39, %v1722_v6  ;;  %v3153_v38 = vadd.f32 %v2895_v25, %v1931_v13  ;;  %v10830_v15 = vpop.f32.mrf.mxu0  ;;  %v10832_v41 = vpop.f32.mrf.mxu1  ;;  %v10840_v62 = vmax.f32 %v3532_v28, %v3540_v50  ;;  %v10842_v30 = vmax.f32 %v3533_v48, %v3541_v43  ;;  %4673 = vmatpush.msra.mxu3 %v3781_v46  ;;  %v14369_v50 = vld [vmem:[#allocation255_spill] sm:$0xff]  ;;  %v14370_v43 = vld [vmem:[#allocation10_spill] sm:$0xff] }
 0x6a0   :  { %14360 = vst [vmem:[#allocation258_spill] sm:$0xff] %v10830_v15  ;;  %v3534_v16 = vmax.f32 %v3406_v12, 0.0  ;;  %v3535_v55 = vmax.f32 %v3407_v0, 0.0  ;;  %v14374_v12 = vld [vmem:[#allocation11_spill] sm:$0xff] }
 0x6a1   :  { %14361 = vst [vmem:[#allocation29_spill] sm:$0xff] %v10832_v41  ;;  %v3280_v2 = vmax.f32 %v3150_v4, %v3152_v7  ;;  %v3281_v47 = vmax.f32 %v3151_v21, %v3153_v38  ;;  %v3748_v38 = vld [vmem:[%s13284_s3 + $0x60] sm:$0xff] }
 0x6a2   :  { %14362 = vst [vmem:[#allocation259_spill] sm:$0xff] %v10840_v62  ;;  %3937 = vmatmul.f32.gmra.mxu0 %v10130_v56  ;;  %4050 = vmatmul.f32.gmra.mxu1 %v14364_v17 }
 0x6a3   :  { %14363 = vst [vmem:[#allocation14_spill] sm:$0xff] %v10842_v30  ;;  %v3414_v60 = vadd.f32 %v9320_v44, %v3280_v2  ;;  %v3415_v14 = vadd.f32 %v9323_v35, %v3281_v47  ;;  %4163 = vmatmul.f32.gmra.mxu2 %v10130_v56  ;;  %4276 = vmatmul.f32.gmra.mxu3 %v14364_v17  ;;  %v3749_v35 = vld [vmem:[%s13284_s3 + $0x68] sm:$0xff] }
 0x6a4   :  { %4560 = vmatpush.msra.mxu2 %v3749_v35  ;;  %4334 = vmatpush.msra.mxu0 %v3748_v38  ;;  %v3778_v38 = vld [vmem:[%s13284_s3 + $0x150] sm:$0xff] }
 0x6a5   :  { %v3542_v61 = vmax.f32 %v3414_v60, 0.0  ;;  %v3543_v6 = vmax.f32 %v3415_v14, 0.0  ;;  %4448 = vmatpush.msra.mxu1 %v3778_v38 }
 0x6a6   :  { %v4116_v36 = vpop.f32.mrf.mxu2  ;;  %v4229_v42 = vpop.f32.mrf.mxu3 }
 0x6a7   :  { %v10852_v13 = vadd.f32 %v4229_v42, %v4116_v36  ;;  %v10854_v28 = vpop.f32.mrf.mxu0  ;;  %v10856_v48 = vpop.f32.mrf.mxu1  ;;  %v10858_v40 = vmax.f32 %v3534_v16, %v3542_v61  ;;  %v10860_v44 = vmax.f32 %v3535_v55, %v3543_v6  ;;  %v3747_v16 = vld [vmem:[%s13284_s3 + $0x58] sm:$0xff]  ;;  %v14377_v61 = vld [vmem:[#allocation241_spill] sm:$0xff]  ;;  %v14378_v6 = vld [vmem:[#allocation26_spill] sm:$0xff] }
 0x6a8   :  { %14365 = vst [vmem:[#allocation244_spill] sm:$0xff] %v10854_v28  ;;  %v3779_v55 = vld [vmem:[%s13284_s3 + $0x158] sm:$0xff]  ;;  %4561 = vmatpush.msra.mxu2 %v3747_v16 }
 0x6a9   :  { %14366 = vst [vmem:[#allocation15_spill] sm:$0xff] %v10856_v48  ;;  %4674 = vmatpush.msra.mxu3 %v3779_v55 }
 0x6aa   :  { %14367 = vst [vmem:[#allocation245_spill] sm:$0xff] %v10858_v40  ;;  %3940 = vmatmul.f32.gmra.mxu0 %v14369_v50  ;;  %4053 = vmatmul.f32.gmra.mxu1 %v14370_v43 }
 0x6ab   :  { %14368 = vst [vmem:[#allocation30_spill] sm:$0xff] %v10860_v44  ;;  %4166 = vmatmul.f32.gmra.mxu2 %v14369_v50  ;;  %4279 = vmatmul.f32.gmra.mxu3 %v14370_v43 }
 0x6ae   :  { %v4119_v4 = vpop.f32.mrf.mxu2  ;;  %v4232_v21 = vpop.f32.mrf.mxu3 }
 0x6af   :  { %v10872_v39 = vadd.f32 %v4232_v21, %v4119_v4  ;;  %v10874_v25 = vpop.f32.mrf.mxu0  ;;  %v10876_v7 = vpop.f32.mrf.mxu1  ;;  %v3746_v21 = vld [vmem:[%s13284_s3 + $0x50] sm:$0xff] }
 0x6b0   :  { %14371 = vst [vmem:[#allocation260_spill] sm:$0xff] %v10874_v25  ;;  %4335 = vmatpush.msra.mxu0 %v3746_v21  ;;  %v3737_v25 = vld [vmem:[%s13284_s3 + $0x8] sm:$0xff] }
 0x6b1   :  { %14372 = vst [vmem:[#allocation31_spill] sm:$0xff] %v10876_v7 }
 0x6b2   :  { %3943 = vmatmul.f32.gmra.mxu0 %v14373_v1  ;;  %4056 = vmatmul.f32.gmra.mxu1 %v14374_v12 }
 0x6b3   :  { %4169 = vmatmul.f32.gmra.mxu2 %v14373_v1  ;;  %4282 = vmatmul.f32.gmra.mxu3 %v14374_v12 }
 0x6b6   :  { %v4122_v0 = vpop.f32.mrf.mxu2  ;;  %v4235_v2 = vpop.f32.mrf.mxu3 }
 0x6b7   :  { %v10888_v47 = vadd.f32 %v4235_v2, %v4122_v0  ;;  %v10890_v60 = vpop.f32.mrf.mxu0  ;;  %v10892_v14 = vpop.f32.mrf.mxu1 }
 0x6b8   :  { %14375 = vst [vmem:[#allocation261_spill] sm:$0xff] %v10890_v60 }
 0x6b9   :  { %14376 = vst [vmem:[#allocation32_spill] sm:$0xff] %v10892_v14 }
 0x6ba   :  { %3946 = vmatmul.f32.gmra.mxu0 %v14377_v61  ;;  %4059 = vmatmul.f32.gmra.mxu1 %v14378_v6 }
 0x6bb   :  { %4172 = vmatmul.f32.gmra.mxu2 %v14377_v61  ;;  %4285 = vmatmul.f32.gmra.mxu3 %v14378_v6 }
 0x6be   :  { %v4125_v36 = vpop.f32.mrf.mxu2  ;;  %v4238_v42 = vpop.f32.mrf.mxu3 }
 0x6bf   :  { %v10904_v35 = vadd.f32 %v4238_v42, %v4125_v36  ;;  %v10906_v46 = vpop.f32.mrf.mxu0  ;;  %v10908_v4 = vpop.f32.mrf.mxu1  ;;  %v3745_v36 = vld [vmem:[%s13284_s3 + $0x48] sm:$0xff] }
 0x6c0   :  { %14379 = vst [vmem:[#allocation262_spill] sm:$0xff] %v10906_v46  ;;  %v3777_v42 = vld [vmem:[%s13284_s3 + $0x148] sm:$0xff]  ;;  %4562 = vmatpush.msra.mxu2 %v3745_v36  ;;  %v3744_v36 = vld [vmem:[%s13284_s3 + $0x40] sm:$0xff] }
 0x6c1   :  { %14380 = vst [vmem:[#allocation33_spill] sm:$0xff] %v10908_v4  ;;  %4675 = vmatpush.msra.mxu3 %v3777_v42  ;;  %v3776_v42 = vld [vmem:[%s13284_s3 + $0x140] sm:$0xff]  ;;  %4336 = vmatpush.msra.mxu0 %v3744_v36  ;;  %v3743_v36 = vld [vmem:[%s13284_s3 + $0x38] sm:$0xff] }
 0x6c2   :  { %3949 = vmatmul.f32.gmra.mxu0 %v10322_v45  ;;  %4062 = vmatmul.f32.gmra.mxu1 %v10324_v34 }
 0x6c3   :  { %4175 = vmatmul.f32.gmra.mxu2 %v10322_v45  ;;  %4288 = vmatmul.f32.gmra.mxu3 %v10324_v34 }
 0x6c4   :  { %4449 = vmatpush.msra.mxu1 %v3776_v42  ;;  %v3775_v42 = vld [vmem:[%s13284_s3 + $0x138] sm:$0xff]  ;;  %4563 = vmatpush.msra.mxu2 %v3743_v36  ;;  %v3742_v36 = vld [vmem:[%s13284_s3 + $0x30] sm:$0xff] }
 0x6c5   :  { %4676 = vmatpush.msra.mxu3 %v3775_v42  ;;  %v3774_v42 = vld [vmem:[%s13284_s3 + $0x130] sm:$0xff]  ;;  %4337 = vmatpush.msra.mxu0 %v3742_v36  ;;  %v3741_v36 = vld [vmem:[%s13284_s3 + $0x28] sm:$0xff] }
 0x6c6   :  { %v4128_v49 = vpop.f32.mrf.mxu2  ;;  %v4241_v0 = vpop.f32.mrf.mxu3  ;;  %4450 = vmatpush.msra.mxu1 %v3774_v42  ;;  %v3773_v42 = vld [vmem:[%s13284_s3 + $0x128] sm:$0xff]  ;;  %4564 = vmatpush.msra.mxu2 %v3741_v36  ;;  %v3740_v36 = vld [vmem:[%s13284_s3 + $0x20] sm:$0xff] }
 0x6c7   :  { %v10920_v2 = vadd.f32 %v4241_v0, %v4128_v49  ;;  %v10922_v16 = vpop.f32.mrf.mxu0  ;;  %v10924_v55 = vpop.f32.mrf.mxu1  ;;  %4677 = vmatpush.msra.mxu3 %v3773_v42  ;;  %v3772_v42 = vld [vmem:[%s13284_s3 + $0x120] sm:$0xff]  ;;  %4338 = vmatpush.msra.mxu0 %v3740_v36  ;;  %v3739_v36 = vld [vmem:[%s13284_s3 + $0x18] sm:$0xff] }
 0x6c8   :  { %14381 = vst [vmem:[#allocation263_spill] sm:$0xff] %v10922_v16  ;;  %4451 = vmatpush.msra.mxu1 %v3772_v42  ;;  %v3771_v42 = vld [vmem:[%s13284_s3 + $0x118] sm:$0xff]  ;;  %4565 = vmatpush.msra.mxu2 %v3739_v36  ;;  %v3738_v36 = vld [vmem:[%s13284_s3 + $0x10] sm:$0xff] }
 0x6c9   :  { %14382 = vst [vmem:[#allocation18_spill] sm:$0xff] %v10924_v55  ;;  %4678 = vmatpush.msra.mxu3 %v3771_v42  ;;  %v3770_v42 = vld [vmem:[%s13284_s3 + $0x110] sm:$0xff]  ;;  %4339 = vmatpush.msra.mxu0 %v3738_v36  ;;  %v3769_v36 = vld [vmem:[%s13284_s3 + $0x108] sm:$0xff] }
 0x6ca   :  { %3952 = vmatmul.f32.gmra.mxu0 %v10349_v3  ;;  %4065 = vmatmul.f32.gmra.mxu1 %v10351_v58 }
 0x6cb   :  { %4178 = vmatmul.f32.gmra.mxu2 %v10349_v3  ;;  %4291 = vmatmul.f32.gmra.mxu3 %v10351_v58 }
 0x6cc   :  { %4452 = vmatpush.msra.mxu1 %v3770_v42  ;;  %4566 = vmatpush.msra.mxu2 %v3737_v25 }
 0x6cd   :  { %4679 = vmatpush.msra.mxu3 %v3769_v36 }
 0x6ce   :  { %v4131_v21 = vpop.f32.mrf.mxu2  ;;  %v4244_v38 = vpop.f32.mrf.mxu3 }
 0x6cf   :  { %v10936_v49 = vadd.f32 %v4244_v38, %v4131_v21  ;;  %v10938_v0 = vpop.f32.mrf.mxu0  ;;  %v10940_v55 = vpop.f32.mrf.mxu1 }
 0x6d0   :  { %14383 = vst [vmem:[#allocation248_spill] sm:$0xff] %v10938_v0 }
 0x6d1   :  { %14384 = vst [vmem:[#allocation19_spill] sm:$0xff] %v10940_v55 }
 0x6d2   :  { %3955 = vmatmul.f32.gmra.mxu0 %v10382_v31  ;;  %4068 = vmatmul.f32.gmra.mxu1 %v10384_v37 }
 0x6d3   :  { %4181 = vmatmul.f32.gmra.mxu2 %v10382_v31  ;;  %4294 = vmatmul.f32.gmra.mxu3 %v10384_v37 }
 0x6d6   :  { %v4134_v21 = vpop.f32.mrf.mxu2  ;;  %v4247_v38 = vpop.f32.mrf.mxu3 }
 0x6d7   :  { %v10952_v55 = vadd.f32 %v4247_v38, %v4134_v21  ;;  %v10954_v0 = vpop.f32.mrf.mxu0  ;;  %v10956_v16 = vpop.f32.mrf.mxu1 }
 0x6d8   :  { %14385 = vst [vmem:[#allocation249_spill] sm:$0xff] %v10954_v0 }
 0x6d9   :  { %14386 = vst [vmem:[#allocation34_spill] sm:$0xff] %v10956_v16 }
 0x6da   :  { %3958 = vmatmul.f32.gmra.mxu0 %v10408_v53  ;;  %4071 = vmatmul.f32.gmra.mxu1 %v10410_v59 }
 0x6db   :  { %4184 = vmatmul.f32.gmra.mxu2 %v10408_v53  ;;  %4297 = vmatmul.f32.gmra.mxu3 %v10410_v59 }
 0x6de   :  { %v4137_v21 = vpop.f32.mrf.mxu2  ;;  %v4250_v38 = vpop.f32.mrf.mxu3 }
 0x6df   :  { %v10968_v16 = vadd.f32 %v4250_v38, %v4137_v21  ;;  %v10970_v0 = vpop.f32.mrf.mxu0  ;;  %v10972_v4 = vpop.f32.mrf.mxu1 }
 0x6e0   :  { %14387 = vst [vmem:[#allocation264_spill] sm:$0xff] %v10970_v0 }
 0x6e1   :  { %14388 = vst [vmem:[#allocation35_spill] sm:$0xff] %v10972_v4 }
 0x6e2   :  { %3961 = vmatmul.f32.gmra.mxu0 %v10538_v63  ;;  %4074 = vmatmul.f32.gmra.mxu1 %v10540_v10 }
 0x6e3   :  { %4187 = vmatmul.f32.gmra.mxu2 %v10538_v63  ;;  %4300 = vmatmul.f32.gmra.mxu3 %v10540_v10 }
 0x6e6   :  { %v4140_v21 = vpop.f32.mrf.mxu2  ;;  %v4253_v38 = vpop.f32.mrf.mxu3 }
 0x6e7   :  { %v10984_v4 = vadd.f32 %v4253_v38, %v4140_v21  ;;  %v10986_v0 = vpop.f32.mrf.mxu0  ;;  %v10988_v46 = vpop.f32.mrf.mxu1 }
 0x6e8   :  { %14389 = vst [vmem:[#allocation265_spill] sm:$0xff] %v10986_v0 }
 0x6e9   :  { %14390 = vst [vmem:[#allocation36_spill] sm:$0xff] %v10988_v46 }
 0x6ea   :  { %3964 = vmatmul.f32.gmra.mxu0 %v10572_v11  ;;  %4077 = vmatmul.f32.gmra.mxu1 %v10574_v26 }
 0x6eb   :  { %4190 = vmatmul.f32.gmra.mxu2 %v10572_v11  ;;  %4303 = vmatmul.f32.gmra.mxu3 %v10574_v26 }
 0x6ee   :  { %v4143_v21 = vpop.f32.mrf.mxu2  ;;  %v4256_v38 = vpop.f32.mrf.mxu3 }
 0x6ef   :  { %v11000_v46 = vadd.f32 %v4256_v38, %v4143_v21  ;;  %v11002_v0 = vpop.f32.mrf.mxu0  ;;  %v11004_v14 = vpop.f32.mrf.mxu1 }
 0x6f0   :  { %14391 = vst [vmem:[#allocation266_spill] sm:$0xff] %v11002_v0 }
 0x6f1   :  { %14392 = vst [vmem:[#allocation37_spill] sm:$0xff] %v11004_v14 }
 0x6f2   :  { %3967 = vmatmul.f32.gmra.mxu0 %v10606_v54  ;;  %4080 = vmatmul.f32.gmra.mxu1 %v10608_v33 }
 0x6f3   :  { %4193 = vmatmul.f32.gmra.mxu2 %v10606_v54  ;;  %4306 = vmatmul.f32.gmra.mxu3 %v10608_v33 }
 0x6f6   :  { %v4146_v21 = vpop.f32.mrf.mxu2  ;;  %v4259_v38 = vpop.f32.mrf.mxu3 }
 0x6f7   :  { %v11016_v14 = vadd.f32 %v4259_v38, %v4146_v21  ;;  %v11018_v0 = vpop.f32.mrf.mxu0  ;;  %v11020_v60 = vpop.f32.mrf.mxu1 }
 0x6f8   :  { %14393 = vst [vmem:[#allocation267_spill] sm:$0xff] %v11018_v0 }
 0x6f9   :  { %14394 = vst [vmem:[#allocation22_spill] sm:$0xff] %v11020_v60 }
 0x6fa   :  { %3970 = vmatmul.f32.gmra.mxu0 %v10632_v29  ;;  %4083 = vmatmul.f32.gmra.mxu1 %v10634_v8 }
 0x6fb   :  { %4196 = vmatmul.f32.gmra.mxu2 %v10632_v29  ;;  %4309 = vmatmul.f32.gmra.mxu3 %v10634_v8 }
 0x6fe   :  { %v4149_v21 = vpop.f32.mrf.mxu2  ;;  %v4262_v38 = vpop.f32.mrf.mxu3 }
 0x6ff   :  { %v11032_v60 = vadd.f32 %v4262_v38, %v4149_v21  ;;  %v11034_v0 = vpop.f32.mrf.mxu0  ;;  %v11036_v7 = vpop.f32.mrf.mxu1  ;;  %v3736_v21 = vld [vmem:[%s13284_s3] sm:$0xff] }
 0x700   :  { %14395 = vst [vmem:[#allocation252_spill] sm:$0xff] %v11034_v0  ;;  %v3768_v38 = vld [vmem:[%s13284_s3 + $0x100] sm:$0xff]  ;;  %4340 = vmatpush.msra.mxu0 %v3736_v21 }
 0x701   :  { %14396 = vst [vmem:[#allocation23_spill] sm:$0xff] %v11036_v7  ;;  %4453 = vmatpush.msra.mxu1 %v3768_v38 }
 0x702   :  { %3973 = vmatmul.f32.gmra.mxu0 %v10768_v27  ;;  %4086 = vmatmul.f32.gmra.mxu1 %v10770_v9 }
 0x703   :  { %4199 = vmatmul.f32.gmra.mxu2 %v10768_v27  ;;  %4312 = vmatmul.f32.gmra.mxu3 %v10770_v9 }
 0x706   :  { %v4152_v42 = vpop.f32.mrf.mxu2  ;;  %v4265_v7 = vpop.f32.mrf.mxu3 }
 0x707   :  { %v11060_v0 = vadd.f32 %v4265_v7, %v4152_v42  ;;  %v11062_v25 = vpop.f32.mrf.mxu0  ;;  %v11064_v48 = vpop.f32.mrf.mxu1 }
 0x708   :  { %14397 = vst [vmem:[#allocation253_spill] sm:$0xff] %v11062_v25 }
 0x709   :  { %14398 = vst [vmem:[#allocation38_spill] sm:$0xff] %v11064_v48 }
 0x70a   :  { %3976 = vmatmul.f32.gmra.mxu0 %v10796_v51  ;;  %4089 = vmatmul.f32.gmra.mxu1 %v10798_v32 }
 0x70b   :  { %4202 = vmatmul.f32.gmra.mxu2 %v10796_v51  ;;  %4315 = vmatmul.f32.gmra.mxu3 %v10798_v32 }
 0x70e   :  { %v4155_v9 = vpop.f32.mrf.mxu2  ;;  %v4268_v21 = vpop.f32.mrf.mxu3 }
 0x70f   :  { %v11070_v38 = vadd.f32 %v4268_v21, %v4155_v9  ;;  %v11072_v36 = vpop.f32.mrf.mxu0  ;;  %v11074_v7 = vpop.f32.mrf.mxu1  ;;  %v6838_v21 = vld [vmem:[%s13284_s3 + $0x4f8] sm:$0xff] }
 0x710   :  { %14399 = vst [vmem:[#allocation268_spill] sm:$0xff] %v11072_v36  ;;  %5132 = vmatpush.msrb.mxu2 %v6838_v21  ;;  %v6869_v21 = vld [vmem:[%s13284_s3 + $0x5f0] sm:$0xff] }
 0x711   :  { %14400 = vst [vmem:[#allocation39_spill] sm:$0xff] %v11074_v7  ;;  %v6870_v7 = vld [vmem:[%s13284_s3 + $0x5f8] sm:$0xff]  ;;  %5019 = vmatpush.msrb.mxu1 %v6869_v21  ;;  %v6868_v21 = vld [vmem:[%s13284_s3 + $0x5e8] sm:$0xff] }
 0x712   :  { %3979 = vmatmul.f32.gmra.mxu0 %v10840_v62  ;;  %4092 = vmatmul.f32.gmra.mxu1 %v10842_v30 }
 0x713   :  { %4205 = vmatmul.f32.gmra.mxu2 %v10840_v62  ;;  %4318 = vmatmul.f32.gmra.mxu3 %v10842_v30 }
 0x714   :  { %5245 = vmatpush.msrb.mxu3 %v6870_v7  ;;  %v6837_v7 = vld [vmem:[%s13284_s3 + $0x4f0] sm:$0xff] }
 0x715   :  { %4906 = vmatpush.msrb.mxu0 %v6837_v7  ;;  %v6836_v7 = vld [vmem:[%s13284_s3 + $0x4e8] sm:$0xff] }
 0x716   :  { %v4158_v42 = vpop.f32.mrf.mxu2  ;;  %v4271_v48 = vpop.f32.mrf.mxu3  ;;  %5133 = vmatpush.msrb.mxu2 %v6836_v7  ;;  %5246 = vmatpush.msrb.mxu3 %v6868_v21  ;;  %v6835_v7 = vld [vmem:[%s13284_s3 + $0x4e0] sm:$0xff] }
 0x717   :  { %v11080_v25 = vadd.f32 %v4271_v48, %v4158_v42  ;;  %v11082_v32 = vpop.f32.mrf.mxu0  ;;  %v11084_v9 = vpop.f32.mrf.mxu1  ;;  %v6867_v21 = vld [vmem:[%s13284_s3 + $0x5e0] sm:$0xff]  ;;  %4907 = vmatpush.msrb.mxu0 %v6835_v7  ;;  %v6834_v7 = vld [vmem:[%s13284_s3 + $0x4d8] sm:$0xff] }
 0x718   :  { %14401 = vst [vmem:[#allocation269_spill] sm:$0xff] %v11082_v32  ;;  %5020 = vmatpush.msrb.mxu1 %v6867_v21  ;;  %v6866_v21 = vld [vmem:[%s13284_s3 + $0x5d8] sm:$0xff]  ;;  %5134 = vmatpush.msrb.mxu2 %v6834_v7  ;;  %v6833_v7 = vld [vmem:[%s13284_s3 + $0x4d0] sm:$0xff] }
 0x719   :  { %14402 = vst [vmem:[#allocation40_spill] sm:$0xff] %v11084_v9  ;;  %5247 = vmatpush.msrb.mxu3 %v6866_v21  ;;  %v6865_v21 = vld [vmem:[%s13284_s3 + $0x5d0] sm:$0xff]  ;;  %4908 = vmatpush.msrb.mxu0 %v6833_v7  ;;  %v6832_v7 = vld [vmem:[%s13284_s3 + $0x4c8] sm:$0xff] }
 0x71a   :  { %3982 = vmatmul.f32.gmra.mxu0 %v10858_v40  ;;  %4095 = vmatmul.f32.gmra.mxu1 %v10860_v44 }
 0x71b   :  { %4208 = vmatmul.f32.gmra.mxu2 %v10858_v40  ;;  %4321 = vmatmul.f32.gmra.mxu3 %v10860_v44  ;;  %v13363_v40 = vmov 0.0  }
 0x71c   :  { %5021 = vmatpush.msrb.mxu1 %v6865_v21  ;;  %v6864_v21 = vld [vmem:[%s13284_s3 + $0x5c8] sm:$0xff]  ;;  %5135 = vmatpush.msrb.mxu2 %v6832_v7  ;;  %v6831_v7 = vld [vmem:[%s13284_s3 + $0x4c0] sm:$0xff] }
 0x71d   :  { %5248 = vmatpush.msrb.mxu3 %v6864_v21  ;;  %v6863_v21 = vld [vmem:[%s13284_s3 + $0x5c0] sm:$0xff]  ;;  %4909 = vmatpush.msrb.mxu0 %v6831_v7  ;;  %v6830_v7 = vld [vmem:[%s13284_s3 + $0x4b8] sm:$0xff] }
 0x71e   :  { %v4161_v48 = vpop.f32.mrf.mxu2  ;;  %v4274_v42 = vpop.f32.mrf.mxu3  ;;  %5022 = vmatpush.msrb.mxu1 %v6863_v21  ;;  %v6862_v21 = vld [vmem:[%s13284_s3 + $0x5b8] sm:$0xff]  ;;  %5136 = vmatpush.msrb.mxu2 %v6830_v7  ;;  %v6829_v7 = vld [vmem:[%s13284_s3 + $0x4b0] sm:$0xff] }
 0x71f   :  { %v11096_v9 = vadd.f32 %v4274_v42, %v4161_v48  ;;  %v11098_v32 = vpop.f32.mrf.mxu0  ;;  %v11100_v36 = vpop.f32.mrf.mxu1  ;;  %5249 = vmatpush.msrb.mxu3 %v6862_v21  ;;  %v6861_v21 = vld [vmem:[%s13284_s3 + $0x5b0] sm:$0xff]  ;;  %4910 = vmatpush.msrb.mxu0 %v6829_v7  ;;  %v6828_v7 = vld [vmem:[%s13284_s3 + $0x4a8] sm:$0xff] }
 0x720   :  { %14403 = vst [vmem:[#allocation270_spill] sm:$0xff] %v11098_v32  ;;  %5023 = vmatpush.msrb.mxu1 %v6861_v21  ;;  %v6860_v21 = vld [vmem:[%s13284_s3 + $0x5a8] sm:$0xff]  ;;  %5137 = vmatpush.msrb.mxu2 %v6828_v7  ;;  %v6827_v7 = vld [vmem:[%s13284_s3 + $0x4a0] sm:$0xff] }
 0x721   :  { %14404 = vst [vmem:[#allocation41_spill] sm:$0xff] %v11100_v36  ;;  %5250 = vmatpush.msrb.mxu3 %v6860_v21  ;;  %v6859_v21 = vld [vmem:[%s13284_s3 + $0x5a0] sm:$0xff]  ;;  %4911 = vmatpush.msrb.mxu0 %v6827_v7  ;;  %v6826_v7 = vld [vmem:[%s13284_s3 + $0x498] sm:$0xff] }
 0x722   :  { %4341 = vmatmul.f32.vlgmr.msra.gmra.mxu0 %v13363_v40  ;;  %4454 = vmatmul.f32.vlgmr.msra.gmra.mxu1 %v13363_v40 }
 0x723   :  { %4567 = vmatmul.f32.vlgmr.msra.gmra.mxu2 %v13363_v40  ;;  %4680 = vmatmul.f32.vlgmr.msra.gmra.mxu3 %v13363_v40 }
 0x724   :  { %5024 = vmatpush.msrb.mxu1 %v6859_v21  ;;  %v6858_v21 = vld [vmem:[%s13284_s3 + $0x598] sm:$0xff]  ;;  %5138 = vmatpush.msrb.mxu2 %v6826_v7  ;;  %v6825_v7 = vld [vmem:[%s13284_s3 + $0x490] sm:$0xff] }
 0x725   :  { %5251 = vmatpush.msrb.mxu3 %v6858_v21  ;;  %v6857_v21 = vld [vmem:[%s13284_s3 + $0x590] sm:$0xff]  ;;  %4912 = vmatpush.msrb.mxu0 %v6825_v7  ;;  %v14456_v7 = vld [vmem:[#allocation242_spill] sm:$0xff] }
 0x726   :  { %v4164_v48 = vpop.f32.mrf.mxu2  ;;  %v4277_v42 = vpop.f32.mrf.mxu3  ;;  %5025 = vmatpush.msrb.mxu1 %v6857_v21  ;;  %v6824_v21 = vld [vmem:[%s13284_s3 + $0x488] sm:$0xff] }
 0x727   :  { %v11112_v36 = vadd.f32 %v4277_v42, %v4164_v48  ;;  %v11114_v32 = vpop.f32.mrf.mxu0  ;;  %v11116_v44 = vpop.f32.mrf.mxu1  ;;  %5139 = vmatpush.msrb.mxu2 %v6824_v21  ;;  %v14461_v21 = vld [vmem:[#allocation243_spill] sm:$0xff] }
 0x728   :  { %14405 = vst [vmem:[#allocation271_spill] sm:$0xff] %v11114_v32 }
 0x729   :  { %14406 = vst [vmem:[#allocation44_spill] sm:$0xff] %v11116_v44 }
 0x72a   :  { %4344 = vmatmul.f32.gmra.mxu0 %v13363_v40  ;;  %4457 = vmatmul.f32.gmra.mxu1 %v13363_v40 }
 0x72b   :  { %4570 = vmatmul.f32.gmra.mxu2 %v13363_v40  ;;  %4683 = vmatmul.f32.gmra.mxu3 %v13363_v40 }
 0x72e   :  { %v4167_v48 = vpop.f32.mrf.mxu2  ;;  %v4280_v42 = vpop.f32.mrf.mxu3 }
 0x72f   :  { %v11128_v44 = vadd.f32 %v4280_v42, %v4167_v48  ;;  %v11130_v32 = vpop.f32.mrf.mxu0  ;;  %v11132_v30 = vpop.f32.mrf.mxu1 }
 0x730   :  { %14407 = vst [vmem:[#allocation274_spill] sm:$0xff] %v11130_v32 }
 0x731   :  { %14408 = vst [vmem:[#allocation45_spill] sm:$0xff] %v11132_v30 }
 0x732   :  { %4347 = vmatmul.f32.gmra.mxu0 %v13363_v40  ;;  %4460 = vmatmul.f32.gmra.mxu1 %v13363_v40 }
 0x733   :  { %4573 = vmatmul.f32.gmra.mxu2 %v13363_v40  ;;  %4686 = vmatmul.f32.gmra.mxu3 %v13363_v40 }
 0x736   :  { %v4170_v48 = vpop.f32.mrf.mxu2  ;;  %v4283_v42 = vpop.f32.mrf.mxu3 }
 0x737   :  { %v11144_v30 = vadd.f32 %v4283_v42, %v4170_v48  ;;  %v11146_v32 = vpop.f32.mrf.mxu0  ;;  %v11148_v62 = vpop.f32.mrf.mxu1 }
 0x738   :  { %14410 = vst [vmem:[#allocation48_spill] sm:$0xff] %v11146_v32 }
 0x739   :  { %14409 = vst [vmem:[#allocation275_spill] sm:$0xff] %v11144_v30  ;;  %v14476_v30 = vld [vmem:[#allocation250_spill] sm:$0xff] }
 0x73a   :  { %14411 = vst [vmem:[#allocation278_spill] sm:$0xff] %v11148_v62  ;;  %4350 = vmatmul.f32.gmra.mxu0 %v13363_v40  ;;  %4463 = vmatmul.f32.gmra.mxu1 %v13363_v40 }
 0x73b   :  { %4576 = vmatmul.f32.gmra.mxu2 %v13363_v40  ;;  %4689 = vmatmul.f32.gmra.mxu3 %v13363_v40 }
 0x73e   :  { %v4173_v48 = vpop.f32.mrf.mxu2  ;;  %v4286_v42 = vpop.f32.mrf.mxu3 }
 0x73f   :  { %v11160_v62 = vadd.f32 %v4286_v42, %v4173_v48  ;;  %v11162_v32 = vpop.f32.mrf.mxu0  ;;  %v11164_v51 = vpop.f32.mrf.mxu1 }
 0x740   :  { %14413 = vst [vmem:[#allocation279_spill] sm:$0xff] %v11162_v32 }
 0x741   :  { %14412 = vst [vmem:[#allocation49_spill] sm:$0xff] %v11160_v62  ;;  %v14451_v62 = vld [vmem:[#allocation239_spill] sm:$0xff] }
 0x742   :  { %14414 = vst [vmem:[#allocation52_spill] sm:$0xff] %v11164_v51  ;;  %4353 = vmatmul.f32.gmra.mxu0 %v9362_v52  ;;  %4466 = vmatmul.f32.gmra.mxu1 %v9364_v24 }
 0x743   :  { %4579 = vmatmul.f32.gmra.mxu2 %v9362_v52  ;;  %4692 = vmatmul.f32.gmra.mxu3 %v9364_v24  ;;  %v14418_v52 = vld [vmem:[#allocation464_spill] sm:$0xff]  ;;  %v14419_v24 = vld [vmem:[#allocation465_spill] sm:$0xff] }
 0x746   :  { %v4176_v48 = vpop.f32.mrf.mxu2  ;;  %v4289_v42 = vpop.f32.mrf.mxu3 }
 0x747   :  { %v11176_v40 = vadd.f32 %v4289_v42, %v4176_v48  ;;  %v11178_v51 = vpop.f32.mrf.mxu0  ;;  %v11180_v32 = vpop.f32.mrf.mxu1 }
 0x748   :  { %14416 = vst [vmem:[#allocation53_spill] sm:$0xff] %v11178_v51 }
 0x749   :  { %14415 = vst [vmem:[#allocation282_spill] sm:$0xff] %v11176_v40  ;;  %v14450_v40 = vld [vmem:[#allocation9_spill] sm:$0xff] }
 0x74a   :  { %14417 = vst [vmem:[#allocation283_spill] sm:$0xff] %v11180_v32  ;;  %4356 = vmatmul.f32.gmra.mxu0 %v14418_v52  ;;  %4469 = vmatmul.f32.gmra.mxu1 %v14419_v24 }
 0x74b   :  { %4582 = vmatmul.f32.gmra.mxu2 %v14418_v52  ;;  %4695 = vmatmul.f32.gmra.mxu3 %v14419_v24  ;;  %v14423_v52 = vld [vmem:[#allocation234_spill] sm:$0xff]  ;;  %v14424_v24 = vld [vmem:[#allocation5_spill] sm:$0xff] }
 0x74e   :  { %v4179_v48 = vpop.f32.mrf.mxu2  ;;  %v4292_v42 = vpop.f32.mrf.mxu3 }
 0x74f   :  { %v11192_v32 = vadd.f32 %v4292_v42, %v4179_v48  ;;  %v11194_v51 = vpop.f32.mrf.mxu0  ;;  %v11196_v27 = vpop.f32.mrf.mxu1 }
 0x750   :  { %14421 = vst [vmem:[#allocation286_spill] sm:$0xff] %v11194_v51 }
 0x751   :  { %14420 = vst [vmem:[#allocation56_spill] sm:$0xff] %v11192_v32  ;;  %v14446_v32 = vld [vmem:[#allocation238_spill] sm:$0xff] }
 0x752   :  { %14422 = vst [vmem:[#allocation57_spill] sm:$0xff] %v11196_v27  ;;  %4359 = vmatmul.f32.gmra.mxu0 %v14423_v52  ;;  %4472 = vmatmul.f32.gmra.mxu1 %v14424_v24 }
 0x753   :  { %4585 = vmatmul.f32.gmra.mxu2 %v14423_v52  ;;  %4698 = vmatmul.f32.gmra.mxu3 %v14424_v24  ;;  %v14428_v52 = vld [vmem:[#allocation235_spill] sm:$0xff]  ;;  %v14429_v24 = vld [vmem:[#allocation6_spill] sm:$0xff] }
 0x756   :  { %v4182_v48 = vpop.f32.mrf.mxu2  ;;  %v4295_v42 = vpop.f32.mrf.mxu3 }
 0x757   :  { %v11208_v27 = vadd.f32 %v4295_v42, %v4182_v48  ;;  %v11210_v51 = vpop.f32.mrf.mxu0  ;;  %v11212_v28 = vpop.f32.mrf.mxu1 }
 0x758   :  { %14426 = vst [vmem:[#allocation42_spill] sm:$0xff] %v11210_v51 }
 0x759   :  { %14425 = vst [vmem:[#allocation287_spill] sm:$0xff] %v11208_v27  ;;  %v14445_v27 = vld [vmem:[#allocation8_spill] sm:$0xff] }
 0x75a   :  { %14427 = vst [vmem:[#allocation272_spill] sm:$0xff] %v11212_v28  ;;  %4362 = vmatmul.f32.gmra.mxu0 %v14428_v52  ;;  %4475 = vmatmul.f32.gmra.mxu1 %v14429_v24 }
 0x75b   :  { %4588 = vmatmul.f32.gmra.mxu2 %v14428_v52  ;;  %4701 = vmatmul.f32.gmra.mxu3 %v14429_v24  ;;  %v14433_v52 = vld [vmem:[#allocation236_spill] sm:$0xff]  ;;  %v14434_v24 = vld [vmem:[#allocation7_spill] sm:$0xff] }
 0x75e   :  { %v4185_v48 = vpop.f32.mrf.mxu2  ;;  %v4298_v42 = vpop.f32.mrf.mxu3 }
 0x75f   :  { %v11224_v28 = vadd.f32 %v4298_v42, %v4185_v48  ;;  %v11226_v51 = vpop.f32.mrf.mxu0  ;;  %v11228_v41 = vpop.f32.mrf.mxu1 }
 0x760   :  { %14431 = vst [vmem:[#allocation273_spill] sm:$0xff] %v11226_v51 }
 0x761   :  { %14430 = vst [vmem:[#allocation43_spill] sm:$0xff] %v11224_v28  ;;  %v14441_v28 = vld [vmem:[#allocation237_spill] sm:$0xff] }
 0x762   :  { %14432 = vst [vmem:[#allocation58_spill] sm:$0xff] %v11228_v41  ;;  %4365 = vmatmul.f32.gmra.mxu0 %v14433_v52  ;;  %4478 = vmatmul.f32.gmra.mxu1 %v14434_v24 }
 0x763   :  { %4591 = vmatmul.f32.gmra.mxu2 %v14433_v52  ;;  %4704 = vmatmul.f32.gmra.mxu3 %v14434_v24 }
 0x766   :  { %v4188_v48 = vpop.f32.mrf.mxu2  ;;  %v4301_v42 = vpop.f32.mrf.mxu3 }
 0x767   :  { %v11240_v41 = vadd.f32 %v4301_v42, %v4188_v48  ;;  %v11242_v51 = vpop.f32.mrf.mxu0  ;;  %v11244_v15 = vpop.f32.mrf.mxu1 }
 0x768   :  { %14436 = vst [vmem:[#allocation59_spill] sm:$0xff] %v11242_v51 }
 0x769   :  { %14435 = vst [vmem:[#allocation288_spill] sm:$0xff] %v11240_v41 }
 0x76a   :  { %14437 = vst [vmem:[#allocation289_spill] sm:$0xff] %v11244_v15  ;;  %4368 = vmatmul.f32.gmra.mxu0 %v9581_v20  ;;  %4481 = vmatmul.f32.gmra.mxu1 %v9583_v19 }
 0x76b   :  { %4594 = vmatmul.f32.gmra.mxu2 %v9581_v20  ;;  %4707 = vmatmul.f32.gmra.mxu3 %v9583_v19 }
 0x76e   :  { %v4191_v48 = vpop.f32.mrf.mxu2  ;;  %v4304_v42 = vpop.f32.mrf.mxu3 }
 0x76f   :  { %v11256_v15 = vadd.f32 %v4304_v42, %v4191_v48  ;;  %v11258_v51 = vpop.f32.mrf.mxu0  ;;  %v11260_v41 = vpop.f32.mrf.mxu1 }
 0x770   :  { %14439 = vst [vmem:[#allocation290_spill] sm:$0xff] %v11258_v51 }
 0x771   :  { %14438 = vst [vmem:[#allocation60_spill] sm:$0xff] %v11256_v15 }
 0x772   :  { %14440 = vst [vmem:[#allocation61_spill] sm:$0xff] %v11260_v41  ;;  %4371 = vmatmul.f32.gmra.mxu0 %v9614_v18  ;;  %4484 = vmatmul.f32.gmra.mxu1 %v14441_v28 }
 0x773   :  { %4597 = vmatmul.f32.gmra.mxu2 %v9614_v18  ;;  %4710 = vmatmul.f32.gmra.mxu3 %v14441_v28 }
 0x776   :  { %v4194_v48 = vpop.f32.mrf.mxu2  ;;  %v4307_v42 = vpop.f32.mrf.mxu3 }
 0x777   :  { %v11272_v41 = vadd.f32 %v4307_v42, %v4194_v48  ;;  %v11274_v51 = vpop.f32.mrf.mxu0  ;;  %v11276_v15 = vpop.f32.mrf.mxu1 }
 0x778   :  { %14443 = vst [vmem:[#allocation46_spill] sm:$0xff] %v11274_v51 }
 0x779   :  { %14442 = vst [vmem:[#allocation291_spill] sm:$0xff] %v11272_v41 }
 0x77a   :  { %14444 = vst [vmem:[#allocation276_spill] sm:$0xff] %v11276_v15  ;;  %4374 = vmatmul.f32.gmra.mxu0 %v14445_v27  ;;  %4487 = vmatmul.f32.gmra.mxu1 %v14446_v32 }
 0x77b   :  { %4600 = vmatmul.f32.gmra.mxu2 %v14445_v27  ;;  %4713 = vmatmul.f32.gmra.mxu3 %v14446_v32  ;;  %v14455_v32 = vld [vmem:[#allocation12_spill] sm:$0xff]  ;;  %v14460_v27 = vld [vmem:[#allocation13_spill] sm:$0xff] }
 0x77e   :  { %v4197_v48 = vpop.f32.mrf.mxu2  ;;  %v4310_v42 = vpop.f32.mrf.mxu3 }
 0x77f   :  { %v11288_v15 = vadd.f32 %v4310_v42, %v4197_v48  ;;  %v11290_v51 = vpop.f32.mrf.mxu0  ;;  %v11292_v41 = vpop.f32.mrf.mxu1 }
 0x780   :  { %14448 = vst [vmem:[#allocation277_spill] sm:$0xff] %v11290_v51 }
 0x781   :  { %14447 = vst [vmem:[#allocation47_spill] sm:$0xff] %v11288_v15 }
 0x782   :  { %14449 = vst [vmem:[#allocation62_spill] sm:$0xff] %v11292_v41  ;;  %4377 = vmatmul.f32.gmra.mxu0 %v14450_v40  ;;  %4490 = vmatmul.f32.gmra.mxu1 %v14451_v62 }
 0x783   :  { %4603 = vmatmul.f32.gmra.mxu2 %v14450_v40  ;;  %4716 = vmatmul.f32.gmra.mxu3 %v14451_v62  ;;  %v6856_v62 = vld [vmem:[%s13284_s3 + $0x588] sm:$0xff]  ;;  %v6823_v40 = vld [vmem:[%s13284_s3 + $0x480] sm:$0xff] }
 0x784   :  { %5252 = vmatpush.msrb.mxu3 %v6856_v62  ;;  %4913 = vmatpush.msrb.mxu0 %v6823_v40 }
 0x786   :  { %v4200_v48 = vpop.f32.mrf.mxu2  ;;  %v4313_v42 = vpop.f32.mrf.mxu3 }
 0x787   :  { %v11304_v41 = vadd.f32 %v4313_v42, %v4200_v48  ;;  %v11306_v51 = vpop.f32.mrf.mxu0  ;;  %v11308_v15 = vpop.f32.mrf.mxu1 }
 0x788   :  { %14453 = vst [vmem:[#allocation63_spill] sm:$0xff] %v11306_v51 }
 0x789   :  { %14452 = vst [vmem:[#allocation292_spill] sm:$0xff] %v11304_v41 }
 0x78a   :  { %14454 = vst [vmem:[#allocation293_spill] sm:$0xff] %v11308_v15  ;;  %4380 = vmatmul.f32.gmra.mxu0 %v14455_v32  ;;  %4493 = vmatmul.f32.gmra.mxu1 %v14456_v7 }
 0x78b   :  { %4606 = vmatmul.f32.gmra.mxu2 %v14455_v32  ;;  %4719 = vmatmul.f32.gmra.mxu3 %v14456_v7  ;;  %v6855_v32 = vld [vmem:[%s13284_s3 + $0x580] sm:$0xff]  ;;  %v14466_v7 = vld [vmem:[#allocation246_spill] sm:$0xff] }
 0x78c   :  { %5026 = vmatpush.msrb.mxu1 %v6855_v32  ;;  %v6854_v32 = vld [vmem:[%s13284_s3 + $0x578] sm:$0xff] }
 0x78d   :  { %5253 = vmatpush.msrb.mxu3 %v6854_v32 }
 0x78e   :  { %v4203_v48 = vpop.f32.mrf.mxu2  ;;  %v4316_v42 = vpop.f32.mrf.mxu3 }
 0x78f   :  { %v11320_v15 = vadd.f32 %v4316_v42, %v4203_v48  ;;  %v11322_v51 = vpop.f32.mrf.mxu0  ;;  %v11324_v41 = vpop.f32.mrf.mxu1 }
 0x790   :  { %14458 = vst [vmem:[#allocation294_spill] sm:$0xff] %v11322_v51 }
 0x791   :  { %14457 = vst [vmem:[#allocation64_spill] sm:$0xff] %v11320_v15  ;;  %v14465_v15 = vld [vmem:[#allocation16_spill] sm:$0xff] }
 0x792   :  { %14459 = vst [vmem:[#allocation65_spill] sm:$0xff] %v11324_v41  ;;  %4383 = vmatmul.f32.gmra.mxu0 %v14460_v27  ;;  %4496 = vmatmul.f32.gmra.mxu1 %v14461_v21 }
 0x793   :  { %4609 = vmatmul.f32.gmra.mxu2 %v14460_v27  ;;  %4722 = vmatmul.f32.gmra.mxu3 %v14461_v21  ;;  %v6822_v27 = vld [vmem:[%s13284_s3 + $0x478] sm:$0xff]  ;;  %v14470_v21 = vld [vmem:[#allocation17_spill] sm:$0xff] }
 0x794   :  { %5140 = vmatpush.msrb.mxu2 %v6822_v27  ;;  %v14471_v27 = vld [vmem:[#allocation247_spill] sm:$0xff] }
 0x796   :  { %v4206_v62 = vpop.f32.mrf.mxu2  ;;  %v4319_v48 = vpop.f32.mrf.mxu3 }
 0x797   :  { %v11336_v42 = vadd.f32 %v4319_v48, %v4206_v62  ;;  %v11338_v41 = vpop.f32.mrf.mxu0  ;;  %v11340_v51 = vpop.f32.mrf.mxu1 }
 0x798   :  { %14463 = vst [vmem:[#allocation50_spill] sm:$0xff] %v11338_v41 }
 0x799   :  { %14462 = vst [vmem:[#allocation295_spill] sm:$0xff] %v11336_v42  ;;  %v6821_v42 = vld [vmem:[%s13284_s3 + $0x470] sm:$0xff] }
 0x79a   :  { %14464 = vst [vmem:[#allocation280_spill] sm:$0xff] %v11340_v51  ;;  %4386 = vmatmul.f32.gmra.mxu0 %v14465_v15  ;;  %4499 = vmatmul.f32.gmra.mxu1 %v14466_v7 }
 0x79b   :  { %4612 = vmatmul.f32.gmra.mxu2 %v14465_v15  ;;  %4725 = vmatmul.f32.gmra.mxu3 %v14466_v7  ;;  %v6853_v15 = vld [vmem:[%s13284_s3 + $0x570] sm:$0xff]  ;;  %v14475_v7 = vld [vmem:[#allocation20_spill] sm:$0xff] }
 0x79c   :  { %4914 = vmatpush.msrb.mxu0 %v6821_v42  ;;  %5027 = vmatpush.msrb.mxu1 %v6853_v15  ;;  %v6852_v15 = vld [vmem:[%s13284_s3 + $0x568] sm:$0xff] }
 0x79d   :  { %5254 = vmatpush.msrb.mxu3 %v6852_v15 }
 0x79e   :  { %v4209_v40 = vpop.f32.mrf.mxu2  ;;  %v4322_v62 = vpop.f32.mrf.mxu3 }
 0x79f   :  { %v11352_v48 = vadd.f32 %v4322_v62, %v4209_v40  ;;  %v11354_v51 = vpop.f32.mrf.mxu0  ;;  %v11356_v41 = vpop.f32.mrf.mxu1 }
 0x7a0   :  { %14468 = vst [vmem:[#allocation281_spill] sm:$0xff] %v11354_v51 }
 0x7a1   :  { %14467 = vst [vmem:[#allocation51_spill] sm:$0xff] %v11352_v48 }
 0x7a2   :  { %14469 = vst [vmem:[#allocation66_spill] sm:$0xff] %v11356_v41  ;;  %4389 = vmatmul.f32.gmra.mxu0 %v14470_v21  ;;  %4502 = vmatmul.f32.gmra.mxu1 %v14471_v27 }
 0x7a3   :  { %4615 = vmatmul.f32.gmra.mxu2 %v14470_v21  ;;  %4728 = vmatmul.f32.gmra.mxu3 %v14471_v27  ;;  %v6820_v27 = vld [vmem:[%s13284_s3 + $0x468] sm:$0xff] }
 0x7a4   :  { %5141 = vmatpush.msrb.mxu2 %v6820_v27 }
 0x7a6   :  { %v4568_v32 = vpop.f32.mrf.mxu2  ;;  %v4681_v40 = vpop.f32.mrf.mxu3 }
 0x7a7   :  { %v4569_v62 = vadd.f32 %v4568_v32, %v10852_v13  ;;  %v11369_v41 = vpop.f32.mrf.mxu0  ;;  %v11371_v51 = vpop.f32.mrf.mxu1 }
 0x7a8   :  { %14472 = vst [vmem:[#allocation296_spill] sm:$0xff] %v11369_v41  ;;  %v6819_v41 = vld [vmem:[%s13284_s3 + $0x460] sm:$0xff] }
 0x7a9   :  { %14473 = vst [vmem:[#allocation67_spill] sm:$0xff] %v11371_v51  ;;  %v11373_v48 = vadd.f32 %v4681_v40, %v4569_v62  ;;  %4915 = vmatpush.msrb.mxu0 %v6819_v41  ;;  %v6850_v41 = vld [vmem:[%s13284_s3 + $0x558] sm:$0xff] }
 0x7aa   :  { %4392 = vmatmul.f32.gmra.mxu0 %v14475_v7  ;;  %4505 = vmatmul.f32.gmra.mxu1 %v14476_v30 }
 0x7ab   :  { %14474 = vst [vmem:[#allocation297_spill] sm:$0xff] %v11373_v48  ;;  %4618 = vmatmul.f32.gmra.mxu2 %v14475_v7  ;;  %4731 = vmatmul.f32.gmra.mxu3 %v14476_v30  ;;  %v6851_v48 = vld [vmem:[%s13284_s3 + $0x560] sm:$0xff] }
 0x7ac   :  { %5028 = vmatpush.msrb.mxu1 %v6851_v48  ;;  %5255 = vmatpush.msrb.mxu3 %v6850_v41 }
 0x7ae   :  { %v4571_v13 = vpop.f32.mrf.mxu2  ;;  %v4684_v42 = vpop.f32.mrf.mxu3 }
 0x7af   :  { %v4572_v32 = vadd.f32 %v4571_v13, %v10872_v39  ;;  %v11386_v40 = vpop.f32.mrf.mxu0  ;;  %v11388_v62 = vpop.f32.mrf.mxu1 }
 0x7b0   :  { %14477 = vst [vmem:[#allocation68_spill] sm:$0xff] %v11388_v62  ;;  %v6818_v62 = vld [vmem:[%s13284_s3 + $0x458] sm:$0xff] }
 0x7b1   :  { %v11390_v51 = vadd.f32 %v4684_v42, %v4572_v32  ;;  %5142 = vmatpush.msrb.mxu2 %v6818_v62 }
 0x7b2   :  { %4395 = vmatmul.f32.gmra.mxu0 %v14336_v57  ;;  %4508 = vmatmul.f32.gmra.mxu1 %v14337_v23 }
 0x7b3   :  { %4621 = vmatmul.f32.gmra.mxu2 %v14336_v57  ;;  %4734 = vmatmul.f32.gmra.mxu3 %v14337_v23 }
 0x7b6   :  { %v4574_v39 = vpop.f32.mrf.mxu2  ;;  %v4687_v27 = vpop.f32.mrf.mxu3 }
 0x7b7   :  { %v4575_v15 = vadd.f32 %v4574_v39, %v10888_v47  ;;  %v11403_v13 = vpop.f32.mrf.mxu0  ;;  %v11405_v42 = vpop.f32.mrf.mxu1 }
 0x7b8   :  { %14478 = vst [vmem:[#allocation298_spill] sm:$0xff] %v11403_v13  ;;  %v6817_v13 = vld [vmem:[%s13284_s3 + $0x450] sm:$0xff] }
 0x7b9   :  { %14479 = vst [vmem:[#allocation69_spill] sm:$0xff] %v11405_v42  ;;  %v11407_v32 = vadd.f32 %v4687_v27, %v4575_v15  ;;  %4916 = vmatpush.msrb.mxu0 %v6817_v13  ;;  %v6848_v13 = vld [vmem:[%s13284_s3 + $0x548] sm:$0xff] }
 0x7ba   :  { %4398 = vmatmul.f32.gmra.mxu0 %v14354_v5  ;;  %4511 = vmatmul.f32.gmra.mxu1 %v14355_v22 }
 0x7bb   :  { %14480 = vst [vmem:[#allocation299_spill] sm:$0xff] %v11407_v32  ;;  %4624 = vmatmul.f32.gmra.mxu2 %v14354_v5  ;;  %4737 = vmatmul.f32.gmra.mxu3 %v14355_v22  ;;  %v6849_v32 = vld [vmem:[%s13284_s3 + $0x550] sm:$0xff] }
 0x7bc   :  { %5029 = vmatpush.msrb.mxu1 %v6849_v32  ;;  %5256 = vmatpush.msrb.mxu3 %v6848_v13 }
 0x7be   :  { %v4577_v47 = vpop.f32.mrf.mxu2  ;;  %v4690_v48 = vpop.f32.mrf.mxu3 }
 0x7bf   :  { %v4578_v39 = vadd.f32 %v4577_v47, %v10904_v35  ;;  %v11420_v27 = vpop.f32.mrf.mxu0  ;;  %v11422_v15 = vpop.f32.mrf.mxu1 }
 0x7c0   :  { %14481 = vst [vmem:[#allocation54_spill] sm:$0xff] %v11422_v15  ;;  %v6816_v15 = vld [vmem:[%s13284_s3 + $0x448] sm:$0xff] }
 0x7c1   :  { %v11424_v42 = vadd.f32 %v4690_v48, %v4578_v39  ;;  %5143 = vmatpush.msrb.mxu2 %v6816_v15 }
 0x7c2   :  { %4401 = vmatmul.f32.gmra.mxu0 %v10130_v56  ;;  %4514 = vmatmul.f32.gmra.mxu1 %v14364_v17 }
 0x7c3   :  { %4627 = vmatmul.f32.gmra.mxu2 %v10130_v56  ;;  %4740 = vmatmul.f32.gmra.mxu3 %v14364_v17 }
 0x7c6   :  { %v4580_v35 = vpop.f32.mrf.mxu2  ;;  %v4693_v62 = vpop.f32.mrf.mxu3 }
 0x7c7   :  { %v4581_v41 = vadd.f32 %v4580_v35, %v10920_v2  ;;  %v11437_v47 = vpop.f32.mrf.mxu0  ;;  %v11439_v48 = vpop.f32.mrf.mxu1 }
 0x7c8   :  { %14482 = vst [vmem:[#allocation284_spill] sm:$0xff] %v11437_v47  ;;  %v6815_v47 = vld [vmem:[%s13284_s3 + $0x440] sm:$0xff] }
 0x7c9   :  { %14483 = vst [vmem:[#allocation55_spill] sm:$0xff] %v11439_v48  ;;  %v11441_v39 = vadd.f32 %v4693_v62, %v4581_v41  ;;  %4917 = vmatpush.msrb.mxu0 %v6815_v47  ;;  %v6846_v47 = vld [vmem:[%s13284_s3 + $0x538] sm:$0xff] }
 0x7ca   :  { %4404 = vmatmul.f32.gmra.mxu0 %v14369_v50  ;;  %4517 = vmatmul.f32.gmra.mxu1 %v14370_v43 }
 0x7cb   :  { %14484 = vst [vmem:[#allocation285_spill] sm:$0xff] %v11441_v39  ;;  %4630 = vmatmul.f32.gmra.mxu2 %v14369_v50  ;;  %4743 = vmatmul.f32.gmra.mxu3 %v14370_v43  ;;  %v6847_v39 = vld [vmem:[%s13284_s3 + $0x540] sm:$0xff] }
 0x7cc   :  { %5030 = vmatpush.msrb.mxu1 %v6847_v39  ;;  %5257 = vmatpush.msrb.mxu3 %v6846_v47 }
 0x7ce   :  { %v4583_v2 = vpop.f32.mrf.mxu2  ;;  %v4696_v32 = vpop.f32.mrf.mxu3 }
 0x7cf   :  { %v4584_v35 = vadd.f32 %v4583_v2, %v10936_v49  ;;  %v11454_v62 = vpop.f32.mrf.mxu0  ;;  %v11456_v41 = vpop.f32.mrf.mxu1 }
 0x7d0   :  { %14485 = vst [vmem:[#allocation70_spill] sm:$0xff] %v11456_v41  ;;  %v6814_v41 = vld [vmem:[%s13284_s3 + $0x438] sm:$0xff] }
 0x7d1   :  { %v11458_v48 = vadd.f32 %v4696_v32, %v4584_v35  ;;  %5144 = vmatpush.msrb.mxu2 %v6814_v41 }
 0x7d2   :  { %4407 = vmatmul.f32.gmra.mxu0 %v14373_v1  ;;  %4520 = vmatmul.f32.gmra.mxu1 %v14374_v12 }
 0x7d3   :  { %4633 = vmatmul.f32.gmra.mxu2 %v14373_v1  ;;  %4746 = vmatmul.f32.gmra.mxu3 %v14374_v12 }
 0x7d6   :  { %v4586_v49 = vpop.f32.mrf.mxu2  ;;  %v4699_v15 = vpop.f32.mrf.mxu3 }
 0x7d7   :  { %v4587_v13 = vadd.f32 %v4586_v49, %v10952_v55  ;;  %v11471_v2 = vpop.f32.mrf.mxu0  ;;  %v11473_v32 = vpop.f32.mrf.mxu1 }
 0x7d8   :  { %14486 = vst [vmem:[#allocation300_spill] sm:$0xff] %v11471_v2  ;;  %v6813_v2 = vld [vmem:[%s13284_s3 + $0x430] sm:$0xff] }
 0x7d9   :  { %14487 = vst [vmem:[#allocation71_spill] sm:$0xff] %v11473_v32  ;;  %v11475_v35 = vadd.f32 %v4699_v15, %v4587_v13  ;;  %4918 = vmatpush.msrb.mxu0 %v6813_v2  ;;  %v6844_v2 = vld [vmem:[%s13284_s3 + $0x528] sm:$0xff] }
 0x7da   :  { %4410 = vmatmul.f32.gmra.mxu0 %v14377_v61  ;;  %4523 = vmatmul.f32.gmra.mxu1 %v14378_v6 }
 0x7db   :  { %14488 = vst [vmem:[#allocation301_spill] sm:$0xff] %v11475_v35  ;;  %4636 = vmatmul.f32.gmra.mxu2 %v14377_v61  ;;  %4749 = vmatmul.f32.gmra.mxu3 %v14378_v6  ;;  %v6845_v35 = vld [vmem:[%s13284_s3 + $0x530] sm:$0xff] }
 0x7dc   :  { %5031 = vmatpush.msrb.mxu1 %v6845_v35  ;;  %5258 = vmatpush.msrb.mxu3 %v6844_v2 }
 0x7de   :  { %v4589_v55 = vpop.f32.mrf.mxu2  ;;  %v4702_v39 = vpop.f32.mrf.mxu3 }
 0x7df   :  { %v4590_v49 = vadd.f32 %v4589_v55, %v10968_v16  ;;  %v11488_v15 = vpop.f32.mrf.mxu0  ;;  %v11490_v13 = vpop.f32.mrf.mxu1 }
 0x7e0   :  { %14489 = vst [vmem:[#allocation72_spill] sm:$0xff] %v11490_v13  ;;  %v6812_v13 = vld [vmem:[%s13284_s3 + $0x428] sm:$0xff] }
 0x7e1   :  { %v11492_v32 = vadd.f32 %v4702_v39, %v4590_v49  ;;  %5145 = vmatpush.msrb.mxu2 %v6812_v13 }
 0x7e2   :  { %4413 = vmatmul.f32.gmra.mxu0 %v10322_v45  ;;  %4526 = vmatmul.f32.gmra.mxu1 %v10324_v34 }
 0x7e3   :  { %4639 = vmatmul.f32.gmra.mxu2 %v10322_v45  ;;  %4752 = vmatmul.f32.gmra.mxu3 %v10324_v34 }
 0x7e6   :  { %v4592_v16 = vpop.f32.mrf.mxu2  ;;  %v4705_v41 = vpop.f32.mrf.mxu3 }
 0x7e7   :  { %v4593_v47 = vadd.f32 %v4592_v16, %v10984_v4  ;;  %v11505_v55 = vpop.f32.mrf.mxu0  ;;  %v11507_v39 = vpop.f32.mrf.mxu1 }
 0x7e8   :  { %14490 = vst [vmem:[#allocation302_spill] sm:$0xff] %v11505_v55  ;;  %v6811_v55 = vld [vmem:[%s13284_s3 + $0x420] sm:$0xff] }
 0x7e9   :  { %14491 = vst [vmem:[#allocation73_spill] sm:$0xff] %v11507_v39  ;;  %v11509_v49 = vadd.f32 %v4705_v41, %v4593_v47  ;;  %4919 = vmatpush.msrb.mxu0 %v6811_v55  ;;  %v6842_v55 = vld [vmem:[%s13284_s3 + $0x518] sm:$0xff] }
 0x7ea   :  { %4416 = vmatmul.f32.gmra.mxu0 %v10349_v3  ;;  %4529 = vmatmul.f32.gmra.mxu1 %v10351_v58 }
 0x7eb   :  { %14492 = vst [vmem:[#allocation303_spill] sm:$0xff] %v11509_v49  ;;  %4642 = vmatmul.f32.gmra.mxu2 %v10349_v3  ;;  %4755 = vmatmul.f32.gmra.mxu3 %v10351_v58  ;;  %v6843_v49 = vld [vmem:[%s13284_s3 + $0x520] sm:$0xff] }
 0x7ec   :  { %5032 = vmatpush.msrb.mxu1 %v6843_v49  ;;  %5259 = vmatpush.msrb.mxu3 %v6842_v55  ;;  %v6839_v55 = vld [vmem:[%s13284_s3 + $0x500] sm:$0xff] }
 0x7ee   :  { %v4595_v4 = vpop.f32.mrf.mxu2  ;;  %v4708_v35 = vpop.f32.mrf.mxu3 }
 0x7ef   :  { %v4596_v16 = vadd.f32 %v4595_v4, %v11000_v46  ;;  %v11522_v41 = vpop.f32.mrf.mxu0  ;;  %v11524_v47 = vpop.f32.mrf.mxu1 }
 0x7f0   :  { %14493 = vst [vmem:[#allocation76_spill] sm:$0xff] %v11524_v47  ;;  %v6810_v47 = vld [vmem:[%s13284_s3 + $0x418] sm:$0xff] }
 0x7f1   :  { %v11526_v39 = vadd.f32 %v4708_v35, %v4596_v16  ;;  %5146 = vmatpush.msrb.mxu2 %v6810_v47 }
 0x7f2   :  { %4419 = vmatmul.f32.gmra.mxu0 %v10382_v31  ;;  %4532 = vmatmul.f32.gmra.mxu1 %v10384_v37 }
 0x7f3   :  { %4645 = vmatmul.f32.gmra.mxu2 %v10382_v31  ;;  %4758 = vmatmul.f32.gmra.mxu3 %v10384_v37 }
 0x7f6   :  { %v4598_v46 = vpop.f32.mrf.mxu2  ;;  %v4711_v13 = vpop.f32.mrf.mxu3 }
 0x7f7   :  { %v4599_v2 = vadd.f32 %v4598_v46, %v11016_v14  ;;  %v11539_v4 = vpop.f32.mrf.mxu0  ;;  %v11541_v35 = vpop.f32.mrf.mxu1 }
 0x7f8   :  { %14494 = vst [vmem:[#allocation306_spill] sm:$0xff] %v11539_v4  ;;  %v6841_v4 = vld [vmem:[%s13284_s3 + $0x510] sm:$0xff] }
 0x7f9   :  { %14495 = vst [vmem:[#allocation77_spill] sm:$0xff] %v11541_v35  ;;  %v11543_v16 = vadd.f32 %v4711_v13, %v4599_v2  ;;  %v6809_v35 = vld [vmem:[%s13284_s3 + $0x410] sm:$0xff]  ;;  %5033 = vmatpush.msrb.mxu1 %v6841_v4  ;;  %v6840_v4 = vld [vmem:[%s13284_s3 + $0x508] sm:$0xff] }
 0x7fa   :  { %4422 = vmatmul.f32.gmra.mxu0 %v10408_v53  ;;  %4535 = vmatmul.f32.gmra.mxu1 %v10410_v59 }
 0x7fb   :  { %4648 = vmatmul.f32.gmra.mxu2 %v10408_v53  ;;  %4761 = vmatmul.f32.gmra.mxu3 %v10410_v59 }
 0x7fc   :  { %4920 = vmatpush.msrb.mxu0 %v6809_v35  ;;  %5034 = vmatpush.msrb.mxu1 %v6839_v55 }
 0x7fd   :  { %5260 = vmatpush.msrb.mxu3 %v6840_v4 }
 0x7fe   :  { %v4601_v14 = vpop.f32.mrf.mxu2  ;;  %v4714_v49 = vpop.f32.mrf.mxu3 }
 0x7ff   :  { %v4602_v46 = vadd.f32 %v4601_v14, %v11032_v60  ;;  %v11556_v13 = vpop.f32.mrf.mxu0  ;;  %v11558_v2 = vpop.f32.mrf.mxu1  ;;  %v6807_v60 = vld [vmem:[%s13284_s3 + $0x400] sm:$0xff]  ;;  %v6808_v14 = vld [vmem:[%s13284_s3 + $0x408] sm:$0xff] }
 0x800   :  { %14496 = vst [vmem:[#allocation307_spill] sm:$0xff] %v11556_v13  ;;  %4921 = vmatpush.msrb.mxu0 %v6807_v60  ;;  %5147 = vmatpush.msrb.mxu2 %v6808_v14 }
 0x801   :  { %14497 = vst [vmem:[#allocation80_spill] sm:$0xff] %v11558_v2  ;;  %v11566_v47 = vadd.f32 %v4714_v49, %v4602_v46 }
 0x802   :  { %4425 = vmatmul.f32.gmra.mxu0 %v10538_v63  ;;  %4538 = vmatmul.f32.gmra.mxu1 %v10540_v10 }
 0x803   :  { %14498 = vst [vmem:[#allocation310_spill] sm:$0xff] %v11566_v47  ;;  %4651 = vmatmul.f32.gmra.mxu2 %v10538_v63  ;;  %4764 = vmatmul.f32.gmra.mxu3 %v10540_v10 }
 0x806   :  { %v4604_v35 = vpop.f32.mrf.mxu2  ;;  %v4717_v49 = vpop.f32.mrf.mxu3 }
 0x807   :  { %v4605_v46 = vadd.f32 %v4604_v35, %v11060_v0  ;;  %v11585_v2 = vpop.f32.mrf.mxu0  ;;  %v11587_v13 = vpop.f32.mrf.mxu1 }
 0x808   :  { %14499 = vst [vmem:[#allocation81_spill] sm:$0xff] %v11585_v2 }
 0x809   :  { %14500 = vst [vmem:[#allocation311_spill] sm:$0xff] %v11587_v13  ;;  %v11589_v47 = vadd.f32 %v4717_v49, %v4605_v46 }
 0x80a   :  { %4428 = vmatmul.f32.gmra.mxu0 %v10572_v11  ;;  %4541 = vmatmul.f32.gmra.mxu1 %v10574_v26 }
 0x80b   :  { %4654 = vmatmul.f32.gmra.mxu2 %v10572_v11  ;;  %4767 = vmatmul.f32.gmra.mxu3 %v10574_v26 }
 0x80e   :  { %v4607_v60 = vpop.f32.mrf.mxu2  ;;  %v4720_v55 = vpop.f32.mrf.mxu3 }
 0x80f   :  { %v4608_v14 = vadd.f32 %v4607_v60, %v11070_v38  ;;  %v11596_v4 = vpop.f32.mrf.mxu0  ;;  %v11598_v0 = vpop.f32.mrf.mxu1 }
 0x810   :  { %14501 = vst [vmem:[#allocation84_spill] sm:$0xff] %v11596_v4 }
 0x811   :  { %14502 = vst [vmem:[#allocation314_spill] sm:$0xff] %v11598_v0  ;;  %v11600_v35 = vadd.f32 %v4720_v55, %v4608_v14 }
 0x812   :  { %4431 = vmatmul.f32.gmra.mxu0 %v10606_v54  ;;  %4544 = vmatmul.f32.gmra.mxu1 %v10608_v33 }
 0x813   :  { %4657 = vmatmul.f32.gmra.mxu2 %v10606_v54  ;;  %4770 = vmatmul.f32.gmra.mxu3 %v10608_v33 }
 0x816   :  { %v4610_v49 = vpop.f32.mrf.mxu2  ;;  %v4723_v46 = vpop.f32.mrf.mxu3 }
 0x817   :  { %v4611_v13 = vadd.f32 %v4610_v49, %v11080_v25  ;;  %v11607_v2 = vpop.f32.mrf.mxu0  ;;  %v11609_v38 = vpop.f32.mrf.mxu1 }
 0x818   :  { %14503 = vst [vmem:[#allocation85_spill] sm:$0xff] %v11607_v2 }
 0x819   :  { %14504 = vst [vmem:[#allocation315_spill] sm:$0xff] %v11609_v38  ;;  %v11611_v60 = vadd.f32 %v4723_v46, %v4611_v13 }
 0x81a   :  { %4434 = vmatmul.f32.gmra.mxu0 %v10632_v29  ;;  %4547 = vmatmul.f32.gmra.mxu1 %v10634_v8 }
 0x81b   :  { %4660 = vmatmul.f32.gmra.mxu2 %v10632_v29  ;;  %4773 = vmatmul.f32.gmra.mxu3 %v10634_v8 }
 0x81e   :  { %v4613_v55 = vpop.f32.mrf.mxu2  ;;  %v4726_v14 = vpop.f32.mrf.mxu3 }
 0x81f   :  { %v4614_v0 = vadd.f32 %v4613_v55, %v11096_v9  ;;  %v11618_v4 = vpop.f32.mrf.mxu0  ;;  %v11620_v25 = vpop.f32.mrf.mxu1 }
 0x821   :  { %v11622_v49 = vadd.f32 %v4726_v14, %v4614_v0 }
 0x822   :  { %4922 = vmatmul.f32.vlgmr.msrb.gmra.mxu0 %v14433_v52  ;;  %5035 = vmatmul.f32.vlgmr.msrb.gmra.mxu1 %v14434_v24 }
 0x823   :  { %5148 = vmatmul.f32.vlgmr.msrb.gmra.mxu2 %v14433_v52  ;;  %5261 = vmatmul.f32.vlgmr.msrb.gmra.mxu3 %v14434_v24  ;;  %v6901_v52 = vld [vmem:[%s13287_s5 + $0x1f0] sm:$0xff]  ;;  %v6902_v24 = vld [vmem:[%s13287_s5 + $0x1f8] sm:$0xff] }
 0x824   :  { %5639 = vmatpush.msra.mxu0 %v6901_v52  ;;  %5704 = vmatpush.msra.mxu1 %v6902_v24  ;;  %v14509_v52 = vld [vmem:[#allocation275_spill] sm:$0xff] }
 0x826   :  { %v4616_v13 = vpop.f32.mrf.mxu2  ;;  %v4729_v46 = vpop.f32.mrf.mxu3 }
 0x827   :  { %v4617_v38 = vadd.f32 %v4616_v13, %v11112_v36  ;;  %v11629_v2 = vpop.f32.mrf.mxu0  ;;  %v11631_v9 = vpop.f32.mrf.mxu1 }
 0x828   :  { %14505 = vst [vmem:[#allocation88_spill] sm:$0xff] %v11631_v9 }
 0x829   :  { %v11633_v55 = vadd.f32 %v4729_v46, %v4617_v38 }
 0x82a   :  { %4925 = vmatmul.f32.gmra.mxu0 %v9581_v20  ;;  %5038 = vmatmul.f32.gmra.mxu1 %v9583_v19 }
 0x82b   :  { %5151 = vmatmul.f32.gmra.mxu2 %v9581_v20  ;;  %5264 = vmatmul.f32.gmra.mxu3 %v9583_v19 }
 0x82e   :  { %v4619_v36 = vpop.f32.mrf.mxu2  ;;  %v4732_v0 = vpop.f32.mrf.mxu3 }
 0x82f   :  { %v4620_v38 = vadd.f32 %v4619_v36, %v11128_v44  ;;  %v11646_v14 = vpop.f32.mrf.mxu0  ;;  %v11648_v13 = vpop.f32.mrf.mxu1 }
 0x830   :  { %14506 = vst [vmem:[#allocation318_spill] sm:$0xff] %v11646_v14  ;;  %v14520_v14 = vld [vmem:[#allocation239_spill] sm:$0xff] }
 0x831   :  { %14507 = vst [vmem:[#allocation89_spill] sm:$0xff] %v11648_v13  ;;  %v11650_v46 = vadd.f32 %v4732_v0, %v4620_v38  ;;  %v14513_v0 = vld [vmem:[#allocation8_spill] sm:$0xff]  ;;  %v14514_v38 = vld [vmem:[#allocation238_spill] sm:$0xff]  ;;  %v14519_v13 = vld [vmem:[#allocation9_spill] sm:$0xff] }
 0x832   :  { %4928 = vmatmul.f32.gmra.mxu0 %v9614_v18  ;;  %5041 = vmatmul.f32.gmra.mxu1 %v14441_v28 }
 0x833   :  { %14508 = vst [vmem:[#allocation319_spill] sm:$0xff] %v11650_v46  ;;  %5154 = vmatmul.f32.gmra.mxu2 %v9614_v18  ;;  %5267 = vmatmul.f32.gmra.mxu3 %v14441_v28  ;;  %v6899_v18 = vld [vmem:[%s13287_s5 + $0x1e0] sm:$0xff]  ;;  %v6900_v28 = vld [vmem:[%s13287_s5 + $0x1e8] sm:$0xff] }
 0x834   :  { %5640 = vmatpush.msra.mxu0 %v6899_v18  ;;  %5705 = vmatpush.msra.mxu1 %v6900_v28  ;;  %v14521_v18 = vld [vmem:[#allocation282_spill] sm:$0xff] }
 0x836   :  { %v4622_v20 = vpop.f32.mrf.mxu2  ;;  %v4735_v19 = vpop.f32.mrf.mxu3 }
 0x837   :  { %v4623_v24 = vadd.f32 %v4622_v20, %v14509_v52  ;;  %v11657_v9 = vpop.f32.mrf.mxu0  ;;  %v11659_v44 = vpop.f32.mrf.mxu1  ;;  %v14515_v52 = vld [vmem:[#allocation49_spill] sm:$0xff] }
 0x838   :  { %14510 = vst [vmem:[#allocation74_spill] sm:$0xff] %v11657_v9 }
 0x839   :  { %14511 = vst [vmem:[#allocation304_spill] sm:$0xff] %v11659_v44  ;;  %v11661_v36 = vadd.f32 %v4735_v19, %v4623_v24 }
 0x83a   :  { %4931 = vmatmul.f32.gmra.mxu0 %v14513_v0  ;;  %5044 = vmatmul.f32.gmra.mxu1 %v14514_v38 }
 0x83b   :  { %14512 = vst [vmem:[#allocation75_spill] sm:$0xff] %v11661_v36  ;;  %5157 = vmatmul.f32.gmra.mxu2 %v14513_v0  ;;  %5270 = vmatmul.f32.gmra.mxu3 %v14514_v38 }
 0x83e   :  { %v4625_v20 = vpop.f32.mrf.mxu2  ;;  %v4738_v19 = vpop.f32.mrf.mxu3 }
 0x83f   :  { %v4626_v24 = vadd.f32 %v4625_v20, %v14515_v52  ;;  %v11674_v44 = vpop.f32.mrf.mxu0  ;;  %v11676_v9 = vpop.f32.mrf.mxu1 }
 0x840   :  { %14516 = vst [vmem:[#allocation305_spill] sm:$0xff] %v11674_v44  ;;  %v14531_v44 = vld [vmem:[#allocation243_spill] sm:$0xff] }
 0x841   :  { %14517 = vst [vmem:[#allocation90_spill] sm:$0xff] %v11676_v9  ;;  %v11678_v36 = vadd.f32 %v4738_v19, %v4626_v24  ;;  %v14525_v19 = vld [vmem:[#allocation12_spill] sm:$0xff]  ;;  %v14526_v24 = vld [vmem:[#allocation242_spill] sm:$0xff]  ;;  %v14530_v9 = vld [vmem:[#allocation13_spill] sm:$0xff] }
 0x842   :  { %4934 = vmatmul.f32.gmra.mxu0 %v14519_v13  ;;  %5047 = vmatmul.f32.gmra.mxu1 %v14520_v14 }
 0x843   :  { %14518 = vst [vmem:[#allocation320_spill] sm:$0xff] %v11678_v36  ;;  %5160 = vmatmul.f32.gmra.mxu2 %v14519_v13  ;;  %5273 = vmatmul.f32.gmra.mxu3 %v14520_v14  ;;  %v6897_v13 = vld [vmem:[%s13287_s5 + $0x1d0] sm:$0xff]  ;;  %v6898_v14 = vld [vmem:[%s13287_s5 + $0x1d8] sm:$0xff] }
 0x844   :  { %5641 = vmatpush.msra.mxu0 %v6897_v13  ;;  %5706 = vmatpush.msra.mxu1 %v6898_v14  ;;  %v14532_v13 = vld [vmem:[#allocation287_spill] sm:$0xff] }
 0x846   :  { %v4628_v0 = vpop.f32.mrf.mxu2  ;;  %v4741_v38 = vpop.f32.mrf.mxu3 }
 0x847   :  { %v4629_v28 = vadd.f32 %v4628_v0, %v14521_v18  ;;  %v11685_v46 = vpop.f32.mrf.mxu0  ;;  %v11687_v20 = vpop.f32.mrf.mxu1  ;;  %v14527_v18 = vld [vmem:[#allocation56_spill] sm:$0xff] }
 0x848   :  { %14522 = vst [vmem:[#allocation91_spill] sm:$0xff] %v11685_v46 }
 0x849   :  { %14523 = vst [vmem:[#allocation321_spill] sm:$0xff] %v11687_v20  ;;  %v11689_v52 = vadd.f32 %v4741_v38, %v4629_v28 }
 0x84a   :  { %4937 = vmatmul.f32.gmra.mxu0 %v14525_v19  ;;  %5050 = vmatmul.f32.gmra.mxu1 %v14526_v24 }
 0x84b   :  { %14524 = vst [vmem:[#allocation92_spill] sm:$0xff] %v11689_v52  ;;  %5163 = vmatmul.f32.gmra.mxu2 %v14525_v19  ;;  %5276 = vmatmul.f32.gmra.mxu3 %v14526_v24 }
 0x84e   :  { %v4631_v0 = vpop.f32.mrf.mxu2  ;;  %v4744_v38 = vpop.f32.mrf.mxu3 }
 0x84f   :  { %v4632_v28 = vadd.f32 %v4631_v0, %v14527_v18  ;;  %v11702_v20 = vpop.f32.mrf.mxu0  ;;  %v11704_v46 = vpop.f32.mrf.mxu1 }
 0x850   :  { %14528 = vst [vmem:[#allocation322_spill] sm:$0xff] %v11702_v20 }
 0x851   :  { %14529 = vst [vmem:[#allocation93_spill] sm:$0xff] %v11704_v46  ;;  %v11706_v52 = vadd.f32 %v4744_v38, %v4632_v28  ;;  %v14536_v38 = vld [vmem:[#allocation16_spill] sm:$0xff]  ;;  %v14537_v28 = vld [vmem:[#allocation246_spill] sm:$0xff]  ;;  %v14539_v46 = vld [vmem:[#allocation247_spill] sm:$0xff] }
 0x852   :  { %4940 = vmatmul.f32.gmra.mxu0 %v14530_v9  ;;  %5053 = vmatmul.f32.gmra.mxu1 %v14531_v44 }
 0x853   :  { %5166 = vmatmul.f32.gmra.mxu2 %v14530_v9  ;;  %5279 = vmatmul.f32.gmra.mxu3 %v14531_v44  ;;  %v6895_v9 = vld [vmem:[%s13287_s5 + $0x1c0] sm:$0xff]  ;;  %v6896_v44 = vld [vmem:[%s13287_s5 + $0x1c8] sm:$0xff] }
 0x854   :  { %5642 = vmatpush.msra.mxu0 %v6895_v9  ;;  %5707 = vmatpush.msra.mxu1 %v6896_v44  ;;  %v14540_v9 = vld [vmem:[#allocation288_spill] sm:$0xff] }
 0x856   :  { %v4634_v19 = vpop.f32.mrf.mxu2  ;;  %v4747_v24 = vpop.f32.mrf.mxu3 }
 0x857   :  { %v4635_v14 = vadd.f32 %v4634_v19, %v14532_v13  ;;  %v11713_v36 = vpop.f32.mrf.mxu0  ;;  %v11715_v0 = vpop.f32.mrf.mxu1  ;;  %v14538_v13 = vld [vmem:[#allocation43_spill] sm:$0xff] }
 0x858   :  { %14533 = vst [vmem:[#allocation323_spill] sm:$0xff] %v11713_v36 }
 0x859   :  { %14534 = vst [vmem:[#allocation78_spill] sm:$0xff] %v11715_v0  ;;  %v11717_v18 = vadd.f32 %v4747_v24, %v4635_v14 }
 0x85a   :  { %4943 = vmatmul.f32.gmra.mxu0 %v14536_v38  ;;  %5056 = vmatmul.f32.gmra.mxu1 %v14537_v28 }
 0x85b   :  { %14535 = vst [vmem:[#allocation308_spill] sm:$0xff] %v11717_v18  ;;  %5169 = vmatmul.f32.gmra.mxu2 %v14536_v38  ;;  %5282 = vmatmul.f32.gmra.mxu3 %v14537_v28 }
 0x85e   :  { %v4637_v19 = vpop.f32.mrf.mxu2  ;;  %v4750_v24 = vpop.f32.mrf.mxu3 }
 0x85f   :  { %v4638_v14 = vadd.f32 %v4637_v19, %v14538_v13  ;;  %v11730_v0 = vpop.f32.mrf.mxu0  ;;  %v11732_v36 = vpop.f32.mrf.mxu1 }
 0x861   :  { %v11734_v18 = vadd.f32 %v4750_v24, %v4638_v14 }
 0x862   :  { %4946 = vmatmul.f32.gmra.mxu0 %v14470_v21  ;;  %5059 = vmatmul.f32.gmra.mxu1 %v14539_v46 }
 0x863   :  { %5172 = vmatmul.f32.gmra.mxu2 %v14470_v21  ;;  %5285 = vmatmul.f32.gmra.mxu3 %v14539_v46  ;;  %v6893_v21 = vld [vmem:[%s13287_s5 + $0x1b0] sm:$0xff]  ;;  %v6894_v46 = vld [vmem:[%s13287_s5 + $0x1b8] sm:$0xff] }
 0x864   :  { %5643 = vmatpush.msra.mxu0 %v6893_v21  ;;  %5708 = vmatpush.msra.mxu1 %v6894_v46  ;;  %v14544_v21 = vld [vmem:[#allocation291_spill] sm:$0xff] }
 0x866   :  { %v4640_v38 = vpop.f32.mrf.mxu2  ;;  %v4753_v28 = vpop.f32.mrf.mxu3 }
 0x867   :  { %v4641_v44 = vadd.f32 %v4640_v38, %v14540_v9  ;;  %v11741_v20 = vpop.f32.mrf.mxu0  ;;  %v11743_v19 = vpop.f32.mrf.mxu1  ;;  %v14543_v38 = vld [vmem:[#allocation60_spill] sm:$0xff] }
 0x868   :  { %14541 = vst [vmem:[#allocation79_spill] sm:$0xff] %v11741_v20 }
 0x869   :  { %14542 = vst [vmem:[#allocation309_spill] sm:$0xff] %v11743_v19  ;;  %v11745_v13 = vadd.f32 %v4753_v28, %v4641_v44 }
 0x86a   :  { %4949 = vmatmul.f32.gmra.mxu0 %v14475_v7  ;;  %5062 = vmatmul.f32.gmra.mxu1 %v14476_v30 }
 0x86b   :  { %5175 = vmatmul.f32.gmra.mxu2 %v14475_v7  ;;  %5288 = vmatmul.f32.gmra.mxu3 %v14476_v30 }
 0x86e   :  { %v4643_v24 = vpop.f32.mrf.mxu2  ;;  %v4756_v14 = vpop.f32.mrf.mxu3 }
 0x86f   :  { %v4644_v28 = vadd.f32 %v4643_v24, %v14543_v38  ;;  %v11758_v9 = vpop.f32.mrf.mxu0  ;;  %v11760_v44 = vpop.f32.mrf.mxu1 }
 0x871   :  { %v11762_v19 = vadd.f32 %v4756_v14, %v4644_v28 }
 0x872   :  { %4952 = vmatmul.f32.gmra.mxu0 %v14336_v57  ;;  %5065 = vmatmul.f32.gmra.mxu1 %v14337_v23 }
 0x873   :  { %5178 = vmatmul.f32.gmra.mxu2 %v14336_v57  ;;  %5291 = vmatmul.f32.gmra.mxu3 %v14337_v23  ;;  %v6891_v57 = vld [vmem:[%s13287_s5 + $0x1a0] sm:$0xff]  ;;  %v6892_v23 = vld [vmem:[%s13287_s5 + $0x1a8] sm:$0xff] }
 0x874   :  { %5644 = vmatpush.msra.mxu0 %v6891_v57  ;;  %5709 = vmatpush.msra.mxu1 %v6892_v23  ;;  %v14549_v57 = vld [vmem:[#allocation292_spill] sm:$0xff] }
 0x876   :  { %v4646_v30 = vpop.f32.mrf.mxu2  ;;  %v4759_v7 = vpop.f32.mrf.mxu3 }
 0x877   :  { %v4647_v46 = vadd.f32 %v4646_v30, %v14544_v21  ;;  %v11769_v20 = vpop.f32.mrf.mxu0  ;;  %v11771_v24 = vpop.f32.mrf.mxu1  ;;  %v14547_v30 = vld [vmem:[#allocation47_spill] sm:$0xff] }
 0x878   :  { %14545 = vst [vmem:[#allocation94_spill] sm:$0xff] %v11769_v20 }
 0x879   :  { %14546 = vst [vmem:[#allocation324_spill] sm:$0xff] %v11771_v24  ;;  %v11773_v38 = vadd.f32 %v4759_v7, %v4647_v46 }
 0x87a   :  { %4955 = vmatmul.f32.gmra.mxu0 %v14354_v5  ;;  %5068 = vmatmul.f32.gmra.mxu1 %v14355_v22 }
 0x87b   :  { %5181 = vmatmul.f32.gmra.mxu2 %v14354_v5  ;;  %5294 = vmatmul.f32.gmra.mxu3 %v14355_v22 }
 0x87e   :  { %v4649_v14 = vpop.f32.mrf.mxu2  ;;  %v4762_v28 = vpop.f32.mrf.mxu3 }
 0x87f   :  { %v4650_v7 = vadd.f32 %v4649_v14, %v14547_v30  ;;  %v11786_v21 = vpop.f32.mrf.mxu0  ;;  %v11788_v46 = vpop.f32.mrf.mxu1 }
 0x880   :  { %14548 = vst [vmem:[#allocation95_spill] sm:$0xff] %v11788_v46 }
 0x881   :  { %v11790_v24 = vadd.f32 %v4762_v28, %v4650_v7  ;;  %v14553_v28 = vld [vmem:[#allocation64_spill] sm:$0xff] }
 0x882   :  { %4958 = vmatmul.f32.gmra.mxu0 %v10130_v56  ;;  %5071 = vmatmul.f32.gmra.mxu1 %v14364_v17 }
 0x883   :  { %5184 = vmatmul.f32.gmra.mxu2 %v10130_v56  ;;  %5297 = vmatmul.f32.gmra.mxu3 %v14364_v17 }
 0x886   :  { %v4652_v5 = vpop.f32.mrf.mxu2  ;;  %v4765_v22 = vpop.f32.mrf.mxu3 }
 0x887   :  { %v4653_v23 = vadd.f32 %v4652_v5, %v14549_v57  ;;  %v11797_v20 = vpop.f32.mrf.mxu0  ;;  %v11799_v14 = vpop.f32.mrf.mxu1  ;;  %v6890_v57 = vld [vmem:[%s13287_s5 + $0x198] sm:$0xff] }
 0x888   :  { %14550 = vst [vmem:[#allocation325_spill] sm:$0xff] %v11797_v20  ;;  %5710 = vmatpush.msra.mxu1 %v6890_v57 }
 0x889   :  { %14551 = vst [vmem:[#allocation96_spill] sm:$0xff] %v11799_v14  ;;  %v11801_v30 = vadd.f32 %v4765_v22, %v4653_v23  ;;  %v6889_v22 = vld [vmem:[%s13287_s5 + $0x190] sm:$0xff] }
 0x88a   :  { %4961 = vmatmul.f32.gmra.mxu0 %v14369_v50  ;;  %5074 = vmatmul.f32.gmra.mxu1 %v14370_v43 }
 0x88b   :  { %14552 = vst [vmem:[#allocation326_spill] sm:$0xff] %v11801_v30  ;;  %5187 = vmatmul.f32.gmra.mxu2 %v14369_v50  ;;  %5300 = vmatmul.f32.gmra.mxu3 %v14370_v43 }
 0x88c   :  { %5645 = vmatpush.msra.mxu0 %v6889_v22 }
 0x88e   :  { %v4655_v56 = vpop.f32.mrf.mxu2  ;;  %v4768_v17 = vpop.f32.mrf.mxu3 }
 0x88f   :  { %v4656_v7 = vadd.f32 %v4655_v56, %v14553_v28  ;;  %v11808_v46 = vpop.f32.mrf.mxu0  ;;  %v11810_v5 = vpop.f32.mrf.mxu1  ;;  %v14557_v56 = vld [vmem:[#allocation295_spill] sm:$0xff] }
 0x890   :  { %14554 = vst [vmem:[#allocation97_spill] sm:$0xff] %v11808_v46 }
 0x891   :  { %14555 = vst [vmem:[#allocation327_spill] sm:$0xff] %v11810_v5  ;;  %v11818_v50 = vadd.f32 %v4768_v17, %v4656_v7  ;;  %v14561_v17 = vld [vmem:[#allocation51_spill] sm:$0xff] }
 0x892   :  { %4964 = vmatmul.f32.gmra.mxu0 %v14373_v1  ;;  %5077 = vmatmul.f32.gmra.mxu1 %v14374_v12 }
 0x893   :  { %14556 = vst [vmem:[#allocation82_spill] sm:$0xff] %v11818_v50  ;;  %5190 = vmatmul.f32.gmra.mxu2 %v14373_v1  ;;  %5303 = vmatmul.f32.gmra.mxu3 %v14374_v12 }
 0x896   :  { %v4658_v43 = vpop.f32.mrf.mxu2  ;;  %v4771_v23 = vpop.f32.mrf.mxu3 }
 0x897   :  { %v4659_v28 = vadd.f32 %v4658_v43, %v14557_v56  ;;  %v11825_v5 = vpop.f32.mrf.mxu0  ;;  %v11827_v46 = vpop.f32.mrf.mxu1  ;;  %v6887_v56 = vld [vmem:[%s13287_s5 + $0x180] sm:$0xff] }
 0x898   :  { %14558 = vst [vmem:[#allocation312_spill] sm:$0xff] %v11825_v5  ;;  %5646 = vmatpush.msra.mxu0 %v6887_v56  ;;  %v14566_v56 = vld [vmem:[#allocation66_spill] sm:$0xff] }
 0x899   :  { %14559 = vst [vmem:[#allocation83_spill] sm:$0xff] %v11827_v46  ;;  %v11829_v22 = vadd.f32 %v4771_v23, %v4659_v28  ;;  %v6888_v23 = vld [vmem:[%s13287_s5 + $0x188] sm:$0xff] }
 0x89a   :  { %4967 = vmatmul.f32.gmra.mxu0 %v14377_v61  ;;  %5080 = vmatmul.f32.gmra.mxu1 %v14378_v6  ;;  %v14562_v28 = vld [vmem:[#allocation258_spill] sm:$0xff] }
 0x89b   :  { %14560 = vst [vmem:[#allocation313_spill] sm:$0xff] %v11829_v22  ;;  %5193 = vmatmul.f32.gmra.mxu2 %v14377_v61  ;;  %5306 = vmatmul.f32.gmra.mxu3 %v14378_v6  ;;  %v14563_v61 = vld [vmem:[#allocation29_spill] sm:$0xff] }
 0x89c   :  { %5711 = vmatpush.msra.mxu1 %v6888_v23  ;;  %v4004_v46 = vadd.f32 %v14563_v61, %v14562_v28 }
 0x89e   :  { %v4661_v1 = vpop.f32.mrf.mxu2  ;;  %v4774_v12 = vpop.f32.mrf.mxu3 }
 0x89f   :  { %v4662_v7 = vadd.f32 %v4661_v1, %v14561_v17  ;;  %v4923_v57 = vpop.f32.mrf.mxu0  ;;  %v5036_v43 = vpop.f32.mrf.mxu1  ;;  %v14565_v1 = vld [vmem:[#allocation281_spill] sm:$0xff] }
 0x8a0   :  { %v4343_v17 = vadd.f32 %v14565_v1, %v4004_v46  ;;  %v5037_v5 = vadd.f32 %v5036_v43, %v4923_v57  ;;  %v5601_v46 = vld [vmem:[%s13287_s5 + $0xf8] sm:$0xff]  ;;  %v14569_v43 = vld [vmem:[#allocation297_spill] sm:$0xff] }
 0x8a1   :  { %v11844_v6 = vadd.f32 %v4774_v12, %v4662_v7  ;;  %v5600_v12 = vld [vmem:[%s13287_s5 + $0xf0] sm:$0xff]  ;;  %5834 = vmatpush.msra.mxu3 %v5601_v46 }
 0x8a2   :  { %4970 = vmatmul.f32.gmra.mxu0 %v10322_v45  ;;  %5083 = vmatmul.f32.gmra.mxu1 %v10324_v34  ;;  %v4456_v23 = vadd.f32 %v14566_v56, %v4343_v17 }
 0x8a3   :  { %14564 = vst [vmem:[#allocation98_spill] sm:$0xff] %v11844_v6  ;;  %5196 = vmatmul.f32.gmra.mxu2 %v10322_v45  ;;  %5309 = vmatmul.f32.gmra.mxu3 %v10324_v34  ;;  %v14567_v45 = vld [vmem:[#allocation244_spill] sm:$0xff]  ;;  %v14568_v34 = vld [vmem:[#allocation15_spill] sm:$0xff] }
 0x8a4   :  { %5769 = vmatpush.msra.mxu2 %v5600_v12  ;;  %v4007_v7 = vadd.f32 %v14568_v34, %v14567_v45  ;;  %v11860_v57 = vadd.f32 %v5037_v5, %v4456_v23  ;;  %v14571_v23 = vld [vmem:[#allocation67_spill] sm:$0xff]  ;;  %v14572_v34 = vld [vmem:[#allocation260_spill] sm:$0xff] }
 0x8a6   :  { %v5149_v22 = vpop.f32.mrf.mxu2  ;;  %v5262_v50 = vpop.f32.mrf.mxu3 }
 0x8a7   :  { %v5263_v14 = vadd.f32 %v5262_v50, %v5149_v22  ;;  %v4926_v20 = vpop.f32.mrf.mxu0  ;;  %v5039_v28 = vpop.f32.mrf.mxu1  ;;  %v14570_v50 = vld [vmem:[#allocation296_spill] sm:$0xff] }
 0x8a8   :  { %v4346_v22 = vadd.f32 %v14570_v50, %v4007_v7  ;;  %v5040_v17 = vadd.f32 %v5039_v28, %v4926_v20 }
 0x8a9   :  { %v11863_v61 = vadd.f32 %v5263_v14, %v14569_v43  ;;  %v14573_v43 = vld [vmem:[#allocation31_spill] sm:$0xff] }
 0x8aa   :  { %4973 = vmatmul.f32.gmra.mxu0 %v10349_v3  ;;  %5086 = vmatmul.f32.gmra.mxu1 %v10351_v58  ;;  %v4459_v12 = vadd.f32 %v14571_v23, %v4346_v22  ;;  %v4010_v6 = vadd.f32 %v14573_v43, %v14572_v34  ;;  %v14578_v43 = vld [vmem:[#allocation298_spill] sm:$0xff] }
 0x8ab   :  { %v5422_v1 = vmax.f32 %v11860_v57, %v11863_v61  ;;  %5199 = vmatmul.f32.gmra.mxu2 %v10349_v3  ;;  %5312 = vmatmul.f32.gmra.mxu3 %v10351_v58  ;;  %v6885_v3 = vld [vmem:[%s13287_s5 + $0x170] sm:$0xff]  ;;  %v6886_v58 = vld [vmem:[%s13287_s5 + $0x178] sm:$0xff] }
 0x8ac   :  { %v11875_v30 = vadd.f32 %v5040_v17, %v4459_v12  ;;  %v4349_v20 = vadd.f32 %v11386_v40, %v4010_v6  ;;  %5647 = vmatpush.msra.mxu0 %v6885_v3  ;;  %5712 = vmatpush.msra.mxu1 %v6886_v58  ;;  %v14574_v17 = vld [vmem:[#allocation68_spill] sm:$0xff]  ;;  %v5598_v40 = vld [vmem:[%s13287_s5 + $0xe0] sm:$0xff]  ;;  %v6881_v57 = vld [vmem:[%s13287_s5 + $0x150] sm:$0xff] }
 0x8ad   :  { %5770 = vmatpush.msra.mxu2 %v5598_v40  ;;  %v14576_v6 = vld [vmem:[#allocation32_spill] sm:$0xff]  ;;  %v14589_v61 = vld [vmem:[#allocation19_spill] sm:$0xff] }
 0x8ae   :  { %v5152_v56 = vpop.f32.mrf.mxu2  ;;  %v5265_v5 = vpop.f32.mrf.mxu3 }
 0x8af   :  { %v5266_v14 = vadd.f32 %v5265_v5, %v5152_v56  ;;  %v4929_v46 = vpop.f32.mrf.mxu0  ;;  %v5042_v45 = vpop.f32.mrf.mxu1  ;;  %v4462_v56 = vadd.f32 %v14574_v17, %v4349_v20 }
 0x8b1   :  { %v11878_v7 = vadd.f32 %v5266_v14, %v11390_v51  ;;  %v5043_v51 = vadd.f32 %v5042_v45, %v4929_v46  ;;  %v14577_v45 = vld [vmem:[#allocation299_spill] sm:$0xff] }
 0x8b2   :  { %4976 = vmatmul.f32.gmra.mxu0 %v10382_v31  ;;  %5089 = vmatmul.f32.gmra.mxu1 %v10384_v37 }
 0x8b3   :  { %v5423_v28 = vmax.f32 %v11875_v30, %v11878_v7  ;;  %5202 = vmatmul.f32.gmra.mxu2 %v10382_v31  ;;  %5315 = vmatmul.f32.gmra.mxu3 %v10384_v37  ;;  %v5599_v31 = vld [vmem:[%s13287_s5 + $0xe8] sm:$0xff]  ;;  %v14575_v37 = vld [vmem:[#allocation261_spill] sm:$0xff]  ;;  %v11902_v46 = vadd.f32 %v5043_v51, %v4462_v56 }
 0x8b4   :  { %5835 = vmatpush.msra.mxu3 %v5599_v31  ;;  %v4013_v14 = vadd.f32 %v14576_v6, %v14575_v37  ;;  %v6883_v31 = vld [vmem:[%s13287_s5 + $0x160] sm:$0xff]  ;;  %v6884_v37 = vld [vmem:[%s13287_s5 + $0x168] sm:$0xff] }
 0x8b5   :  { %5648 = vmatpush.msra.mxu0 %v6883_v31  ;;  %5713 = vmatpush.msra.mxu1 %v6884_v37  ;;  %v14585_v37 = vld [vmem:[#allocation285_spill] sm:$0xff]  ;;  %v14592_v7 = vld [vmem:[#allocation34_spill] sm:$0xff] }
 0x8b6   :  { %v5155_v50 = vpop.f32.mrf.mxu2  ;;  %v5268_v22 = vpop.f32.mrf.mxu3  ;;  %v4352_v3 = vadd.f32 %v14578_v43, %v4013_v14  ;;  %v5594_v30 = vld [vmem:[%s13287_s5 + $0xc0] sm:$0xff] }
 0x8b7   :  { %v5269_v5 = vadd.f32 %v5268_v22, %v5155_v50  ;;  %v4932_v23 = vpop.f32.mrf.mxu0  ;;  %v5045_v12 = vpop.f32.mrf.mxu1  ;;  %v14579_v22 = vld [vmem:[#allocation69_spill] sm:$0xff]  ;;  %5649 = vmatpush.msra.mxu0 %v6881_v57  ;;  %v14594_v57 = vld [vmem:[#allocation300_spill] sm:$0xff] }
 0x8b8   :  { %v5046_v20 = vadd.f32 %v5045_v12, %v4932_v23  ;;  %v4465_v17 = vadd.f32 %v14579_v22, %v4352_v3 }
 0x8b9   :  { %v11905_v34 = vadd.f32 %v5269_v5, %v14577_v45 }
 0x8ba   :  { %4979 = vmatmul.f32.gmra.mxu0 %v10408_v53  ;;  %5092 = vmatmul.f32.gmra.mxu1 %v10410_v59  ;;  %v11923_v12 = vadd.f32 %v5046_v20, %v4465_v17 }
 0x8bb   :  { %v5424_v58 = vmax.f32 %v11902_v46, %v11905_v34  ;;  %5205 = vmatmul.f32.gmra.mxu2 %v10408_v53  ;;  %5318 = vmatmul.f32.gmra.mxu3 %v10410_v59  ;;  %v14580_v53 = vld [vmem:[#allocation262_spill] sm:$0xff]  ;;  %v14581_v59 = vld [vmem:[#allocation33_spill] sm:$0xff]  ;;  %v14597_v34 = vld [vmem:[#allocation35_spill] sm:$0xff] }
 0x8bc   :  { %v4016_v23 = vadd.f32 %v14581_v59, %v14580_v53  ;;  %v14586_v59 = vld [vmem:[#allocation284_spill] sm:$0xff]  ;;  %v6879_v46 = vld [vmem:[%s13287_s5 + $0x140] sm:$0xff] }
 0x8bd   :  { %5650 = vmatpush.msra.mxu0 %v6879_v46  ;;  %v5590_v46 = vld [vmem:[%s13287_s5 + $0xa0] sm:$0xff] }
 0x8be   :  { %v5158_v50 = vpop.f32.mrf.mxu2  ;;  %v5271_v51 = vpop.f32.mrf.mxu3  ;;  %v4355_v14 = vadd.f32 %v11420_v27, %v4016_v23 }
 0x8bf   :  { %v5272_v56 = vadd.f32 %v5271_v51, %v5158_v50  ;;  %v4935_v5 = vpop.f32.mrf.mxu0  ;;  %v5048_v40 = vpop.f32.mrf.mxu1  ;;  %v14582_v50 = vld [vmem:[#allocation54_spill] sm:$0xff] }
 0x8c0   :  { %v5049_v43 = vadd.f32 %v5048_v40, %v4935_v5  ;;  %v4468_v51 = vadd.f32 %v14582_v50, %v4355_v14  ;;  %v14584_v5 = vld [vmem:[#allocation18_spill] sm:$0xff] }
 0x8c1   :  { %v11926_v6 = vadd.f32 %v5272_v56, %v11424_v42  ;;  %v11939_v42 = vld [vmem:[%s13286_s4] ss:$0 sm:$0xff]  ;;  %v5596_v56 = vld [vmem:[%s13287_s5 + $0xd0] sm:$0xff] }
 0x8c2   :  { %4982 = vmatmul.f32.gmra.mxu0 %v10538_v63  ;;  %5095 = vmatmul.f32.gmra.mxu1 %v10540_v10  ;;  %v5366_v31 = vadd.f32 %v5049_v43, %v4468_v51  ;;  %v5458_v14 = vadd.f32 %v11939_v42, %v5422_v1 }
 0x8c3   :  { %v5425_v45 = vmax.f32 %v11923_v12, %v11926_v6  ;;  %5208 = vmatmul.f32.gmra.mxu2 %v10538_v63  ;;  %5321 = vmatmul.f32.gmra.mxu3 %v10540_v10  ;;  %v5597_v63 = vld [vmem:[%s13287_s5 + $0xd8] sm:$0xff]  ;;  %v14583_v10 = vld [vmem:[#allocation263_spill] sm:$0xff] }
 0x8c4   :  { %5771 = vmatpush.msra.mxu2 %v5596_v56  ;;  %5836 = vmatpush.msra.mxu3 %v5597_v63  ;;  %v4019_v40 = vadd.f32 %v14584_v5, %v14583_v10  ;;  %v5490_v63 = vmax.f32 %v5458_v14, 0.0  ;;  %v5592_v12 = vld [vmem:[%s13287_s5 + $0xb0] sm:$0xff]  ;;  %v5593_v6 = vld [vmem:[%s13287_s5 + $0xb8] sm:$0xff] }
 0x8c6   :  { %v5161_v3 = vpop.f32.mrf.mxu2  ;;  %v5274_v20 = vpop.f32.mrf.mxu3  ;;  %v4358_v23 = vadd.f32 %v14586_v59, %v4019_v40  ;;  %v5459_v59 = vadd.f32 %v11939_v42, %v5423_v28  ;;  %5772 = vmatpush.msra.mxu2 %v5594_v30  ;;  %v5461_v30 = vadd.f32 %v11939_v42, %v5425_v45  ;;  %v14601_v45 = vld [vmem:[#allocation265_spill] sm:$0xff] }
 0x8c7   :  { %v5275_v22 = vadd.f32 %v5274_v20, %v5161_v3  ;;  %v4938_v17 = vpop.f32.mrf.mxu0  ;;  %v5051_v27 = vpop.f32.mrf.mxu1 }
 0x8c8   :  { %v5052_v20 = vadd.f32 %v5051_v27, %v4938_v17  ;;  %5773 = vmatpush.msra.mxu2 %v5592_v12  ;;  %v5584_v12 = vld [vmem:[%s13287_s5 + $0x70] sm:$0xff] }
 0x8c9   :  { %v5367_v53 = vadd.f32 %v5275_v22, %v14585_v37  ;;  %v14587_v22 = vld [vmem:[#allocation55_spill] sm:$0xff] }
 0x8ca   :  { %4985 = vmatmul.f32.gmra.mxu0 %v10572_v11  ;;  %5098 = vmatmul.f32.gmra.mxu1 %v10574_v26  ;;  %v4471_v56 = vadd.f32 %v14587_v22, %v4358_v23 }
 0x8cb   :  { %v5426_v3 = vmax.f32 %v5366_v31, %v5367_v53  ;;  %5211 = vmatmul.f32.gmra.mxu2 %v10572_v11  ;;  %5324 = vmatmul.f32.gmra.mxu3 %v10574_v26  ;;  %v6882_v11 = vld [vmem:[%s13287_s5 + $0x158] sm:$0xff] }
 0x8cc   :  { %5714 = vmatpush.msra.mxu1 %v6882_v11  ;;  %v14588_v26 = vld [vmem:[#allocation248_spill] sm:$0xff]  ;;  %v5368_v27 = vadd.f32 %v5052_v20, %v4471_v56  ;;  %v14590_v20 = vld [vmem:[#allocation70_spill] sm:$0xff]  ;;  %5774 = vmatpush.msra.mxu2 %v5590_v46  ;;  %v14613_v46 = vld [vmem:[#allocation267_spill] sm:$0xff] }
 0x8cd   :  { %v5462_v43 = vadd.f32 %v11939_v42, %v5426_v3  ;;  %v4022_v1 = vadd.f32 %v14589_v61, %v14588_v26  ;;  %v5460_v26 = vadd.f32 %v11939_v42, %v5424_v58 }
 0x8ce   :  { %v5164_v50 = vpop.f32.mrf.mxu2  ;;  %v5277_v51 = vpop.f32.mrf.mxu3 }
 0x8cf   :  { %v5494_v10 = vmax.f32 %v5462_v43, 0.0  ;;  %v5278_v5 = vadd.f32 %v5277_v51, %v5164_v50  ;;  %v4941_v40 = vpop.f32.mrf.mxu0  ;;  %v5054_v37 = vpop.f32.mrf.mxu1  ;;  %v4361_v53 = vadd.f32 %v11454_v62, %v4022_v1  ;;  %v5491_v51 = vmax.f32 %v5459_v59, 0.0  ;;  %v14595_v59 = vld [vmem:[#allocation71_spill] sm:$0xff] }
 0x8d0   :  { %v5055_v3 = vadd.f32 %v5054_v37, %v4941_v40 }
 0x8d1   :  { %v11969_v17 = vmax.f32 %v5490_v63, %v5494_v10  ;;  %v5369_v31 = vadd.f32 %v5278_v5, %v11458_v48  ;;  %v4474_v50 = vadd.f32 %v14590_v20, %v4361_v53  ;;  %v14593_v5 = vld [vmem:[#allocation301_spill] sm:$0xff] }
 0x8d2   :  { %4988 = vmatmul.f32.gmra.mxu0 %v10606_v54  ;;  %5101 = vmatmul.f32.gmra.mxu1 %v10608_v33 }
 0x8d3   :  { %v5427_v23 = vmax.f32 %v5368_v27, %v5369_v31  ;;  %5214 = vmatmul.f32.gmra.mxu2 %v10606_v54  ;;  %5327 = vmatmul.f32.gmra.mxu3 %v10608_v33  ;;  %v5595_v54 = vld [vmem:[%s13287_s5 + $0xc8] sm:$0xff]  ;;  %v14591_v33 = vld [vmem:[#allocation249_spill] sm:$0xff]  ;;  %v5370_v10 = vadd.f32 %v5055_v3, %v4474_v50 }
 0x8d4   :  { %5837 = vmatpush.msra.mxu3 %v5595_v54  ;;  %v4025_v28 = vadd.f32 %v14592_v7, %v14591_v33 }
 0x8d5   :  { %v5463_v14 = vadd.f32 %v11939_v42, %v5427_v23 }
 0x8d6   :  { %v5167_v48 = vpop.f32.mrf.mxu2  ;;  %v5280_v43 = vpop.f32.mrf.mxu3  ;;  %v4364_v11 = vadd.f32 %v14594_v57, %v4025_v28  ;;  %5838 = vmatpush.msra.mxu3 %v5593_v6  ;;  %v5585_v6 = vld [vmem:[%s13287_s5 + $0x78] sm:$0xff] }
 0x8d7   :  { %v5495_v22 = vmax.f32 %v5463_v14, 0.0  ;;  %v5281_v62 = vadd.f32 %v5280_v43, %v5167_v48  ;;  %v4944_v56 = vpop.f32.mrf.mxu0  ;;  %v5057_v63 = vpop.f32.mrf.mxu1  ;;  %v5492_v14 = vmax.f32 %v5460_v26, 0.0 }
 0x8d8   :  { %v5058_v27 = vadd.f32 %v5057_v63, %v4944_v56  ;;  %v4477_v23 = vadd.f32 %v14595_v59, %v4364_v11  ;;  %v14599_v56 = vld [vmem:[#allocation27_spill] sm:$0xff] }
 0x8d9   :  { %v5371_v40 = vadd.f32 %v5281_v62, %v14593_v5  ;;  %v11992_v37 = vmax.f32 %v5491_v51, %v5495_v22  ;;  %v14598_v62 = vld [vmem:[#allocation256_spill] sm:$0xff] }
 0x8da   :  { %4991 = vmatmul.f32.gmra.mxu0 %v10632_v29  ;;  %5104 = vmatmul.f32.gmra.mxu1 %v10634_v8  ;;  %v5372_v50 = vadd.f32 %v5058_v27, %v4477_v23  ;;  %v14604_v23 = vld [vmem:[#allocation257_spill] sm:$0xff] }
 0x8db   :  { %v5428_v61 = vmax.f32 %v5370_v10, %v5371_v40  ;;  %5217 = vmatmul.f32.gmra.mxu2 %v10632_v29  ;;  %5330 = vmatmul.f32.gmra.mxu3 %v10634_v8  ;;  %v6880_v29 = vld [vmem:[%s13287_s5 + $0x148] sm:$0xff]  ;;  %v14596_v8 = vld [vmem:[#allocation264_spill] sm:$0xff]  ;;  %v5493_v40 = vmax.f32 %v5461_v30, 0.0 }
 0x8dc   :  { %5715 = vmatpush.msra.mxu1 %v6880_v29  ;;  %v4028_v58 = vadd.f32 %v14597_v34, %v14596_v8  ;;  %v14600_v10 = vld [vmem:[#allocation72_spill] sm:$0xff]  ;;  %v5591_v29 = vld [vmem:[%s13287_s5 + $0xa8] sm:$0xff] }
 0x8dd   :  { %v5464_v1 = vadd.f32 %v11939_v42, %v5428_v61  ;;  %v14602_v61 = vld [vmem:[#allocation36_spill] sm:$0xff]  ;;  %5839 = vmatpush.msra.mxu3 %v5591_v29  ;;  %v14614_v29 = vld [vmem:[#allocation22_spill] sm:$0xff] }
 0x8de   :  { %v5170_v31 = vpop.f32.mrf.mxu2  ;;  %v5283_v53 = vpop.f32.mrf.mxu3  ;;  %v4367_v63 = vadd.f32 %v11488_v15, %v4028_v58  ;;  %v14607_v58 = vld [vmem:[#allocation73_spill] sm:$0xff]  ;;  %v5589_v30 = vld [vmem:[%s13287_s5 + $0x98] sm:$0xff] }
 0x8df   :  { %v5496_v3 = vmax.f32 %v5464_v1, 0.0  ;;  %v5284_v48 = vadd.f32 %v5283_v53, %v5170_v31  ;;  %v4947_v43 = vpop.f32.mrf.mxu0  ;;  %v5060_v20 = vpop.f32.mrf.mxu1  ;;  %v4031_v1 = vadd.f32 %v14602_v61, %v14601_v45  ;;  %v14603_v31 = vld [vmem:[#allocation303_spill] sm:$0xff]  ;;  %5840 = vmatpush.msra.mxu3 %v5589_v30 }
 0x8e0   :  { %v5061_v33 = vadd.f32 %v5060_v20, %v4947_v43  ;;  %v4480_v5 = vadd.f32 %v14600_v10, %v4367_v63  ;;  %v5588_v63 = vld [vmem:[%s13287_s5 + $0x90] sm:$0xff] }
 0x8e1   :  { %v5373_v51 = vadd.f32 %v5284_v48, %v11492_v32  ;;  %v12014_v22 = vmax.f32 %v5492_v14, %v5496_v3  ;;  %v14605_v14 = vld [vmem:[#allocation28_spill] sm:$0xff]  ;;  %v14606_v3 = vld [vmem:[#allocation302_spill] sm:$0xff]  ;;  %5775 = vmatpush.msra.mxu2 %v5588_v63  ;;  %v6877_v10 = vld [vmem:[%s13287_s5 + $0x130] sm:$0xff] }
 0x8e2   :  { %4994 = vmatmul.f32.gmra.mxu0 %v14598_v62  ;;  %5107 = vmatmul.f32.gmra.mxu1 %v14599_v56  ;;  %v12035_v27 = vadd.f32 %v5061_v33, %v4480_v5  ;;  %v4370_v48 = vadd.f32 %v14606_v3, %v4031_v1  ;;  %v6878_v5 = vld [vmem:[%s13287_s5 + $0x138] sm:$0xff]  ;;  %v5582_v1 = vld [vmem:[%s13287_s5 + $0x60] sm:$0xff]  ;;  %v14617_v63 = vld [vmem:[#allocation306_spill] sm:$0xff] }
 0x8e3   :  { %v5429_v54 = vmax.f32 %v5372_v50, %v5373_v51  ;;  %5220 = vmatmul.f32.gmra.mxu2 %v14598_v62  ;;  %5333 = vmatmul.f32.gmra.mxu3 %v14599_v56 }
 0x8e4   :  { %v4483_v50 = vadd.f32 %v14607_v58, %v4370_v48  ;;  %5651 = vmatpush.msra.mxu0 %v6877_v10  ;;  %5716 = vmatpush.msra.mxu1 %v6878_v5  ;;  %v6875_v10 = vld [vmem:[%s13287_s5 + $0x120] sm:$0xff]  ;;  %v6876_v5 = vld [vmem:[%s13287_s5 + $0x128] sm:$0xff] }
 0x8e5   :  { %v5465_v32 = vadd.f32 %v11939_v42, %v5429_v54  ;;  %v14608_v54 = vld [vmem:[#allocation266_spill] sm:$0xff] }
 0x8e6   :  { %v5173_v7 = vpop.f32.mrf.mxu2  ;;  %v5286_v28 = vpop.f32.mrf.mxu3  ;;  %5652 = vmatpush.msra.mxu0 %v6875_v10  ;;  %5717 = vmatpush.msra.mxu1 %v6876_v5  ;;  %v5571_v10 = vld [vmem:[%s13287_s5 + $0x8] sm:$0xff] }
 0x8e7   :  { %v5497_v57 = vmax.f32 %v5465_v32, 0.0  ;;  %v5287_v15 = vadd.f32 %v5286_v28, %v5173_v7  ;;  %v4950_v11 = vpop.f32.mrf.mxu0  ;;  %v5063_v26 = vpop.f32.mrf.mxu1  ;;  %v14609_v32 = vld [vmem:[#allocation37_spill] sm:$0xff] }
 0x8e8   :  { %v5064_v20 = vadd.f32 %v5063_v26, %v4950_v11  ;;  %v4034_v33 = vadd.f32 %v14609_v32, %v14608_v54  ;;  %v5578_v54 = vld [vmem:[%s13287_s5 + $0x40] sm:$0xff]  ;;  %v5579_v32 = vld [vmem:[%s13287_s5 + $0x48] sm:$0xff] }
 0x8e9   :  { %v12038_v53 = vadd.f32 %v5287_v15, %v14603_v31  ;;  %v12040_v59 = vmax.f32 %v5493_v40, %v5497_v57  ;;  %v14610_v40 = vld [vmem:[#allocation259_spill] sm:$0xff]  ;;  %v14611_v57 = vld [vmem:[#allocation14_spill] sm:$0xff]  ;;  %v5586_v15 = vld [vmem:[%s13287_s5 + $0x80] sm:$0xff] }
 0x8ea   :  { %4997 = vmatmul.f32.gmra.mxu0 %v14604_v23  ;;  %5110 = vmatmul.f32.gmra.mxu1 %v14605_v14  ;;  %v12064_v7 = vadd.f32 %v5064_v20, %v4483_v50  ;;  %v4373_v11 = vadd.f32 %v11522_v41, %v4034_v33  ;;  %v5583_v31 = vld [vmem:[%s13287_s5 + $0x68] sm:$0xff]  ;;  %v5580_v50 = vld [vmem:[%s13287_s5 + $0x50] sm:$0xff] }
 0x8eb   :  { %v5430_v43 = vmax.f32 %v12035_v27, %v12038_v53  ;;  %5223 = vmatmul.f32.gmra.mxu2 %v14604_v23  ;;  %5336 = vmatmul.f32.gmra.mxu3 %v14605_v14  ;;  %v14612_v23 = vld [vmem:[#allocation76_spill] sm:$0xff]  ;;  %v14630_v53 = vld [vmem:[#allocation39_spill] sm:$0xff] }
 0x8ec   :  { %5776 = vmatpush.msra.mxu2 %v5586_v15  ;;  %v4486_v14 = vadd.f32 %v14612_v23, %v4373_v11  ;;  %v5576_v15 = vld [vmem:[%s13287_s5 + $0x30] sm:$0xff]  ;;  %v14618_v11 = vld [vmem:[#allocation77_spill] sm:$0xff]  ;;  %v14629_v27 = vld [vmem:[#allocation268_spill] sm:$0xff] }
 0x8ed   :  { %v14620_v23 = vld [vmem:[#allocation23_spill] sm:$0xff] }
 0x8ee   :  { %v5176_v8 = vpop.f32.mrf.mxu2  ;;  %v5289_v34 = vpop.f32.mrf.mxu3  ;;  %5777 = vmatpush.msra.mxu2 %v5584_v12 }
 0x8ef   :  { %v5290_v51 = vadd.f32 %v5289_v34, %v5176_v8  ;;  %v4953_v62 = vpop.f32.mrf.mxu0  ;;  %v5066_v56 = vpop.f32.mrf.mxu1  ;;  %v4037_v8 = vadd.f32 %v14614_v29, %v14613_v46  ;;  %v5574_v46 = vld [vmem:[%s13287_s5 + $0x20] sm:$0xff]  ;;  %v5575_v29 = vld [vmem:[%s13287_s5 + $0x28] sm:$0xff] }
 0x8f0   :  { %v5067_v45 = vadd.f32 %v5066_v56, %v4953_v62  ;;  %5778 = vmatpush.msra.mxu2 %v5582_v1  ;;  %v14615_v62 = vld [vmem:[#allocation245_spill] sm:$0xff]  ;;  %v14616_v56 = vld [vmem:[#allocation30_spill] sm:$0xff]  ;;  %v6874_v1 = vld [vmem:[%s13287_s5 + $0x118] sm:$0xff] }
 0x8f1   :  { %v12067_v28 = vadd.f32 %v5290_v51, %v11526_v39  ;;  %v5587_v39 = vld [vmem:[%s13287_s5 + $0x88] sm:$0xff]  ;;  %v5581_v51 = vld [vmem:[%s13287_s5 + $0x58] sm:$0xff]  ;;  %v4376_v30 = vadd.f32 %v14617_v63, %v4037_v8  ;;  %5718 = vmatpush.msra.mxu1 %v6874_v1  ;;  %v14622_v8 = vmov 0.0  }
 0x8f2   :  { %5000 = vmatmul.f32.gmra.mxu0 %v14610_v40  ;;  %5113 = vmatmul.f32.gmra.mxu1 %v14611_v57  ;;  %v12103_v34 = vadd.f32 %v5067_v45, %v4486_v14 }
 0x8f3   :  { %v5431_v26 = vmax.f32 %v12064_v7, %v12067_v28  ;;  %5226 = vmatmul.f32.gmra.mxu2 %v14610_v40  ;;  %5339 = vmatmul.f32.gmra.mxu3 %v14611_v57  ;;  %v4489_v12 = vadd.f32 %v14618_v11, %v4376_v30  ;;  %v5572_v30 = vld [vmem:[%s13287_s5 + $0x10] sm:$0xff]  ;;  %v14633_v7 = vld [vmem:[#allocation269_spill] sm:$0xff]  ;;  %v14634_v28 = vld [vmem:[#allocation40_spill] sm:$0xff] }
 0x8f4   :  { %5841 = vmatpush.msra.mxu3 %v5587_v39  ;;  %5779 = vmatpush.msra.mxu2 %v5580_v50  ;;  %v5577_v39 = vld [vmem:[%s13287_s5 + $0x38] sm:$0xff]  ;;  %v6871_v50 = vld [vmem:[%s13287_s5 + $0x100] sm:$0xff] }
 0x8f6   :  { %v5179_v41 = vpop.f32.mrf.mxu2  ;;  %v5292_v61 = vpop.f32.mrf.mxu3  ;;  %5842 = vmatpush.msra.mxu3 %v5585_v6  ;;  %5780 = vmatpush.msra.mxu2 %v5578_v54  ;;  %v5573_v54 = vld [vmem:[%s13287_s5 + $0x18] sm:$0xff] }
 0x8f7   :  { %v5293_v3 = vadd.f32 %v5292_v61, %v5179_v41  ;;  %v4956_v48 = vpop.f32.mrf.mxu0  ;;  %v5069_v20 = vpop.f32.mrf.mxu1  ;;  %v6873_v61 = vld [vmem:[%s13287_s5 + $0x110] sm:$0xff] }
 0x8f8   :  { %5843 = vmatpush.msra.mxu3 %v5583_v31  ;;  %v5070_v33 = vadd.f32 %v5069_v20, %v4956_v48  ;;  %5653 = vmatpush.msra.mxu0 %v6873_v61  ;;  %v14619_v31 = vld [vmem:[#allocation252_spill] sm:$0xff]  ;;  %v14621_v48 = vld [vmem:[#allocation310_spill] sm:$0xff] }
 0x8f9   :  { %v12106_v58 = vadd.f32 %v5293_v3, %v11543_v16  ;;  %v4040_v14 = vadd.f32 %v14620_v23, %v14619_v31  ;;  %5781 = vmatpush.msra.mxu2 %v5576_v15  ;;  %v14627_v31 = vld [vmem:[#allocation81_spill] sm:$0xff] }
 0x8fa   :  { %5003 = vmatmul.f32.gmra.mxu0 %v14615_v62  ;;  %5116 = vmatmul.f32.gmra.mxu1 %v14616_v56  ;;  %v12148_v3 = vadd.f32 %v5070_v33, %v4489_v12  ;;  %v5570_v33 = vld [vmem:[%s13287_s5] sm:$0xff] }
 0x8fb   :  { %v5432_v16 = vmax.f32 %v12103_v34, %v12106_v58  ;;  %5229 = vmatmul.f32.gmra.mxu2 %v14615_v62  ;;  %5342 = vmatmul.f32.gmra.mxu3 %v14616_v56  ;;  %v14623_v62 = vld [vmem:[#allocation307_spill] sm:$0xff]  ;;  %v14637_v34 = vld [vmem:[#allocation270_spill] sm:$0xff]  ;;  %v14638_v58 = vld [vmem:[#allocation41_spill] sm:$0xff] }
 0x8fc   :  { %5844 = vmatpush.msra.mxu3 %v5581_v51  ;;  %v6872_v51 = vld [vmem:[%s13287_s5 + $0x108] sm:$0xff]  ;;  %v4379_v56 = vadd.f32 %v14623_v62, %v4040_v14  ;;  %5782 = vmatpush.msra.mxu2 %v5574_v46  ;;  %v5466_v14 = vadd.f32 %v11939_v42, %v5430_v43  ;;  %v4046_v43 = vadd.f32 %v14630_v53, %v14629_v27 }
 0x8fd   :  { %5654 = vmatpush.msra.mxu0 %v6871_v50  ;;  %5719 = vmatpush.msra.mxu1 %v6872_v51  ;;  %v14628_v51 = vld [vmem:[#allocation311_spill] sm:$0xff] }
 0x8fe   :  { %v5182_v40 = vpop.f32.mrf.mxu2  ;;  %v5295_v57 = vpop.f32.mrf.mxu3  ;;  %5845 = vmatpush.msra.mxu3 %v5579_v32  ;;  %5783 = vmatpush.msra.mxu2 %v5572_v30 }
 0x8ff   :  { %v5296_v6 = vadd.f32 %v5295_v57, %v5182_v40  ;;  %v4959_v45 = vpop.f32.mrf.mxu0  ;;  %v5072_v41 = vpop.f32.mrf.mxu1  ;;  %v14624_v57 = vld [vmem:[#allocation80_spill] sm:$0xff] }
 0x900   :  { %5846 = vmatpush.msra.mxu3 %v5577_v39  ;;  %v5073_v32 = vadd.f32 %v5072_v41, %v4959_v45  ;;  %v4492_v15 = vadd.f32 %v14624_v57, %v4379_v56  ;;  %5784 = vmatpush.msra.mxu2 %v5570_v33  ;;  %v14626_v45 = vld [vmem:[#allocation38_spill] sm:$0xff]  ;;  %v5498_v56 = vmax.f32 %v5466_v14, 0.0  ;;  %v14631_v57 = vld [vmem:[#allocation84_spill] sm:$0xff] }
 0x901   :  { %v12151_v20 = vadd.f32 %v5296_v6, %v14621_v48  ;;  %v14625_v6 = vld [vmem:[#allocation253_spill] sm:$0xff] }
 0x902   :  { %5006 = vmatmul.f32.gmra.mxu0 %v14622_v8  ;;  %5119 = vmatmul.f32.gmra.mxu1 %v14622_v8  ;;  %v4043_v41 = vadd.f32 %v14626_v45, %v14625_v6  ;;  %v5382_v61 = vadd.f32 %v5073_v32, %v4492_v15  ;;  %v4385_v15 = vadd.f32 %v14631_v57, %v4046_v43 }
 0x903   :  { %v5433_v63 = vmax.f32 %v12148_v3, %v12151_v20  ;;  %5232 = vmatmul.f32.gmra.mxu2 %v14622_v8  ;;  %5345 = vmatmul.f32.gmra.mxu3 %v14622_v8  ;;  %v14639_v3 = vld [vmem:[#allocation271_spill] sm:$0xff]  ;;  %v14640_v20 = vld [vmem:[#allocation44_spill] sm:$0xff] }
 0x904   :  { %5847 = vmatpush.msra.mxu3 %v5575_v29  ;;  %v4382_v23 = vadd.f32 %v14627_v31, %v4043_v41  ;;  %v14632_v41 = vld [vmem:[#allocation314_spill] sm:$0xff] }
 0x906   :  { %v5185_v5 = vpop.f32.mrf.mxu2  ;;  %v5298_v40 = vpop.f32.mrf.mxu3  ;;  %5848 = vmatpush.msra.mxu3 %v5573_v54  ;;  %v4495_v62 = vadd.f32 %v14628_v51, %v4382_v23 }
 0x907   :  { %v5299_v39 = vadd.f32 %v5298_v40, %v5185_v5  ;;  %v4962_v11 = vpop.f32.mrf.mxu0  ;;  %v5075_v12 = vpop.f32.mrf.mxu1 }
 0x908   :  { %5849 = vmatpush.msra.mxu3 %v5571_v10  ;;  %v5076_v29 = vadd.f32 %v5075_v12, %v4962_v11 }
 0x909   :  { %v5383_v1 = vadd.f32 %v5299_v39, %v11589_v47  ;;  %v5467_v39 = vadd.f32 %v11939_v42, %v5431_v26  ;;  %v4049_v26 = vadd.f32 %v14634_v28, %v14633_v7 }
 0x90a   :  { %5009 = vmatmul.f32.gmra.mxu0 %v14622_v8  ;;  %5122 = vmatmul.f32.gmra.mxu1 %v14622_v8  ;;  %v5384_v5 = vadd.f32 %v5076_v29, %v4495_v62  ;;  %v5468_v62 = vadd.f32 %v11939_v42, %v5432_v16  ;;  %v4052_v16 = vadd.f32 %v14638_v58, %v14637_v34 }
 0x90b   :  { %v5434_v48 = vmax.f32 %v5382_v61, %v5383_v1  ;;  %5235 = vmatmul.f32.gmra.mxu2 %v14622_v8  ;;  %5348 = vmatmul.f32.gmra.mxu3 %v14622_v8  ;;  %v4498_v61 = vadd.f32 %v14632_v41, %v4385_v15  ;;  %v5499_v1 = vmax.f32 %v5467_v39, 0.0 }
 0x90c   :  { %v5500_v53 = vmax.f32 %v5468_v62, 0.0  ;;  %v14641_v62 = vld [vmem:[#allocation88_spill] sm:$0xff] }
 0x90d   :  { %v5470_v46 = vadd.f32 %v11939_v42, %v5434_v48 }
 0x90e   :  { %v5188_v47 = vpop.f32.mrf.mxu2  ;;  %v5301_v50 = vpop.f32.mrf.mxu3 }
 0x90f   :  { %v5502_v30 = vmax.f32 %v5470_v46, 0.0  ;;  %v5302_v54 = vadd.f32 %v5301_v50, %v5188_v47  ;;  %v4965_v32 = vpop.f32.mrf.mxu0  ;;  %v5078_v33 = vpop.f32.mrf.mxu1  ;;  %v14635_v50 = vld [vmem:[#allocation85_spill] sm:$0xff] }
 0x910   :  { %v5079_v6 = vadd.f32 %v5078_v33, %v4965_v32  ;;  %v4388_v51 = vadd.f32 %v14635_v50, %v4049_v26  ;;  %v14636_v33 = vld [vmem:[#allocation315_spill] sm:$0xff] }
 0x911   :  { %v12201_v10 = vmax.f32 %v5498_v56, %v5502_v30  ;;  %v5385_v40 = vadd.f32 %v5302_v54, %v11600_v35 }
 0x912   :  { %5012 = vmatmul.f32.gmra.mxu0 %v14622_v8  ;;  %5125 = vmatmul.f32.gmra.mxu1 %v14622_v8  ;;  %v5386_v29 = vadd.f32 %v5079_v6, %v4498_v61  ;;  %v4501_v27 = vadd.f32 %v14636_v33, %v4388_v51  ;;  %v5469_v6 = vadd.f32 %v11939_v42, %v5433_v63 }
 0x913   :  { %v5435_v11 = vmax.f32 %v5384_v5, %v5385_v40  ;;  %5238 = vmatmul.f32.gmra.mxu2 %v14622_v8  ;;  %5351 = vmatmul.f32.gmra.mxu3 %v14622_v8  ;;  %v4055_v63 = vadd.f32 %v14640_v20, %v14639_v3 }
 0x915   :  { %v5471_v12 = vadd.f32 %v11939_v42, %v5435_v11 }
 0x916   :  { %v5191_v35 = vpop.f32.mrf.mxu2  ;;  %v5304_v45 = vpop.f32.mrf.mxu3 }
 0x917   :  { %v5503_v31 = vmax.f32 %v5471_v12, 0.0  ;;  %v5305_v23 = vadd.f32 %v5304_v45, %v5191_v35  ;;  %v4968_v14 = vpop.f32.mrf.mxu0  ;;  %v5081_v48 = vpop.f32.mrf.mxu1  ;;  %v4391_v12 = vadd.f32 %v11618_v4, %v4052_v16 }
 0x918   :  { %v5082_v54 = vadd.f32 %v5081_v48, %v4968_v14 }
 0x919   :  { %v12217_v46 = vmax.f32 %v5499_v1, %v5503_v31  ;;  %v5387_v47 = vadd.f32 %v5305_v23, %v11611_v60  ;;  %v4504_v1 = vadd.f32 %v11620_v25, %v4391_v12  ;;  %v5501_v31 = vmax.f32 %v5469_v6, 0.0 }
 0x91a   :  { %5015 = vmatmul.f32.gmra.mxu0 %v14622_v8  ;;  %5128 = vmatmul.f32.gmra.mxu1 %v14622_v8  ;;  %v5388_v39 = vadd.f32 %v5082_v54, %v4501_v27  ;;  %v4394_v25 = vadd.f32 %v11629_v2, %v4055_v63  ;;  %v14644_v2 = vld [vmem:[#allocation319_spill] sm:$0xff] }
 0x91b   :  { %v5436_v56 = vmax.f32 %v5386_v29, %v5387_v47  ;;  %5241 = vmatmul.f32.gmra.mxu2 %v14622_v8  ;;  %5354 = vmatmul.f32.gmra.mxu3 %v14622_v8 }
 0x91d   :  { %v5472_v30 = vadd.f32 %v11939_v42, %v5436_v56  ;;  %v4507_v56 = vadd.f32 %v14641_v62, %v4394_v25 }
 0x91e   :  { %v5194_v60 = vpop.f32.mrf.mxu2  ;;  %v5307_v32 = vpop.f32.mrf.mxu3 }
 0x91f   :  { %v5504_v43 = vmax.f32 %v5472_v30, 0.0  ;;  %v5308_v5 = vadd.f32 %v5307_v32, %v5194_v60  ;;  %v4971_v40 = vpop.f32.mrf.mxu0  ;;  %v5084_v57 = vpop.f32.mrf.mxu1  ;;  %v14642_v60 = vld [vmem:[#allocation274_spill] sm:$0xff]  ;;  %v14643_v32 = vld [vmem:[#allocation45_spill] sm:$0xff] }
 0x920   :  { %v5085_v41 = vadd.f32 %v5084_v57, %v4971_v40  ;;  %v4058_v33 = vadd.f32 %v14643_v32, %v14642_v60  ;;  %v14645_v40 = vld [vmem:[#allocation318_spill] sm:$0xff] }
 0x921   :  { %v12233_v15 = vmax.f32 %v5500_v53, %v5504_v43  ;;  %v5389_v11 = vadd.f32 %v5308_v5, %v11622_v49  ;;  %v6933_v43 = vld [vmem:[%s13287_s5 + $0x2f0] sm:$0xff]  ;;  %v6934_v5 = vld [vmem:[%s13287_s5 + $0x2f8] sm:$0xff] }
 0x922   :  { %5655 = vmatmul.f32.vlgmr.msra.gmra.mxu0 %v11969_v17  ;;  %5720 = vmatmul.f32.vlgmr.msra.gmra.mxu1 %v11969_v17  ;;  %v12251_v28 = vadd.f32 %v5085_v41, %v4504_v1  ;;  %v4397_v57 = vadd.f32 %v14645_v40, %v4058_v33  ;;  %v14647_v41 = vld [vmem:[#allocation48_spill] sm:$0xff]  ;;  %v14655_v40 = vld [vmem:[#allocation305_spill] sm:$0xff] }
 0x923   :  { %v5437_v35 = vmax.f32 %v5388_v39, %v5389_v11  ;;  %5785 = vmatmul.f32.vlgmr.msra.gmra.mxu2 %v14622_v8  ;;  %5850 = vmatmul.f32.vlgmr.msra.gmra.mxu3 %v14622_v8  ;;  %v14646_v11 = vld [vmem:[#allocation89_spill] sm:$0xff]  ;;  %v14654_v33 = vld [vmem:[#allocation320_spill] sm:$0xff] }
 0x924   :  { %5948 = vmatpush.msrb.mxu0 %v6933_v43  ;;  %6013 = vmatpush.msrb.mxu1 %v6934_v5  ;;  %v4510_v12 = vadd.f32 %v14646_v11, %v4397_v57  ;;  %v6929_v43 = vld [vmem:[%s13287_s5 + $0x2d0] sm:$0xff]  ;;  %v6930_v5 = vld [vmem:[%s13287_s5 + $0x2d8] sm:$0xff] }
 0x925   :  { %v5473_v45 = vadd.f32 %v11939_v42, %v5437_v35 }
 0x926   :  { %v5197_v49 = vpop.f32.mrf.mxu2  ;;  %v5310_v61 = vpop.f32.mrf.mxu3 }
 0x927   :  { %v5505_v23 = vmax.f32 %v5473_v45, 0.0  ;;  %v5311_v4 = vadd.f32 %v5310_v61, %v5197_v49  ;;  %v4974_v14 = vpop.f32.mrf.mxu0  ;;  %v5087_v48 = vpop.f32.mrf.mxu1  ;;  %v14648_v49 = vld [vmem:[#allocation278_spill] sm:$0xff] }
 0x928   :  { %v5088_v47 = vadd.f32 %v5087_v48, %v4974_v14  ;;  %v4061_v61 = vadd.f32 %v14648_v49, %v14647_v41  ;;  %v6932_v14 = vld [vmem:[%s13287_s5 + $0x2e8] sm:$0xff]  ;;  %v14657_v49 = vld [vmem:[#allocation53_spill] sm:$0xff] }
 0x929   :  { %v12249_v7 = vmax.f32 %v5501_v31, %v5505_v23  ;;  %v12254_v26 = vadd.f32 %v5311_v4, %v11633_v55  ;;  %v14649_v31 = vld [vmem:[#allocation75_spill] sm:$0xff]  ;;  %v6931_v4 = vld [vmem:[%s13287_s5 + $0x2e0] sm:$0xff]  ;;  %v14650_v48 = vld [vmem:[#allocation74_spill] sm:$0xff]  ;;  %6014 = vmatpush.msrb.mxu1 %v6932_v14 }
 0x92a   :  { %5658 = vmatmul.f32.gmra.mxu0 %v11992_v37  ;;  %5723 = vmatmul.f32.gmra.mxu1 %v11992_v37  ;;  %v12266_v27 = vadd.f32 %v5088_v47, %v4507_v56  ;;  %v4400_v3 = vadd.f32 %v14650_v48, %v4061_v61  ;;  %v14658_v61 = vld [vmem:[#allocation283_spill] sm:$0xff]  ;;  %v14659_v14 = vld [vmem:[#allocation92_spill] sm:$0xff] }
 0x92b   :  { %v5438_v29 = vmax.f32 %v12251_v28, %v12254_v26  ;;  %5788 = vmatmul.f32.gmra.mxu2 %v14622_v8  ;;  %5853 = vmatmul.f32.gmra.mxu3 %v14622_v8 }
 0x92c   :  { %5949 = vmatpush.msrb.mxu0 %v6931_v4  ;;  %6015 = vmatpush.msrb.mxu1 %v6930_v5  ;;  %v14662_v5 = vld [vmem:[#allocation286_spill] sm:$0xff] }
 0x92e   :  { %v5200_v50 = vpop.f32.mrf.mxu2  ;;  %v5313_v51 = vpop.f32.mrf.mxu3  ;;  %5950 = vmatpush.msrb.mxu0 %v6929_v43 }
 0x92f   :  { %v5314_v55 = vadd.f32 %v5313_v51, %v5200_v50  ;;  %v4977_v30 = vpop.f32.mrf.mxu0  ;;  %v5090_v54 = vpop.f32.mrf.mxu1  ;;  %v14651_v50 = vld [vmem:[#allocation304_spill] sm:$0xff] }
 0x930   :  { %v5091_v58 = vadd.f32 %v5090_v54, %v4977_v30  ;;  %v4513_v51 = vadd.f32 %v14651_v50, %v4400_v3  ;;  %v14652_v30 = vld [vmem:[#allocation279_spill] sm:$0xff]  ;;  %v14653_v54 = vld [vmem:[#allocation52_spill] sm:$0xff]  ;;  %v6928_v3 = vld [vmem:[%s13287_s5 + $0x2c8] sm:$0xff] }
 0x931   :  { %v12269_v53 = vadd.f32 %v5314_v55, %v14644_v2  ;;  %v4064_v60 = vadd.f32 %v14653_v54, %v14652_v30  ;;  %6016 = vmatpush.msrb.mxu1 %v6928_v3  ;;  %v14661_v30 = vld [vmem:[#allocation321_spill] sm:$0xff] }
 0x932   :  { %5661 = vmatmul.f32.gmra.mxu0 %v12014_v22  ;;  %5726 = vmatmul.f32.gmra.mxu1 %v12014_v22  ;;  %v12287_v1 = vadd.f32 %v5091_v58, %v4510_v12  ;;  %v14656_v12 = vld [vmem:[#allocation90_spill] sm:$0xff] }
 0x933   :  { %v5439_v34 = vmax.f32 %v12266_v27, %v12269_v53  ;;  %5791 = vmatmul.f32.gmra.mxu2 %v14622_v8  ;;  %5856 = vmatmul.f32.gmra.mxu3 %v14622_v8  ;;  %v4403_v57 = vadd.f32 %v14655_v40, %v4064_v60  ;;  %v14663_v40 = vld [vmem:[#allocation57_spill] sm:$0xff]  ;;  %v14666_v53 = vld [vmem:[#allocation42_spill] sm:$0xff] }
 0x934   :  { %v6923_v27 = vld [vmem:[%s13287_s5 + $0x2a0] sm:$0xff] }
 0x936   :  { %v5203_v16 = vpop.f32.mrf.mxu2  ;;  %v5316_v39 = vpop.f32.mrf.mxu3 }
 0x937   :  { %v5317_v6 = vadd.f32 %v5316_v39, %v5203_v16  ;;  %v4980_v35 = vpop.f32.mrf.mxu0  ;;  %v5093_v45 = vpop.f32.mrf.mxu1 }
 0x938   :  { %v5094_v63 = vadd.f32 %v5093_v45, %v4980_v35 }
 0x939   :  { %v12290_v23 = vadd.f32 %v5317_v6, %v14649_v31  ;;  %v4516_v6 = vadd.f32 %v14656_v12, %v4403_v57  ;;  %v4067_v31 = vadd.f32 %v14658_v61, %v14657_v49  ;;  %v4070_v57 = vadd.f32 %v14663_v40, %v14662_v5  ;;  %v14664_v12 = vld [vmem:[#allocation322_spill] sm:$0xff] }
 0x93a   :  { %5664 = vmatmul.f32.gmra.mxu0 %v12040_v59  ;;  %5729 = vmatmul.f32.gmra.mxu1 %v12040_v59  ;;  %v12308_v32 = vadd.f32 %v5094_v63, %v4513_v51  ;;  %v14660_v63 = vld [vmem:[#allocation91_spill] sm:$0xff] }
 0x93b   :  { %v5440_v20 = vmax.f32 %v12287_v1, %v12290_v23  ;;  %5794 = vmatmul.f32.gmra.mxu2 %v14622_v8  ;;  %5859 = vmatmul.f32.gmra.mxu3 %v14622_v8  ;;  %v6921_v1 = vld [vmem:[%s13287_s5 + $0x290] sm:$0xff]  ;;  %v14671_v23 = vld [vmem:[#allocation273_spill] sm:$0xff] }
 0x93e   :  { %v5206_v25 = vpop.f32.mrf.mxu2  ;;  %v5319_v47 = vpop.f32.mrf.mxu3 }
 0x93f   :  { %v5320_v62 = vadd.f32 %v5319_v47, %v5206_v25  ;;  %v4983_v56 = vpop.f32.mrf.mxu0  ;;  %v5096_v55 = vpop.f32.mrf.mxu1  ;;  %v4406_v25 = vadd.f32 %v14660_v63, %v4067_v31  ;;  %v5474_v47 = vadd.f32 %v11939_v42, %v5438_v29  ;;  %v6925_v29 = vld [vmem:[%s13287_s5 + $0x2b0] sm:$0xff]  ;;  %v14665_v31 = vld [vmem:[#allocation93_spill] sm:$0xff] }
 0x940   :  { %v5097_v16 = vadd.f32 %v5096_v55, %v4983_v56 }
 0x941   :  { %v12311_v2 = vadd.f32 %v5320_v62, %v14654_v33  ;;  %v4519_v54 = vadd.f32 %v14661_v30, %v4406_v25  ;;  %v5506_v60 = vmax.f32 %v5474_v47, 0.0  ;;  %v5476_v30 = vadd.f32 %v11939_v42, %v5440_v20  ;;  %v14672_v20 = vld [vmem:[#allocation58_spill] sm:$0xff] }
 0x942   :  { %5667 = vmatmul.f32.gmra.mxu0 %v12201_v10  ;;  %5732 = vmatmul.f32.gmra.mxu1 %v12201_v10  ;;  %v5398_v4 = vadd.f32 %v5097_v16, %v4516_v6  ;;  %v4409_v6 = vadd.f32 %v14664_v12, %v4070_v57 }
 0x943   :  { %v5441_v58 = vmax.f32 %v12308_v32, %v12311_v2  ;;  %5797 = vmatmul.f32.gmra.mxu2 %v11969_v17  ;;  %5862 = vmatmul.f32.gmra.mxu3 %v11969_v17  ;;  %v6927_v17 = vld [vmem:[%s13287_s5 + $0x2c0] sm:$0xff]  ;;  %v6920_v2 = vld [vmem:[%s13287_s5 + $0x288] sm:$0xff] }
 0x944   :  { %5951 = vmatpush.msrb.mxu0 %v6927_v17  ;;  %v6919_v32 = vld [vmem:[%s13287_s5 + $0x280] sm:$0xff] }
 0x946   :  { %v5209_v39 = vpop.f32.mrf.mxu2  ;;  %v5322_v11 = vpop.f32.mrf.mxu3  ;;  %5952 = vmatpush.msrb.mxu0 %v6925_v29 }
 0x947   :  { %v5323_v35 = vadd.f32 %v5322_v11, %v5209_v39  ;;  %v4986_v45 = vpop.f32.mrf.mxu0  ;;  %v5099_v41 = vpop.f32.mrf.mxu1 }
 0x948   :  { %v5100_v62 = vadd.f32 %v5099_v41, %v4986_v45  ;;  %5953 = vmatpush.msrb.mxu0 %v6923_v27 }
 0x949   :  { %v5399_v48 = vadd.f32 %v5323_v35, %v14659_v14  ;;  %v5475_v35 = vadd.f32 %v11939_v42, %v5439_v34  ;;  %v14667_v34 = vld [vmem:[#allocation272_spill] sm:$0xff] }
 0x94a   :  { %5670 = vmatmul.f32.gmra.mxu0 %v12217_v46  ;;  %5735 = vmatmul.f32.gmra.mxu1 %v12217_v46  ;;  %v5400_v39 = vadd.f32 %v5100_v62, %v4519_v54  ;;  %v4073_v25 = vadd.f32 %v14667_v34, %v14666_v53  ;;  %v14675_v53 = vld [vmem:[#allocation79_spill] sm:$0xff] }
 0x94b   :  { %v5442_v50 = vmax.f32 %v5398_v4, %v5399_v48  ;;  %5800 = vmatmul.f32.gmra.mxu2 %v11992_v37  ;;  %5865 = vmatmul.f32.gmra.mxu3 %v11992_v37  ;;  %v6926_v37 = vld [vmem:[%s13287_s5 + $0x2b8] sm:$0xff]  ;;  %v4522_v4 = vadd.f32 %v14665_v31, %v4409_v6  ;;  %v5507_v14 = vmax.f32 %v5475_v35, 0.0 }
 0x94c   :  { %6017 = vmatpush.msrb.mxu1 %v6926_v37  ;;  %v5508_v37 = vmax.f32 %v5476_v30, 0.0  ;;  %5954 = vmatpush.msrb.mxu0 %v6921_v1 }
 0x94d   :  { %v5478_v51 = vadd.f32 %v11939_v42, %v5442_v50 }
 0x94e   :  { %v5212_v56 = vpop.f32.mrf.mxu2  ;;  %v5325_v55 = vpop.f32.mrf.mxu3  ;;  %5955 = vmatpush.msrb.mxu0 %v6919_v32  ;;  %v6914_v32 = vld [vmem:[%s13287_s5 + $0x258] sm:$0xff] }
 0x94f   :  { %v5510_v33 = vmax.f32 %v5478_v51, 0.0  ;;  %v5326_v43 = vadd.f32 %v5325_v55, %v5212_v56  ;;  %v4989_v28 = vpop.f32.mrf.mxu0  ;;  %v5102_v26 = vpop.f32.mrf.mxu1  ;;  %v14668_v51 = vld [vmem:[#allocation308_spill] sm:$0xff]  ;;  %v14669_v56 = vld [vmem:[#allocation323_spill] sm:$0xff] }
 0x950   :  { %v5103_v49 = vadd.f32 %v5102_v26, %v4989_v28  ;;  %v4412_v55 = vadd.f32 %v14669_v56, %v4073_v25  ;;  %v14670_v26 = vld [vmem:[#allocation78_spill] sm:$0xff]  ;;  %v14676_v56 = vld [vmem:[#allocation309_spill] sm:$0xff] }
 0x951   :  { %v12355_v16 = vmax.f32 %v5506_v60, %v5510_v33  ;;  %v5401_v11 = vadd.f32 %v5326_v43, %v11706_v52 }
 0x952   :  { %5673 = vmatmul.f32.gmra.mxu0 %v12233_v15  ;;  %5738 = vmatmul.f32.gmra.mxu1 %v12233_v15  ;;  %v5402_v50 = vadd.f32 %v5103_v49, %v4522_v4  ;;  %v4525_v29 = vadd.f32 %v14670_v26, %v4412_v55 }
 0x953   :  { %v5443_v45 = vmax.f32 %v5400_v39, %v5401_v11  ;;  %5803 = vmatmul.f32.gmra.mxu2 %v12014_v22  ;;  %5868 = vmatmul.f32.gmra.mxu3 %v12014_v22  ;;  %v6924_v22 = vld [vmem:[%s13287_s5 + $0x2a8] sm:$0xff]  ;;  %v4076_v11 = vadd.f32 %v14672_v20, %v14671_v23 }
 0x954   :  { %6018 = vmatpush.msrb.mxu1 %v6924_v22 }
 0x955   :  { %v5479_v41 = vadd.f32 %v11939_v42, %v5443_v45  ;;  %v4415_v45 = vadd.f32 %v11730_v0, %v4076_v11  ;;  %v6915_v11 = vld [vmem:[%s13287_s5 + $0x260] sm:$0xff] }
 0x956   :  { %v5215_v52 = vpop.f32.mrf.mxu2  ;;  %v5328_v61 = vpop.f32.mrf.mxu3 }
 0x957   :  { %v5511_v48 = vmax.f32 %v5479_v41, 0.0  ;;  %v5329_v17 = vadd.f32 %v5328_v61, %v5215_v52  ;;  %v4992_v3 = vpop.f32.mrf.mxu0  ;;  %v5105_v63 = vpop.f32.mrf.mxu1  ;;  %v5477_v41 = vadd.f32 %v11939_v42, %v5441_v58  ;;  %v4528_v4 = vadd.f32 %v11732_v36, %v4415_v45  ;;  %v14674_v58 = vld [vmem:[#allocation289_spill] sm:$0xff] }
 0x958   :  { %v5106_v33 = vadd.f32 %v5105_v63, %v4992_v3 }
 0x959   :  { %v12377_v47 = vmax.f32 %v5507_v14, %v5511_v48  ;;  %v5403_v62 = vadd.f32 %v5329_v17, %v14668_v51  ;;  %v5509_v14 = vmax.f32 %v5477_v41, 0.0 }
 0x95a   :  { %5676 = vmatmul.f32.gmra.mxu0 %v12249_v7  ;;  %5741 = vmatmul.f32.gmra.mxu1 %v12249_v7  ;;  %v5404_v6 = vadd.f32 %v5106_v33, %v4525_v29  ;;  %v6918_v33 = vld [vmem:[%s13287_s5 + $0x278] sm:$0xff] }
 0x95b   :  { %v5444_v54 = vmax.f32 %v5402_v50, %v5403_v62  ;;  %5806 = vmatmul.f32.gmra.mxu2 %v12040_v59  ;;  %5871 = vmatmul.f32.gmra.mxu3 %v12040_v59  ;;  %v6922_v59 = vld [vmem:[%s13287_s5 + $0x298] sm:$0xff] }
 0x95c   :  { %6019 = vmatpush.msrb.mxu1 %v6922_v59 }
 0x95d   :  { %v5480_v60 = vadd.f32 %v11939_v42, %v5444_v54 }
 0x95e   :  { %v5218_v43 = vpop.f32.mrf.mxu2  ;;  %v5331_v28 = vpop.f32.mrf.mxu3  ;;  %6020 = vmatpush.msrb.mxu1 %v6920_v2  ;;  %v14683_v2 = vld [vmem:[#allocation277_spill] sm:$0xff] }
 0x95f   :  { %v5512_v5 = vmax.f32 %v5480_v60, 0.0  ;;  %v5332_v40 = vadd.f32 %v5331_v28, %v5218_v43  ;;  %v4995_v57 = vpop.f32.mrf.mxu0  ;;  %v5108_v39 = vpop.f32.mrf.mxu1  ;;  %v6917_v60 = vld [vmem:[%s13287_s5 + $0x270] sm:$0xff]  ;;  %v14677_v43 = vld [vmem:[#allocation290_spill] sm:$0xff]  ;;  %v14678_v28 = vld [vmem:[#allocation61_spill] sm:$0xff] }
 0x960   :  { %v5109_v61 = vadd.f32 %v5108_v39, %v4995_v57  ;;  %5956 = vmatpush.msrb.mxu0 %v6917_v60  ;;  %6021 = vmatpush.msrb.mxu1 %v6918_v33  ;;  %v4082_v26 = vadd.f32 %v14678_v28, %v14677_v43  ;;  %v6909_v33 = vld [vmem:[%s13287_s5 + $0x230] sm:$0xff]  ;;  %v6910_v43 = vld [vmem:[%s13287_s5 + $0x238] sm:$0xff] }
 0x961   :  { %v12399_v12 = vmax.f32 %v5508_v37, %v5512_v5  ;;  %v5405_v35 = vadd.f32 %v5332_v40, %v11734_v18  ;;  %v14686_v28 = vld [vmem:[#allocation63_spill] sm:$0xff] }
 0x962   :  { %5679 = vmatmul.f32.gmra.mxu0 %v12355_v16  ;;  %5744 = vmatmul.f32.gmra.mxu1 %v12355_v16  ;;  %v12423_v36 = vadd.f32 %v5109_v61, %v4528_v4  ;;  %v4421_v5 = vadd.f32 %v11758_v9, %v4082_v26  ;;  %v6916_v9 = vld [vmem:[%s13287_s5 + $0x268] sm:$0xff]  ;;  %v14687_v26 = vld [vmem:[#allocation293_spill] sm:$0xff] }
 0x963   :  { %v5445_v49 = vmax.f32 %v5404_v6, %v5405_v35  ;;  %5809 = vmatmul.f32.gmra.mxu2 %v12201_v10  ;;  %5874 = vmatmul.f32.gmra.mxu3 %v12201_v10  ;;  %v14679_v6 = vld [vmem:[#allocation46_spill] sm:$0xff]  ;;  %v14680_v35 = vld [vmem:[#allocation276_spill] sm:$0xff] }
 0x964   :  { %v4534_v59 = vadd.f32 %v11760_v44, %v4421_v5  ;;  %5957 = vmatpush.msrb.mxu0 %v6915_v11  ;;  %6022 = vmatpush.msrb.mxu1 %v6916_v9  ;;  %v4085_v45 = vadd.f32 %v14680_v35, %v14679_v6  ;;  %v4091_v5 = vadd.f32 %v14687_v26, %v14686_v28  ;;  %v14696_v26 = vld [vmem:[#allocation50_spill] sm:$0xff] }
 0x965   :  { %v5481_v52 = vadd.f32 %v11939_v42, %v5445_v49  ;;  %v14673_v42 = vld [vmem:[#allocation59_spill] sm:$0xff]  ;;  %v14681_v49 = vld [vmem:[#allocation94_spill] sm:$0xff] }
 0x966   :  { %v5221_v18 = vpop.f32.mrf.mxu2  ;;  %v5334_v31 = vpop.f32.mrf.mxu3  ;;  %v4079_v63 = vadd.f32 %v14674_v58, %v14673_v42  ;;  %6023 = vmatpush.msrb.mxu1 %v6914_v32  ;;  %v14684_v42 = vld [vmem:[#allocation62_spill] sm:$0xff] }
 0x967   :  { %v5513_v48 = vmax.f32 %v5481_v52, 0.0  ;;  %v5335_v0 = vadd.f32 %v5334_v31, %v5221_v18  ;;  %v4998_v17 = vpop.f32.mrf.mxu0  ;;  %v5111_v3 = vpop.f32.mrf.mxu1  ;;  %v4424_v52 = vadd.f32 %v14681_v49, %v4085_v45  ;;  %v4088_v58 = vadd.f32 %v14684_v42, %v14683_v2  ;;  %v6907_v49 = vld [vmem:[%s13287_s5 + $0x220] sm:$0xff]  ;;  %v14693_v2 = vld [vmem:[#allocation82_spill] sm:$0xff] }
 0x968   :  { %v4418_v34 = vadd.f32 %v14675_v53, %v4079_v63  ;;  %v5112_v50 = vadd.f32 %v5111_v3, %v4998_v17  ;;  %v6913_v3 = vld [vmem:[%s13287_s5 + $0x250] sm:$0xff] }
 0x969   :  { %v12421_v27 = vmax.f32 %v5509_v14, %v5513_v48  ;;  %v12426_v22 = vadd.f32 %v5335_v0, %v11745_v13  ;;  %v14682_v14 = vld [vmem:[#allocation324_spill] sm:$0xff]  ;;  %5958 = vmatpush.msrb.mxu0 %v6913_v3 }
 0x96a   :  { %5682 = vmatmul.f32.gmra.mxu0 %v12377_v47  ;;  %5747 = vmatmul.f32.gmra.mxu1 %v12377_v47  ;;  %v4531_v55 = vadd.f32 %v14676_v56, %v4418_v34  ;;  %v4537_v48 = vadd.f32 %v14682_v14, %v4424_v52  ;;  %v4427_v34 = vadd.f32 %v11786_v21, %v4088_v58  ;;  %v6912_v21 = vld [vmem:[%s13287_s5 + $0x248] sm:$0xff] }
 0x96b   :  { %v5446_v25 = vmax.f32 %v12423_v36, %v12426_v22  ;;  %5812 = vmatmul.f32.gmra.mxu2 %v12217_v46  ;;  %5877 = vmatmul.f32.gmra.mxu3 %v12217_v46  ;;  %v6908_v36 = vld [vmem:[%s13287_s5 + $0x228] sm:$0xff]  ;;  %v14690_v22 = vld [vmem:[#allocation96_spill] sm:$0xff] }
 0x96c   :  { %v12444_v29 = vadd.f32 %v5112_v50, %v4531_v55  ;;  %v14685_v55 = vld [vmem:[#allocation95_spill] sm:$0xff]  ;;  %6024 = vmatpush.msrb.mxu1 %v6912_v21 }
 0x96d   :  { %v14695_v21 = vld [vmem:[#allocation327_spill] sm:$0xff] }
 0x96e   :  { %v5224_v51 = vpop.f32.mrf.mxu2  ;;  %v5337_v62 = vpop.f32.mrf.mxu3  ;;  %6025 = vmatpush.msrb.mxu1 %v6910_v43 }
 0x96f   :  { %v5338_v13 = vadd.f32 %v5337_v62, %v5224_v51  ;;  %v5001_v30 = vpop.f32.mrf.mxu0  ;;  %v5114_v54 = vpop.f32.mrf.mxu1 }
 0x970   :  { %v5115_v57 = vadd.f32 %v5114_v54, %v5001_v30  ;;  %6026 = vmatpush.msrb.mxu1 %v6908_v36 }
 0x971   :  { %v12447_v37 = vadd.f32 %v5338_v13, %v11762_v19  ;;  %v4540_v13 = vadd.f32 %v14685_v55, %v4427_v34  ;;  %v6903_v34 = vld [vmem:[%s13287_s5 + $0x200] sm:$0xff] }
 0x972   :  { %5685 = vmatmul.f32.gmra.mxu0 %v12399_v12  ;;  %5750 = vmatmul.f32.gmra.mxu1 %v12399_v12  ;;  %v12465_v41 = vadd.f32 %v5115_v57, %v4534_v59  ;;  %v14689_v59 = vld [vmem:[#allocation325_spill] sm:$0xff] }
 0x973   :  { %v5447_v40 = vmax.f32 %v12444_v29, %v12447_v37  ;;  %5815 = vmatmul.f32.gmra.mxu2 %v12233_v15  ;;  %5880 = vmatmul.f32.gmra.mxu3 %v12233_v15 }
 0x976   :  { %v5227_v39 = vpop.f32.mrf.mxu2  ;;  %v5340_v1 = vpop.f32.mrf.mxu3 }
 0x977   :  { %v5341_v19 = vadd.f32 %v5340_v1, %v5227_v39  ;;  %v5004_v23 = vpop.f32.mrf.mxu0  ;;  %v5117_v20 = vpop.f32.mrf.mxu1  ;;  %v14688_v39 = vld [vmem:[#allocation326_spill] sm:$0xff] }
 0x978   :  { %v5118_v18 = vadd.f32 %v5117_v20, %v5004_v23  ;;  %v12516_v23 = vld [vmem:[%s13286_s4] ss:$0 sm:$0xff] }
 0x979   :  { %v12468_v44 = vadd.f32 %v5341_v19, %v11773_v38  ;;  %v4430_v19 = vadd.f32 %v14689_v59, %v4091_v5  ;;  %v5482_v20 = vadd.f32 %v12516_v23, %v5446_v25  ;;  %v5483_v55 = vadd.f32 %v12516_v23, %v5447_v40  ;;  %v14697_v5 = vld [vmem:[#allocation280_spill] sm:$0xff] }
 0x97a   :  { %5688 = vmatmul.f32.gmra.mxu0 %v12421_v27  ;;  %5753 = vmatmul.f32.gmra.mxu1 %v12421_v27  ;;  %v12486_v63 = vadd.f32 %v5118_v18, %v4537_v48  ;;  %v6905_v48 = vld [vmem:[%s13287_s5 + $0x210] sm:$0xff] }
 0x97b   :  { %v5448_v61 = vmax.f32 %v12465_v41, %v12468_v44  ;;  %5818 = vmatmul.f32.gmra.mxu2 %v12249_v7  ;;  %5883 = vmatmul.f32.gmra.mxu3 %v12249_v7  ;;  %v4543_v25 = vadd.f32 %v14690_v22, %v4430_v19  ;;  %v5514_v52 = vmax.f32 %v5482_v20, 0.0  ;;  %v5515_v37 = vmax.f32 %v5483_v55, 0.0  ;;  %v14699_v20 = vld [vmem:[#allocation312_spill] sm:$0xff]  ;;  %v14700_v22 = vld [vmem:[#allocation83_spill] sm:$0xff] }
 0x97e   :  { %v5230_v31 = vpop.f32.mrf.mxu2  ;;  %v5343_v4 = vpop.f32.mrf.mxu3 }
 0x97f   :  { %v5344_v38 = vadd.f32 %v5343_v4, %v5230_v31  ;;  %v5007_v0 = vpop.f32.mrf.mxu0  ;;  %v5120_v17 = vpop.f32.mrf.mxu1 }
 0x980   :  { %v5121_v51 = vadd.f32 %v5120_v17, %v5007_v0  ;;  %v14691_v0 = vld [vmem:[#allocation294_spill] sm:$0xff]  ;;  %v14692_v17 = vld [vmem:[#allocation65_spill] sm:$0xff] }
 0x981   :  { %v12489_v53 = vadd.f32 %v5344_v38, %v11790_v24  ;;  %v6911_v24 = vld [vmem:[%s13287_s5 + $0x240] sm:$0xff]  ;;  %v6906_v38 = vld [vmem:[%s13287_s5 + $0x218] sm:$0xff]  ;;  %v4094_v3 = vadd.f32 %v14692_v17, %v14691_v0 }
 0x982   :  { %5959 = vmatpush.msrb.mxu0 %v6911_v24  ;;  %v5414_v57 = vadd.f32 %v5121_v51, %v4540_v13  ;;  %6027 = vmatpush.msrb.mxu1 %v6906_v38  ;;  %v6904_v51 = vld [vmem:[%s13287_s5 + $0x208] sm:$0xff] }
 0x983   :  { %v5449_v50 = vmax.f32 %v12486_v63, %v12489_v53  ;;  %5821 = vmatmul.f32.gmra.mxu2 %v12355_v16  ;;  %5886 = vmatmul.f32.gmra.mxu3 %v12355_v16 }
 0x984   :  { %5960 = vmatpush.msrb.mxu0 %v6909_v33  ;;  %6028 = vmatpush.msrb.mxu1 %v6904_v51 }
 0x985   :  { %v5485_v38 = vadd.f32 %v12516_v23, %v5449_v50 }
 0x986   :  { %v5233_v62 = vpop.f32.mrf.mxu2  ;;  %v5346_v56 = vpop.f32.mrf.mxu3  ;;  %5961 = vmatpush.msrb.mxu0 %v6907_v49 }
 0x987   :  { %v5347_v30 = vadd.f32 %v5346_v56, %v5233_v62  ;;  %v5010_v54 = vpop.f32.mrf.mxu0  ;;  %v5123_v60 = vpop.f32.mrf.mxu1  ;;  %v14694_v62 = vld [vmem:[#allocation97_spill] sm:$0xff] }
 0x988   :  { %v5124_v6 = vadd.f32 %v5123_v60, %v5010_v54  ;;  %5962 = vmatpush.msrb.mxu0 %v6905_v48  ;;  %v4433_v56 = vadd.f32 %v14694_v62, %v4094_v3  ;;  %v5517_v3 = vmax.f32 %v5485_v38, 0.0 }
 0x989   :  { %v5415_v1 = vadd.f32 %v5347_v30, %v14688_v39 }
 0x98a   :  { %v5416_v32 = vadd.f32 %v5124_v6, %v4543_v25  ;;  %5963 = vmatpush.msrb.mxu0 %v6903_v34  ;;  %v4546_v29 = vadd.f32 %v14695_v21, %v4433_v56  ;;  %v6961_v21 = vld [vmem:[%s13289_s7 + $0x1d0] sm:$0xff] }
 0x98b   :  { %v5450_v11 = vmax.f32 %v5414_v57, %v5415_v1  ;;  %5824 = vmatmul.f32.gmra.mxu2 %v12377_v47  ;;  %5889 = vmatmul.f32.gmra.mxu3 %v12377_v47  ;;  %v4097_v57 = vadd.f32 %v14697_v5, %v14696_v26  ;;  %v14698_v1 = vld [vmem:[#allocation313_spill] sm:$0xff] }
 0x98d   :  { %v5486_v9 = vadd.f32 %v12516_v23, %v5450_v11  ;;  %v4436_v11 = vadd.f32 %v14699_v20, %v4097_v57 }
 0x98e   :  { %v5236_v35 = vpop.f32.mrf.mxu2  ;;  %v5349_v45 = vpop.f32.mrf.mxu3 }
 0x98f   :  { %v5518_v18 = vmax.f32 %v5486_v9, 0.0  ;;  %v5350_v31 = vadd.f32 %v5349_v45, %v5236_v35  ;;  %v5013_v4 = vpop.f32.mrf.mxu0  ;;  %v5126_v14 = vpop.f32.mrf.mxu1  ;;  %v5484_v9 = vadd.f32 %v12516_v23, %v5448_v61  ;;  %v4549_v25 = vadd.f32 %v14700_v22, %v4436_v11  ;;  %v6953_v22 = vld [vmem:[%s13289_s7 + $0x190] sm:$0xff] }
 0x990   :  { %v5127_v54 = vadd.f32 %v5126_v14, %v5013_v4  ;;  %v14701_v4 = vld [vmem:[#allocation98_spill] sm:$0xff] }
 0x991   :  { %v5417_v42 = vadd.f32 %v5350_v31, %v14693_v2  ;;  %v12541_v58 = vmax.f32 %v5514_v52, %v5518_v18  ;;  %v5516_v52 = vmax.f32 %v5484_v9, 0.0  ;;  %v6955_v9 = vld [vmem:[%s13289_s7 + $0x1a0] sm:$0xff] }
 0x992   :  { %v5418_v39 = vadd.f32 %v5127_v54, %v4546_v29  ;;  %v6962_v29 = vld [vmem:[%s13289_s7 + $0x1d8] sm:$0xff] }
 0x993   :  { %v5451_v13 = vmax.f32 %v5416_v32, %v5417_v42  ;;  %5691 = vmatmul.f32.gmra.mxu0 %v12541_v58  ;;  %5756 = vmatmul.f32.gmra.mxu1 %v12541_v58 }
 0x994   :  { %5827 = vmatmul.f32.gmra.mxu2 %v12399_v12  ;;  %5892 = vmatmul.f32.gmra.mxu3 %v12399_v12 }
 0x995   :  { %v5487_v30 = vadd.f32 %v12516_v23, %v5451_v13 }
 0x996   :  { %v5239_v60 = vpop.f32.mrf.mxu2  ;;  %v5352_v24 = vpop.f32.mrf.mxu3 }
 0x997   :  { %v5519_v40 = vmax.f32 %v5487_v30, 0.0  ;;  %v5353_v33 = vadd.f32 %v5352_v24, %v5239_v60  ;;  %v5016_v43 = vpop.f32.mrf.mxu0  ;;  %v5129_v28 = vpop.f32.mrf.mxu1  ;;  %v6964_v60 = vld [vmem:[%s13289_s7 + $0x1e8] sm:$0xff] }
 0x998   :  { %v5130_v45 = vadd.f32 %v5129_v28, %v5016_v43  ;;  %v6960_v43 = vld [vmem:[%s13289_s7 + $0x1c8] sm:$0xff] }
 0x999   :  { %v5419_v59 = vadd.f32 %v5353_v33, %v14698_v1  ;;  %v12563_v19 = vmax.f32 %v5515_v37, %v5519_v40  ;;  %v6959_v33 = vld [vmem:[%s13289_s7 + $0x1c0] sm:$0xff]  ;;  %v6958_v1 = vld [vmem:[%s13289_s7 + $0x1b8] sm:$0xff] }
 0x99a   :  { %v5420_v31 = vadd.f32 %v5130_v45, %v4549_v25  ;;  %v6954_v25 = vld [vmem:[%s13289_s7 + $0x198] sm:$0xff] }
 0x99b   :  { %v5452_v6 = vmax.f32 %v5418_v39, %v5419_v59  ;;  %5694 = vmatmul.f32.gmra.mxu0 %v12563_v19  ;;  %5759 = vmatmul.f32.gmra.mxu1 %v12563_v19  ;;  %v6957_v39 = vld [vmem:[%s13289_s7 + $0x1b0] sm:$0xff] }
 0x99c   :  { %5830 = vmatmul.f32.gmra.mxu2 %v12421_v27  ;;  %5895 = vmatmul.f32.gmra.mxu3 %v12421_v27 }
 0x99d   :  { %v5488_v35 = vadd.f32 %v12516_v23, %v5452_v6  ;;  %v6956_v6 = vld [vmem:[%s13289_s7 + $0x1a8] sm:$0xff] }
 0x99e   :  { %v5242_v49 = vpop.f32.mrf.mxu2  ;;  %v5355_v36 = vpop.f32.mrf.mxu3 }
 0x99f   :  { %v5520_v41 = vmax.f32 %v5488_v35, 0.0  ;;  %v5356_v44 = vadd.f32 %v5355_v36, %v5242_v49  ;;  %v12576_v61 = vpop.f32.mrf.mxu0  ;;  %v12578_v18 = vpop.f32.mrf.mxu1 }
 0x9a1   :  { %v5421_v14 = vadd.f32 %v5356_v44, %v14701_v4  ;;  %v12581_v48 = vmax.f32 %v5516_v52, %v5520_v41  ;;  %v6951_v44 = vld [vmem:[%s13289_s7 + $0x180] sm:$0xff]  ;;  %v6949_v4 = vld [vmem:[%s13289_s7 + $0x170] sm:$0xff] }
 0x9a3   :  { %v5453_v0 = vmax.f32 %v5420_v31, %v5421_v14  ;;  %5697 = vmatmul.f32.gmra.mxu0 %v12581_v48  ;;  %5762 = vmatmul.f32.gmra.mxu1 %v12581_v48  ;;  %v6952_v31 = vld [vmem:[%s13289_s7 + $0x188] sm:$0xff]  ;;  %v6950_v14 = vld [vmem:[%s13289_s7 + $0x178] sm:$0xff] }
 0x9a5   :  { %v5489_v17 = vadd.f32 %v12516_v23, %v5453_v0  ;;  %v6947_v0 = vld [vmem:[%s13289_s7 + $0x160] sm:$0xff] }
 0x9a6   :  { %v12686_v28 = vpop.f32.mrf.mxu2  ;;  %v12688_v26 = vpop.f32.mrf.mxu3 }
 0x9a7   :  { %v5521_v32 = vmax.f32 %v5489_v17, 0.0  ;;  %v12590_v2 = vpop.f32.mrf.mxu0  ;;  %v12592_v42 = vpop.f32.mrf.mxu1  ;;  %v6948_v17 = vld [vmem:[%s13289_s7 + $0x168] sm:$0xff] }
 0x9a9   :  { %v12594_v34 = vmax.f32 %v5517_v3, %v5521_v32 }
 0x9ab   :  { %5700 = vmatmul.f32.gmra.mxu0 %v12594_v34  ;;  %5765 = vmatmul.f32.gmra.mxu1 %v12594_v34 }
 0x9ae   :  { %v12706_v20 = vpop.f32.mrf.mxu2  ;;  %v12708_v11 = vpop.f32.mrf.mxu3 }
 0x9af   :  { %v12598_v63 = vpop.f32.mrf.mxu0  ;;  %v12600_v53 = vpop.f32.mrf.mxu1 }
 0x9b3   :  { %5964 = vmatmul.f32.vlgmr.msrb.gmra.mxu0 %v12201_v10  ;;  %6029 = vmatmul.f32.vlgmr.msrb.gmra.mxu1 %v12201_v10 }
 0x9b6   :  { %v12722_v49 = vpop.f32.mrf.mxu2  ;;  %v12724_v36 = vpop.f32.mrf.mxu3 }
 0x9b7   :  { %v12604_v50 = vpop.f32.mrf.mxu0  ;;  %v12606_v23 = vpop.f32.mrf.mxu1 }
 0x9bb   :  { %5967 = vmatmul.f32.gmra.mxu0 %v12217_v46  ;;  %6032 = vmatmul.f32.gmra.mxu1 %v12217_v46 }
 0x9be   :  { %v12754_v38 = vpop.f32.mrf.mxu3 }
 0x9bf   :  { %v12610_v51 = vpop.f32.mrf.mxu0  ;;  %v12612_v62 = vpop.f32.mrf.mxu1 }
 0x9c3   :  { %5970 = vmatmul.f32.gmra.mxu0 %v12233_v15  ;;  %6035 = vmatmul.f32.gmra.mxu1 %v12233_v15 }
 0x9c7   :  { %v12618_v10 = vpop.f32.mrf.mxu0  ;;  %v12620_v56 = vpop.f32.mrf.mxu1 }
 0x9cb   :  { %5973 = vmatmul.f32.gmra.mxu0 %v12249_v7  ;;  %6038 = vmatmul.f32.gmra.mxu1 %v12249_v7 }
 0x9cf   :  { %v12624_v46 = vpop.f32.mrf.mxu0  ;;  %v12626_v55 = vpop.f32.mrf.mxu1 }
 0x9d3   :  { %5976 = vmatmul.f32.gmra.mxu0 %v12355_v16  ;;  %6041 = vmatmul.f32.gmra.mxu1 %v12355_v16  ;;  %v6965_v16 = vld [vmem:[%s13289_s7 + $0x1f0] sm:$0xff] }
 0x9d4   :  { %6255 = vmatpush.msrb.mxu2 %v6965_v16  ;;  %v6946_v16 = vld [vmem:[%s13289_s7 + $0x158] sm:$0xff] }
 0x9d7   :  { %v12630_v15 = vpop.f32.mrf.mxu0  ;;  %v12632_v13 = vpop.f32.mrf.mxu1 }
 0x9db   :  { %5979 = vmatmul.f32.gmra.mxu0 %v12377_v47  ;;  %6044 = vmatmul.f32.gmra.mxu1 %v12377_v47  ;;  %v6966_v47 = vld [vmem:[%s13289_s7 + $0x1f8] sm:$0xff] }
 0x9dc   :  { %6294 = vmatpush.msrb.mxu3 %v6966_v47  ;;  %v6943_v47 = vld [vmem:[%s13289_s7 + $0x140] sm:$0xff] }
 0x9de   :  { %6295 = vmatpush.msrb.mxu3 %v6964_v60  ;;  %v6941_v60 = vld [vmem:[%s13289_s7 + $0x130] sm:$0xff] }
 0x9df   :  { %v12636_v7 = vpop.f32.mrf.mxu0  ;;  %v12638_v30 = vpop.f32.mrf.mxu1 }
 0x9e0   :  { %6296 = vmatpush.msrb.mxu3 %v6962_v29  ;;  %v6939_v29 = vld [vmem:[%s13289_s7 + $0x120] sm:$0xff] }
 0x9e2   :  { %6297 = vmatpush.msrb.mxu3 %v6960_v43 }
 0x9e3   :  { %5982 = vmatmul.f32.gmra.mxu0 %v12399_v12  ;;  %6047 = vmatmul.f32.gmra.mxu1 %v12399_v12 }
 0x9e4   :  { %6298 = vmatpush.msrb.mxu3 %v6958_v1 }
 0x9e6   :  { %6299 = vmatpush.msrb.mxu3 %v6956_v6  ;;  %v6937_v6 = vld [vmem:[%s13289_s7 + $0x110] sm:$0xff] }
 0x9e7   :  { %v12650_v12 = vpop.f32.mrf.mxu0  ;;  %v12652_v54 = vpop.f32.mrf.mxu1 }
 0x9e8   :  { %6300 = vmatpush.msrb.mxu3 %v6954_v25  ;;  %v6935_v25 = vld [vmem:[%s13289_s7 + $0x100] sm:$0xff] }
 0x9ea   :  { %6301 = vmatpush.msrb.mxu3 %v6952_v31 }
 0x9eb   :  { %5985 = vmatmul.f32.gmra.mxu0 %v12421_v27  ;;  %6050 = vmatmul.f32.gmra.mxu1 %v12421_v27  ;;  %v6963_v27 = vld [vmem:[%s13289_s7 + $0x1e0] sm:$0xff] }
 0x9ec   :  { %6256 = vmatpush.msrb.mxu2 %v6963_v27  ;;  %6302 = vmatpush.msrb.mxu3 %v6950_v14  ;;  %v6944_v27 = vld [vmem:[%s13289_s7 + $0x148] sm:$0xff] }
 0x9ee   :  { %6257 = vmatpush.msrb.mxu2 %v6961_v21  ;;  %6303 = vmatpush.msrb.mxu3 %v6948_v17  ;;  %v6942_v21 = vld [vmem:[%s13289_s7 + $0x138] sm:$0xff]  ;;  %v12801_v17 = vld [vmem:[%s13289_s7 + $0x2f0] sm:$0xff] }
 0x9ef   :  { %v12662_v24 = vpop.f32.mrf.mxu0  ;;  %6452 = vmatpush.msra.mxu0 %v12801_v17 }
 0x9f0   :  { %6258 = vmatpush.msrb.mxu2 %v6959_v33  ;;  %6304 = vmatpush.msrb.mxu3 %v6946_v16  ;;  %v6940_v33 = vld [vmem:[%s13289_s7 + $0x128] sm:$0xff] }
 0x9f2   :  { %6259 = vmatpush.msrb.mxu2 %v6957_v39  ;;  %6305 = vmatpush.msrb.mxu3 %v6944_v27  ;;  %v5863_v39 = vpop.f32.mrf.mxu3  ;;  %v5787_v27 = vadd.f32 %v12686_v28, %v12576_v61 }
 0x9f3   :  { %5988 = vmatmul.f32.gmra.mxu0 %v12541_v58  ;;  %6053 = vmatmul.f32.gmra.mxu1 %v12541_v58  ;;  %v12664_v58 = vpop.f32.mrf.mxu1 }
 0x9f4   :  { %6260 = vmatpush.msrb.mxu2 %v6955_v9  ;;  %6306 = vmatpush.msrb.mxu3 %v6942_v21  ;;  %v12821_v21 = vld [vmem:[%s13289_s7 + $0x2e0] sm:$0xff] }
 0x9f5   :  { %6453 = vmatpush.msra.mxu0 %v12821_v21 }
 0x9f6   :  { %6261 = vmatpush.msrb.mxu2 %v6953_v22  ;;  %6307 = vmatpush.msrb.mxu3 %v6940_v33  ;;  %v6938_v22 = vld [vmem:[%s13289_s7 + $0x118] sm:$0xff] }
 0x9f7   :  { %v12674_v37 = vpop.f32.mrf.mxu0 }
 0x9f8   :  { %6262 = vmatpush.msrb.mxu2 %v6951_v44  ;;  %6308 = vmatpush.msrb.mxu3 %v6938_v22  ;;  %v6936_v44 = vld [vmem:[%s13289_s7 + $0x108] sm:$0xff] }
 0x9fa   :  { %6263 = vmatpush.msrb.mxu2 %v6949_v4  ;;  %6309 = vmatpush.msrb.mxu3 %v6936_v44 }
 0x9fb   :  { %5991 = vmatmul.f32.gmra.mxu0 %v12563_v19  ;;  %6056 = vmatmul.f32.gmra.mxu1 %v12563_v19  ;;  %v12676_v40 = vpop.f32.mrf.mxu1 }
 0x9fc   :  { %6264 = vmatpush.msrb.mxu2 %v6947_v0  ;;  %v5866_v0 = vpop.f32.mrf.mxu3 }
 0xa03   :  { %5994 = vmatmul.f32.gmra.mxu0 %v12581_v48  ;;  %6059 = vmatmul.f32.gmra.mxu1 %v12581_v48  ;;  %v12752_v48 = vpop.f32.mrf.mxu2 }
 0xa0b   :  { %5997 = vmatmul.f32.gmra.mxu0 %v12594_v34  ;;  %6062 = vmatmul.f32.gmra.mxu1 %v12594_v34  ;;  %v6945_v34 = vld [vmem:[%s13289_s7 + $0x150] sm:$0xff]  ;;  %v5798_v43 = vpop.f32.mrf.mxu2 }
 0xa0c   :  { %6265 = vmatpush.msrb.mxu2 %v6945_v34  ;;  %v12806_v34 = vld [vmem:[%s13289_s7 + $0x2f8] sm:$0xff] }
 0xa0d   :  { %6491 = vmatpush.msra.mxu1 %v12806_v34 }
 0xa0e   :  { %6266 = vmatpush.msrb.mxu2 %v6943_v47 }
 0xa10   :  { %v12690_v5 = vpop.f32.mrf.mxu0  ;;  %v12692_v57 = vpop.f32.mrf.mxu1  ;;  %6267 = vmatpush.msrb.mxu2 %v6941_v60  ;;  %v5852_v60 = vadd.f32 %v12688_v26, %v12578_v18  ;;  %v5799_v18 = vadd.f32 %v5798_v43, %v12610_v51  ;;  %v5864_v26 = vadd.f32 %v5863_v39, %v12612_v62  ;;  %v12844_v51 = vld [vmem:[%s13289_s7 + $0x2d0] sm:$0xff]  ;;  %v12849_v62 = vld [vmem:[%s13289_s7 + $0x2d8] sm:$0xff] }
 0xa11   :  { %6454 = vmatpush.msra.mxu0 %v12844_v51 }
 0xa12   :  { %6268 = vmatpush.msrb.mxu2 %v6939_v29  ;;  %v12826_v29 = vld [vmem:[%s13289_s7 + $0x2e8] sm:$0xff] }
 0xa13   :  { %6000 = vmatmul.f32.gmra.mxu0 %v14622_v8  ;;  %6065 = vmatmul.f32.gmra.mxu1 %v14622_v8  ;;  %v5801_v14 = vpop.f32.mrf.mxu2 }
 0xa14   :  { %6269 = vmatpush.msrb.mxu2 %v6937_v6  ;;  %6492 = vmatpush.msra.mxu1 %v12826_v29  ;;  %v5869_v6 = vpop.f32.mrf.mxu3 }
 0xa16   :  { %6270 = vmatpush.msrb.mxu2 %v6935_v25  ;;  %v12835_v25 = vld [vmem:[%s13288_s6] ss:$0 sm:$0xff]  ;;  %6493 = vmatpush.msra.mxu1 %v12849_v62 }
 0xa18   :  { %v12702_v59 = vpop.f32.mrf.mxu0  ;;  %v12704_v19 = vpop.f32.mrf.mxu1 }
 0xa1b   :  { %6003 = vmatmul.f32.gmra.mxu0 %v14622_v8  ;;  %6068 = vmatmul.f32.gmra.mxu1 %v14622_v8  ;;  %v5804_v33 = vpop.f32.mrf.mxu2 }
 0xa1c   :  { %v5872_v43 = vpop.f32.mrf.mxu3 }
 0xa20   :  { %v12718_v35 = vpop.f32.mrf.mxu0  ;;  %v12720_v45 = vpop.f32.mrf.mxu1 }
 0xa23   :  { %6006 = vmatmul.f32.gmra.mxu0 %v14622_v8  ;;  %6071 = vmatmul.f32.gmra.mxu1 %v14622_v8 }
 0xa28   :  { %v12734_v52 = vpop.f32.mrf.mxu0  ;;  %v12736_v41 = vpop.f32.mrf.mxu1 }
 0xa29   :  { %14702 = vst [vmem:[#allocation328_spill] sm:$0xff] %v12734_v52  ;;  %v5855_v52 = vadd.f32 %v12708_v11, %v12592_v42 }
 0xa2a   :  { %14703 = vst [vmem:[#allocation99_spill] sm:$0xff] %v12736_v41  ;;  %v5790_v41 = vadd.f32 %v12706_v20, %v12590_v2 }
 0xa2b   :  { %6009 = vmatmul.f32.gmra.mxu0 %v14622_v8  ;;  %6074 = vmatmul.f32.gmra.mxu1 %v14622_v8 }
 0xa30   :  { %v5965_v3 = vpop.f32.mrf.mxu0  ;;  %v6030_v32 = vpop.f32.mrf.mxu1 }
 0xa31   :  { %v6078_v61 = vadd.f32 %v5965_v3, %v5787_v27  ;;  %v6079_v28 = vadd.f32 %v6030_v32, %v5852_v60  ;;  %v5802_v27 = vadd.f32 %v5801_v14, %v12618_v10  ;;  %v5867_v60 = vadd.f32 %v5866_v0, %v12620_v56 }
 0xa32   :  { %v5858_v10 = vadd.f32 %v12724_v36, %v12600_v53  ;;  %v5870_v36 = vadd.f32 %v5869_v6, %v12626_v55  ;;  %v5861_v6 = vadd.f32 %v12754_v38, %v12606_v23  ;;  %v12913_v23 = vld [vmem:[%s13289_s7 + $0x2a0] sm:$0xff]  ;;  %v12918_v38 = vld [vmem:[%s13289_s7 + $0x2a8] sm:$0xff] }
 0xa33   :  { %v6110_v22 = vmax.f32 %v6078_v61, %v6079_v28 }
 0xa35   :  { %v6130_v2 = vadd.f32 %v12835_v25, %v6110_v22 }
 0xa37   :  { %v6146_v61 = vmax.f32 %v6130_v2, 0.0 }
 0xa38   :  { %v5968_v1 = vpop.f32.mrf.mxu0  ;;  %v6033_v9 = vpop.f32.mrf.mxu1 }
 0xa39   :  { %v6080_v20 = vadd.f32 %v5968_v1, %v5790_v41  ;;  %v6081_v42 = vadd.f32 %v6033_v9, %v5855_v52  ;;  %v12865_v52 = vld [vmem:[%s13289_s7 + $0x2c8] sm:$0xff]  ;;  %v5793_v41 = vadd.f32 %v12722_v49, %v12598_v63  ;;  %v5805_v49 = vadd.f32 %v5804_v33, %v12624_v46 }
 0xa3a   :  { %6494 = vmatpush.msra.mxu1 %v12865_v52  ;;  %v5796_v46 = vadd.f32 %v12752_v48, %v12604_v50 }
 0xa3b   :  { %v6111_v28 = vmax.f32 %v6080_v20, %v6081_v42  ;;  %v12883_v20 = vpop.f32.mrf.mxu3  ;;  %v12888_v42 = vld [vmem:[%s13289_s7 + $0x2b0] sm:$0xff] }
 0xa40   :  { %v5971_v31 = vpop.f32.mrf.mxu0  ;;  %v6036_v4 = vpop.f32.mrf.mxu1 }
 0xa41   :  { %v6082_v22 = vadd.f32 %v5971_v31, %v5793_v41 }
 0xa48   :  { %v12810_v16 = vpop.f32.mrf.mxu0  ;;  %v12812_v47 = vpop.f32.mrf.mxu1 }
 0xa50   :  { %v5977_v44 = vpop.f32.mrf.mxu0  ;;  %v6042_v8 = vpop.f32.mrf.mxu1 }
 0xa51   :  { %v6086_v3 = vadd.f32 %v5977_v44, %v5799_v18  ;;  %v6087_v32 = vadd.f32 %v6042_v8, %v5864_v26  ;;  %v5807_v8 = vpop.f32.mrf.mxu2  ;;  %v12860_v26 = vld [vmem:[%s13289_s7 + $0x2c0] sm:$0xff]  ;;  %v6083_v44 = vadd.f32 %v6036_v4, %v5858_v10 }
 0xa52   :  { %6455 = vmatpush.msra.mxu0 %v12860_v26  ;;  %v5808_v41 = vadd.f32 %v5807_v8, %v12630_v15 }
 0xa53   :  { %v6114_v11 = vmax.f32 %v6086_v3, %v6087_v32  ;;  %v6131_v3 = vadd.f32 %v12835_v25, %v6111_v28  ;;  %v6112_v53 = vmax.f32 %v6082_v22, %v6083_v44  ;;  %v6084_v28 = vadd.f32 %v12810_v16, %v5796_v46  ;;  %v12977_v46 = vld [vmem:[%s13289_s7 + $0x268] sm:$0xff] }
 0xa54   :  { %6456 = vmatpush.msra.mxu0 %v12888_v42  ;;  %v5873_v16 = vadd.f32 %v5872_v43, %v12632_v13  ;;  %v12935_v43 = vpop.f32.mrf.mxu3 }
 0xa55   :  { %v6134_v39 = vadd.f32 %v12835_v25, %v6114_v11  ;;  %v6147_v31 = vmax.f32 %v6131_v3, 0.0  ;;  %v12893_v11 = vld [vmem:[%s13289_s7 + $0x2b8] sm:$0xff]  ;;  %v12944_v3 = vld [vmem:[%s13289_s7 + $0x280] sm:$0xff] }
 0xa56   :  { %6495 = vmatpush.msra.mxu1 %v12893_v11  ;;  %6457 = vmatpush.msra.mxu0 %v12913_v23 }
 0xa57   :  { %v6150_v18 = vmax.f32 %v6134_v39, 0.0 }
 0xa58   :  { %v5980_v56 = vpop.f32.mrf.mxu0  ;;  %v6045_v1 = vpop.f32.mrf.mxu1  ;;  %6496 = vmatpush.msra.mxu1 %v12918_v38 }
 0xa59   :  { %v12873_v9 = vmax.f32 %v6146_v61, %v6150_v18  ;;  %v6088_v14 = vadd.f32 %v5980_v56, %v5802_v27  ;;  %v6089_v0 = vadd.f32 %v6045_v1, %v5867_v60  ;;  %v12881_v2 = vpop.f32.mrf.mxu2  ;;  %v6132_v61 = vadd.f32 %v12835_v25, %v6112_v53  ;;  %v12926_v1 = vld [vmem:[%s13289_s7 + $0x290] sm:$0xff] }
 0xa5a   :  { %v6085_v18 = vadd.f32 %v12812_v47, %v5861_v6  ;;  %6458 = vmatpush.msra.mxu0 %v12926_v1 }
 0xa5b   :  { %14704 = vst [vmem:[#allocation329_spill] sm:$0xff] %v12873_v9  ;;  %v6115_v32 = vmax.f32 %v6088_v14, %v6089_v0  ;;  %6271 = vmatmul.f32.vlgmr.msrb.gmra.mxu2 %v12873_v9  ;;  %6310 = vmatmul.f32.vlgmr.msrb.gmra.mxu3 %v12873_v9  ;;  %v6148_v47 = vmax.f32 %v6132_v61, 0.0  ;;  %v12931_v14 = vld [vmem:[%s13289_s7 + $0x298] sm:$0xff]  ;;  %v6212_v9 = vld [vmem:[%s13289_s7 + $0xd0] sm:$0xff] }
 0xa5c   :  { %v6113_v10 = vmax.f32 %v6084_v28, %v6085_v18  ;;  %6497 = vmatpush.msra.mxu1 %v12931_v14  ;;  %6459 = vmatpush.msra.mxu0 %v12944_v3  ;;  %v12993_v61 = vld [vmem:[%s13289_s7 + $0x258] sm:$0xff]  ;;  %v13002_v18 = vld [vmem:[%s13289_s7 + $0x240] sm:$0xff] }
 0xa5d   :  { %v6135_v63 = vadd.f32 %v12835_v25, %v6115_v32  ;;  %v12949_v32 = vld [vmem:[%s13289_s7 + $0x288] sm:$0xff] }
 0xa5e   :  { %6498 = vmatpush.msra.mxu1 %v12949_v32 }
 0xa5f   :  { %v6151_v4 = vmax.f32 %v6135_v63, 0.0  ;;  %v6133_v63 = vadd.f32 %v12835_v25, %v6113_v10  ;;  %v13032_v10 = vld [vmem:[%s13289_s7 + $0x220] sm:$0xff] }
 0xa60   :  { %v5983_v55 = vpop.f32.mrf.mxu0  ;;  %v6048_v33 = vpop.f32.mrf.mxu1  ;;  %14709 = vst [vmem:[#allocation86_spill] sm:$0xff] %v13032_v10 }
 0xa61   :  { %v12901_v39 = vmax.f32 %v6147_v31, %v6151_v4  ;;  %v6090_v27 = vadd.f32 %v5983_v55, %v5805_v49  ;;  %v6091_v60 = vadd.f32 %v6048_v33, %v5870_v36  ;;  %v12933_v13 = vpop.f32.mrf.mxu2  ;;  %v12959_v49 = vld [vmem:[%s13289_s7 + $0x270] sm:$0xff]  ;;  %v12964_v36 = vld [vmem:[%s13289_s7 + $0x278] sm:$0xff]  ;;  %v12972_v4 = vld [vmem:[%s13289_s7 + $0x260] sm:$0xff]  ;;  %v6149_v55 = vmax.f32 %v6133_v63, 0.0 }
 0xa62   :  { %6460 = vmatpush.msra.mxu0 %v12959_v49  ;;  %6499 = vmatpush.msra.mxu1 %v12964_v36  ;;  %v6216_v63 = vld [vmem:[%s13289_s7 + $0xf0] sm:$0xff] }
 0xa63   :  { %14705 = vst [vmem:[#allocation100_spill] sm:$0xff] %v12901_v39  ;;  %v6116_v50 = vmax.f32 %v6090_v27, %v6091_v60  ;;  %6274 = vmatmul.f32.gmra.mxu2 %v12901_v39  ;;  %6313 = vmatmul.f32.gmra.mxu3 %v12901_v39  ;;  %v12988_v60 = vld [vmem:[%s13289_s7 + $0x250] sm:$0xff] }
 0xa64   :  { %6461 = vmatpush.msra.mxu0 %v12972_v4  ;;  %6500 = vmatpush.msra.mxu1 %v12977_v46 }
 0xa65   :  { %v6136_v48 = vadd.f32 %v12835_v25, %v6116_v50  ;;  %v13007_v50 = vld [vmem:[%s13289_s7 + $0x248] sm:$0xff]  ;;  %6333 = vmatpush.msra.mxu2 %v6216_v63 }
 0xa66   :  { %6462 = vmatpush.msra.mxu0 %v12988_v60  ;;  %6501 = vmatpush.msra.mxu1 %v12993_v61 }
 0xa67   :  { %v6152_v56 = vmax.f32 %v6136_v48, 0.0 }
 0xa68   :  { %v5986_v15 = vpop.f32.mrf.mxu0  ;;  %v6051_v8 = vpop.f32.mrf.mxu1  ;;  %6463 = vmatpush.msra.mxu0 %v13002_v18  ;;  %6502 = vmatpush.msra.mxu1 %v13007_v50 }
 0xa69   :  { %v12937_v0 = vmax.f32 %v6148_v47, %v6152_v56  ;;  %v6092_v22 = vadd.f32 %v5986_v15, %v5808_v41  ;;  %v6093_v44 = vadd.f32 %v6051_v8, %v5873_v16  ;;  %v13009_v48 = vpop.f32.mrf.mxu2  ;;  %v13011_v41 = vpop.f32.mrf.mxu3  ;;  %v13020_v16 = vld [vmem:[%s13289_s7 + $0x230] sm:$0xff]  ;;  %v13025_v47 = vld [vmem:[%s13289_s7 + $0x238] sm:$0xff]  ;;  %v13037_v56 = vld [vmem:[%s13289_s7 + $0x228] sm:$0xff] }
 0xa6a   :  { %14708 = vst [vmem:[#allocation331_spill] sm:$0xff] %v13025_v47  ;;  %6464 = vmatpush.msra.mxu0 %v13020_v16  ;;  %6503 = vmatpush.msra.mxu1 %v13025_v47  ;;  %v6205_v47 = vld [vmem:[%s13289_s7 + $0x98] sm:$0xff] }
 0xa6b   :  { %14706 = vst [vmem:[#allocation330_spill] sm:$0xff] %v12937_v0  ;;  %v6117_v53 = vmax.f32 %v6092_v22, %v6093_v44  ;;  %6277 = vmatmul.f32.gmra.mxu2 %v12937_v0  ;;  %6316 = vmatmul.f32.gmra.mxu3 %v12937_v0  ;;  %v13048_v22 = vld [vmem:[%s13289_s7 + $0x210] sm:$0xff]  ;;  %v13053_v44 = vld [vmem:[%s13289_s7 + $0x218] sm:$0xff] }
 0xa6c   :  { %14710 = vst [vmem:[#allocation316_spill] sm:$0xff] %v13037_v56  ;;  %6465 = vmatpush.msra.mxu0 %v13032_v10  ;;  %6504 = vmatpush.msra.mxu1 %v13037_v56  ;;  %v5876_v56 = vadd.f32 %v12883_v20, %v12638_v30  ;;  %v6204_v10 = vld [vmem:[%s13289_s7 + $0x90] sm:$0xff]  ;;  %v6202_v30 = vld [vmem:[%s13289_s7 + $0x80] sm:$0xff] }
 0xa6d   :  { %v6137_v31 = vadd.f32 %v12835_v25, %v6117_v53  ;;  %14711 = vst [vmem:[#allocation87_spill] sm:$0xff] %v13048_v22  ;;  %v6217_v53 = vld [vmem:[%s13289_s7 + $0xf8] sm:$0xff]  ;;  %v6200_v20 = vld [vmem:[%s13289_s7 + $0x70] sm:$0xff] }
 0xa6e   :  { %14712 = vst [vmem:[#allocation317_spill] sm:$0xff] %v13053_v44  ;;  %6372 = vmatpush.msra.mxu3 %v6217_v53  ;;  %6466 = vmatpush.msra.mxu0 %v13048_v22  ;;  %v5811_v22 = vadd.f32 %v12881_v2, %v12636_v7  ;;  %v6203_v2 = vld [vmem:[%s13289_s7 + $0x88] sm:$0xff] }
 0xa6f   :  { %v6153_v33 = vmax.f32 %v6137_v31, 0.0  ;;  %v6214_v31 = vld [vmem:[%s13289_s7 + $0xe0] sm:$0xff]  ;;  %6505 = vmatpush.msra.mxu1 %v13053_v44  ;;  %v6209_v44 = vld [vmem:[%s13289_s7 + $0xb8] sm:$0xff] }
 0xa70   :  { %v12979_v6 = vpop.f32.mrf.mxu0  ;;  %v12981_v27 = vpop.f32.mrf.mxu1  ;;  %6334 = vmatpush.msra.mxu2 %v6214_v31  ;;  %v6213_v31 = vld [vmem:[%s13289_s7 + $0xd8] sm:$0xff] }
 0xa71   :  { %v12995_v28 = vmax.f32 %v6149_v55, %v6153_v33  ;;  %v6215_v55 = vld [vmem:[%s13289_s7 + $0xe8] sm:$0xff]  ;;  %v13070_v33 = vld [vmem:[%s13289_s7 + $0x200] sm:$0xff]  ;;  %v13079_v63 = vpop.f32.mrf.mxu2  ;;  %v13081_v53 = vpop.f32.mrf.mxu3  ;;  %v6095_v7 = vadd.f32 %v12981_v27, %v5876_v56 }
 0xa72   :  { %14713 = vst [vmem:[#allocation102_spill] sm:$0xff] %v13070_v33  ;;  %6373 = vmatpush.msra.mxu3 %v6215_v55  ;;  %6467 = vmatpush.msra.mxu0 %v13070_v33  ;;  %v6210_v55 = vld [vmem:[%s13289_s7 + $0xc0] sm:$0xff]  ;;  %v6208_v33 = vld [vmem:[%s13289_s7 + $0xb0] sm:$0xff] }
 0xa73   :  { %14707 = vst [vmem:[#allocation101_spill] sm:$0xff] %v12995_v28  ;;  %6280 = vmatmul.f32.gmra.mxu2 %v12995_v28  ;;  %6319 = vmatmul.f32.gmra.mxu3 %v12995_v28  ;;  %v13075_v28 = vld [vmem:[%s13289_s7 + $0x208] sm:$0xff] }
 0xa74   :  { %14714 = vst [vmem:[#allocation332_spill] sm:$0xff] %v13075_v28  ;;  %6506 = vmatpush.msra.mxu1 %v13075_v28  ;;  %6335 = vmatpush.msra.mxu2 %v6212_v9  ;;  %v6211_v28 = vld [vmem:[%s13289_s7 + $0xc8] sm:$0xff]  ;;  %v6206_v9 = vld [vmem:[%s13289_s7 + $0xa0] sm:$0xff] }
 0xa75   :  { %6374 = vmatpush.msra.mxu3 %v6213_v31  ;;  %v6207_v31 = vld [vmem:[%s13289_s7 + $0xa8] sm:$0xff] }
 0xa76   :  { %6336 = vmatpush.msra.mxu2 %v6210_v55 }
 0xa77   :  { %6375 = vmatpush.msra.mxu3 %v6211_v28 }
 0xa78   :  { %v13039_v15 = vpop.f32.mrf.mxu0  ;;  %v13041_v8 = vpop.f32.mrf.mxu1  ;;  %6337 = vmatpush.msra.mxu2 %v6208_v33 }
 0xa79   :  { %6376 = vmatpush.msra.mxu3 %v6209_v44  ;;  %v5822_v55 = vpop.f32.mrf.mxu2  ;;  %v5887_v28 = vpop.f32.mrf.mxu3 }
 0xa7a   :  { %6338 = vmatpush.msra.mxu2 %v6206_v9  ;;  %v6094_v9 = vadd.f32 %v12979_v6, %v5811_v22  ;;  %v6201_v6 = vld [vmem:[%s13289_s7 + $0x78] sm:$0xff]  ;;  %v5823_v56 = vadd.f32 %v5822_v55, %v12690_v5  ;;  %v5888_v22 = vadd.f32 %v5887_v28, %v12692_v57  ;;  %v5879_v5 = vadd.f32 %v12935_v43, %v12652_v54 }
 0xa7b   :  { %6377 = vmatpush.msra.mxu3 %v6207_v31  ;;  %v5814_v31 = vadd.f32 %v12933_v13, %v12650_v12  ;;  %v6194_v12 = vld [vmem:[%s13289_s7 + $0x40] sm:$0xff]  ;;  %v6195_v13 = vld [vmem:[%s13289_s7 + $0x48] sm:$0xff] }
 0xa7c   :  { %6339 = vmatpush.msra.mxu2 %v6204_v10  ;;  %v6118_v27 = vmax.f32 %v6094_v9, %v6095_v7  ;;  %v6199_v10 = vld [vmem:[%s13289_s7 + $0x68] sm:$0xff]  ;;  %v6196_v9 = vld [vmem:[%s13289_s7 + $0x50] sm:$0xff]  ;;  %v6197_v7 = vld [vmem:[%s13289_s7 + $0x58] sm:$0xff]  ;;  %v6097_v54 = vadd.f32 %v13041_v8, %v5879_v5 }
 0xa7d   :  { %6378 = vmatpush.msra.mxu3 %v6205_v47  ;;  %v6198_v47 = vld [vmem:[%s13289_s7 + $0x60] sm:$0xff] }
 0xa7e   :  { %6340 = vmatpush.msra.mxu2 %v6202_v30 }
 0xa7f   :  { %6379 = vmatpush.msra.mxu3 %v6203_v2 }
 0xa80   :  { %v13085_v0 = vpop.f32.mrf.mxu0  ;;  %v13087_v39 = vpop.f32.mrf.mxu1  ;;  %6341 = vmatpush.msra.mxu2 %v6200_v20 }
 0xa81   :  { %6380 = vmatpush.msra.mxu3 %v6201_v6  ;;  %v5825_v55 = vpop.f32.mrf.mxu2  ;;  %v5890_v20 = vpop.f32.mrf.mxu3  ;;  %v6138_v6 = vadd.f32 %v12835_v25, %v6118_v27 }
 0xa82   :  { %6342 = vmatpush.msra.mxu2 %v6198_v47  ;;  %v6096_v47 = vadd.f32 %v13039_v15, %v5814_v31  ;;  %v6191_v15 = vld [vmem:[%s13289_s7 + $0x28] sm:$0xff]  ;;  %v5826_v8 = vadd.f32 %v5825_v55, %v12702_v59  ;;  %v6188_v31 = vld [vmem:[%s13289_s7 + $0x10] sm:$0xff]  ;;  %v5882_v59 = vadd.f32 %v13011_v41, %v12664_v58 }
 0xa83   :  { %6381 = vmatpush.msra.mxu3 %v6199_v10  ;;  %v6192_v10 = vld [vmem:[%s13289_s7 + $0x30] sm:$0xff] }
 0xa84   :  { %6343 = vmatpush.msra.mxu2 %v6196_v9  ;;  %v6154_v9 = vmax.f32 %v6138_v6, 0.0  ;;  %v6186_v6 = vld [vmem:[%s13289_s7] sm:$0xff] }
 0xa85   :  { %6382 = vmatpush.msra.mxu3 %v6197_v7  ;;  %v6119_v7 = vmax.f32 %v6096_v47, %v6097_v54 }
 0xa86   :  { %6344 = vmatpush.msra.mxu2 %v6194_v12 }
 0xa87   :  { %6383 = vmatpush.msra.mxu3 %v6195_v13 }
 0xa88   :  { %v13117_v33 = vpop.f32.mrf.mxu0  ;;  %v13119_v44 = vpop.f32.mrf.mxu1  ;;  %6345 = vmatpush.msra.mxu2 %v6192_v10 }
 0xa89   :  { %v5828_v58 = vpop.f32.mrf.mxu2  ;;  %v5893_v47 = vpop.f32.mrf.mxu3 }
 0xa8a   :  { %v5829_v54 = vadd.f32 %v5828_v58, %v12718_v35  ;;  %v5894_v10 = vadd.f32 %v5893_v47, %v12720_v45 }
 0xa90   :  { %v6001_v30 = vpop.f32.mrf.mxu0  ;;  %v6066_v2 = vpop.f32.mrf.mxu1 }
 0xa91   :  { %v6102_v57 = vadd.f32 %v6001_v30, %v5823_v56  ;;  %v6103_v28 = vadd.f32 %v6066_v2, %v5888_v22  ;;  %v6193_v56 = vld [vmem:[%s13289_s7 + $0x38] sm:$0xff]  ;;  %v6190_v22 = vld [vmem:[%s13289_s7 + $0x20] sm:$0xff]  ;;  %v5891_v2 = vadd.f32 %v5890_v20, %v12704_v19  ;;  %v6099_v20 = vadd.f32 %v13087_v39, %v5882_v59 }
 0xa92   :  { %6384 = vmatpush.msra.mxu3 %v6193_v56  ;;  %v6189_v30 = vld [vmem:[%s13289_s7 + $0x18] sm:$0xff]  ;;  %6346 = vmatpush.msra.mxu2 %v6190_v22 }
 0xa93   :  { %v6122_v43 = vmax.f32 %v6102_v57, %v6103_v28  ;;  %v5817_v57 = vadd.f32 %v13009_v48, %v12662_v24  ;;  %v6187_v24 = vld [vmem:[%s13289_s7 + $0x8] sm:$0xff]  ;;  %v6139_v48 = vadd.f32 %v12835_v25, %v6119_v7 }
 0xa94   :  { %6385 = vmatpush.msra.mxu3 %v6191_v15  ;;  %6347 = vmatpush.msra.mxu2 %v6188_v31 }
 0xa95   :  { %v6142_v27 = vadd.f32 %v12835_v25, %v6122_v43  ;;  %v6098_v19 = vadd.f32 %v13085_v0, %v5817_v57  ;;  %v6155_v56 = vmax.f32 %v6139_v48, 0.0 }
 0xa96   :  { %6386 = vmatpush.msra.mxu3 %v6189_v30  ;;  %6348 = vmatpush.msra.mxu2 %v6186_v6 }
 0xa97   :  { %v6158_v5 = vmax.f32 %v6142_v27, 0.0  ;;  %v6120_v39 = vmax.f32 %v6098_v19, %v6099_v20  ;;  %v5820_v27 = vadd.f32 %v13079_v63, %v12674_v37 }
 0xa98   :  { %v6004_v55 = vpop.f32.mrf.mxu0  ;;  %v6069_v28 = vpop.f32.mrf.mxu1  ;;  %6387 = vmatpush.msra.mxu3 %v6187_v24  ;;  %7015 = vmatpush.msrb.mxu2 %v12806_v34 }
 0xa99   :  { %v6170_v12 = vmax.f32 %v6154_v9, %v6158_v5  ;;  %v6104_v13 = vadd.f32 %v6004_v55, %v5826_v8  ;;  %v6105_v43 = vadd.f32 %v6069_v28, %v5891_v2  ;;  %v6140_v35 = vadd.f32 %v12835_v25, %v6120_v39 }
 0xa9a   :  { %6999 = vmatpush.msrb.mxu3 %v12801_v17  ;;  %7016 = vmatpush.msrb.mxu2 %v12826_v29  ;;  %v5885_v17 = vadd.f32 %v13081_v53, %v12676_v40  ;;  %v6100_v37 = vadd.f32 %v13117_v33, %v5820_v27  ;;  %v5896_v29 = vpop.f32.mrf.mxu3 }
 0xa9b   :  { %v6123_v41 = vmax.f32 %v6104_v13, %v6105_v43  ;;  %6282 = vmatmul.f32.gmra.mxu2 %v6170_v12  ;;  %6321 = vmatmul.f32.gmra.mxu3 %v6170_v12  ;;  %v6156_v33 = vmax.f32 %v6140_v35, 0.0  ;;  %v14728_v43 = vld [vmem:[#allocation101_spill] sm:$0xff] }
 0xa9c   :  { %6468 = vmatmul.f32.vlgmr.msra.gmra.mxu0 %v6170_v12  ;;  %6507 = vmatmul.f32.vlgmr.msra.gmra.mxu1 %v6170_v12  ;;  %v6101_v45 = vadd.f32 %v13119_v44, %v5885_v17 }
 0xa9d   :  { %v6143_v0 = vadd.f32 %v12835_v25, %v6123_v41  ;;  %7000 = vmatpush.msrb.mxu3 %v12821_v21  ;;  %7017 = vmatpush.msrb.mxu2 %v12849_v62  ;;  %v5831_v21 = vpop.f32.mrf.mxu2  ;;  %v14716_v62 = vld [vmem:[#allocation99_spill] sm:$0xff] }
 0xa9e   :  { %v5897_v2 = vadd.f32 %v5896_v29, %v14716_v62  ;;  %v6121_v9 = vmax.f32 %v6100_v37, %v6101_v45 }
 0xa9f   :  { %v6159_v22 = vmax.f32 %v6143_v0, 0.0  ;;  %7001 = vmatpush.msrb.mxu3 %v12844_v51  ;;  %7018 = vmatpush.msrb.mxu2 %v12865_v52  ;;  %v14715_v51 = vld [vmem:[#allocation328_spill] sm:$0xff] }
 0xaa0   :  { %v6007_v15 = vpop.f32.mrf.mxu0  ;;  %v6072_v8 = vpop.f32.mrf.mxu1  ;;  %v5832_v53 = vadd.f32 %v5831_v21, %v14715_v51 }
 0xaa1   :  { %v6171_v31 = vmax.f32 %v6155_v56, %v6159_v22  ;;  %v6106_v34 = vadd.f32 %v6007_v15, %v5829_v54  ;;  %v6107_v30 = vadd.f32 %v6072_v8, %v5894_v10  ;;  %7002 = vmatpush.msrb.mxu3 %v12860_v26  ;;  %7019 = vmatpush.msrb.mxu2 %v12893_v11 }
 0xaa2   :  { %v6141_v26 = vadd.f32 %v12835_v25, %v6121_v9 }
 0xaa3   :  { %v6124_v63 = vmax.f32 %v6106_v34, %v6107_v30  ;;  %6285 = vmatmul.f32.gmra.mxu2 %v6171_v31  ;;  %6324 = vmatmul.f32.gmra.mxu3 %v6171_v31 }
 0xaa4   :  { %6471 = vmatmul.f32.gmra.mxu0 %v6171_v31  ;;  %6510 = vmatmul.f32.gmra.mxu1 %v6171_v31  ;;  %v6157_v11 = vmax.f32 %v6141_v26, 0.0 }
 0xaa5   :  { %v6144_v40 = vadd.f32 %v12835_v25, %v6124_v63  ;;  %7003 = vmatpush.msrb.mxu3 %v12888_v42  ;;  %7020 = vmatpush.msrb.mxu2 %v12918_v38  ;;  %v14718_v38 = vld [vmem:[#allocation331_spill] sm:$0xff] }
 0xaa7   :  { %v6160_v44 = vmax.f32 %v6144_v40, 0.0  ;;  %7004 = vmatpush.msrb.mxu3 %v12913_v23  ;;  %7021 = vmatpush.msrb.mxu2 %v12931_v14  ;;  %v14720_v14 = vld [vmem:[#allocation316_spill] sm:$0xff] }
 0xaa8   :  { %v6010_v7 = vpop.f32.mrf.mxu0  ;;  %v6075_v5 = vpop.f32.mrf.mxu1 }
 0xaa9   :  { %v6172_v57 = vmax.f32 %v6156_v33, %v6160_v44  ;;  %v6108_v59 = vadd.f32 %v6010_v7, %v5832_v53  ;;  %v6109_v55 = vadd.f32 %v6075_v5, %v5897_v2  ;;  %7005 = vmatpush.msrb.mxu3 %v12926_v1  ;;  %7022 = vmatpush.msrb.mxu2 %v12949_v32  ;;  %v14719_v1 = vld [vmem:[#allocation86_spill] sm:$0xff]  ;;  %v14722_v32 = vld [vmem:[#allocation317_spill] sm:$0xff] }
 0xaab   :  { %v6125_v52 = vmax.f32 %v6108_v59, %v6109_v55  ;;  %6288 = vmatmul.f32.gmra.mxu2 %v6172_v57  ;;  %6327 = vmatmul.f32.gmra.mxu3 %v6172_v57 }
 0xaac   :  { %6474 = vmatmul.f32.gmra.mxu0 %v6172_v57  ;;  %6513 = vmatmul.f32.gmra.mxu1 %v6172_v57 }
 0xaad   :  { %v6145_v42 = vadd.f32 %v12835_v25, %v6125_v52  ;;  %7006 = vmatpush.msrb.mxu3 %v12944_v3  ;;  %7023 = vmatpush.msrb.mxu2 %v12964_v36  ;;  %v14717_v25 = vmov 0.0   ;;  %v14721_v3 = vld [vmem:[#allocation87_spill] sm:$0xff]  ;;  %v14724_v36 = vld [vmem:[#allocation332_spill] sm:$0xff] }
 0xaaf   :  { %v6161_v28 = vmax.f32 %v6145_v42, 0.0  ;;  %7007 = vmatpush.msrb.mxu3 %v12959_v49  ;;  %7024 = vmatpush.msrb.mxu2 %v12977_v46  ;;  %v14723_v49 = vld [vmem:[#allocation102_spill] sm:$0xff] }
 0xab1   :  { %v6173_v23 = vmax.f32 %v6157_v11, %v6161_v28  ;;  %7008 = vmatpush.msrb.mxu3 %v12972_v4  ;;  %7025 = vmatpush.msrb.mxu2 %v12993_v61  ;;  %v14725_v4 = vld [vmem:[#allocation329_spill] sm:$0xff]  ;;  %v14726_v61 = vld [vmem:[#allocation100_spill] sm:$0xff] }
 0xab3   :  { %6291 = vmatmul.f32.gmra.mxu2 %v6173_v23  ;;  %6330 = vmatmul.f32.gmra.mxu3 %v6173_v23 }
 0xab4   :  { %6477 = vmatmul.f32.gmra.mxu0 %v6173_v23  ;;  %6516 = vmatmul.f32.gmra.mxu1 %v6173_v23  ;;  %v7034_v23 = vld [vmem:[%s13290_s8] ss:$0 sm:$0xff] }
 0xab5   :  { %7009 = vmatpush.msrb.mxu3 %v12988_v60  ;;  %7026 = vmatpush.msrb.mxu2 %v13007_v50 }
 0xab7   :  { %7010 = vmatpush.msrb.mxu3 %v13002_v18  ;;  %7027 = vmatpush.msrb.mxu2 %v14718_v38 }
 0xab9   :  { %7011 = vmatpush.msrb.mxu3 %v13020_v16  ;;  %7028 = vmatpush.msrb.mxu2 %v14720_v14  ;;  %v14727_v16 = vld [vmem:[#allocation330_spill] sm:$0xff] }
 0xabb   :  { %6349 = vmatmul.f32.vlgmr.msra.gmra.mxu2 %v14717_v25  ;;  %6388 = vmatmul.f32.vlgmr.msra.gmra.mxu3 %v14717_v25 }
 0xabc   :  { %6479 = vmatmul.f32.gmra.mxu0 %v14717_v25  ;;  %6518 = vmatmul.f32.gmra.mxu1 %v14717_v25 }
 0xabd   :  { %7012 = vmatpush.msrb.mxu3 %v14719_v1  ;;  %7029 = vmatpush.msrb.mxu2 %v14722_v32 }
 0xabf   :  { %7013 = vmatpush.msrb.mxu3 %v14721_v3  ;;  %7030 = vmatpush.msrb.mxu2 %v14724_v36 }
 0xac1   :  { %7014 = vmatpush.msrb.mxu3 %v14723_v49 }
 0xac3   :  { %6352 = vmatmul.f32.gmra.mxu2 %v14717_v25  ;;  %6391 = vmatmul.f32.gmra.mxu3 %v14717_v25 }
 0xacb   :  { %6355 = vmatmul.f32.gmra.mxu2 %v14717_v25  ;;  %6394 = vmatmul.f32.gmra.mxu3 %v14717_v25 }
 0xad3   :  { %6358 = vmatmul.f32.gmra.mxu2 %v14717_v25  ;;  %6397 = vmatmul.f32.gmra.mxu3 %v14717_v25 }
 0xadb   :  { %6360 = vmatmul.f32.gmra.mxu2 %v14725_v4  ;;  %6399 = vmatmul.f32.gmra.mxu3 %v14725_v4 }
 0xade   :  { %v6272_v46 = vpop.f32.mrf.mxu2  ;;  %v6311_v60 = vpop.f32.mrf.mxu3 }
 0xae3   :  { %6363 = vmatmul.f32.gmra.mxu2 %v14726_v61  ;;  %6402 = vmatmul.f32.gmra.mxu3 %v14726_v61 }
 0xae6   :  { %v6275_v18 = vpop.f32.mrf.mxu2  ;;  %v6314_v50 = vpop.f32.mrf.mxu3 }
 0xaeb   :  { %6366 = vmatmul.f32.gmra.mxu2 %v14727_v16  ;;  %6405 = vmatmul.f32.gmra.mxu3 %v14727_v16 }
 0xaee   :  { %v6278_v12 = vpop.f32.mrf.mxu2  ;;  %v6317_v13 = vpop.f32.mrf.mxu3 }
 0xaf3   :  { %6369 = vmatmul.f32.gmra.mxu2 %v14728_v43  ;;  %6408 = vmatmul.f32.gmra.mxu3 %v14728_v43 }
 0xaf6   :  { %v6281_v19 = vpop.f32.mrf.mxu2  ;;  %v6320_v20 = vpop.f32.mrf.mxu3 }
 0xafb   :  { %6482 = vmatmul.f32.vlgmr.msrb.gmra.mxu3 %v14717_v25  ;;  %6521 = vmatmul.f32.vlgmr.msrb.gmra.mxu2 %v14717_v25 }
 0xb03   :  { %6485 = vmatmul.f32.gmra.mxu3 %v14717_v25  ;;  %6524 = vmatmul.f32.gmra.mxu2 %v14717_v25 }
 0xb0b   :  { %6527 = vmatmul.f32.gmra.mxu2 %v14717_v25  ;;  %6488 = vmatmul.f32.gmra.mxu3 %v14717_v25 }
 0xb19   :  { %v6469_v6 = vpop.f32.mrf.mxu0  ;;  %v6508_v24 = vpop.f32.mrf.mxu1 }
 0xb1e   :  { %v6283_v58 = vpop.f32.mrf.mxu2  ;;  %v6322_v48 = vpop.f32.mrf.mxu3 }
 0xb21   :  { %v6472_v41 = vpop.f32.mrf.mxu0  ;;  %v6511_v47 = vpop.f32.mrf.mxu1 }
 0xb26   :  { %v6286_v0 = vpop.f32.mrf.mxu2  ;;  %v6325_v39 = vpop.f32.mrf.mxu3 }
 0xb29   :  { %v6475_v54 = vpop.f32.mrf.mxu0  ;;  %v6514_v10 = vpop.f32.mrf.mxu1 }
 0xb2e   :  { %v6289_v56 = vpop.f32.mrf.mxu2  ;;  %v6328_v22 = vpop.f32.mrf.mxu3 }
 0xb31   :  { %v6478_v27 = vpop.f32.mrf.mxu0  ;;  %v6517_v15 = vpop.f32.mrf.mxu1 }
 0xb36   :  { %v6292_v8 = vpop.f32.mrf.mxu2  ;;  %v6331_v17 = vpop.f32.mrf.mxu3 }
 0xb39   :  { %v6480_v52 = vpop.f32.mrf.mxu0  ;;  %v6519_v42 = vpop.f32.mrf.mxu1 }
 0xb3e   :  { %v6350_v31 = vpop.f32.mrf.mxu2  ;;  %v6389_v34 = vpop.f32.mrf.mxu3 }
 0xb3f   :  { %v6351_v30 = vadd.f32 %v6350_v31, %v6272_v46  ;;  %v6390_v35 = vadd.f32 %v6389_v34, %v6311_v60 }
 0xb41   :  { %v6530_v37 = vadd.f32 %v6469_v6, %v6351_v30  ;;  %v6531_v45 = vadd.f32 %v6508_v24, %v6390_v35 }
 0xb43   :  { %v6542_v63 = vmax.f32 %v6530_v37, %v6531_v45 }
 0xb45   :  { %v6552_v32 = vadd.f32 %v7034_v23, %v6542_v63 }
 0xb46   :  { %v6353_v21 = vpop.f32.mrf.mxu2  ;;  %v6392_v40 = vpop.f32.mrf.mxu3 }
 0xb47   :  { %v6354_v29 = vadd.f32 %v6353_v21, %v6275_v18  ;;  %v6393_v51 = vadd.f32 %v6392_v40, %v6314_v50  ;;  %v6558_v61 = vmax.f32 %v6552_v32, 0.0 }
 0xb49   :  { %v6532_v53 = vadd.f32 %v6472_v41, %v6354_v29  ;;  %v6533_v62 = vadd.f32 %v6511_v47, %v6393_v51 }
 0xb4b   :  { %v6543_v2 = vmax.f32 %v6532_v53, %v6533_v62 }
 0xb4d   :  { %v6553_v47 = vadd.f32 %v7034_v23, %v6543_v2 }
 0xb4e   :  { %v6356_v33 = vpop.f32.mrf.mxu2  ;;  %v6395_v9 = vpop.f32.mrf.mxu3 }
 0xb4f   :  { %v6357_v44 = vadd.f32 %v6356_v33, %v6278_v12  ;;  %v6396_v7 = vadd.f32 %v6395_v9, %v6317_v13 }
 0xb51   :  { %v6534_v5 = vadd.f32 %v6475_v54, %v6357_v44  ;;  %v6535_v57 = vadd.f32 %v6514_v10, %v6396_v7 }
 0xb53   :  { %v6544_v59 = vmax.f32 %v6534_v5, %v6535_v57 }
 0xb55   :  { %v6554_v34 = vadd.f32 %v7034_v23, %v6544_v59 }
 0xb56   :  { %v6359_v55 = vpop.f32.mrf.mxu2  ;;  %v6398_v26 = vpop.f32.mrf.mxu3 }
 0xb57   :  { %v6560_v35 = vmax.f32 %v6554_v34, 0.0 }
 0xb5e   :  { %v6361_v11 = vpop.f32.mrf.mxu2  ;;  %v6400_v28 = vpop.f32.mrf.mxu3 }
 0xb5f   :  { %v6362_v25 = vadd.f32 %v6361_v11, %v6283_v58  ;;  %v6401_v38 = vadd.f32 %v6400_v28, %v6322_v48 }
 0xb61   :  { %v6536_v1 = vadd.f32 %v6480_v52, %v6362_v25  ;;  %v6537_v14 = vadd.f32 %v6519_v42, %v6401_v38 }
 0xb63   :  { %v6545_v3 = vmax.f32 %v6536_v1, %v6537_v14 }
 0xb65   :  { %v6555_v49 = vadd.f32 %v7034_v23, %v6545_v3 }
 0xb66   :  { %v6364_v36 = vpop.f32.mrf.mxu2  ;;  %v6403_v4 = vpop.f32.mrf.mxu3 }
 0xb67   :  { %v6365_v46 = vadd.f32 %v6364_v36, %v6286_v0  ;;  %v6404_v60 = vadd.f32 %v6403_v4, %v6325_v39  ;;  %v6561_v18 = vmax.f32 %v6555_v49, 0.0  ;;  %v6559_v0 = vmax.f32 %v6553_v47, 0.0 }
 0xb69   :  { %v6564_v50 = vmax.f32 %v6558_v61, %v6561_v18 }
 0xb6b   :  { %v6567_v16 = vmul.f32 %v6564_v50, %v6564_v50 }
 0xb6d   :  { %6568 = vadd.xlane.f32.xlu0 %v6567_v16 }
 0xb6e   :  { %v6367_v12 = vpop.f32.mrf.mxu2  ;;  %v6406_v13 = vpop.f32.mrf.mxu3 }
 0xb6f   :  { %v6368_v43 = vadd.f32 %v6367_v12, %v6289_v56  ;;  %v6407_v19 = vadd.f32 %v6406_v13, %v6328_v22 }
 0xb76   :  { %v6370_v20 = vpop.f32.mrf.mxu2  ;;  %v6409_v6 = vpop.f32.mrf.mxu3 }
 0xb7e   :  { %v6483_v24 = vpop.f32.mrf.mxu3  ;;  %v6522_v58 = vpop.f32.mrf.mxu2 }
 0xb7f   :  { %v6538_v48 = vadd.f32 %v6483_v24, %v6365_v46  ;;  %v6539_v41 = vadd.f32 %v6522_v58, %v6404_v60 }
 0xb81   :  { %v6546_v54 = vmax.f32 %v6538_v48, %v6539_v41 }
 0xb83   :  { %v6556_v10 = vadd.f32 %v7034_v23, %v6546_v54 }
 0xb85   :  { %v6562_v39 = vmax.f32 %v6556_v10, 0.0 }
 0xb86   :  { %v6486_v27 = vpop.f32.mrf.mxu3  ;;  %v6525_v15 = vpop.f32.mrf.mxu2 }
 0xb87   :  { %v6565_v8 = vmax.f32 %v6559_v0, %v6562_v39  ;;  %v6540_v17 = vadd.f32 %v6486_v27, %v6368_v43  ;;  %v6541_v31 = vadd.f32 %v6525_v15, %v6407_v19 }
 0xb89   :  { %v6547_v30 = vmax.f32 %v6540_v17, %v6541_v31  ;;  %v6582_v7 = vmul.f32 0.0625, %v6565_v8 }
 0xb8b   :  { %v6557_v56 = vadd.f32 %v7034_v23, %v6547_v30 }
 0xb8d   :  { %v6563_v22 = vmax.f32 %v6557_v56, 0.0 }
 0xb8e   :  { %v6528_v37 = vpop.f32.mrf.mxu2  ;;  %v6489_v45 = vpop.f32.mrf.mxu3 }
 0xb8f   :  { %v6566_v63 = vmax.f32 %v6560_v35, %v6563_v22 }
 0xb91   :  { %v6583_v5 = vmul.f32 0.0625, %v6566_v63 }
 0xbe0   :  { %v6569_v21 = vpop.xlane.xlu0 %6568 }
 0xbe1   :  { %v6570_v40 = vmax.f32 %v6569_v21, 1e-24 }
 0xbe3   :  { %7035 = vrsqrt.f32 %v6570_v40  ;;  %vm6577_vm1 = vweird.f32 %v6570_v40 }
 0xbe9   :  { %v7036_v29 = vpop.eup %7035 }
 0xbea   :  { %v6572_v51 = vmul.f32 %v7036_v29, %v6570_v40  ;;  %vm6578_vm0 = vweird.f32 %v7036_v29 }
 0xbeb   :  { %vm6579_vm2 = vmor %vm6577_vm1, %vm6578_vm0 }
 0xbec   :  { %v6573_v53 = vmul.f32 %v7036_v29, %v6572_v51 }
 0xbee   :  { %v6574_v62 = vmul.f32 0.5, %v6573_v53 }
 0xbf0   :  { %v6575_v2 = vsub.f32 1.5, %v6574_v62 }
 0xbf2   :  { %v6576_v33 = vmul.f32 %v7036_v29, %v6575_v2 }
 0xbf4   :  { %v6580_v9 = vsel %vm6579_vm2, %v7036_v29, %v6576_v33 }
 0xbf5   :  { %v6581_v44 = vmul.f32 %v6580_v9, %v6564_v50 }
 0xbf7   :  { %6599 = vmatpush.xpose.msra.mxu2 %v6581_v44 }
 0xbfa   :  { %6600 = vmatmul.f32.vlgmr.msra.gmra.mxu2 %v6582_v7 }
 0xc02   :  { %6603 = vmatmul.f32.gmra.mxu2 %v6583_v5 }
 0xc7d   :  { %v6601_v57 = vpop.f32.mrf.mxu2 }
 0xc7e   :  { %6608 = vst.msk [vmem:[%s13291_s9] sm:$0xff] %vm6607_vm3, %v6601_v57 }
 0xc85   :  { %v6604_v59 = vpop.f32.mrf.mxu2 }
 0xc86   :  { %6610 = vst.msk [vmem:[%s13291_s9 + $0x8] sm:$0x7f] %vm6609_vm4, %v6604_v59 }

</bundles_post_ra>
